<compile_context>
chip_gen: v7x
topology: tpu7x:2x2x1
jax: 0.10.0
libtpu: 0.0.40
codegen_flags: <defaults>
</compile_context>

<pallas_src>
import jax
import jax.numpy as jnp
from jax.experimental import pallas as pl
from jax.experimental.pallas import tpu as pltpu

_H1 = 26        # conv1 output spatial size (28 - 3 + 1)
_P1 = 680       # padded flat-spatial rows for y1 (676 real + 4 zero pad)
_ROWS2 = 624    # 24 * 26 flat conv2 rows (cols 24,25 of each row are junk)
_HALF = 312     # _ROWS2 // 2 (rows after the oj-pair max)


# ---------------------------------------------------------------------------
# Kernel 1: conv1 + ReLU + conv2 + ReLU + 2x2 max-pool, block_b elements/step.
# ---------------------------------------------------------------------------
def _conv_pool_kernel(p1_ref, w1_ref, b1_ref, w2_ref, b2_ref, o_ref,
                      y1_scr, y2_scr, m1_scr):
    bb = p1_ref.shape[0]
    b2 = b2_ref[...]                                           # (1, 64) f32

    for e in range(bb):
        # conv1 + ReLU: (680, 9) @ (9, 32), bf16 operands, f32 accumulate.
        y1 = jnp.dot(p1_ref[e], w1_ref[...],
                     preferred_element_type=jnp.float32)
        y1 = jnp.maximum(y1 + b1_ref[...], 0.0)
        y1_scr[...] = y1.astype(jnp.bfloat16)

        # conv2 as a SINGLE K=288 matmul.  Flat-spatial shift trick:
        # output row p = oi*26 + oj reads y1 rows p + di*26 + dj; rows with
        # oj in {24,25} are junk and never pooled.  The 9 shifted (624,32)
        # slices are concatenated along lanes -> (624, 288) im2col.
        taps = [y1_scr[pl.ds(di * _H1 + dj, _ROWS2), :]
                for di in range(3) for dj in range(3)]
        a = jnp.concatenate(taps, axis=-1)                     # (624, 288) bf16
        y2_scr[...] = jnp.dot(a, w2_ref[...],
                              preferred_element_type=jnp.float32)

        # 2x2 max-pool + bias + ReLU (bias/ReLU commute with max).
        # Step 1: oj-pair max via two whole-height stride-2 slices.
        ev = y2_scr[pl.ds(0, _HALF, stride=2), :]              # oj even
        od = y2_scr[pl.ds(1, _HALF, stride=2), :]              # oj odd
        m1_scr[...] = jnp.maximum(ev, od)                      # row q = oi*13+pw

        # Step 2: oi-pair max via pairs of contiguous (12, 64) reads.
        for ph in range(12):
            top = m1_scr[pl.ds(26 * ph, 12), :]                # oi = 2*ph
            bot = m1_scr[pl.ds(26 * ph + 13, 12), :]           # oi = 2*ph + 1
            pooled = jnp.maximum(jnp.maximum(top, bot) + b2, 0.0)
            o_ref[e, pl.ds(ph * 12, 12), :] = pooled.astype(o_ref.dtype)


def _pick_bb(n):
    # Amortize per-grid-step overhead, but keep grid length >= 2 so the
    # "parallel" batch axis can still feed both v7x TensorCores.
    for bb in (8, 4, 2):
        if n % bb == 0 and n // bb >= 2:
            return bb
    return 1


def conv_pool(p1, w1, b1, w2, b2, *, block_b=None):
    n = p1.shape[0]
    bb = _pick_bb(n) if block_b is None else block_b
    assert n % bb == 0, (n, bb)
    return pl.pallas_call(
        _conv_pool_kernel,
        out_shape=jax.ShapeDtypeStruct((n, 144, 64), jnp.bfloat16),
        grid=(n // bb,),
        in_specs=[
            pl.BlockSpec((bb, _P1, 9), lambda b: (b, 0, 0)),
            pl.BlockSpec((9, 32), lambda b: (0, 0)),
            pl.BlockSpec((1, 32), lambda b: (0, 0)),
            pl.BlockSpec((288, 64), lambda b: (0, 0)),
            pl.BlockSpec((1, 64), lambda b: (0, 0)),
        ],
        out_specs=pl.BlockSpec((bb, 144, 64), lambda b: (b, 0, 0)),
        scratch_shapes=[
            pltpu.VMEM((_P1, 32), jnp.bfloat16),     # y1 (conv1 activations)
            pltpu.VMEM((_ROWS2, 64), jnp.float32),   # conv2 result (1 write)
            pltpu.VMEM((_HALF, 64), jnp.float32),    # oj-pair max
        ],
        compiler_params=pltpu.CompilerParams(
            dimension_semantics=("parallel",)),
    )(p1, w1, b1, w2, b2)


# ---------------------------------------------------------------------------
# Kernel 2: fc1 (K-tiled, int8 weight-only) + ReLU + fc2 + log_softmax.
# ---------------------------------------------------------------------------
def _head_kernel(x_ref, w1_ref, s1_ref, b1_ref, w2_ref, b2_ref, o_ref,
                 acc_ref):
    k = pl.program_id(1)

    @pl.when(k == 0)
    def _():
        acc_ref[...] = jnp.zeros_like(acc_ref)

    # int8 -> bf16 is exact (|q| <= 127); per-column scale is applied once on
    # the accumulator in the finalize step, not per weight element.
    w = w1_ref[...].astype(jnp.float32).astype(jnp.bfloat16)
    acc_ref[...] += jnp.dot(x_ref[...], w,
                            preferred_element_type=jnp.float32)

    @pl.when(k == pl.num_programs(1) - 1)
    def _():
        h = jnp.maximum(acc_ref[...] * s1_ref[...] + b1_ref[...], 0.0)
        z = jnp.dot(h, w2_ref[...], preferred_element_type=jnp.float32)
        z = z + b2_ref[...]                                    # (tn, 10)
        m = jnp.max(z, axis=-1, keepdims=True)
        lse = jnp.log(jnp.sum(jnp.exp(z - m), axis=-1, keepdims=True)) + m
        o_ref[...] = (z - lse).astype(o_ref.dtype)


def mlp_head(flat, w1_q, s1, b1, w2, b2, *, tk=4608, tile_n=None):
    n, K = flat.shape
    assert K % tk == 0, (K, tk)      # no silently-dropped remainder
    kt = K // tk
    tn = (n if n <= 256 else 256) if tile_n is None else tile_n
    assert n % tn == 0, (n, tn)
    return pl.pallas_call(
        _head_kernel,
        out_shape=jax.ShapeDtypeStruct((n, 10), jnp.float32),
        grid=(n // tn, kt),
        in_specs=[
            pl.BlockSpec((tn, tk), lambda i, k: (i, k)),
            pl.BlockSpec((tk, 128), lambda i, k: (k, 0)),
            pl.BlockSpec((1, 128), lambda i, k: (0, 0)),
            pl.BlockSpec((1, 128), lambda i, k: (0, 0)),
            pl.BlockSpec((128, 10), lambda i, k: (0, 0)),
            pl.BlockSpec((1, 10), lambda i, k: (0, 0)),
        ],
        out_specs=pl.BlockSpec((tn, 10), lambda i, k: (i, 0)),
        scratch_shapes=[pltpu.VMEM((tn, 128), jnp.float32)],
        compiler_params=pltpu.CompilerParams(
            dimension_semantics=("parallel", "arbitrary")),
    )(flat, w1_q, s1, b1, w2, b2)


# ---------------------------------------------------------------------------
# One-time parameter layout prep (hoisted out of the per-call path).
# ---------------------------------------------------------------------------
def prepare_params(params):
    c1w, c1b, c2w, c2b, f1w, f1b, f2w, f2b = params
    w1 = jnp.transpose(c1w, (2, 3, 1, 0)).reshape(9, 32).astype(jnp.bfloat16)
    b1 = c1b.reshape(1, 32).astype(jnp.float32)
    # conv2 weights tap-major -> (288, 64) so the kernel does one K=288 dot.
    w2 = (jnp.transpose(c2w, (2, 3, 1, 0))
          .reshape(288, 64).astype(jnp.bfloat16))
    b2 = c2b.reshape(1, 64).astype(jnp.float32)

    # fc1: transpose to (9216, 128) AND permute rows from PyTorch NCHW
    # flatten order (c*144 + h*12 + w) to the pooled NHWC order
    # (h*768 + w*64 + c); then int8 weight-only quantize (per-column scale).
    f1 = f1w.reshape(128, 64, 12, 12)                          # (o, c, h, w)
    f1 = (jnp.transpose(f1, (2, 3, 1, 0))
          .reshape(9216, 128).astype(jnp.float32))
    s1 = jnp.max(jnp.abs(f1), axis=0, keepdims=True) / 127.0   # (1, 128)
    s1 = jnp.where(s1 > 0, s1, 1.0).astype(jnp.float32)
    f1_q = jnp.clip(jnp.round(f1 / s1), -127.0, 127.0).astype(jnp.int8)
    fb1 = f1b.reshape(1, 128).astype(jnp.float32)

    f2 = jnp.transpose(f2w).astype(jnp.float32)                # (128, 10)
    fb2 = f2b.reshape(1, 10).astype(jnp.float32)
    return (w1, b1, w2, b2, f1_q, s1, fb1, f2, fb2)


@jax.jit
def net_forward(x_nchw, prepped):
    w1, b1, w2, b2, f1_q, s1, fb1, f2, fb2 = prepped
    n = x_nchw.shape[0]
    x = x_nchw.reshape(n, 28, 28)
    # Tiny wrapper-side im2col for conv1 only (~48 KB); tap order (di, dj).
    cols = [x[:, di:di + 26, dj:dj + 26].reshape(n, 676, 1)
            for di in range(3) for dj in range(3)]
    p1 = jnp.concatenate(cols, axis=-1)                        # (n, 676, 9)
    p1 = jnp.pad(p1, ((0, 0), (0, _P1 - 676), (0, 0))).astype(jnp.bfloat16)

    # dropout1 / dropout2: identity in eval mode.
    pooled = conv_pool(p1, w1, b1, w2, b2)                     # (n, 144, 64)
    flat = pooled.reshape(n, 144 * 64)                         # (n, 9216)
    return mlp_head(flat, f1_q, s1, fb1, f2, fb2)              # (n, 10)


# ---------------------------------------------------------------------------
if __name__ == "__main__":
    key = jax.random.PRNGKey(0)
    ks = jax.random.split(key, 9)

    # Batch of 2; 28x28 input is dictated by fc1 (64 * 12 * 12 = 9216).
    x = jax.random.normal(ks[0], (2, 1, 28, 28), dtype=jnp.float32)

    # Deterministic synthetic parameters (PyTorch layouts: OIHW / (out, in)).
    params = (
        jax.random.normal(ks[1], (32, 1, 3, 3), jnp.float32) * 0.1,    # conv1.w
        jax.random.normal(ks[2], (32,), jnp.float32) * 0.1,            # conv1.b
        jax.random.normal(ks[3], (64, 32, 3, 3), jnp.float32) * 0.05,  # conv2.w
        jax.random.normal(ks[4], (64,), jnp.float32) * 0.05,           # conv2.b
        jax.random.normal(ks[5], (128, 9216), jnp.float32) * 0.01,     # fc1.w
        jax.random.normal(ks[6], (128,), jnp.float32) * 0.01,          # fc1.b
        jax.random.normal(ks[7], (10, 128), jnp.float32) * 0.05,       # fc2.w
        jax.random.normal(ks[8], (10,), jnp.float32) * 0.05,           # fc2.b
    )

    prepped = prepare_params(params)
    out = net_forward(x, prepped)
    out = jax.block_until_ready(out)

    assert out.shape == (2, 10), out.shape
    assert bool(jnp.all(jnp.isfinite(out)))
    # log_softmax rows must exponentiate to ~1
    assert bool(jnp.allclose(jnp.sum(jnp.exp(out), axis=1), 1.0, atol=1e-4))

    print("KERNEL_OK")
</pallas_src>

<mosaic_0001>
module attributes {stable_mosaic.version = 11 : i64} {
  func.func @_conv_pool_kernel(%arg0: i32, %arg1: memref<1x680x9xbf16, #tpu.memory_space<vmem>>, %arg2: memref<9x32xbf16, #tpu.memory_space<vmem>>, %arg3: memref<1x32xf32, #tpu.memory_space<vmem>>, %arg4: memref<288x64xbf16, #tpu.memory_space<vmem>>, %arg5: memref<1x64xf32, #tpu.memory_space<vmem>>, %arg6: memref<1x144x64xbf16, #tpu.memory_space<vmem>>, %arg7: memref<680x32xbf16, #tpu.memory_space<vmem>>, %arg8: memref<624x64xf32, #tpu.memory_space<vmem>>, %arg9: memref<312x64xf32, #tpu.memory_space<vmem>>) attributes {dimension_semantics = [#tpu.dimension_semantics<parallel>], iteration_bounds = array<i64: 2>, scalar_prefetch = 0 : i64, scratch_operands = 3 : i64, tpu.core_type = #tpu.core_type<tc>, window_params = [{transform_indices = @transform_0, window_bounds = array<i64: 1, 680, 9>}, {pipeline_mode = #tpu.pipeline_mode<synchronous>, transform_indices = @transform_1, window_bounds = array<i64: 9, 32>}, {pipeline_mode = #tpu.pipeline_mode<synchronous>, transform_indices = @transform_2, window_bounds = array<i64: 1, 32>}, {pipeline_mode = #tpu.pipeline_mode<synchronous>, transform_indices = @transform_3, window_bounds = array<i64: 288, 64>}, {pipeline_mode = #tpu.pipeline_mode<synchronous>, transform_indices = @transform_4, window_bounds = array<i64: 1, 64>}, {transform_indices = @transform_5, window_bounds = array<i64: 1, 144, 64>}]} {
    %c0 = arith.constant 0 : index
    %c0_0 = arith.constant 0 : index
    %0 = vector.load %arg5[%c0, %c0_0] : memref<1x64xf32, #tpu.memory_space<vmem>>, vector<1x64xf32>
    %c0_1 = arith.constant 0 : index
    %c0_2 = arith.constant 0 : index
    %c0_3 = arith.constant 0 : index
    %1 = vector.load %arg1[%c0_1, %c0_2, %c0_3] : memref<1x680x9xbf16, #tpu.memory_space<vmem>>, vector<1x680x9xbf16>
    %2 = vector.shape_cast %1 : vector<1x680x9xbf16> to vector<680x9xbf16>
    %c0_4 = arith.constant 0 : index
    %c0_5 = arith.constant 0 : index
    %3 = vector.load %arg2[%c0_4, %c0_5] : memref<9x32xbf16, #tpu.memory_space<vmem>>, vector<9x32xbf16>
    %cst = arith.constant dense<0.000000e+00> : vector<680x32xf32>
    %4 = tpu.matmul %2, %3, %cst {dimension_numbers = #tpu.dot_dimension_numbers<[1], [0], [0], [1], [0, 0, 1, 1], [], []>} : vector<680x9xbf16>, vector<9x32xbf16>, vector<680x32xf32> -> vector<680x32xf32>
    %c0_6 = arith.constant 0 : index
    %c0_7 = arith.constant 0 : index
    %5 = vector.load %arg3[%c0_6, %c0_7] : memref<1x32xf32, #tpu.memory_space<vmem>>, vector<1x32xf32>
    %6 = vector.broadcast %5 : vector<1x32xf32> to vector<680x32xf32>
    %7 = arith.addf %4, %6 : vector<680x32xf32>
    %cst_8 = arith.constant 0.000000e+00 : f32
    %8 = vector.broadcast %cst_8 : f32 to vector<680x32xf32>
    %9 = arith.maximumf %7, %8 : vector<680x32xf32>
    %10 = arith.truncf %9 : vector<680x32xf32> to vector<680x32xbf16>
    %c0_9 = arith.constant 0 : index
    %c0_10 = arith.constant 0 : index
    %11 = vector.load %arg7[%c0_9, %c0_10] : memref<680x32xbf16, #tpu.memory_space<vmem>>, vector<680x32xbf16>
    tpu.vector_store %arg7[%c0_9, %c0_10], %10 {strides = array<i32>} : memref<680x32xbf16, #tpu.memory_space<vmem>>, vector<680x32xbf16>,
    %c0_11 = arith.constant 0 : index
    %c0_12 = arith.constant 0 : index
    %12 = vector.load %arg7[%c0_11, %c0_12] : memref<680x32xbf16, #tpu.memory_space<vmem>>, vector<624x32xbf16>
    %c1 = arith.constant 1 : index
    %c0_13 = arith.constant 0 : index
    %13 = vector.load %arg7[%c1, %c0_13] : memref<680x32xbf16, #tpu.memory_space<vmem>>, vector<624x32xbf16>
    %c2 = arith.constant 2 : index
    %c0_14 = arith.constant 0 : index
    %14 = vector.load %arg7[%c2, %c0_14] : memref<680x32xbf16, #tpu.memory_space<vmem>>, vector<624x32xbf16>
    %c26 = arith.constant 26 : index
    %c0_15 = arith.constant 0 : index
    %15 = vector.load %arg7[%c26, %c0_15] : memref<680x32xbf16, #tpu.memory_space<vmem>>, vector<624x32xbf16>
    %c27 = arith.constant 27 : index
    %c0_16 = arith.constant 0 : index
    %16 = vector.load %arg7[%c27, %c0_16] : memref<680x32xbf16, #tpu.memory_space<vmem>>, vector<624x32xbf16>
    %c28 = arith.constant 28 : index
    %c0_17 = arith.constant 0 : index
    %17 = vector.load %arg7[%c28, %c0_17] : memref<680x32xbf16, #tpu.memory_space<vmem>>, vector<624x32xbf16>
    %c52 = arith.constant 52 : index
    %c0_18 = arith.constant 0 : index
    %18 = vector.load %arg7[%c52, %c0_18] : memref<680x32xbf16, #tpu.memory_space<vmem>>, vector<624x32xbf16>
    %c53 = arith.constant 53 : index
    %c0_19 = arith.constant 0 : index
    %19 = vector.load %arg7[%c53, %c0_19] : memref<680x32xbf16, #tpu.memory_space<vmem>>, vector<624x32xbf16>
    %c54 = arith.constant 54 : index
    %c0_20 = arith.constant 0 : index
    %20 = vector.load %arg7[%c54, %c0_20] : memref<680x32xbf16, #tpu.memory_space<vmem>>, vector<624x32xbf16>
    %21 = tpu.concatenate %12, %13, %14, %15, %16, %17, %18, %19, %20 in 1 : vector<624x32xbf16>, vector<624x32xbf16>, vector<624x32xbf16>, vector<624x32xbf16>, vector<624x32xbf16>, vector<624x32xbf16>, vector<624x32xbf16>, vector<624x32xbf16>, vector<624x32xbf16> -> vector<624x288xbf16>
    %c0_21 = arith.constant 0 : index
    %c0_22 = arith.constant 0 : index
    %22 = vector.load %arg4[%c0_21, %c0_22] : memref<288x64xbf16, #tpu.memory_space<vmem>>, vector<288x64xbf16>
    %cst_23 = arith.constant dense<0.000000e+00> : vector<624x64xf32>
    %23 = tpu.matmul %21, %22, %cst_23 {dimension_numbers = #tpu.dot_dimension_numbers<[1], [0], [0], [1], [0, 0, 1, 1], [], []>} : vector<624x288xbf16>, vector<288x64xbf16>, vector<624x64xf32> -> vector<624x64xf32>
    %c0_24 = arith.constant 0 : index
    %c0_25 = arith.constant 0 : index
    %24 = vector.load %arg8[%c0_24, %c0_25] : memref<624x64xf32, #tpu.memory_space<vmem>>, vector<624x64xf32>
    tpu.vector_store %arg8[%c0_24, %c0_25], %23 {strides = array<i32>} : memref<624x64xf32, #tpu.memory_space<vmem>>, vector<624x64xf32>,
    %c0_26 = arith.constant 0 : index
    %c0_27 = arith.constant 0 : index
    %25 = tpu.strided_load %arg8[%c0_26, %c0_27] {strides = array<i32: 2, 1>} : memref<624x64xf32, #tpu.memory_space<vmem>>, vector<312x64xf32>
    %c1_28 = arith.constant 1 : index
    %c0_29 = arith.constant 0 : index
    %26 = tpu.strided_load %arg8[%c1_28, %c0_29] {strides = array<i32: 2, 1>} : memref<624x64xf32, #tpu.memory_space<vmem>>, vector<312x64xf32>
    %27 = arith.maximumf %25, %26 : vector<312x64xf32>
    %c0_30 = arith.constant 0 : index
    %c0_31 = arith.constant 0 : index
    %28 = vector.load %arg9[%c0_30, %c0_31] : memref<312x64xf32, #tpu.memory_space<vmem>>, vector<312x64xf32>
    tpu.vector_store %arg9[%c0_30, %c0_31], %27 {strides = array<i32>} : memref<312x64xf32, #tpu.memory_space<vmem>>, vector<312x64xf32>,
    %c0_32 = arith.constant 0 : index
    %c0_33 = arith.constant 0 : index
    %29 = vector.load %arg9[%c0_32, %c0_33] : memref<312x64xf32, #tpu.memory_space<vmem>>, vector<12x64xf32>
    %c13 = arith.constant 13 : index
    %c0_34 = arith.constant 0 : index
    %30 = vector.load %arg9[%c13, %c0_34] : memref<312x64xf32, #tpu.memory_space<vmem>>, vector<12x64xf32>
    %31 = arith.maximumf %29, %30 : vector<12x64xf32>
    %32 = vector.broadcast %0 : vector<1x64xf32> to vector<12x64xf32>
    %33 = arith.addf %31, %32 : vector<12x64xf32>
    %cst_35 = arith.constant 0.000000e+00 : f32
    %34 = vector.broadcast %cst_35 : f32 to vector<12x64xf32>
    %35 = arith.maximumf %33, %34 : vector<12x64xf32>
    %36 = arith.truncf %35 : vector<12x64xf32> to vector<12x64xbf16>
    %c0_36 = arith.constant 0 : index
    %c0_37 = arith.constant 0 : index
    %c0_38 = arith.constant 0 : index
    %37 = vector.load %arg6[%c0_36, %c0_37, %c0_38] : memref<1x144x64xbf16, #tpu.memory_space<vmem>>, vector<1x12x64xbf16>
    %38 = vector.shape_cast %37 : vector<1x12x64xbf16> to vector<12x64xbf16>
    %39 = vector.shape_cast %36 : vector<12x64xbf16> to vector<1x12x64xbf16>
    tpu.vector_store %arg6[%c0_36, %c0_37, %c0_38], %39 {strides = array<i32>} : memref<1x144x64xbf16, #tpu.memory_space<vmem>>, vector<1x12x64xbf16>,
    %c26_39 = arith.constant 26 : index
    %c0_40 = arith.constant 0 : index
    %40 = vector.load %arg9[%c26_39, %c0_40] : memref<312x64xf32, #tpu.memory_space<vmem>>, vector<12x64xf32>
    %c39 = arith.constant 39 : index
    %c0_41 = arith.constant 0 : index
    %41 = vector.load %arg9[%c39, %c0_41] : memref<312x64xf32, #tpu.memory_space<vmem>>, vector<12x64xf32>
    %42 = arith.maximumf %40, %41 : vector<12x64xf32>
    %43 = vector.broadcast %0 : vector<1x64xf32> to vector<12x64xf32>
    %44 = arith.addf %42, %43 : vector<12x64xf32>
    %cst_42 = arith.constant 0.000000e+00 : f32
    %45 = vector.broadcast %cst_42 : f32 to vector<12x64xf32>
    %46 = arith.maximumf %44, %45 : vector<12x64xf32>
    %47 = arith.truncf %46 : vector<12x64xf32> to vector<12x64xbf16>
    %c0_43 = arith.constant 0 : index
    %c12 = arith.constant 12 : index
    %c0_44 = arith.constant 0 : index
    %48 = vector.load %arg6[%c0_43, %c12, %c0_44] : memref<1x144x64xbf16, #tpu.memory_space<vmem>>, vector<1x12x64xbf16>
    %49 = vector.shape_cast %48 : vector<1x12x64xbf16> to vector<12x64xbf16>
    %50 = vector.shape_cast %47 : vector<12x64xbf16> to vector<1x12x64xbf16>
    tpu.vector_store %arg6[%c0_43, %c12, %c0_44], %50 {strides = array<i32>} : memref<1x144x64xbf16, #tpu.memory_space<vmem>>, vector<1x12x64xbf16>,
    %c52_45 = arith.constant 52 : index
    %c0_46 = arith.constant 0 : index
    %51 = vector.load %arg9[%c52_45, %c0_46] : memref<312x64xf32, #tpu.memory_space<vmem>>, vector<12x64xf32>
    %c65 = arith.constant 65 : index
    %c0_47 = arith.constant 0 : index
    %52 = vector.load %arg9[%c65, %c0_47] : memref<312x64xf32, #tpu.memory_space<vmem>>, vector<12x64xf32>
    %53 = arith.maximumf %51, %52 : vector<12x64xf32>
    %54 = vector.broadcast %0 : vector<1x64xf32> to vector<12x64xf32>
    %55 = arith.addf %53, %54 : vector<12x64xf32>
    %cst_48 = arith.constant 0.000000e+00 : f32
    %56 = vector.broadcast %cst_48 : f32 to vector<12x64xf32>
    %57 = arith.maximumf %55, %56 : vector<12x64xf32>
    %58 = arith.truncf %57 : vector<12x64xf32> to vector<12x64xbf16>
    %c0_49 = arith.constant 0 : index
    %c24 = arith.constant 24 : index
    %c0_50 = arith.constant 0 : index
    %59 = vector.load %arg6[%c0_49, %c24, %c0_50] : memref<1x144x64xbf16, #tpu.memory_space<vmem>>, vector<1x12x64xbf16>
    %60 = vector.shape_cast %59 : vector<1x12x64xbf16> to vector<12x64xbf16>
    %61 = vector.shape_cast %58 : vector<12x64xbf16> to vector<1x12x64xbf16>
    tpu.vector_store %arg6[%c0_49, %c24, %c0_50], %61 {strides = array<i32>} : memref<1x144x64xbf16, #tpu.memory_space<vmem>>, vector<1x12x64xbf16>,
    %c78 = arith.constant 78 : index
    %c0_51 = arith.constant 0 : index
    %62 = vector.load %arg9[%c78, %c0_51] : memref<312x64xf32, #tpu.memory_space<vmem>>, vector<12x64xf32>
    %c91 = arith.constant 91 : index
    %c0_52 = arith.constant 0 : index
    %63 = vector.load %arg9[%c91, %c0_52] : memref<312x64xf32, #tpu.memory_space<vmem>>, vector<12x64xf32>
    %64 = arith.maximumf %62, %63 : vector<12x64xf32>
    %65 = vector.broadcast %0 : vector<1x64xf32> to vector<12x64xf32>
    %66 = arith.addf %64, %65 : vector<12x64xf32>
    %cst_53 = arith.constant 0.000000e+00 : f32
    %67 = vector.broadcast %cst_53 : f32 to vector<12x64xf32>
    %68 = arith.maximumf %66, %67 : vector<12x64xf32>
    %69 = arith.truncf %68 : vector<12x64xf32> to vector<12x64xbf16>
    %c0_54 = arith.constant 0 : index
    %c36 = arith.constant 36 : index
    %c0_55 = arith.constant 0 : index
    %70 = vector.load %arg6[%c0_54, %c36, %c0_55] : memref<1x144x64xbf16, #tpu.memory_space<vmem>>, vector<1x12x64xbf16>
    %71 = vector.shape_cast %70 : vector<1x12x64xbf16> to vector<12x64xbf16>
    %72 = vector.shape_cast %69 : vector<12x64xbf16> to vector<1x12x64xbf16>
    tpu.vector_store %arg6[%c0_54, %c36, %c0_55], %72 {strides = array<i32>} : memref<1x144x64xbf16, #tpu.memory_space<vmem>>, vector<1x12x64xbf16>,
    %c104 = arith.constant 104 : index
    %c0_56 = arith.constant 0 : index
    %73 = vector.load %arg9[%c104, %c0_56] : memref<312x64xf32, #tpu.memory_space<vmem>>, vector<12x64xf32>
    %c117 = arith.constant 117 : index
    %c0_57 = arith.constant 0 : index
    %74 = vector.load %arg9[%c117, %c0_57] : memref<312x64xf32, #tpu.memory_space<vmem>>, vector<12x64xf32>
    %75 = arith.maximumf %73, %74 : vector<12x64xf32>
    %76 = vector.broadcast %0 : vector<1x64xf32> to vector<12x64xf32>
    %77 = arith.addf %75, %76 : vector<12x64xf32>
    %cst_58 = arith.constant 0.000000e+00 : f32
    %78 = vector.broadcast %cst_58 : f32 to vector<12x64xf32>
    %79 = arith.maximumf %77, %78 : vector<12x64xf32>
    %80 = arith.truncf %79 : vector<12x64xf32> to vector<12x64xbf16>
    %c0_59 = arith.constant 0 : index
    %c48 = arith.constant 48 : index
    %c0_60 = arith.constant 0 : index
    %81 = vector.load %arg6[%c0_59, %c48, %c0_60] : memref<1x144x64xbf16, #tpu.memory_space<vmem>>, vector<1x12x64xbf16>
    %82 = vector.shape_cast %81 : vector<1x12x64xbf16> to vector<12x64xbf16>
    %83 = vector.shape_cast %80 : vector<12x64xbf16> to vector<1x12x64xbf16>
    tpu.vector_store %arg6[%c0_59, %c48, %c0_60], %83 {strides = array<i32>} : memref<1x144x64xbf16, #tpu.memory_space<vmem>>, vector<1x12x64xbf16>,
    %c130 = arith.constant 130 : index
    %c0_61 = arith.constant 0 : index
    %84 = vector.load %arg9[%c130, %c0_61] : memref<312x64xf32, #tpu.memory_space<vmem>>, vector<12x64xf32>
    %c143 = arith.constant 143 : index
    %c0_62 = arith.constant 0 : index
    %85 = vector.load %arg9[%c143, %c0_62] : memref<312x64xf32, #tpu.memory_space<vmem>>, vector<12x64xf32>
    %86 = arith.maximumf %84, %85 : vector<12x64xf32>
    %87 = vector.broadcast %0 : vector<1x64xf32> to vector<12x64xf32>
    %88 = arith.addf %86, %87 : vector<12x64xf32>
    %cst_63 = arith.constant 0.000000e+00 : f32
    %89 = vector.broadcast %cst_63 : f32 to vector<12x64xf32>
    %90 = arith.maximumf %88, %89 : vector<12x64xf32>
    %91 = arith.truncf %90 : vector<12x64xf32> to vector<12x64xbf16>
    %c0_64 = arith.constant 0 : index
    %c60 = arith.constant 60 : index
    %c0_65 = arith.constant 0 : index
    %92 = vector.load %arg6[%c0_64, %c60, %c0_65] : memref<1x144x64xbf16, #tpu.memory_space<vmem>>, vector<1x12x64xbf16>
    %93 = vector.shape_cast %92 : vector<1x12x64xbf16> to vector<12x64xbf16>
    %94 = vector.shape_cast %91 : vector<12x64xbf16> to vector<1x12x64xbf16>
    tpu.vector_store %arg6[%c0_64, %c60, %c0_65], %94 {strides = array<i32>} : memref<1x144x64xbf16, #tpu.memory_space<vmem>>, vector<1x12x64xbf16>,
    %c156 = arith.constant 156 : index
    %c0_66 = arith.constant 0 : index
    %95 = vector.load %arg9[%c156, %c0_66] : memref<312x64xf32, #tpu.memory_space<vmem>>, vector<12x64xf32>
    %c169 = arith.constant 169 : index
    %c0_67 = arith.constant 0 : index
    %96 = vector.load %arg9[%c169, %c0_67] : memref<312x64xf32, #tpu.memory_space<vmem>>, vector<12x64xf32>
    %97 = arith.maximumf %95, %96 : vector<12x64xf32>
    %98 = vector.broadcast %0 : vector<1x64xf32> to vector<12x64xf32>
    %99 = arith.addf %97, %98 : vector<12x64xf32>
    %cst_68 = arith.constant 0.000000e+00 : f32
    %100 = vector.broadcast %cst_68 : f32 to vector<12x64xf32>
    %101 = arith.maximumf %99, %100 : vector<12x64xf32>
    %102 = arith.truncf %101 : vector<12x64xf32> to vector<12x64xbf16>
    %c0_69 = arith.constant 0 : index
    %c72 = arith.constant 72 : index
    %c0_70 = arith.constant 0 : index
    %103 = vector.load %arg6[%c0_69, %c72, %c0_70] : memref<1x144x64xbf16, #tpu.memory_space<vmem>>, vector<1x12x64xbf16>
    %104 = vector.shape_cast %103 : vector<1x12x64xbf16> to vector<12x64xbf16>
    %105 = vector.shape_cast %102 : vector<12x64xbf16> to vector<1x12x64xbf16>
    tpu.vector_store %arg6[%c0_69, %c72, %c0_70], %105 {strides = array<i32>} : memref<1x144x64xbf16, #tpu.memory_space<vmem>>, vector<1x12x64xbf16>,
    %c182 = arith.constant 182 : index
    %c0_71 = arith.constant 0 : index
    %106 = vector.load %arg9[%c182, %c0_71] : memref<312x64xf32, #tpu.memory_space<vmem>>, vector<12x64xf32>
    %c195 = arith.constant 195 : index
    %c0_72 = arith.constant 0 : index
    %107 = vector.load %arg9[%c195, %c0_72] : memref<312x64xf32, #tpu.memory_space<vmem>>, vector<12x64xf32>
    %108 = arith.maximumf %106, %107 : vector<12x64xf32>
    %109 = vector.broadcast %0 : vector<1x64xf32> to vector<12x64xf32>
    %110 = arith.addf %108, %109 : vector<12x64xf32>
    %cst_73 = arith.constant 0.000000e+00 : f32
    %111 = vector.broadcast %cst_73 : f32 to vector<12x64xf32>
    %112 = arith.maximumf %110, %111 : vector<12x64xf32>
    %113 = arith.truncf %112 : vector<12x64xf32> to vector<12x64xbf16>
    %c0_74 = arith.constant 0 : index
    %c84 = arith.constant 84 : index
    %c0_75 = arith.constant 0 : index
    %114 = vector.load %arg6[%c0_74, %c84, %c0_75] : memref<1x144x64xbf16, #tpu.memory_space<vmem>>, vector<1x12x64xbf16>
    %115 = vector.shape_cast %114 : vector<1x12x64xbf16> to vector<12x64xbf16>
    %116 = vector.shape_cast %113 : vector<12x64xbf16> to vector<1x12x64xbf16>
    tpu.vector_store %arg6[%c0_74, %c84, %c0_75], %116 {strides = array<i32>} : memref<1x144x64xbf16, #tpu.memory_space<vmem>>, vector<1x12x64xbf16>,
    %c208 = arith.constant 208 : index
    %c0_76 = arith.constant 0 : index
    %117 = vector.load %arg9[%c208, %c0_76] : memref<312x64xf32, #tpu.memory_space<vmem>>, vector<12x64xf32>
    %c221 = arith.constant 221 : index
    %c0_77 = arith.constant 0 : index
    %118 = vector.load %arg9[%c221, %c0_77] : memref<312x64xf32, #tpu.memory_space<vmem>>, vector<12x64xf32>
    %119 = arith.maximumf %117, %118 : vector<12x64xf32>
    %120 = vector.broadcast %0 : vector<1x64xf32> to vector<12x64xf32>
    %121 = arith.addf %119, %120 : vector<12x64xf32>
    %cst_78 = arith.constant 0.000000e+00 : f32
    %122 = vector.broadcast %cst_78 : f32 to vector<12x64xf32>
    %123 = arith.maximumf %121, %122 : vector<12x64xf32>
    %124 = arith.truncf %123 : vector<12x64xf32> to vector<12x64xbf16>
    %c0_79 = arith.constant 0 : index
    %c96 = arith.constant 96 : index
    %c0_80 = arith.constant 0 : index
    %125 = vector.load %arg6[%c0_79, %c96, %c0_80] : memref<1x144x64xbf16, #tpu.memory_space<vmem>>, vector<1x12x64xbf16>
    %126 = vector.shape_cast %125 : vector<1x12x64xbf16> to vector<12x64xbf16>
    %127 = vector.shape_cast %124 : vector<12x64xbf16> to vector<1x12x64xbf16>
    tpu.vector_store %arg6[%c0_79, %c96, %c0_80], %127 {strides = array<i32>} : memref<1x144x64xbf16, #tpu.memory_space<vmem>>, vector<1x12x64xbf16>,
    %c234 = arith.constant 234 : index
    %c0_81 = arith.constant 0 : index
    %128 = vector.load %arg9[%c234, %c0_81] : memref<312x64xf32, #tpu.memory_space<vmem>>, vector<12x64xf32>
    %c247 = arith.constant 247 : index
    %c0_82 = arith.constant 0 : index
    %129 = vector.load %arg9[%c247, %c0_82] : memref<312x64xf32, #tpu.memory_space<vmem>>, vector<12x64xf32>
    %130 = arith.maximumf %128, %129 : vector<12x64xf32>
    %131 = vector.broadcast %0 : vector<1x64xf32> to vector<12x64xf32>
    %132 = arith.addf %130, %131 : vector<12x64xf32>
    %cst_83 = arith.constant 0.000000e+00 : f32
    %133 = vector.broadcast %cst_83 : f32 to vector<12x64xf32>
    %134 = arith.maximumf %132, %133 : vector<12x64xf32>
    %135 = arith.truncf %134 : vector<12x64xf32> to vector<12x64xbf16>
    %c0_84 = arith.constant 0 : index
    %c108 = arith.constant 108 : index
    %c0_85 = arith.constant 0 : index
    %136 = vector.load %arg6[%c0_84, %c108, %c0_85] : memref<1x144x64xbf16, #tpu.memory_space<vmem>>, vector<1x12x64xbf16>
    %137 = vector.shape_cast %136 : vector<1x12x64xbf16> to vector<12x64xbf16>
    %138 = vector.shape_cast %135 : vector<12x64xbf16> to vector<1x12x64xbf16>
    tpu.vector_store %arg6[%c0_84, %c108, %c0_85], %138 {strides = array<i32>} : memref<1x144x64xbf16, #tpu.memory_space<vmem>>, vector<1x12x64xbf16>,
    %c260 = arith.constant 260 : index
    %c0_86 = arith.constant 0 : index
    %139 = vector.load %arg9[%c260, %c0_86] : memref<312x64xf32, #tpu.memory_space<vmem>>, vector<12x64xf32>
    %c273 = arith.constant 273 : index
    %c0_87 = arith.constant 0 : index
    %140 = vector.load %arg9[%c273, %c0_87] : memref<312x64xf32, #tpu.memory_space<vmem>>, vector<12x64xf32>
    %141 = arith.maximumf %139, %140 : vector<12x64xf32>
    %142 = vector.broadcast %0 : vector<1x64xf32> to vector<12x64xf32>
    %143 = arith.addf %141, %142 : vector<12x64xf32>
    %cst_88 = arith.constant 0.000000e+00 : f32
    %144 = vector.broadcast %cst_88 : f32 to vector<12x64xf32>
    %145 = arith.maximumf %143, %144 : vector<12x64xf32>
    %146 = arith.truncf %145 : vector<12x64xf32> to vector<12x64xbf16>
    %c0_89 = arith.constant 0 : index
    %c120 = arith.constant 120 : index
    %c0_90 = arith.constant 0 : index
    %147 = vector.load %arg6[%c0_89, %c120, %c0_90] : memref<1x144x64xbf16, #tpu.memory_space<vmem>>, vector<1x12x64xbf16>
    %148 = vector.shape_cast %147 : vector<1x12x64xbf16> to vector<12x64xbf16>
    %149 = vector.shape_cast %146 : vector<12x64xbf16> to vector<1x12x64xbf16>
    tpu.vector_store %arg6[%c0_89, %c120, %c0_90], %149 {strides = array<i32>} : memref<1x144x64xbf16, #tpu.memory_space<vmem>>, vector<1x12x64xbf16>,
    %c286 = arith.constant 286 : index
    %c0_91 = arith.constant 0 : index
    %150 = vector.load %arg9[%c286, %c0_91] : memref<312x64xf32, #tpu.memory_space<vmem>>, vector<12x64xf32>
    %c299 = arith.constant 299 : index
    %c0_92 = arith.constant 0 : index
    %151 = vector.load %arg9[%c299, %c0_92] : memref<312x64xf32, #tpu.memory_space<vmem>>, vector<12x64xf32>
    %152 = arith.maximumf %150, %151 : vector<12x64xf32>
    %153 = vector.broadcast %0 : vector<1x64xf32> to vector<12x64xf32>
    %154 = arith.addf %152, %153 : vector<12x64xf32>
    %cst_93 = arith.constant 0.000000e+00 : f32
    %155 = vector.broadcast %cst_93 : f32 to vector<12x64xf32>
    %156 = arith.maximumf %154, %155 : vector<12x64xf32>
    %157 = arith.truncf %156 : vector<12x64xf32> to vector<12x64xbf16>
    %c0_94 = arith.constant 0 : index
    %c132 = arith.constant 132 : index
    %c0_95 = arith.constant 0 : index
    %158 = vector.load %arg6[%c0_94, %c132, %c0_95] : memref<1x144x64xbf16, #tpu.memory_space<vmem>>, vector<1x12x64xbf16>
    %159 = vector.shape_cast %158 : vector<1x12x64xbf16> to vector<12x64xbf16>
    %160 = vector.shape_cast %157 : vector<12x64xbf16> to vector<1x12x64xbf16>
    tpu.vector_store %arg6[%c0_94, %c132, %c0_95], %160 {strides = array<i32>} : memref<1x144x64xbf16, #tpu.memory_space<vmem>>, vector<1x12x64xbf16>,
    return
  }
  func.func @transform_0(%arg0: i32) -> (i32, i32, i32) {
    %c0_i32 = arith.constant 0 : i32
    %c0_i32_0 = arith.constant 0 : i32
    %c0_i32_1 = arith.constant 0 : i32
    return %arg0, %c0_i32, %c0_i32_0 : i32, i32, i32
  }
  func.func @transform_1(%arg0: i32) -> (i32, i32) {
    %c0_i32 = arith.constant 0 : i32
    %c0_i32_0 = arith.constant 0 : i32
    %c0_i32_1 = arith.constant 0 : i32
    return %c0_i32, %c0_i32_0 : i32, i32
  }
  func.func @transform_2(%arg0: i32) -> (i32, i32) {
    %c0_i32 = arith.constant 0 : i32
    %c0_i32_0 = arith.constant 0 : i32
    %c0_i32_1 = arith.constant 0 : i32
    return %c0_i32, %c0_i32_0 : i32, i32
  }
  func.func @transform_3(%arg0: i32) -> (i32, i32) {
    %c0_i32 = arith.constant 0 : i32
    %c0_i32_0 = arith.constant 0 : i32
    %c0_i32_1 = arith.constant 0 : i32
    return %c0_i32, %c0_i32_0 : i32, i32
  }
  func.func @transform_4(%arg0: i32) -> (i32, i32) {
    %c0_i32 = arith.constant 0 : i32
    %c0_i32_0 = arith.constant 0 : i32
    %c0_i32_1 = arith.constant 0 : i32
    return %c0_i32, %c0_i32_0 : i32, i32
  }
  func.func @transform_5(%arg0: i32) -> (i32, i32, i32) {
    %c0_i32 = arith.constant 0 : i32
    %c0_i32_0 = arith.constant 0 : i32
    %c0_i32_1 = arith.constant 0 : i32
    return %arg0, %c0_i32, %c0_i32_0 : i32, i32, i32
  }
}

module attributes {stable_mosaic.version = 11 : i64} {
  func.func @_head_kernel(%arg0: i32, %arg1: i32, %arg2: memref<2x4608xbf16, #tpu.memory_space<vmem>>, %arg3: memref<4608x128xi8, #tpu.memory_space<vmem>>, %arg4: memref<1x128xf32, #tpu.memory_space<vmem>>, %arg5: memref<1x128xf32, #tpu.memory_space<vmem>>, %arg6: memref<128x10xf32, #tpu.memory_space<vmem>>, %arg7: memref<1x10xf32, #tpu.memory_space<vmem>>, %arg8: memref<2x10xf32, #tpu.memory_space<vmem>>, %arg9: memref<2x128xf32, #tpu.memory_space<vmem>>) attributes {dimension_semantics = [#tpu.dimension_semantics<parallel>, #tpu.dimension_semantics<arbitrary>], iteration_bounds = array<i64: 1, 2>, scalar_prefetch = 0 : i64, scratch_operands = 1 : i64, tpu.core_type = #tpu.core_type<tc>, window_params = [{transform_indices = @transform_0, window_bounds = array<i64: 2, 4608>}, {transform_indices = @transform_1, window_bounds = array<i64: 4608, 128>}, {pipeline_mode = #tpu.pipeline_mode<synchronous>, transform_indices = @transform_2, window_bounds = array<i64: 1, 128>}, {pipeline_mode = #tpu.pipeline_mode<synchronous>, transform_indices = @transform_3, window_bounds = array<i64: 1, 128>}, {pipeline_mode = #tpu.pipeline_mode<synchronous>, transform_indices = @transform_4, window_bounds = array<i64: 128, 10>}, {pipeline_mode = #tpu.pipeline_mode<synchronous>, transform_indices = @transform_5, window_bounds = array<i64: 1, 10>}, {transform_indices = @transform_6, window_bounds = array<i64: 2, 10>}]} {
    %c0_i32 = arith.constant 0 : i32
    %0 = arith.cmpi eq, %arg1, %c0_i32 : i32
    %1 = arith.extui %0 : i1 to i32
    %c0_i32_0 = arith.constant 0 : i32
    %2 = arith.cmpi ne, %1, %c0_i32_0 : i32
    scf.if %2 {
      %cst_9 = arith.constant 0.000000e+00 : f32
      %14 = vector.broadcast %cst_9 : f32 to vector<2x128xf32>
      %c0_10 = arith.constant 0 : index
      %c0_11 = arith.constant 0 : index
      %15 = vector.load %arg9[%c0_10, %c0_11] : memref<2x128xf32, #tpu.memory_space<vmem>>, vector<2x128xf32>
      tpu.vector_store %arg9[%c0_10, %c0_11], %14 {strides = array<i32>} : memref<2x128xf32, #tpu.memory_space<vmem>>, vector<2x128xf32>,
    } else {
    }
    %c0 = arith.constant 0 : index
    %c0_1 = arith.constant 0 : index
    %3 = vector.load %arg3[%c0, %c0_1] : memref<4608x128xi8, #tpu.memory_space<vmem>>, vector<4608x128xi8>
    %4 = arith.sitofp %3 : vector<4608x128xi8> to vector<4608x128xf32>
    %5 = arith.truncf %4 : vector<4608x128xf32> to vector<4608x128xbf16>
    %c0_2 = arith.constant 0 : index
    %c0_3 = arith.constant 0 : index
    %6 = vector.load %arg9[%c0_2, %c0_3] : memref<2x128xf32, #tpu.memory_space<vmem>>, vector<2x128xf32>
    %c0_4 = arith.constant 0 : index
    %c0_5 = arith.constant 0 : index
    %7 = vector.load %arg2[%c0_4, %c0_5] : memref<2x4608xbf16, #tpu.memory_space<vmem>>, vector<2x4608xbf16>
    %cst = arith.constant dense<0.000000e+00> : vector<2x128xf32>
    %8 = tpu.matmul %7, %5, %cst {dimension_numbers = #tpu.dot_dimension_numbers<[1], [0], [0], [1], [0, 0, 1, 1], [], []>} : vector<2x4608xbf16>, vector<4608x128xbf16>, vector<2x128xf32> -> vector<2x128xf32>
    %9 = arith.addf %6, %8 : vector<2x128xf32>
    %c0_6 = arith.constant 0 : index
    %c0_7 = arith.constant 0 : index
    %10 = vector.load %arg9[%c0_6, %c0_7] : memref<2x128xf32, #tpu.memory_space<vmem>>, vector<2x128xf32>
    tpu.vector_store %arg9[%c0_6, %c0_7], %9 {strides = array<i32>} : memref<2x128xf32, #tpu.memory_space<vmem>>, vector<2x128xf32>,
    %c1_i32 = arith.constant 1 : i32
    %11 = arith.cmpi eq, %arg1, %c1_i32 : i32
    %12 = arith.extui %11 : i1 to i32
    %c0_i32_8 = arith.constant 0 : i32
    %13 = arith.cmpi ne, %12, %c0_i32_8 : i32
    scf.if %13 {
      %c0_9 = arith.constant 0 : index
      %c0_10 = arith.constant 0 : index
      %14 = vector.load %arg9[%c0_9, %c0_10] : memref<2x128xf32, #tpu.memory_space<vmem>>, vector<2x128xf32>
      %c0_11 = arith.constant 0 : index
      %c0_12 = arith.constant 0 : index
      %15 = vector.load %arg4[%c0_11, %c0_12] : memref<1x128xf32, #tpu.memory_space<vmem>>, vector<1x128xf32>
      %16 = vector.broadcast %15 : vector<1x128xf32> to vector<2x128xf32>
      %17 = arith.mulf %14, %16 : vector<2x128xf32>
      %c0_13 = arith.constant 0 : index
      %c0_14 = arith.constant 0 : index
      %18 = vector.load %arg5[%c0_13, %c0_14] : memref<1x128xf32, #tpu.memory_space<vmem>>, vector<1x128xf32>
      %19 = vector.broadcast %18 : vector<1x128xf32> to vector<2x128xf32>
      %20 = arith.addf %17, %19 : vector<2x128xf32>
      %cst_15 = arith.constant 0.000000e+00 : f32
      %21 = vector.broadcast %cst_15 : f32 to vector<2x128xf32>
      %22 = arith.maximumf %20, %21 : vector<2x128xf32>
      %c0_16 = arith.constant 0 : index
      %c0_17 = arith.constant 0 : index
      %23 = vector.load %arg6[%c0_16, %c0_17] : memref<128x10xf32, #tpu.memory_space<vmem>>, vector<128x10xf32>
      %cst_18 = arith.constant dense<0.000000e+00> : vector<2x10xf32>
      %24 = tpu.matmul %22, %23, %cst_18 {dimension_numbers = #tpu.dot_dimension_numbers<[1], [0], [0], [1], [0, 0, 1, 1], [], []>} : vector<2x128xf32>, vector<128x10xf32>, vector<2x10xf32> -> vector<2x10xf32>
      %c0_19 = arith.constant 0 : index
      %c0_20 = arith.constant 0 : index
      %25 = vector.load %arg7[%c0_19, %c0_20] : memref<1x10xf32, #tpu.memory_space<vmem>>, vector<1x10xf32>
      %26 = vector.broadcast %25 : vector<1x10xf32> to vector<2x10xf32>
      %27 = arith.addf %24, %26 : vector<2x10xf32>
      %cst_21 = arith.constant dense<0xFF800000> : vector<2xf32>
      %28 = vector.multi_reduction <maximumf>, %27, %cst_21 [1] : vector<2x10xf32> to vector<2xf32>
      %29 = vector.shape_cast %28 : vector<2xf32> to vector<2x1xf32>
      %30 = vector.broadcast %29 : vector<2x1xf32> to vector<2x10xf32>
      %31 = arith.subf %27, %30 : vector<2x10xf32>
      %32 = math.exp %31 : vector<2x10xf32>
      %cst_22 = arith.constant dense<0.000000e+00> : vector<2xf32>
      %33 = vector.multi_reduction <add>, %32, %cst_22 [1] : vector<2x10xf32> to vector<2xf32>
      %34 = vector.shape_cast %33 : vector<2xf32> to vector<2x1xf32>
      %35 = math.log %34 : vector<2x1xf32>
      %36 = arith.addf %35, %29 : vector<2x1xf32>
      %37 = vector.broadcast %36 : vector<2x1xf32> to vector<2x10xf32>
      %38 = arith.subf %27, %37 : vector<2x10xf32>
      %c0_23 = arith.constant 0 : index
      %c0_24 = arith.constant 0 : index
      %39 = vector.load %arg8[%c0_23, %c0_24] : memref<2x10xf32, #tpu.memory_space<vmem>>, vector<2x10xf32>
      tpu.vector_store %arg8[%c0_23, %c0_24], %38 {strides = array<i32>} : memref<2x10xf32, #tpu.memory_space<vmem>>, vector<2x10xf32>,
    } else {
    }
    return
  }
  func.func @transform_0(%arg0: i32, %arg1: i32) -> (i32, i32) {
    %c0_i32 = arith.constant 0 : i32
    return %arg0, %arg1 : i32, i32
  }
  func.func @transform_1(%arg0: i32, %arg1: i32) -> (i32, i32) {
    %c0_i32 = arith.constant 0 : i32
    %c0_i32_0 = arith.constant 0 : i32
    return %arg1, %c0_i32 : i32, i32
  }
  func.func @transform_2(%arg0: i32, %arg1: i32) -> (i32, i32) {
    %c0_i32 = arith.constant 0 : i32
    %c0_i32_0 = arith.constant 0 : i32
    %c0_i32_1 = arith.constant 0 : i32
    return %c0_i32, %c0_i32_0 : i32, i32
  }
  func.func @transform_3(%arg0: i32, %arg1: i32) -> (i32, i32) {
    %c0_i32 = arith.constant 0 : i32
    %c0_i32_0 = arith.constant 0 : i32
    %c0_i32_1 = arith.constant 0 : i32
    return %c0_i32, %c0_i32_0 : i32, i32
  }
  func.func @transform_4(%arg0: i32, %arg1: i32) -> (i32, i32) {
    %c0_i32 = arith.constant 0 : i32
    %c0_i32_0 = arith.constant 0 : i32
    %c0_i32_1 = arith.constant 0 : i32
    return %c0_i32, %c0_i32_0 : i32, i32
  }
  func.func @transform_5(%arg0: i32, %arg1: i32) -> (i32, i32) {
    %c0_i32 = arith.constant 0 : i32
    %c0_i32_0 = arith.constant 0 : i32
    %c0_i32_1 = arith.constant 0 : i32
    return %c0_i32, %c0_i32_0 : i32, i32
  }
  func.func @transform_6(%arg0: i32, %arg1: i32) -> (i32, i32) {
    %c0_i32 = arith.constant 0 : i32
    %c0_i32_0 = arith.constant 0 : i32
    return %arg0, %c0_i32 : i32, i32
  }
}

</mosaic_0001>

<bundles_post_ra>
// kernel: net_forward.3
= control target key start
LH: loop header
LB: loop body
LE: loop exit
PB: predicated region body
PF: predicated region fallthrough
CT: control target
= control target key end

     0   :  { %11 = vsyncpa [#allocation4], 0  ;;  %s2547_s21 = smov 0   ;;  %s2549_s22 = smov 0   ;;  %s2914_s0 = inlined_call_operand.vmem [shape: bf16[2,9216], index: 0, kind: input, shape index: {}]   ;;  %s2915_s1 = inlined_call_operand.vmem [shape: s8[9216,128], index: 1, kind: input, shape index: {}]   ;;  %s2916_s2 = inlined_call_operand.vmem [shape: f32[1,128], index: 2, kind: input, shape index: {}]   ;;  %s2917_s3 = inlined_call_operand.vmem [shape: f32[1,128], index: 3, kind: input, shape index: {}]   ;;  %s2918_s4 = inlined_call_operand.vmem [shape: f32[128,10], index: 4, kind: input, shape index: {}]   ;;  %s2919_s5 = inlined_call_operand.vmem [shape: f32[1,10], index: 5, kind: input, shape index: {}]   ;;  %s2920_s6 = inlined_call_operand.hbm [shape: f32[2,10], index: 6, kind: output, shape index: {}]  }
   0x1   :  { %s2551_s23 = smov 0  }
   0x2 LB: > { %s1921_s24 = sadd.s32 4294967295, %s2504_s23   ;;  %s26_s25 = sadd.s32 1, %s2500_s22  ;;  %s2504_s23 = sphi %s2551_s23, %s17_s23   ;;  %s2500_s22 = sphi %s2549_s22, %s2923_s22   ;;  %s2496_s21 = sphi %s2547_s21, %s2922_s21  }
   0x3   : > { %p27_p0 = scmp.ge.s32.totalorder %s26_s25, 2  ;;  %p1924_p1 = scmp.ge.s32.totalorder %s2504_s23, 1 }
   0x4   : > { %p242_p2 = scmp.lt.s32.totalorder %s2504_s23, 3 }
   0x5   : > { %s2925_s25 = smov (%p27_p0, %s26_s25), 0 }
   0x6   : > { %p243_p3 = pnand %p1924_p1, %p242_p2 }
   0x7   : > { %s275_s26 = smul.u32 (!%p243_p3), 36, %s2496_s21  ;;  %p1926_p6 = scmp.ne.s32.totalorder (!%p243_p3), %s2496_s21, 0 }
   0x8   : > { %246 = sbr.rel (%p243_p3) target bundleno = 1109 (0x455), region = 44 }
   0x9   : > { %s284_s27 = smul.u32 (!%p243_p3), 144, %s2496_s21  ;;  %p278_p4 = scmp.lt.s32.totalorder (!%p243_p3), %s275_s26, 71 }
   0xb   : > { %p285_p5 = scmp.lt.s32.totalorder (!%p243_p3), %s284_s27, 287 }
   0xf   : > { %s2927_s26 = smov (!%p278_p4, %s275_s26), 71  ;;  %s2929_s27 = smov (!%p285_p5, %s284_s27), 287 }
  0x10   : > { %s2573_s30 = scalar_lea.vmem %s2914_s0, %s2927_s26  ;;  %s1925_s7 = sshll.u32 %s2929_s27, 3  ;;  %v2506_v0 = vmov (!%p1926_p6), 0.0  }
  0x11   : > { %s2578_s10 = scalar_lea.vmem %s2915_s1, %s1925_s7  ;;  %294 = sbr.rel (%p1926_p6) target bundleno = 24 (0x18), region = 48  ;;  %295 = vst [vmem:[#allocation2] sm:$0x3] (!%p1926_p6), %v2506_v0 }
  0x18 PF: > { %v300_v1 = vld [vmem:[%s2578_s10 + $0x20] sm:$0xff]  ;;  %v301_v11 = vld [vmem:[%s2578_s10 + $0x28] sm:$0xff]  ;;  %v743_v19 = vlaneseq  ;;  %v2507_v24 = vmov 1966171168   ;;  %v302_v27 = vld [vmem:[%s2578_s10 + $0x30] sm:$0xff]  ;;  %p1928_p7 = scmp.ne.s32.totalorder %s2496_s21, 1 }
  0x19   : > { %v308_v2 = vld [vmem:[%s2578_s10 + $0x60] sm:$0xff]  ;;  %v448_v4 = vunpack.c.l.s8.bf16 %v300_v1  ;;  %v449_v5 = vunpack.c.h.s8.bf16 %v300_v1  ;;  %v309_v12 = vld [vmem:[%s2578_s10 + $0x68] sm:$0xff]  ;;  %v450_v15 = vunpack.c.l.s8.bf16 %v301_v11  ;;  %v451_v22 = vunpack.c.h.s8.bf16 %v301_v11  ;;  %v310_v28 = vld [vmem:[%s2578_s10 + $0x70] sm:$0xff] }
  0x1a   : > { %v296_v3 = vld [vmem:[%s2578_s10] sm:$0xff]  ;;  %v464_v6 = vunpack.c.l.s8.bf16 %v308_v2  ;;  %v465_v7 = vunpack.c.h.s8.bf16 %v308_v2  ;;  %v466_v16 = vunpack.c.l.s8.bf16 %v309_v12  ;;  %v297_v17 = vld [vmem:[%s2578_s10 + $0x8] sm:$0xff]  ;;  %v467_v23 = vunpack.c.h.s8.bf16 %v309_v12  ;;  %v298_v35 = vld [vmem:[%s2578_s10 + $0x10] sm:$0xff] }
  0x1b   : > { %v304_v8 = vld [vmem:[%s2578_s10 + $0x40] sm:$0xff]  ;;  %v440_v9 = vunpack.c.l.s8.bf16 %v296_v3  ;;  %1936 = vmatprep.subr.bf16.mxu0 %v448_v4  ;;  %v441_v13 = vunpack.c.h.s8.bf16 %v296_v3  ;;  %v305_v18 = vld [vmem:[%s2578_s10 + $0x48] sm:$0xff]  ;;  %v442_v20 = vunpack.c.l.s8.bf16 %v297_v17  ;;  %v741_v25 = vunpack.c.l.s4 %v2507_v24  ;;  %v306_v36 = vld [vmem:[%s2578_s10 + $0x50] sm:$0xff] }
  0x1c   : > { %v456_v10 = vunpack.c.l.s8.bf16 %v304_v8  ;;  %1958 = vmatprep.subr.bf16.mxu1 %v464_v6  ;;  %v457_v14 = vunpack.c.h.s8.bf16 %v304_v8  ;;  %v458_v21 = vunpack.c.l.s8.bf16 %v305_v18  ;;  %v744_v26 = vshrl.u32 %v743_v19, 7  ;;  %v729_v32 = vld [vmem:[%s2573_s30] sm:$0xff]  ;;  %v303_v44 = vld [vmem:[%s2578_s10 + $0x38] sm:$0xff]  ;;  %v317_v12 = vld [vmem:[%s2578_s10 + $0xa8] sm:$0xff] }
  0x1d   : > { %1937 = vmatpush3.bf16.msra.mxu0 %v440_v9  ;;  %v742_v29 = vunpack.c.0.s8 %v741_v25  ;;  %v443_v30 = vunpack.c.h.s8.bf16 %v297_v17  ;;  %v459_v31 = vunpack.c.h.s8.bf16 %v305_v18  ;;  %v452_v33 = vunpack.c.l.s8.bf16 %v302_v27  ;;  %v311_v45 = vld [vmem:[%s2578_s10 + $0x78] sm:$0xff]  ;;  %v316_v60 = vld [vmem:[%s2578_s10 + $0xa0] sm:$0xff]  ;;  %v313_v19 = vld [vmem:[%s2578_s10 + $0x88] sm:$0xff] }
  0x1e   : > { %1959 = vmatpush3.bf16.msra.mxu1 %v456_v10  ;;  %1938 = vmatprep.subr.bf16.mxu0 %v449_v5  ;;  %v468_v34 = vunpack.c.l.s8.bf16 %v310_v28  ;;  %v444_v39 = vunpack.c.l.s8.bf16 %v298_v35  ;;  %v460_v40 = vunpack.c.l.s8.bf16 %v306_v36  ;;  %v453_v41 = vunpack.c.h.s8.bf16 %v302_v27  ;;  %v299_v52 = vld [vmem:[%s2578_s10 + $0x18] sm:$0xff]  ;;  %v324_v61 = vld [vmem:[%s2578_s10 + $0xe0] sm:$0xff]  ;;  %v318_v25 = vld [vmem:[%s2578_s10 + $0xb0] sm:$0xff] }
  0x1f   : > { %1960 = vmatprep.subr.bf16.mxu1 %v465_v7  ;;  %v2594_v37 = vsub.s32 %v742_v29, %v744_v26  ;;  %v469_v42 = vunpack.c.h.s8.bf16 %v310_v28  ;;  %v739_v46 = vcombine.high %v729_v32, %v729_v32  ;;  %v445_v48 = vunpack.c.h.s8.bf16 %v298_v35  ;;  %v307_v53 = vld [vmem:[%s2578_s10 + $0x58] sm:$0xff]  ;;  %v312_v4 = vld [vmem:[%s2578_s10 + $0x80] sm:$0xff]  ;;  %v326_v26 = vld [vmem:[%s2578_s10 + $0xf0] sm:$0xff] }
  0x20   : > { %v461_v49 = vunpack.c.h.s8.bf16 %v306_v36  ;;  %v454_v50 = vunpack.c.l.s8.bf16 %v303_v44  ;;  %v470_v51 = vunpack.c.l.s8.bf16 %v311_v45  ;;  %v446_v56 = vunpack.c.l.s8.bf16 %v299_v52  ;;  %v320_v5 = vld [vmem:[%s2578_s10 + $0xc0] sm:$0xff] }
  0x21   : > { %1939 = vmatpush3.bf16.msra.mxu0 %v441_v13  ;;  %v746_v38 = vrot.slane %v729_v32, %v2594_v37  ;;  %v2603_v55 = vrot.slane %v739_v46, %v2594_v37  ;;  %v462_v57 = vunpack.c.l.s8.bf16 %v307_v53  ;;  %v455_v58 = vunpack.c.h.s8.bf16 %v303_v44  ;;  %v325_v13 = vld [vmem:[%s2578_s10 + $0xe8] sm:$0xff]  ;;  %v322_v32 = vld [vmem:[%s2578_s10 + $0xd0] sm:$0xff]  ;;  %v323_v46 = vld [vmem:[%s2578_s10 + $0xd8] sm:$0xff] }
  0x22   : > { %1961 = vmatpush3.bf16.msra.mxu1 %v457_v14  ;;  %1940 = vmatprep.subr.bf16.mxu0 %v450_v15  ;;  %v471_v59 = vunpack.c.h.s8.bf16 %v311_v45  ;;  %v447_v0 = vunpack.c.h.s8.bf16 %v299_v52  ;;  %v463_v1 = vunpack.c.h.s8.bf16 %v307_v53  ;;  %v480_v2 = vunpack.c.l.s8.bf16 %v316_v60  ;;  %v315_v45 = vld [vmem:[%s2578_s10 + $0x98] sm:$0xff]  ;;  %v332_v52 = vld [vmem:[%s2578_s10 + $0x120] sm:$0xff] }
  0x23   : > { %1962 = vmatprep.subr.bf16.mxu1 %v466_v16  ;;  %v754_v43 = vcombine.high %v746_v38, %v746_v38  ;;  %v755_v62 = vcombine.high %v2603_v55, %v2603_v55  ;;  %v762_v63 = vrot.slane %v746_v38, %v2594_v37  ;;  %v496_v3 = vunpack.c.l.s8.bf16 %v324_v61  ;;  %v319_v38 = vld [vmem:[%s2578_s10 + $0xb8] sm:$0xff]  ;;  %v340_v53 = vld [vmem:[%s2578_s10 + $0x160] sm:$0xff] }
  0x24   : > { %v472_v8 = vunpack.c.l.s8.bf16 %v312_v4  ;;  %v488_v9 = vunpack.c.l.s8.bf16 %v320_v5  ;;  %v481_v10 = vunpack.c.h.s8.bf16 %v316_v60  ;;  %v497_v11 = vunpack.c.h.s8.bf16 %v324_v61  ;;  %v328_v61 = vld [vmem:[%s2578_s10 + $0x100] sm:$0xff] }
  0x25   : > { %1941 = vmatpush3.bf16.msra.mxu0 %v442_v20  ;;  %v776_v47 = vrot.slane %v754_v43, %v2594_v37  ;;  %v783_v6 = vrot.slane %v755_v62, %v2594_v37  ;;  %v784_v7 = vcombine.high %v762_v63, %v762_v63  ;;  %v473_v15 = vunpack.c.h.s8.bf16 %v312_v4  ;;  %v321_v20 = vld [vmem:[%s2578_s10 + $0xc8] sm:$0xff]  ;;  %v336_v62 = vld [vmem:[%s2578_s10 + $0x140] sm:$0xff] }
  0x26   : > { %1963 = vmatpush3.bf16.msra.mxu1 %v458_v21  ;;  %1942 = vmatprep.subr.bf16.mxu0 %v451_v22  ;;  %v489_v16 = vunpack.c.h.s8.bf16 %v320_v5  ;;  %v482_v17 = vunpack.c.l.s8.bf16 %v317_v12  ;;  %v498_v18 = vunpack.c.l.s8.bf16 %v325_v13  ;;  %v474_v21 = vunpack.c.l.s8.bf16 %v313_v19  ;;  %v333_v4 = vld [vmem:[%s2578_s10 + $0x128] sm:$0xff] }
  0x27   : > { %1964 = vmatprep.subr.bf16.mxu1 %v467_v23  ;;  %v786_v54 = vcombine.high %v776_v47, %v776_v47  ;;  %1027 = vmatprep.mubr.bf16.mxu0 %v776_v47  ;;  %v787_v14 = vcombine.high %v783_v6, %v783_v6  ;;  %v490_v22 = vunpack.c.l.s8.bf16 %v321_v20  ;;  %v483_v23 = vunpack.c.h.s8.bf16 %v317_v12  ;;  %v341_v5 = vld [vmem:[%s2578_s10 + $0x168] sm:$0xff] }
  0x28   : > { %v499_v24 = vunpack.c.h.s8.bf16 %v325_v13  ;;  %v475_v27 = vunpack.c.h.s8.bf16 %v313_v19  ;;  %v491_v28 = vunpack.c.h.s8.bf16 %v321_v20  ;;  %v484_v29 = vunpack.c.l.s8.bf16 %v318_v25  ;;  %v337_v12 = vld [vmem:[%s2578_s10 + $0x148] sm:$0xff] }
  0x29   : > { %1943 = vmatpush3.bf16.msra.mxu0 %v443_v30  ;;  %1067 = vmatprep.mubr.bf16.mxu1 %v786_v54  ;;  %v500_v30 = vunpack.c.l.s8.bf16 %v326_v26  ;;  %v485_v35 = vunpack.c.h.s8.bf16 %v318_v25  ;;  %v501_v36 = vunpack.c.h.s8.bf16 %v326_v26  ;;  %v486_v43 = vunpack.c.l.s8.bf16 %v319_v38 }
  0x2a   : > { %1965 = vmatpush3.bf16.msra.mxu1 %v459_v31  ;;  %1944 = vmatprep.subr.bf16.mxu0 %v452_v33  ;;  %v314_v31 = vld [vmem:[%s2578_s10 + $0x90] sm:$0xff]  ;;  %v528_v60 = vunpack.c.l.s8.bf16 %v340_v53  ;;  %v523_v20 = vunpack.c.h.s8.bf16 %v337_v12  ;;  %vm2509_vm0 = vmmov (!%p1928_p7), 0   ;;  %vm1832_vm1 = vcmask (!%p1928_p7), 74752  }
  0x2b   : > { %1966 = vmatprep.subr.bf16.mxu1 %v468_v34  ;;  %v476_v33 = vunpack.c.l.s8.bf16 %v314_v31  ;;  %v492_v34 = vunpack.c.l.s8.bf16 %v322_v32 }
  0x2d   : > { %1945 = vmatpush3.bf16.msra.mxu0 %v444_v39  ;;  %v327_v39 = vld [vmem:[%s2578_s10 + $0xf8] sm:$0xff] }
  0x2e   : > { %1967 = vmatpush3.bf16.msra.mxu1 %v460_v40  ;;  %1946 = vmatprep.subr.bf16.mxu0 %v453_v41  ;;  %v2624_v40 = vld [vmem:[%s2573_s30 + $0x8] sm:$0xff]  ;;  %v477_v41 = vunpack.c.h.s8.bf16 %v314_v31  ;;  %v502_v44 = vunpack.c.l.s8.bf16 %v327_v39 }
  0x2f   : > { %1968 = vmatprep.subr.bf16.mxu1 %v469_v42  ;;  %v493_v42 = vunpack.c.h.s8.bf16 %v322_v32  ;;  %v2630_v47 = vrot.slane %v2624_v40, %v2594_v37  ;;  %v788_v31 = vcombine.high %v2624_v40, %v2624_v40 }
  0x31   : > { %1947 = vmatpush3.bf16.msra.mxu0 %v445_v48  ;;  %v478_v48 = vunpack.c.l.s8.bf16 %v315_v45  ;;  %v803_v54 = vcombine.high %v2630_v47, %v2630_v47 }
  0x32   : > { %1969 = vmatpush3.bf16.msra.mxu1 %v461_v49  ;;  %1948 = vmatprep.subr.bf16.mxu0 %v454_v50  ;;  %v494_v49 = vunpack.c.l.s8.bf16 %v323_v46  ;;  %v487_v50 = vunpack.c.h.s8.bf16 %v319_v38  ;;  %v339_v38 = vld [vmem:[%s2578_s10 + $0x158] sm:$0xff] }
  0x33   : > { %1970 = vmatprep.subr.bf16.mxu1 %v470_v51  ;;  %v503_v51 = vunpack.c.h.s8.bf16 %v327_v39  ;;  %v2656_v39 = vrot.slane %v788_v31, %v2594_v37 }
  0x35   : > { %1949 = vmatpush3.bf16.msra.mxu0 %v446_v56  ;;  %v769_v56 = vrot.slane %v2603_v55, %v2594_v37  ;;  %v513_v55 = vunpack.c.h.s8.bf16 %v332_v52 }
  0x36   : > { %1971 = vmatpush3.bf16.msra.mxu1 %v462_v57  ;;  %1950 = vmatprep.subr.bf16.mxu0 %v455_v58  ;;  %v479_v57 = vunpack.c.h.s8.bf16 %v315_v45  ;;  %v495_v58 = vunpack.c.h.s8.bf16 %v323_v46  ;;  %v356_v45 = vld [vmem:[%s2578_s10 + $0x1e0] sm:$0xff]  ;;  %v804_v46 = vcombine.high %v2656_v39, %v2656_v39 }
  0x37   : > { %1972 = vmatprep.subr.bf16.mxu1 %v471_v59  ;;  %v512_v59 = vunpack.c.l.s8.bf16 %v332_v52  ;;  %v560_v52 = vunpack.c.l.s8.bf16 %v356_v45 }
  0x39   : > { %1951 = vmatpush3.bf16.msra.mxu0 %v447_v0  ;;  %v785_v0 = vcombine.high %v769_v56, %v769_v56 }
  0x3a   : > { %1973 = vmatpush3.bf16.msra.mxu1 %v463_v1  ;;  %1980 = vmatprep.subr.bf16.mxu0 %v480_v2  ;;  %v504_v1 = vunpack.c.l.s8.bf16 %v328_v61  ;;  %v520_v2 = vunpack.c.l.s8.bf16 %v336_v62 }
  0x3b   : > { %2002 = vmatprep.subr.bf16.mxu1 %v496_v3  ;;  %v529_v3 = vunpack.c.h.s8.bf16 %v340_v53  ;;  %v344_v53 = vld [vmem:[%s2578_s10 + $0x180] sm:$0xff] }
  0x3c   : > { %1028 = vmatmul.mubr.bf16.vlgmr.msra.gmra.mrb[0].mxu0 %v762_v63  ;;  %v825_v63 = vrot.slane %v803_v54, %v2594_v37  ;;  %v352_v54 = vld [vmem:[%s2578_s10 + $0x1c0] sm:$0xff] }
  0x3d   : > { %1068 = vmatmul.mubr.bf16.vlgmr.msra.gmra.mrb[0].mxu1 %v784_v7  ;;  %1981 = vmatpush3.bf16.msra.mxu0 %v472_v8  ;;  %v505_v7 = vunpack.c.h.s8.bf16 %v328_v61  ;;  %v521_v8 = vunpack.c.h.s8.bf16 %v336_v62  ;;  %v349_v61 = vld [vmem:[%s2578_s10 + $0x1a8] sm:$0xff] }
  0x3e   : > { %2003 = vmatpush3.bf16.msra.mxu1 %v488_v9  ;;  %1982 = vmatprep.subr.bf16.mxu0 %v481_v10  ;;  %v514_v9 = vunpack.c.l.s8.bf16 %v333_v4  ;;  %v530_v10 = vunpack.c.l.s8.bf16 %v341_v5  ;;  %v357_v62 = vld [vmem:[%s2578_s10 + $0x1e8] sm:$0xff] }
  0x3f   : > { %2004 = vmatprep.subr.bf16.mxu1 %v497_v11  ;;  %1107 = vmatprep.mubr.bf16.mxu0 %v783_v6  ;;  %v835_v6 = vcombine.high %v825_v63, %v825_v63  ;;  %v329_v11 = vld [vmem:[%s2578_s10 + $0x108] sm:$0xff] }
  0x40   : > { %1147 = vmatprep.mubr.bf16.mxu1 %v787_v14  ;;  %v506_v13 = vunpack.c.l.s8.bf16 %v329_v11  ;;  %v522_v14 = vunpack.c.l.s8.bf16 %v337_v12  ;;  %v507_v19 = vunpack.c.h.s8.bf16 %v329_v11 }
  0x41   : > { %1983 = vmatpush3.bf16.msra.mxu0 %v473_v15  ;;  %v515_v15 = vunpack.c.h.s8.bf16 %v333_v4  ;;  %v353_v4 = vld [vmem:[%s2578_s10 + $0x1c8] sm:$0xff] }
  0x42   : > { %2005 = vmatpush3.bf16.msra.mxu1 %v489_v16  ;;  %1984 = vmatprep.subr.bf16.mxu0 %v482_v17  ;;  %v531_v16 = vunpack.c.h.s8.bf16 %v341_v5  ;;  %v334_v17 = vld [vmem:[%s2578_s10 + $0x130] sm:$0xff]  ;;  %v555_v12 = vunpack.c.h.s8.bf16 %v353_v4 }
  0x43   : > { %2006 = vmatprep.subr.bf16.mxu1 %v498_v18  ;;  %v342_v18 = vld [vmem:[%s2578_s10 + $0x170] sm:$0xff] }
  0x45   : > { %1985 = vmatpush3.bf16.msra.mxu0 %v474_v21  ;;  %v516_v21 = vunpack.c.l.s8.bf16 %v334_v17 }
  0x46   : > { %2007 = vmatpush3.bf16.msra.mxu1 %v490_v22  ;;  %1986 = vmatprep.subr.bf16.mxu0 %v483_v23  ;;  %v532_v22 = vunpack.c.l.s8.bf16 %v342_v18  ;;  %v330_v23 = vld [vmem:[%s2578_s10 + $0x110] sm:$0xff] }
  0x47   : > { %2008 = vmatprep.subr.bf16.mxu1 %v499_v24  ;;  %v338_v24 = vld [vmem:[%s2578_s10 + $0x150] sm:$0xff]  ;;  %v508_v25 = vunpack.c.l.s8.bf16 %v330_v23  ;;  %v509_v32 = vunpack.c.h.s8.bf16 %v330_v23 }
  0x48   : > { %v524_v26 = vunpack.c.l.s8.bf16 %v338_v24  ;;  %v2678_v23 = vld [vmem:[%s2573_s30 + $0x10] sm:$0xff] }
  0x49   : > { %1987 = vmatpush3.bf16.msra.mxu0 %v475_v27  ;;  %v517_v27 = vunpack.c.h.s8.bf16 %v334_v17 }
  0x4a   : > { %2009 = vmatpush3.bf16.msra.mxu1 %v491_v28  ;;  %1988 = vmatprep.subr.bf16.mxu0 %v484_v29  ;;  %v533_v28 = vunpack.c.h.s8.bf16 %v342_v18  ;;  %v335_v29 = vld [vmem:[%s2578_s10 + $0x138] sm:$0xff] }
  0x4b   : > { %2010 = vmatprep.subr.bf16.mxu1 %v500_v30  ;;  %v343_v30 = vld [vmem:[%s2578_s10 + $0x178] sm:$0xff]  ;;  %v519_v40 = vunpack.c.h.s8.bf16 %v335_v29 }
  0x4d   : > { %1989 = vmatpush3.bf16.msra.mxu0 %v476_v33  ;;  %v525_v33 = vunpack.c.h.s8.bf16 %v338_v24 }
  0x4e   : > { %2011 = vmatpush3.bf16.msra.mxu1 %v492_v34  ;;  %1990 = vmatprep.subr.bf16.mxu0 %v485_v35  ;;  %v518_v34 = vunpack.c.l.s8.bf16 %v335_v29  ;;  %v534_v35 = vunpack.c.l.s8.bf16 %v343_v30  ;;  %v355_v29 = vld [vmem:[%s2578_s10 + $0x1d8] sm:$0xff] }
  0x4f   : > { %2012 = vmatprep.subr.bf16.mxu1 %v501_v36  ;;  %v331_v36 = vld [vmem:[%s2578_s10 + $0x118] sm:$0xff] }
  0x51   : > { %1991 = vmatpush3.bf16.msra.mxu0 %v477_v41  ;;  %v510_v41 = vunpack.c.l.s8.bf16 %v331_v36 }
  0x52   : > { %2013 = vmatpush3.bf16.msra.mxu1 %v493_v42  ;;  %1992 = vmatprep.subr.bf16.mxu0 %v486_v43  ;;  %v526_v42 = vunpack.c.l.s8.bf16 %v339_v38  ;;  %v535_v43 = vunpack.c.h.s8.bf16 %v343_v30  ;;  %v2684_v30 = vrot.slane %v2678_v23, %v2594_v37 }
  0x53   : > { %2014 = vmatprep.subr.bf16.mxu1 %v502_v44  ;;  %v348_v44 = vld [vmem:[%s2578_s10 + $0x1a0] sm:$0xff] }
  0x55   : > { %1993 = vmatpush3.bf16.msra.mxu0 %v478_v48  ;;  %v811_v48 = vrot.slane %v2630_v47, %v2594_v37  ;;  %v545_v47 = vunpack.c.h.s8.bf16 %v348_v44 }
  0x56   : > { %2015 = vmatpush3.bf16.msra.mxu1 %v494_v49  ;;  %1994 = vmatprep.subr.bf16.mxu0 %v487_v50  ;;  %v511_v49 = vunpack.c.h.s8.bf16 %v331_v36  ;;  %v527_v50 = vunpack.c.h.s8.bf16 %v339_v38  ;;  %v372_v36 = vld [vmem:[%s2578_s10 + $0x260] sm:$0xff]  ;;  %v852_v38 = vcombine.high %v2684_v30, %v2684_v30 }
  0x57   : > { %2016 = vmatprep.subr.bf16.mxu1 %v503_v51  ;;  %v544_v51 = vunpack.c.l.s8.bf16 %v348_v44  ;;  %v592_v44 = vunpack.c.l.s8.bf16 %v372_v36 }
  0x59   : > { %1995 = vmatpush3.bf16.msra.mxu0 %v479_v57  ;;  %v833_v57 = vcombine.high %v811_v48, %v811_v48 }
  0x5a   : > { %2017 = vmatpush3.bf16.msra.mxu1 %v495_v58  ;;  %2024 = vmatprep.subr.bf16.mxu0 %v512_v59  ;;  %v536_v58 = vunpack.c.l.s8.bf16 %v344_v53  ;;  %v552_v59 = vunpack.c.l.s8.bf16 %v352_v54 }
  0x5b   : > { %2046 = vmatprep.subr.bf16.mxu1 %v528_v60  ;;  %v561_v60 = vunpack.c.h.s8.bf16 %v356_v45  ;;  %v360_v45 = vld [vmem:[%s2578_s10 + $0x200] sm:$0xff] }
  0x5c   : > { %1108 = vmatmul.mubr.bf16.vlgmr.msra.gmra.mrb[4].mxu0 %v769_v56  ;;  %v832_v56 = vrot.slane %v804_v46, %v2594_v37  ;;  %v368_v46 = vld [vmem:[%s2578_s10 + $0x240] sm:$0xff] }
  0x5d   : > { %1148 = vmatmul.mubr.bf16.vlgmr.msra.gmra.mrb[4].mxu1 %v785_v0  ;;  %2025 = vmatpush3.bf16.msra.mxu0 %v504_v1  ;;  %v537_v0 = vunpack.c.h.s8.bf16 %v344_v53  ;;  %v553_v1 = vunpack.c.h.s8.bf16 %v352_v54  ;;  %v365_v53 = vld [vmem:[%s2578_s10 + $0x228] sm:$0xff] }
  0x5e   : > { %2047 = vmatpush3.bf16.msra.mxu1 %v520_v2  ;;  %2026 = vmatprep.subr.bf16.mxu0 %v513_v55  ;;  %v546_v2 = vunpack.c.l.s8.bf16 %v349_v61  ;;  %v562_v55 = vunpack.c.l.s8.bf16 %v357_v62  ;;  %v373_v54 = vld [vmem:[%s2578_s10 + $0x268] sm:$0xff] }
  0x5f   : > { %2048 = vmatprep.subr.bf16.mxu1 %v529_v3  ;;  %1187 = vmatprep.mubr.bf16.mxu0 %v825_v63  ;;  %v836_v63 = vcombine.high %v832_v56, %v832_v56  ;;  %v345_v3 = vld [vmem:[%s2578_s10 + $0x188] sm:$0xff] }
  0x60   : > { %1227 = vmatprep.mubr.bf16.mxu1 %v835_v6  ;;  %v538_v5 = vunpack.c.l.s8.bf16 %v345_v3  ;;  %v554_v6 = vunpack.c.l.s8.bf16 %v353_v4  ;;  %v539_v11 = vunpack.c.h.s8.bf16 %v345_v3 }
  0x61   : > { %2027 = vmatpush3.bf16.msra.mxu0 %v505_v7  ;;  %v547_v7 = vunpack.c.h.s8.bf16 %v349_v61  ;;  %v369_v61 = vld [vmem:[%s2578_s10 + $0x248] sm:$0xff] }
  0x62   : > { %2049 = vmatpush3.bf16.msra.mxu1 %v521_v8  ;;  %2028 = vmatprep.subr.bf16.mxu0 %v514_v9  ;;  %v563_v8 = vunpack.c.h.s8.bf16 %v357_v62  ;;  %v350_v9 = vld [vmem:[%s2578_s10 + $0x1b0] sm:$0xff]  ;;  %v587_v4 = vunpack.c.h.s8.bf16 %v369_v61 }
  0x63   : > { %2050 = vmatprep.subr.bf16.mxu1 %v530_v10  ;;  %v358_v10 = vld [vmem:[%s2578_s10 + $0x1f0] sm:$0xff] }
  0x65   : > { %2029 = vmatpush3.bf16.msra.mxu0 %v506_v13  ;;  %v548_v13 = vunpack.c.l.s8.bf16 %v350_v9 }
  0x66   : > { %2051 = vmatpush3.bf16.msra.mxu1 %v522_v14  ;;  %2030 = vmatprep.subr.bf16.mxu0 %v515_v15  ;;  %v564_v14 = vunpack.c.l.s8.bf16 %v358_v10  ;;  %v346_v15 = vld [vmem:[%s2578_s10 + $0x190] sm:$0xff] }
  0x67   : > { %2052 = vmatprep.subr.bf16.mxu1 %v531_v16  ;;  %v354_v16 = vld [vmem:[%s2578_s10 + $0x1d0] sm:$0xff]  ;;  %v540_v17 = vunpack.c.l.s8.bf16 %v346_v15  ;;  %v541_v24 = vunpack.c.h.s8.bf16 %v346_v15  ;;  %v837_v15 = vcombine.high %v2678_v23, %v2678_v23 }
  0x68   : > { %v556_v18 = vunpack.c.l.s8.bf16 %v354_v16 }
  0x69   : > { %2031 = vmatpush3.bf16.msra.mxu0 %v507_v19  ;;  %v549_v19 = vunpack.c.h.s8.bf16 %v350_v9 }
  0x6a   : > { %2053 = vmatpush3.bf16.msra.mxu1 %v523_v20  ;;  %2032 = vmatprep.subr.bf16.mxu0 %v516_v21  ;;  %v565_v20 = vunpack.c.h.s8.bf16 %v358_v10  ;;  %v351_v21 = vld [vmem:[%s2578_s10 + $0x1b8] sm:$0xff] }
  0x6b   : > { %2054 = vmatprep.subr.bf16.mxu1 %v532_v22  ;;  %v359_v22 = vld [vmem:[%s2578_s10 + $0x1f8] sm:$0xff] }
  0x6d   : > { %2033 = vmatpush3.bf16.msra.mxu0 %v508_v25  ;;  %v557_v25 = vunpack.c.h.s8.bf16 %v354_v16 }
  0x6e   : > { %2055 = vmatpush3.bf16.msra.mxu1 %v524_v26  ;;  %2034 = vmatprep.subr.bf16.mxu0 %v517_v27  ;;  %v550_v26 = vunpack.c.l.s8.bf16 %v351_v21  ;;  %v566_v27 = vunpack.c.l.s8.bf16 %v359_v22 }
  0x6f   : > { %2056 = vmatprep.subr.bf16.mxu1 %v533_v28  ;;  %v347_v28 = vld [vmem:[%s2578_s10 + $0x198] sm:$0xff] }
  0x70   : > { %v542_v31 = vunpack.c.l.s8.bf16 %v347_v28 }
  0x71   : > { %2035 = vmatpush3.bf16.msra.mxu0 %v509_v32  ;;  %v558_v32 = vunpack.c.l.s8.bf16 %v355_v29 }
  0x72   : > { %2057 = vmatpush3.bf16.msra.mxu1 %v525_v33  ;;  %2036 = vmatprep.subr.bf16.mxu0 %v518_v34  ;;  %v551_v33 = vunpack.c.h.s8.bf16 %v351_v21  ;;  %v567_v34 = vunpack.c.h.s8.bf16 %v359_v22  ;;  %v371_v21 = vld [vmem:[%s2578_s10 + $0x258] sm:$0xff]  ;;  %v2710_v22 = vrot.slane %v837_v15, %v2594_v37 }
  0x73   : > { %2058 = vmatprep.subr.bf16.mxu1 %v534_v35  ;;  %v364_v35 = vld [vmem:[%s2578_s10 + $0x220] sm:$0xff] }
  0x75   : > { %2037 = vmatpush3.bf16.msra.mxu0 %v510_v41  ;;  %v818_v41 = vrot.slane %v2656_v39, %v2594_v37  ;;  %v577_v39 = vunpack.c.h.s8.bf16 %v364_v35 }
  0x76   : > { %2059 = vmatpush3.bf16.msra.mxu1 %v526_v42  ;;  %2038 = vmatprep.subr.bf16.mxu0 %v519_v40  ;;  %v543_v42 = vunpack.c.h.s8.bf16 %v347_v28  ;;  %v559_v40 = vunpack.c.h.s8.bf16 %v355_v29  ;;  %v388_v28 = vld [vmem:[%s2578_s10 + $0x2e0] sm:$0xff]  ;;  %v853_v29 = vcombine.high %v2710_v22, %v2710_v22 }
  0x77   : > { %2060 = vmatprep.subr.bf16.mxu1 %v535_v43  ;;  %v576_v43 = vunpack.c.l.s8.bf16 %v364_v35  ;;  %v624_v35 = vunpack.c.l.s8.bf16 %v388_v28 }
  0x79   : > { %2039 = vmatpush3.bf16.msra.mxu0 %v511_v49  ;;  %v834_v49 = vcombine.high %v818_v41, %v818_v41 }
  0x7a   : > { %2061 = vmatpush3.bf16.msra.mxu1 %v527_v50  ;;  %2068 = vmatprep.subr.bf16.mxu0 %v544_v51  ;;  %v568_v50 = vunpack.c.l.s8.bf16 %v360_v45  ;;  %v584_v51 = vunpack.c.l.s8.bf16 %v368_v46 }
  0x7b   : > { %2090 = vmatprep.subr.bf16.mxu1 %v560_v52  ;;  %v593_v52 = vunpack.c.h.s8.bf16 %v372_v36  ;;  %v376_v36 = vld [vmem:[%s2578_s10 + $0x280] sm:$0xff] }
  0x7c   : > { %1188 = vmatmul.mubr.bf16.vlgmr.msra.gmra.mrb[8].mxu0 %v811_v48  ;;  %v874_v48 = vrot.slane %v852_v38, %v2594_v37  ;;  %v384_v38 = vld [vmem:[%s2578_s10 + $0x2c0] sm:$0xff] }
  0x7d   : > { %1228 = vmatmul.mubr.bf16.vlgmr.msra.gmra.mrb[8].mxu1 %v833_v57  ;;  %2069 = vmatpush3.bf16.msra.mxu0 %v536_v58  ;;  %v569_v57 = vunpack.c.h.s8.bf16 %v360_v45  ;;  %v585_v58 = vunpack.c.h.s8.bf16 %v368_v46  ;;  %v381_v45 = vld [vmem:[%s2578_s10 + $0x2a8] sm:$0xff] }
  0x7e   : > { %2091 = vmatpush3.bf16.msra.mxu1 %v552_v59  ;;  %2070 = vmatprep.subr.bf16.mxu0 %v545_v47  ;;  %v578_v59 = vunpack.c.l.s8.bf16 %v365_v53  ;;  %v594_v47 = vunpack.c.l.s8.bf16 %v373_v54  ;;  %v389_v46 = vld [vmem:[%s2578_s10 + $0x2e8] sm:$0xff] }
  0x7f   : > { %2092 = vmatprep.subr.bf16.mxu1 %v561_v60  ;;  %1267 = vmatprep.mubr.bf16.mxu0 %v832_v56  ;;  %v884_v56 = vcombine.high %v874_v48, %v874_v48  ;;  %v361_v60 = vld [vmem:[%s2578_s10 + $0x208] sm:$0xff] }
  0x80   : > { %1307 = vmatprep.mubr.bf16.mxu1 %v836_v63  ;;  %v570_v62 = vunpack.c.l.s8.bf16 %v361_v60  ;;  %v586_v63 = vunpack.c.l.s8.bf16 %v369_v61  ;;  %v571_v3 = vunpack.c.h.s8.bf16 %v361_v60 }
  0x81   : > { %2071 = vmatpush3.bf16.msra.mxu0 %v537_v0  ;;  %v579_v0 = vunpack.c.h.s8.bf16 %v365_v53  ;;  %v385_v53 = vld [vmem:[%s2578_s10 + $0x2c8] sm:$0xff] }
  0x82   : > { %2093 = vmatpush3.bf16.msra.mxu1 %v553_v1  ;;  %2072 = vmatprep.subr.bf16.mxu0 %v546_v2  ;;  %v595_v1 = vunpack.c.h.s8.bf16 %v373_v54  ;;  %v366_v2 = vld [vmem:[%s2578_s10 + $0x230] sm:$0xff]  ;;  %v619_v61 = vunpack.c.h.s8.bf16 %v385_v53 }
  0x83   : > { %2094 = vmatprep.subr.bf16.mxu1 %v562_v55  ;;  %v374_v55 = vld [vmem:[%s2578_s10 + $0x270] sm:$0xff] }
  0x85   : > { %2073 = vmatpush3.bf16.msra.mxu0 %v538_v5  ;;  %v580_v5 = vunpack.c.l.s8.bf16 %v366_v2 }
  0x86   : > { %2095 = vmatpush3.bf16.msra.mxu1 %v554_v6  ;;  %2074 = vmatprep.subr.bf16.mxu0 %v547_v7  ;;  %v596_v6 = vunpack.c.l.s8.bf16 %v374_v55  ;;  %v362_v7 = vld [vmem:[%s2578_s10 + $0x210] sm:$0xff] }
  0x87   : > { %2096 = vmatprep.subr.bf16.mxu1 %v563_v8  ;;  %v370_v8 = vld [vmem:[%s2578_s10 + $0x250] sm:$0xff]  ;;  %v572_v9 = vunpack.c.l.s8.bf16 %v362_v7  ;;  %v573_v16 = vunpack.c.h.s8.bf16 %v362_v7  ;;  %v2732_v7 = vld [vmem:[%s2573_s30 + $0x18] sm:$0xff] }
  0x88   : > { %v588_v10 = vunpack.c.l.s8.bf16 %v370_v8 }
  0x89   : > { %2075 = vmatpush3.bf16.msra.mxu0 %v539_v11  ;;  %v581_v11 = vunpack.c.h.s8.bf16 %v366_v2 }
  0x8a   : > { %2097 = vmatpush3.bf16.msra.mxu1 %v555_v12  ;;  %2076 = vmatprep.subr.bf16.mxu0 %v548_v13  ;;  %v597_v12 = vunpack.c.h.s8.bf16 %v374_v55  ;;  %v367_v13 = vld [vmem:[%s2578_s10 + $0x238] sm:$0xff] }
  0x8b   : > { %2098 = vmatprep.subr.bf16.mxu1 %v564_v14  ;;  %v375_v14 = vld [vmem:[%s2578_s10 + $0x278] sm:$0xff]  ;;  %v583_v23 = vunpack.c.h.s8.bf16 %v367_v13 }
  0x8d   : > { %2077 = vmatpush3.bf16.msra.mxu0 %v540_v17  ;;  %v589_v17 = vunpack.c.h.s8.bf16 %v370_v8 }
  0x8e   : > { %2099 = vmatpush3.bf16.msra.mxu1 %v556_v18  ;;  %2078 = vmatprep.subr.bf16.mxu0 %v549_v19  ;;  %v582_v18 = vunpack.c.l.s8.bf16 %v367_v13  ;;  %v598_v19 = vunpack.c.l.s8.bf16 %v375_v14  ;;  %v387_v13 = vld [vmem:[%s2578_s10 + $0x2d8] sm:$0xff] }
  0x8f   : > { %2100 = vmatprep.subr.bf16.mxu1 %v565_v20  ;;  %v363_v20 = vld [vmem:[%s2578_s10 + $0x218] sm:$0xff] }
  0x91   : > { %2079 = vmatpush3.bf16.msra.mxu0 %v541_v24  ;;  %v574_v24 = vunpack.c.l.s8.bf16 %v363_v20 }
  0x92   : > { %2101 = vmatpush3.bf16.msra.mxu1 %v557_v25  ;;  %2080 = vmatprep.subr.bf16.mxu0 %v550_v26  ;;  %v590_v25 = vunpack.c.l.s8.bf16 %v371_v21  ;;  %v599_v26 = vunpack.c.h.s8.bf16 %v375_v14  ;;  %v2738_v14 = vrot.slane %v2732_v7, %v2594_v37 }
  0x93   : > { %2102 = vmatprep.subr.bf16.mxu1 %v566_v27  ;;  %v380_v27 = vld [vmem:[%s2578_s10 + $0x2a0] sm:$0xff] }
  0x95   : > { %2081 = vmatpush3.bf16.msra.mxu0 %v542_v31  ;;  %v860_v31 = vrot.slane %v2684_v30, %v2594_v37  ;;  %v609_v30 = vunpack.c.h.s8.bf16 %v380_v27 }
  0x96   : > { %2103 = vmatpush3.bf16.msra.mxu1 %v558_v32  ;;  %2082 = vmatprep.subr.bf16.mxu0 %v551_v33  ;;  %v575_v32 = vunpack.c.h.s8.bf16 %v363_v20  ;;  %v591_v33 = vunpack.c.h.s8.bf16 %v371_v21  ;;  %v404_v20 = vld [vmem:[%s2578_s10 + $0x360] sm:$0xff]  ;;  %v901_v21 = vcombine.high %v2738_v14, %v2738_v14 }
  0x97   : > { %2104 = vmatprep.subr.bf16.mxu1 %v567_v34  ;;  %v608_v34 = vunpack.c.l.s8.bf16 %v380_v27  ;;  %v656_v27 = vunpack.c.l.s8.bf16 %v404_v20 }
  0x99   : > { %2083 = vmatpush3.bf16.msra.mxu0 %v543_v42  ;;  %v882_v42 = vcombine.high %v860_v31, %v860_v31 }
  0x9a   : > { %2105 = vmatpush3.bf16.msra.mxu1 %v559_v40  ;;  %2112 = vmatprep.subr.bf16.mxu0 %v576_v43  ;;  %v600_v40 = vunpack.c.l.s8.bf16 %v376_v36  ;;  %v616_v43 = vunpack.c.l.s8.bf16 %v384_v38 }
  0x9b   : > { %2134 = vmatprep.subr.bf16.mxu1 %v592_v44  ;;  %v625_v44 = vunpack.c.h.s8.bf16 %v388_v28  ;;  %v392_v28 = vld [vmem:[%s2578_s10 + $0x300] sm:$0xff] }
  0x9c   : > { %1268 = vmatmul.mubr.bf16.vlgmr.msra.gmra.mrb[12].mxu0 %v818_v41  ;;  %v881_v41 = vrot.slane %v853_v29, %v2594_v37  ;;  %v400_v29 = vld [vmem:[%s2578_s10 + $0x340] sm:$0xff] }
  0x9d   : > { %1308 = vmatmul.mubr.bf16.vlgmr.msra.gmra.mrb[12].mxu1 %v834_v49  ;;  %2113 = vmatpush3.bf16.msra.mxu0 %v568_v50  ;;  %v601_v49 = vunpack.c.h.s8.bf16 %v376_v36  ;;  %v617_v50 = vunpack.c.h.s8.bf16 %v384_v38  ;;  %v397_v36 = vld [vmem:[%s2578_s10 + $0x328] sm:$0xff] }
  0x9e   : > { %2135 = vmatpush3.bf16.msra.mxu1 %v584_v51  ;;  %2114 = vmatprep.subr.bf16.mxu0 %v577_v39  ;;  %v610_v51 = vunpack.c.l.s8.bf16 %v381_v45  ;;  %v626_v39 = vunpack.c.l.s8.bf16 %v389_v46  ;;  %v405_v38 = vld [vmem:[%s2578_s10 + $0x368] sm:$0xff] }
  0x9f   : > { %2136 = vmatprep.subr.bf16.mxu1 %v593_v52  ;;  %1347 = vmatprep.mubr.bf16.mxu0 %v874_v48  ;;  %v885_v48 = vcombine.high %v881_v41, %v881_v41  ;;  %v377_v52 = vld [vmem:[%s2578_s10 + $0x288] sm:$0xff] }
  0xa0   : > { %1387 = vmatprep.mubr.bf16.mxu1 %v884_v56  ;;  %v602_v54 = vunpack.c.l.s8.bf16 %v377_v52  ;;  %v618_v56 = vunpack.c.l.s8.bf16 %v385_v53  ;;  %v603_v60 = vunpack.c.h.s8.bf16 %v377_v52 }
  0xa1   : > { %2115 = vmatpush3.bf16.msra.mxu0 %v569_v57  ;;  %v611_v57 = vunpack.c.h.s8.bf16 %v381_v45  ;;  %v401_v45 = vld [vmem:[%s2578_s10 + $0x348] sm:$0xff] }
  0xa2   : > { %2137 = vmatpush3.bf16.msra.mxu1 %v585_v58  ;;  %2116 = vmatprep.subr.bf16.mxu0 %v578_v59  ;;  %v627_v58 = vunpack.c.h.s8.bf16 %v389_v46  ;;  %v382_v59 = vld [vmem:[%s2578_s10 + $0x2b0] sm:$0xff]  ;;  %v651_v53 = vunpack.c.h.s8.bf16 %v401_v45 }
  0xa3   : > { %2138 = vmatprep.subr.bf16.mxu1 %v594_v47  ;;  %v390_v47 = vld [vmem:[%s2578_s10 + $0x2f0] sm:$0xff] }
  0xa5   : > { %2117 = vmatpush3.bf16.msra.mxu0 %v570_v62  ;;  %v612_v62 = vunpack.c.l.s8.bf16 %v382_v59 }
  0xa6   : > { %2139 = vmatpush3.bf16.msra.mxu1 %v586_v63  ;;  %2118 = vmatprep.subr.bf16.mxu0 %v579_v0  ;;  %v628_v63 = vunpack.c.l.s8.bf16 %v390_v47  ;;  %v378_v0 = vld [vmem:[%s2578_s10 + $0x290] sm:$0xff] }
  0xa7   : > { %2140 = vmatprep.subr.bf16.mxu1 %v595_v1  ;;  %v386_v1 = vld [vmem:[%s2578_s10 + $0x2d0] sm:$0xff]  ;;  %v604_v2 = vunpack.c.l.s8.bf16 %v378_v0  ;;  %v605_v8 = vunpack.c.h.s8.bf16 %v378_v0  ;;  %v886_v0 = vcombine.high %v2732_v7, %v2732_v7 }
  0xa8   : > { %v620_v55 = vunpack.c.l.s8.bf16 %v386_v1 }
  0xa9   : > { %2119 = vmatpush3.bf16.msra.mxu0 %v571_v3  ;;  %v613_v3 = vunpack.c.h.s8.bf16 %v382_v59 }
  0xaa   : > { %2141 = vmatpush3.bf16.msra.mxu1 %v587_v4  ;;  %2120 = vmatprep.subr.bf16.mxu0 %v580_v5  ;;  %v629_v4 = vunpack.c.h.s8.bf16 %v390_v47  ;;  %v383_v5 = vld [vmem:[%s2578_s10 + $0x2b8] sm:$0xff] }
  0xab   : > { %2142 = vmatprep.subr.bf16.mxu1 %v596_v6  ;;  %v391_v6 = vld [vmem:[%s2578_s10 + $0x2f8] sm:$0xff] }
  0xad   : > { %2121 = vmatpush3.bf16.msra.mxu0 %v572_v9  ;;  %v621_v9 = vunpack.c.h.s8.bf16 %v386_v1 }
  0xae   : > { %2143 = vmatpush3.bf16.msra.mxu1 %v588_v10  ;;  %2122 = vmatprep.subr.bf16.mxu0 %v581_v11  ;;  %v614_v10 = vunpack.c.l.s8.bf16 %v383_v5  ;;  %v630_v11 = vunpack.c.l.s8.bf16 %v391_v6 }
  0xaf   : > { %2144 = vmatprep.subr.bf16.mxu1 %v597_v12  ;;  %v379_v12 = vld [vmem:[%s2578_s10 + $0x298] sm:$0xff] }
  0xb0   : > { %v606_v15 = vunpack.c.l.s8.bf16 %v379_v12 }
  0xb1   : > { %2123 = vmatpush3.bf16.msra.mxu0 %v573_v16  ;;  %v622_v16 = vunpack.c.l.s8.bf16 %v387_v13 }
  0xb2   : > { %2145 = vmatpush3.bf16.msra.mxu1 %v589_v17  ;;  %2124 = vmatprep.subr.bf16.mxu0 %v582_v18  ;;  %v615_v17 = vunpack.c.h.s8.bf16 %v383_v5  ;;  %v631_v18 = vunpack.c.h.s8.bf16 %v391_v6  ;;  %v403_v5 = vld [vmem:[%s2578_s10 + $0x358] sm:$0xff]  ;;  %v2764_v6 = vrot.slane %v886_v0, %v2594_v37 }
  0xb3   : > { %2146 = vmatprep.subr.bf16.mxu1 %v598_v19  ;;  %v396_v19 = vld [vmem:[%s2578_s10 + $0x320] sm:$0xff] }
  0xb5   : > { %2125 = vmatpush3.bf16.msra.mxu0 %v574_v24  ;;  %v867_v24 = vrot.slane %v2710_v22, %v2594_v37  ;;  %v641_v22 = vunpack.c.h.s8.bf16 %v396_v19 }
  0xb6   : > { %2147 = vmatpush3.bf16.msra.mxu1 %v590_v25  ;;  %2126 = vmatprep.subr.bf16.mxu0 %v583_v23  ;;  %v607_v25 = vunpack.c.h.s8.bf16 %v379_v12  ;;  %v623_v23 = vunpack.c.h.s8.bf16 %v387_v13  ;;  %v420_v12 = vld [vmem:[%s2578_s10 + $0x3e0] sm:$0xff]  ;;  %v902_v13 = vcombine.high %v2764_v6, %v2764_v6 }
  0xb7   : > { %2148 = vmatprep.subr.bf16.mxu1 %v599_v26  ;;  %v640_v26 = vunpack.c.l.s8.bf16 %v396_v19  ;;  %v688_v19 = vunpack.c.l.s8.bf16 %v420_v12 }
  0xb9   : > { %2127 = vmatpush3.bf16.msra.mxu0 %v575_v32  ;;  %v883_v32 = vcombine.high %v867_v24, %v867_v24 }
  0xba   : > { %2149 = vmatpush3.bf16.msra.mxu1 %v591_v33  ;;  %2156 = vmatprep.subr.bf16.mxu0 %v608_v34  ;;  %v632_v33 = vunpack.c.l.s8.bf16 %v392_v28  ;;  %v648_v34 = vunpack.c.l.s8.bf16 %v400_v29 }
  0xbb   : > { %2178 = vmatprep.subr.bf16.mxu1 %v624_v35  ;;  %v657_v35 = vunpack.c.h.s8.bf16 %v404_v20  ;;  %v408_v20 = vld [vmem:[%s2578_s10 + $0x380] sm:$0xff] }
  0xbc   : > { %1348 = vmatmul.mubr.bf16.vlgmr.msra.gmra.mrb[16].mxu0 %v860_v31  ;;  %v923_v31 = vrot.slane %v901_v21, %v2594_v37  ;;  %v416_v21 = vld [vmem:[%s2578_s10 + $0x3c0] sm:$0xff] }
  0xbd   : > { %1388 = vmatmul.mubr.bf16.vlgmr.msra.gmra.mrb[16].mxu1 %v882_v42  ;;  %2157 = vmatpush3.bf16.msra.mxu0 %v600_v40  ;;  %v633_v42 = vunpack.c.h.s8.bf16 %v392_v28  ;;  %v649_v40 = vunpack.c.h.s8.bf16 %v400_v29  ;;  %v413_v28 = vld [vmem:[%s2578_s10 + $0x3a8] sm:$0xff] }
  0xbe   : > { %2179 = vmatpush3.bf16.msra.mxu1 %v616_v43  ;;  %2158 = vmatprep.subr.bf16.mxu0 %v609_v30  ;;  %v642_v43 = vunpack.c.l.s8.bf16 %v397_v36  ;;  %v658_v30 = vunpack.c.l.s8.bf16 %v405_v38  ;;  %v421_v29 = vld [vmem:[%s2578_s10 + $0x3e8] sm:$0xff] }
  0xbf   : > { %2180 = vmatprep.subr.bf16.mxu1 %v625_v44  ;;  %1427 = vmatprep.mubr.bf16.mxu0 %v881_v41  ;;  %v933_v41 = vcombine.high %v923_v31, %v923_v31  ;;  %v393_v44 = vld [vmem:[%s2578_s10 + $0x308] sm:$0xff] }
  0xc0   : > { %1467 = vmatprep.mubr.bf16.mxu1 %v885_v48  ;;  %v634_v46 = vunpack.c.l.s8.bf16 %v393_v44  ;;  %v650_v48 = vunpack.c.l.s8.bf16 %v401_v45  ;;  %v635_v52 = vunpack.c.h.s8.bf16 %v393_v44 }
  0xc1   : > { %2159 = vmatpush3.bf16.msra.mxu0 %v601_v49  ;;  %v643_v49 = vunpack.c.h.s8.bf16 %v397_v36  ;;  %v417_v36 = vld [vmem:[%s2578_s10 + $0x3c8] sm:$0xff] }
  0xc2   : > { %2181 = vmatpush3.bf16.msra.mxu1 %v617_v50  ;;  %2160 = vmatprep.subr.bf16.mxu0 %v610_v51  ;;  %v659_v50 = vunpack.c.h.s8.bf16 %v405_v38  ;;  %v398_v51 = vld [vmem:[%s2578_s10 + $0x330] sm:$0xff]  ;;  %v683_v45 = vunpack.c.h.s8.bf16 %v417_v36 }
  0xc3   : > { %2182 = vmatprep.subr.bf16.mxu1 %v626_v39  ;;  %v406_v39 = vld [vmem:[%s2578_s10 + $0x370] sm:$0xff] }
  0xc5   : > { %2161 = vmatpush3.bf16.msra.mxu0 %v602_v54  ;;  %v644_v54 = vunpack.c.l.s8.bf16 %v398_v51 }
  0xc6   : > { %2183 = vmatpush3.bf16.msra.mxu1 %v618_v56  ;;  %2162 = vmatprep.subr.bf16.mxu0 %v611_v57  ;;  %v660_v56 = vunpack.c.l.s8.bf16 %v406_v39  ;;  %v394_v57 = vld [vmem:[%s2578_s10 + $0x310] sm:$0xff] }
  0xc7   : > { %2184 = vmatprep.subr.bf16.mxu1 %v627_v58  ;;  %v402_v58 = vld [vmem:[%s2578_s10 + $0x350] sm:$0xff]  ;;  %v636_v59 = vunpack.c.l.s8.bf16 %v394_v57  ;;  %v637_v1 = vunpack.c.h.s8.bf16 %v394_v57 }
  0xc8   : > { %v652_v47 = vunpack.c.l.s8.bf16 %v402_v58 }
  0xc9   : > { %2163 = vmatpush3.bf16.msra.mxu0 %v603_v60  ;;  %v645_v60 = vunpack.c.h.s8.bf16 %v398_v51 }
  0xca   : > { %2185 = vmatpush3.bf16.msra.mxu1 %v619_v61  ;;  %2164 = vmatprep.subr.bf16.mxu0 %v612_v62  ;;  %v661_v61 = vunpack.c.h.s8.bf16 %v406_v39  ;;  %v399_v62 = vld [vmem:[%s2578_s10 + $0x338] sm:$0xff] }
  0xcb   : > { %2186 = vmatprep.subr.bf16.mxu1 %v628_v63  ;;  %v407_v63 = vld [vmem:[%s2578_s10 + $0x378] sm:$0xff]  ;;  %v647_v7 = vunpack.c.h.s8.bf16 %v399_v62 }
  0xcd   : > { %2165 = vmatpush3.bf16.msra.mxu0 %v604_v2  ;;  %v653_v2 = vunpack.c.h.s8.bf16 %v402_v58 }
  0xce   : > { %2187 = vmatpush3.bf16.msra.mxu1 %v620_v55  ;;  %2166 = vmatprep.subr.bf16.mxu0 %v613_v3  ;;  %v646_v55 = vunpack.c.l.s8.bf16 %v399_v62  ;;  %v662_v3 = vunpack.c.l.s8.bf16 %v407_v63 }
  0xcf   : > { %2188 = vmatprep.subr.bf16.mxu1 %v629_v4  ;;  %v395_v4 = vld [vmem:[%s2578_s10 + $0x318] sm:$0xff] }
  0xd1   : > { %2167 = vmatpush3.bf16.msra.mxu0 %v605_v8  ;;  %v638_v8 = vunpack.c.l.s8.bf16 %v395_v4 }
  0xd2   : > { %2189 = vmatpush3.bf16.msra.mxu1 %v621_v9  ;;  %2168 = vmatprep.subr.bf16.mxu0 %v614_v10  ;;  %v654_v9 = vunpack.c.l.s8.bf16 %v403_v5  ;;  %v663_v10 = vunpack.c.h.s8.bf16 %v407_v63 }
  0xd3   : > { %2190 = vmatprep.subr.bf16.mxu1 %v630_v11  ;;  %v412_v11 = vld [vmem:[%s2578_s10 + $0x3a0] sm:$0xff] }
  0xd5   : > { %2169 = vmatpush3.bf16.msra.mxu0 %v606_v15  ;;  %v909_v15 = vrot.slane %v2738_v14, %v2594_v37  ;;  %v673_v14 = vunpack.c.h.s8.bf16 %v412_v11 }
  0xd6   : > { %2191 = vmatpush3.bf16.msra.mxu1 %v622_v16  ;;  %2170 = vmatprep.subr.bf16.mxu0 %v615_v17  ;;  %v639_v16 = vunpack.c.h.s8.bf16 %v395_v4  ;;  %v655_v17 = vunpack.c.h.s8.bf16 %v403_v5 }
  0xd7   : > { %2192 = vmatprep.subr.bf16.mxu1 %v631_v18  ;;  %v672_v18 = vunpack.c.l.s8.bf16 %v412_v11 }
  0xd9   : > { %2171 = vmatpush3.bf16.msra.mxu0 %v607_v25  ;;  %v931_v25 = vcombine.high %v909_v15, %v909_v15 }
  0xda   : > { %2193 = vmatpush3.bf16.msra.mxu1 %v623_v23  ;;  %2200 = vmatprep.subr.bf16.mxu0 %v640_v26  ;;  %v664_v23 = vunpack.c.l.s8.bf16 %v408_v20  ;;  %v680_v26 = vunpack.c.l.s8.bf16 %v416_v21 }
  0xdb   : > { %2222 = vmatprep.subr.bf16.mxu1 %v656_v27  ;;  %v689_v27 = vunpack.c.h.s8.bf16 %v420_v12 }
  0xdc   : > { %1428 = vmatmul.mubr.bf16.vlgmr.msra.gmra.mrb[20].mxu0 %v867_v24  ;;  %v930_v24 = vrot.slane %v902_v13, %v2594_v37 }
  0xdd   : > { %1468 = vmatmul.mubr.bf16.vlgmr.msra.gmra.mrb[20].mxu1 %v883_v32  ;;  %2201 = vmatpush3.bf16.msra.mxu0 %v632_v33  ;;  %v665_v32 = vunpack.c.h.s8.bf16 %v408_v20  ;;  %v681_v33 = vunpack.c.h.s8.bf16 %v416_v21 }
  0xde   : > { %2223 = vmatpush3.bf16.msra.mxu1 %v648_v34  ;;  %2202 = vmatprep.subr.bf16.mxu0 %v641_v22  ;;  %v674_v34 = vunpack.c.l.s8.bf16 %v413_v28  ;;  %v690_v22 = vunpack.c.l.s8.bf16 %v421_v29 }
  0xdf   : > { %2224 = vmatprep.subr.bf16.mxu1 %v657_v35  ;;  %1507 = vmatprep.mubr.bf16.mxu0 %v923_v31  ;;  %v934_v31 = vcombine.high %v930_v24, %v930_v24  ;;  %v409_v35 = vld [vmem:[%s2578_s10 + $0x388] sm:$0xff] }
  0xe0   : > { %1547 = vmatprep.mubr.bf16.mxu1 %v933_v41  ;;  %v666_v38 = vunpack.c.l.s8.bf16 %v409_v35  ;;  %v682_v41 = vunpack.c.l.s8.bf16 %v417_v36  ;;  %v667_v44 = vunpack.c.h.s8.bf16 %v409_v35 }
  0xe1   : > { %2203 = vmatpush3.bf16.msra.mxu0 %v633_v42  ;;  %v675_v42 = vunpack.c.h.s8.bf16 %v413_v28 }
  0xe2   : > { %2225 = vmatpush3.bf16.msra.mxu1 %v649_v40  ;;  %2204 = vmatprep.subr.bf16.mxu0 %v642_v43  ;;  %v691_v40 = vunpack.c.h.s8.bf16 %v421_v29  ;;  %v414_v43 = vld [vmem:[%s2578_s10 + $0x3b0] sm:$0xff] }
  0xe3   : > { %2226 = vmatprep.subr.bf16.mxu1 %v658_v30  ;;  %v422_v30 = vld [vmem:[%s2578_s10 + $0x3f0] sm:$0xff] }
  0xe5   : > { %2205 = vmatpush3.bf16.msra.mxu0 %v634_v46  ;;  %v676_v46 = vunpack.c.l.s8.bf16 %v414_v43 }
  0xe6   : > { %2227 = vmatpush3.bf16.msra.mxu1 %v650_v48  ;;  %2206 = vmatprep.subr.bf16.mxu0 %v643_v49  ;;  %v692_v48 = vunpack.c.l.s8.bf16 %v422_v30  ;;  %v410_v49 = vld [vmem:[%s2578_s10 + $0x390] sm:$0xff] }
  0xe7   : > { %2228 = vmatprep.subr.bf16.mxu1 %v659_v50  ;;  %v418_v50 = vld [vmem:[%s2578_s10 + $0x3d0] sm:$0xff]  ;;  %v668_v51 = vunpack.c.l.s8.bf16 %v410_v49  ;;  %v669_v57 = vunpack.c.h.s8.bf16 %v410_v49 }
  0xe8   : > { %v684_v39 = vunpack.c.l.s8.bf16 %v418_v50  ;;  %v685_v58 = vunpack.c.h.s8.bf16 %v418_v50 }
  0xe9   : > { %2207 = vmatpush3.bf16.msra.mxu0 %v635_v52  ;;  %v677_v52 = vunpack.c.h.s8.bf16 %v414_v43 }
  0xea   : > { %2229 = vmatpush3.bf16.msra.mxu1 %v651_v53  ;;  %2208 = vmatprep.subr.bf16.mxu0 %v644_v54  ;;  %v693_v53 = vunpack.c.h.s8.bf16 %v422_v30  ;;  %v415_v54 = vld [vmem:[%s2578_s10 + $0x3b8] sm:$0xff] }
  0xeb   : > { %2230 = vmatprep.subr.bf16.mxu1 %v660_v56  ;;  %v423_v56 = vld [vmem:[%s2578_s10 + $0x3f8] sm:$0xff]  ;;  %v679_v11 = vunpack.c.h.s8.bf16 %v415_v54 }
  0xec   : > { %v695_v12 = vunpack.c.h.s8.bf16 %v423_v56 }
  0xed   : > { %2209 = vmatpush3.bf16.msra.mxu0 %v636_v59  ;;  %v678_v59 = vunpack.c.l.s8.bf16 %v415_v54 }
  0xee   : > { %2231 = vmatpush3.bf16.msra.mxu1 %v652_v47  ;;  %2210 = vmatprep.subr.bf16.mxu0 %v645_v60  ;;  %v694_v47 = vunpack.c.l.s8.bf16 %v423_v56  ;;  %v411_v60 = vld [vmem:[%s2578_s10 + $0x398] sm:$0xff] }
  0xef   : > { %2232 = vmatprep.subr.bf16.mxu1 %v661_v61  ;;  %v419_v61 = vld [vmem:[%s2578_s10 + $0x3d8] sm:$0xff] }
  0xf0   : > { %v687_v20 = vunpack.c.h.s8.bf16 %v419_v61 }
  0xf1   : > { %2211 = vmatpush3.bf16.msra.mxu0 %v637_v1 }
  0xf2   : > { %2233 = vmatpush3.bf16.msra.mxu1 %v653_v2  ;;  %2212 = vmatprep.subr.bf16.mxu0 %v646_v55  ;;  %v2788_v2 = vld.sshfl [vmem:[%s2573_s30 + $0x20] sm:$0x33 pattern:$0x75316420] }
  0xf3   : > { %2234 = vmatprep.subr.bf16.mxu1 %v662_v3 }
  0xf5   : > { %2213 = vmatpush3.bf16.msra.mxu0 %v638_v8  ;;  %v670_v8 = vunpack.c.l.s8.bf16 %v411_v60 }
  0xf6   : > { %2235 = vmatpush3.bf16.msra.mxu1 %v654_v9  ;;  %2214 = vmatprep.subr.bf16.mxu0 %v647_v7  ;;  %v686_v9 = vunpack.c.l.s8.bf16 %v419_v61 }
  0xf7   : > { %2236 = vmatprep.subr.bf16.mxu1 %v663_v10 }
  0xf9   : > { %2215 = vmatpush3.bf16.msra.mxu0 %v639_v16  ;;  %v436_v16 = vld [vmem:[%s2578_s10 + $0x460] sm:$0xff] }
  0xfa   : > { %2237 = vmatpush3.bf16.msra.mxu1 %v655_v17  ;;  %2244 = vmatprep.subr.bf16.mxu0 %v672_v18  ;;  %v942_v17 = vcombine.high %v2788_v2, %v2788_v2  ;;  %v916_v18 = vrot.slane %v2764_v6, %v2594_v37  ;;  %v721_v29 = vunpack.c.h.s8.bf16 %v436_v16 }
  0xfb   : > { %2266 = vmatprep.subr.bf16.mxu1 %v688_v19  ;;  %v671_v19 = vunpack.c.h.s8.bf16 %v411_v60 }
  0xfc   : > { %1508 = vmatmul.mubr.bf16.vlgmr.msra.gmra.mrb[24].mxu0 %v909_v15  ;;  %v428_v15 = vld [vmem:[%s2578_s10 + $0x420] sm:$0xff] }
  0xfd   : > { %1548 = vmatmul.mubr.bf16.vlgmr.msra.gmra.mrb[24].mxu1 %v931_v25  ;;  %2245 = vmatpush3.bf16.msra.mxu0 %v664_v23  ;;  %v704_v21 = vunpack.c.l.s8.bf16 %v428_v15  ;;  %v424_v25 = vld [vmem:[%s2578_s10 + $0x400] sm:$0xff]  ;;  %v705_v6 = vunpack.c.h.s8.bf16 %v428_v15 }
  0xfe   : > { %2267 = vmatpush3.bf16.msra.mxu1 %v680_v26  ;;  %2246 = vmatprep.subr.bf16.mxu0 %v673_v14  ;;  %v432_v23 = vld [vmem:[%s2578_s10 + $0x440] sm:$0xff]  ;;  %v956_v26 = vrot.slane %v942_v17, %v2594_v37  ;;  %v932_v14 = vcombine.high %v916_v18, %v916_v18 }
  0xff   : > { %2268 = vmatprep.subr.bf16.mxu1 %v689_v27  ;;  %1587 = vmatprep.mubr.bf16.mxu0 %v930_v24  ;;  %v720_v24 = vunpack.c.l.s8.bf16 %v436_v16  ;;  %v696_v27 = vunpack.c.l.s8.bf16 %v424_v25  ;;  %v712_v28 = vunpack.c.l.s8.bf16 %v432_v23 }
 0x100   : > { %1627 = vmatprep.mubr.bf16.mxu1 %v934_v31  ;;  %v429_v31 = vld [vmem:[%s2578_s10 + $0x428] sm:$0xff] }
 0x101   : > { %2247 = vmatpush3.bf16.msra.mxu0 %v665_v32  ;;  %v437_v32 = vld [vmem:[%s2578_s10 + $0x468] sm:$0xff]  ;;  %v706_v35 = vunpack.c.l.s8.bf16 %v429_v31  ;;  %v707_v43 = vunpack.c.h.s8.bf16 %v429_v31 }
 0x102   : > { %2269 = vmatpush3.bf16.msra.mxu1 %v681_v33  ;;  %2248 = vmatprep.subr.bf16.mxu0 %v674_v34  ;;  %v958_v33 = vcombine.high %v956_v26, %v956_v26  ;;  %v697_v34 = vunpack.c.h.s8.bf16 %v424_v25  ;;  %v722_v36 = vunpack.c.l.s8.bf16 %v437_v32  ;;  %v723_v30 = vunpack.c.h.s8.bf16 %v437_v32 }
 0x103   : > { %2270 = vmatprep.subr.bf16.mxu1 %v690_v22  ;;  %v713_v22 = vunpack.c.h.s8.bf16 %v432_v23 }
 0x105   : > { %2249 = vmatpush3.bf16.msra.mxu0 %v666_v38  ;;  %v425_v38 = vld [vmem:[%s2578_s10 + $0x408] sm:$0xff] }
 0x106   : > { %2271 = vmatpush3.bf16.msra.mxu1 %v682_v41  ;;  %2250 = vmatprep.subr.bf16.mxu0 %v675_v42  ;;  %v433_v41 = vld [vmem:[%s2578_s10 + $0x448] sm:$0xff]  ;;  %v698_v42 = vunpack.c.l.s8.bf16 %v425_v38 }
 0x107   : > { %2272 = vmatprep.subr.bf16.mxu1 %v691_v40  ;;  %v714_v40 = vunpack.c.l.s8.bf16 %v433_v41 }
 0x109   : > { %2251 = vmatpush3.bf16.msra.mxu0 %v667_v44  ;;  %v430_v44 = vld [vmem:[%s2578_s10 + $0x430] sm:$0xff] }
 0x10a   : > { %2273 = vmatpush3.bf16.msra.mxu1 %v683_v45  ;;  %2252 = vmatprep.subr.bf16.mxu0 %v676_v46  ;;  %v438_v45 = vld [vmem:[%s2578_s10 + $0x470] sm:$0xff]  ;;  %v699_v46 = vunpack.c.h.s8.bf16 %v425_v38  ;;  %v708_v49 = vunpack.c.l.s8.bf16 %v430_v44  ;;  %v709_v54 = vunpack.c.h.s8.bf16 %v430_v44 }
 0x10b   : > { %2274 = vmatprep.subr.bf16.mxu1 %v692_v48  ;;  %v715_v48 = vunpack.c.h.s8.bf16 %v433_v41  ;;  %v724_v50 = vunpack.c.l.s8.bf16 %v438_v45  ;;  %v725_v56 = vunpack.c.h.s8.bf16 %v438_v45 }
 0x10d   : > { %2253 = vmatpush3.bf16.msra.mxu0 %v668_v51  ;;  %v426_v51 = vld [vmem:[%s2578_s10 + $0x410] sm:$0xff] }
 0x10e   : > { %2275 = vmatpush3.bf16.msra.mxu1 %v684_v39  ;;  %2254 = vmatprep.subr.bf16.mxu0 %v677_v52  ;;  %v434_v39 = vld [vmem:[%s2578_s10 + $0x450] sm:$0xff]  ;;  %v700_v52 = vunpack.c.l.s8.bf16 %v426_v51 }
 0x10f   : > { %2276 = vmatprep.subr.bf16.mxu1 %v693_v53  ;;  %v1952_v62 = vpop.f32.mrb[0].mxu0  ;;  %v716_v53 = vunpack.c.l.s8.bf16 %v434_v39 }
 0x110   : > { %v1974_v63 = vpop.f32.mrb[0].mxu1  ;;  %v1953_v0 = vpop.f32.mrb[1].mxu0 }
 0x111   : > { %v1975_v1 = vpop.f32.mrb[1].mxu1  ;;  %v1954_v55 = vadd.f32 %v1953_v0, %v1952_v62  ;;  %v1955_v4 = vpop.f32.mrb[2].mxu0  ;;  %2255 = vmatpush3.bf16.msra.mxu0 %v669_v57  ;;  %v431_v57 = vld [vmem:[%s2578_s10 + $0x438] sm:$0xff] }
 0x112   : > { %v1976_v3 = vadd.f32 %v1975_v1, %v1974_v63  ;;  %v1977_v5 = vpop.f32.mrb[2].mxu1  ;;  %2277 = vmatpush3.bf16.msra.mxu1 %v685_v58  ;;  %v1956_v7 = vpop.f32.mrb[3].mxu0  ;;  %2256 = vmatprep.subr.bf16.mxu0 %v678_v59  ;;  %v439_v58 = vld [vmem:[%s2578_s10 + $0x478] sm:$0xff]  ;;  %v701_v59 = vunpack.c.h.s8.bf16 %v426_v51  ;;  %v710_v60 = vunpack.c.l.s8.bf16 %v431_v57  ;;  %v711_v15 = vunpack.c.h.s8.bf16 %v431_v57 }
 0x113   : > { %v1978_v10 = vpop.f32.mrb[3].mxu1  ;;  %2278 = vmatprep.subr.bf16.mxu1 %v694_v47  ;;  %v717_v47 = vunpack.c.h.s8.bf16 %v434_v39  ;;  %v726_v61 = vunpack.c.l.s8.bf16 %v439_v58  ;;  %v427_v62 = vld [vmem:[%s2578_s10 + $0x418] sm:$0xff]  ;;  %v727_v16 = vunpack.c.h.s8.bf16 %v439_v58 }
 0x114   : > { %v2790_v13 = vadd.f32 %v1976_v3, %v1954_v55  ;;  %v435_v63 = vld [vmem:[%s2578_s10 + $0x458] sm:$0xff]  ;;  %v702_v7 = vunpack.c.l.s8.bf16 %v427_v62 }
 0x115   : > { %2257 = vmatpush3.bf16.msra.mxu0 %v670_v8  ;;  %v718_v10 = vunpack.c.l.s8.bf16 %v435_v63 }
 0x116   : > { %2279 = vmatpush3.bf16.msra.mxu1 %v686_v9  ;;  %2258 = vmatprep.subr.bf16.mxu0 %v679_v11 }
 0x117   : > { %2280 = vmatprep.subr.bf16.mxu1 %v695_v12 }
 0x119   : > { %2259 = vmatpush3.bf16.msra.mxu0 %v671_v19 }
 0x11a   : > { %2281 = vmatpush3.bf16.msra.mxu1 %v687_v20  ;;  %2288 = vmatprep.subr.bf16.mxu0 %v704_v21  ;;  %v703_v20 = vunpack.c.h.s8.bf16 %v427_v62  ;;  %v719_v21 = vunpack.c.h.s8.bf16 %v435_v63 }
 0x11b   : > { %2310 = vmatprep.subr.bf16.mxu1 %v720_v24 }
 0x11c   : > { %1588 = vmatmul.mubr.bf16.vlgmr.msra.gmra.mrb[28].mxu0 %v916_v18  ;;  %v949_v18 = vrot.slane %v2788_v2, %v2594_v37 }
 0x11d   : > { %1628 = vmatmul.mubr.bf16.vlgmr.msra.gmra.mrb[28].mxu1 %v932_v14  ;;  %2289 = vmatpush3.bf16.msra.mxu0 %v696_v27 }
 0x11e   : > { %2311 = vmatpush3.bf16.msra.mxu1 %v712_v28  ;;  %2290 = vmatprep.subr.bf16.mxu0 %v705_v6  ;;  %v957_v24 = vcombine.high %v949_v18, %v949_v18 }
 0x11f   : > { %2312 = vmatprep.subr.bf16.mxu1 %v721_v29  ;;  %1667 = vmatprep.mubr.bf16.mxu0 %v956_v26 }
 0x120   : > { %1707 = vmatprep.mubr.bf16.mxu1 %v958_v33 }
 0x121   : > { %2291 = vmatpush3.bf16.msra.mxu0 %v697_v34 }
 0x122   : > { %2313 = vmatpush3.bf16.msra.mxu1 %v713_v22  ;;  %2292 = vmatprep.subr.bf16.mxu0 %v706_v35 }
 0x123   : > { %2314 = vmatprep.subr.bf16.mxu1 %v722_v36 }
 0x125   : > { %2293 = vmatpush3.bf16.msra.mxu0 %v698_v42 }
 0x126   : > { %2315 = vmatpush3.bf16.msra.mxu1 %v714_v40  ;;  %2294 = vmatprep.subr.bf16.mxu0 %v707_v43 }
 0x127   : > { %2316 = vmatprep.subr.bf16.mxu1 %v723_v30 }
 0x129   : > { %2295 = vmatpush3.bf16.msra.mxu0 %v699_v46 }
 0x12a   : > { %2317 = vmatpush3.bf16.msra.mxu1 %v715_v48  ;;  %2296 = vmatprep.subr.bf16.mxu0 %v708_v49 }
 0x12b   : > { %2318 = vmatprep.subr.bf16.mxu1 %v724_v50 }
 0x12d   : > { %2297 = vmatpush3.bf16.msra.mxu0 %v700_v52 }
 0x12e   : > { %2319 = vmatpush3.bf16.msra.mxu1 %v716_v53  ;;  %2298 = vmatprep.subr.bf16.mxu0 %v709_v54 }
 0x12f   : > { %2320 = vmatprep.subr.bf16.mxu1 %v725_v56  ;;  %v1996_v0 = vpop.f32.mrb[4].mxu0 }
 0x130   : > { %v2018_v1 = vpop.f32.mrb[4].mxu1  ;;  %v1997_v55 = vpop.f32.mrb[5].mxu0 }
 0x131   : > { %v2019_v3 = vpop.f32.mrb[5].mxu1  ;;  %v1998_v4 = vadd.f32 %v1997_v55, %v1996_v0  ;;  %v1999_v8 = vpop.f32.mrb[6].mxu0  ;;  %2299 = vmatpush3.bf16.msra.mxu0 %v701_v59 }
 0x132   : > { %v2020_v5 = vadd.f32 %v2019_v3, %v2018_v1  ;;  %v2021_v9 = vpop.f32.mrb[6].mxu1  ;;  %2321 = vmatpush3.bf16.msra.mxu1 %v717_v47  ;;  %v2000_v11 = vpop.f32.mrb[7].mxu0  ;;  %2300 = vmatprep.subr.bf16.mxu0 %v710_v60 }
 0x133   : > { %v2022_v12 = vpop.f32.mrb[7].mxu1  ;;  %2322 = vmatprep.subr.bf16.mxu1 %v726_v61  ;;  %v1110_v17 = vadd.f32 %v1998_v4, %v2790_v13 }
 0x135   : > { %v1150_v19 = vadd.f32 %v2020_v5, %v1110_v17  ;;  %2301 = vmatpush3.bf16.msra.mxu0 %v702_v7 }
 0x136   : > { %2323 = vmatpush3.bf16.msra.mxu1 %v718_v10  ;;  %2302 = vmatprep.subr.bf16.mxu0 %v711_v15 }
 0x137   : > { %2324 = vmatprep.subr.bf16.mxu1 %v727_v16 }
 0x139   : > { %2303 = vmatpush3.bf16.msra.mxu0 %v703_v20 }
 0x13a   : > { %2325 = vmatpush3.bf16.msra.mxu1 %v719_v21 }
 0x13c   : > { %1668 = vmatmul.mubr.bf16.vlgmr.msra.gmra.mrb[32].mxu0 %v949_v18 }
 0x13d   : > { %1708 = vmatmul.mubr.bf16.vlgmr.msra.gmra.mrb[32].mxu1 %v957_v24 }
 0x14f   : > { %v2040_v25 = vpop.f32.mrb[8].mxu0 }
 0x150   : > { %v2062_v23 = vpop.f32.mrb[8].mxu1  ;;  %v2041_v26 = vpop.f32.mrb[9].mxu0 }
 0x151   : > { %v2063_v14 = vpop.f32.mrb[9].mxu1  ;;  %v2042_v13 = vadd.f32 %v2041_v26, %v2040_v25  ;;  %v2043_v28 = vpop.f32.mrb[10].mxu0 }
 0x152   : > { %v2064_v27 = vadd.f32 %v2063_v14, %v2062_v23  ;;  %v2065_v37 = vpop.f32.mrb[10].mxu1  ;;  %v2044_v2 = vpop.f32.mrb[11].mxu0 }
 0x153   : > { %v2066_v6 = vpop.f32.mrb[11].mxu1  ;;  %v1190_v29 = vadd.f32 %v2042_v13, %v1150_v19 }
 0x155   : > { %v1230_v31 = vadd.f32 %v2064_v27, %v1190_v29 }
 0x16f   : > { %v2084_v32 = vpop.f32.mrb[12].mxu0 }
 0x170   : > { %v2106_v33 = vpop.f32.mrb[12].mxu1  ;;  %v2085_v34 = vpop.f32.mrb[13].mxu0 }
 0x171   : > { %v2107_v22 = vpop.f32.mrb[13].mxu1  ;;  %v2086_v35 = vadd.f32 %v2085_v34, %v2084_v32  ;;  %v2087_v38 = vpop.f32.mrb[14].mxu0 }
 0x172   : > { %v2108_v36 = vadd.f32 %v2107_v22, %v2106_v33  ;;  %v2109_v41 = vpop.f32.mrb[14].mxu1  ;;  %v2088_v42 = vpop.f32.mrb[15].mxu0 }
 0x173   : > { %v2110_v40 = vpop.f32.mrb[15].mxu1  ;;  %v1270_v43 = vadd.f32 %v2086_v35, %v1230_v31  ;;  %v728_v41 = vld [vmem:[#allocation2] sm:$0x3] }
 0x175   : > { %v1310_v30 = vadd.f32 %v2108_v36, %v1270_v43  ;;  %v1739_v43 = vld [vmem:[%s2918_s4] sm:$0xff] (!%p1928_p7) }
 0x18f   : > { %v2128_v44 = vpop.f32.mrb[16].mxu0 }
 0x190   : > { %v2150_v45 = vpop.f32.mrb[16].mxu1  ;;  %v2129_v46 = vpop.f32.mrb[17].mxu0 }
 0x191   : > { %v2151_v48 = vpop.f32.mrb[17].mxu1  ;;  %v2130_v49 = vadd.f32 %v2129_v46, %v2128_v44  ;;  %v2131_v51 = vpop.f32.mrb[18].mxu0  ;;  %v1741_v44 = vld [vmem:[%s2918_s4 + $0x10] sm:$0xff] (!%p1928_p7) }
 0x192   : > { %v2152_v50 = vadd.f32 %v2151_v48, %v2150_v45  ;;  %v2153_v39 = vpop.f32.mrb[18].mxu1  ;;  %v2132_v52 = vpop.f32.mrb[19].mxu0  ;;  %v2508_v45 = vmov (!%p1928_p7), 0.0|0.0   ;;  %v1742_v48 = vld [vmem:[%s2918_s4 + $0x18] sm:$0xff] (!%p1928_p7)  ;;  %v1743_v51 = vld [vmem:[%s2918_s4 + $0x20] sm:$0xff] (!%p1928_p7) }
 0x193   : > { %v2154_v53 = vpop.f32.mrb[19].mxu1  ;;  %v1350_v54 = vadd.f32 %v2130_v49, %v1310_v30  ;;  %v1740_v30 = vld [vmem:[%s2918_s4 + $0x8] sm:$0xff] (!%p1928_p7)  ;;  %2384 = vmatprep.subr.bf16.mxu0 (!%p1928_p7), %v2508_v45  ;;  %v2510_v49 = vmov (!%p1928_p7), 0.0  }
 0x194   : > { %v2385_v46 = vpack.c.bf16 (!%p1928_p7), %v1740_v30, %v1739_v43  ;;  %2381 = vmatprep.mubr.msk.f32.mxu0 (!%p1928_p7), %vm2509_vm0, %v2510_v49  ;;  %v1744_v39 = vld [vmem:[%s2918_s4 + $0x28] sm:$0xff] (!%p1928_p7)  ;;  %v1745_v53 = vld [vmem:[%s2918_s4 + $0x30] sm:$0xff] (!%p1928_p7) }
 0x195   : > { %v1390_v56 = vadd.f32 %v2152_v50, %v1350_v54  ;;  %v2388_v50 = vpack.c.bf16 (!%p1928_p7), %v1742_v48, %v1741_v44  ;;  %v2391_v52 = vpack.c.bf16 (!%p1928_p7), %v1744_v39, %v1743_v51  ;;  %v1746_v54 = vld [vmem:[%s2918_s4 + $0x38] sm:$0xff] (!%p1928_p7) }
 0x196   : > { %2386 = vmatpush3.bf16.msra.mxu0 (!%p1928_p7), %v2385_v46 }
 0x197   : > { %2387 = vmatprep.subr.bf16.mxu0 (!%p1928_p7), %v2508_v45 }
 0x19a   : > { %2389 = vmatpush3.bf16.msra.mxu0 (!%p1928_p7), %v2388_v50 }
 0x19b   : > { %2390 = vmatprep.subr.bf16.mxu0 (!%p1928_p7), %v2508_v45 }
 0x19e   : > { %2392 = vmatpush3.bf16.msra.mxu0 (!%p1928_p7), %v2391_v52 }
 0x19f   : > { %2393 = vmatprep.subr.bf16.mxu0 (!%p1928_p7), %v2508_v45 }
 0x1af   : > { %v2172_v57 = vpop.f32.mrb[20].mxu0 }
 0x1b0   : > { %v2194_v58 = vpop.f32.mrb[20].mxu1  ;;  %v2173_v59 = vpop.f32.mrb[21].mxu0 }
 0x1b1   : > { %v2195_v47 = vpop.f32.mrb[21].mxu1  ;;  %v2174_v60 = vadd.f32 %v2173_v59, %v2172_v57  ;;  %v2175_v62 = vpop.f32.mrb[22].mxu0  ;;  %v1747_v57 = vld [vmem:[%s2918_s4 + $0x40] sm:$0xff] (!%p1928_p7) }
 0x1b2   : > { %v2196_v61 = vadd.f32 %v2195_v47, %v2194_v58  ;;  %v2197_v63 = vpop.f32.mrb[22].mxu1  ;;  %v2176_v0 = vpop.f32.mrb[23].mxu0  ;;  %v1748_v58 = vld [vmem:[%s2918_s4 + $0x48] sm:$0xff] (!%p1928_p7)  ;;  %v1749_v47 = vld [vmem:[%s2918_s4 + $0x50] sm:$0xff] (!%p1928_p7) }
 0x1b3   : > { %v2198_v1 = vpop.f32.mrb[23].mxu1  ;;  %v1430_v55 = vadd.f32 %v2174_v60, %v1390_v56  ;;  %v2394_v56 = vpack.c.bf16 (!%p1928_p7), %v1746_v54, %v1745_v53  ;;  %v2397_v59 = vpack.c.bf16 (!%p1928_p7), %v1748_v58, %v1747_v57  ;;  %v1750_v60 = vld [vmem:[%s2918_s4 + $0x58] sm:$0xff] (!%p1928_p7)  ;;  %v1929_v63 = vld [vmem:[%s2916_s2] ss:$0 sm:$0xff] (!%p1928_p7) }
 0x1b4   : > { %v1751_v0 = vld [vmem:[%s2918_s4 + $0x60] sm:$0xff] (!%p1928_p7)  ;;  %v1752_v1 = vld [vmem:[%s2918_s4 + $0x68] sm:$0xff] (!%p1928_p7) }
 0x1b5   : > { %v1470_v3 = vadd.f32 %v2196_v61, %v1430_v55  ;;  %2395 = vmatpush3.bf16.msra.mxu0 (!%p1928_p7), %v2394_v56  ;;  %v2400_v61 = vpack.c.bf16 (!%p1928_p7), %v1750_v60, %v1749_v47 }
 0x1b6   : > { %2396 = vmatprep.subr.bf16.mxu0 (!%p1928_p7), %v2508_v45 }
 0x1b9   : > { %2398 = vmatpush3.bf16.msra.mxu0 (!%p1928_p7), %v2397_v59 }
 0x1ba   : > { %2399 = vmatprep.subr.bf16.mxu0 (!%p1928_p7), %v2508_v45 }
 0x1bd   : > { %2401 = vmatpush3.bf16.msra.mxu0 (!%p1928_p7), %v2400_v61 }
 0x1be   : > { %2402 = vmatprep.subr.bf16.mxu0 (!%p1928_p7), %v2508_v45 }
 0x1cf   : > { %v2216_v4 = vpop.f32.mrb[24].mxu0 }
 0x1d0   : > { %v2238_v5 = vpop.f32.mrb[24].mxu1  ;;  %v2217_v8 = vpop.f32.mrb[25].mxu0 }
 0x1d1   : > { %v2239_v9 = vpop.f32.mrb[25].mxu1  ;;  %v2218_v7 = vadd.f32 %v2217_v8, %v2216_v4  ;;  %v2219_v11 = vpop.f32.mrb[26].mxu0  ;;  %v1930_v4 = vld [vmem:[%s2917_s3] ss:$0 sm:$0xff] (!%p1928_p7)  ;;  %v1754_v8 = vld [vmem:[%s2918_s4 + $0x78] sm:$0xff] (!%p1928_p7) }
 0x1d2   : > { %v2240_v10 = vadd.f32 %v2239_v9, %v2238_v5  ;;  %v2241_v12 = vpop.f32.mrb[26].mxu1  ;;  %v2220_v15 = vpop.f32.mrb[27].mxu0  ;;  %v1753_v5 = vld [vmem:[%s2918_s4 + $0x70] sm:$0xff] (!%p1928_p7)  ;;  %v1931_v11 = vld [vmem:[%s2919_s5] ss:$0 sm:$0xff] (!%p1928_p7) }
 0x1d3   : > { %v2242_v16 = vpop.f32.mrb[27].mxu1  ;;  %v1510_v17 = vadd.f32 %v2218_v7, %v1470_v3  ;;  %v2403_v3 = vpack.c.bf16 (!%p1928_p7), %v1752_v1, %v1751_v0  ;;  %v2406_v7 = vpack.c.bf16 (!%p1928_p7), %v1754_v8, %v1753_v5 }
 0x1d5   : > { %v1550_v18 = vadd.f32 %v2240_v10, %v1510_v17  ;;  %2404 = vmatpush3.bf16.msra.mxu0 (!%p1928_p7), %v2403_v3 }
 0x1d6   : > { %2405 = vmatprep.subr.bf16.mxu0 (!%p1928_p7), %v2508_v45 }
 0x1d9   : > { %2407 = vmatpush3.bf16.msra.mxu0 (!%p1928_p7), %v2406_v7 }
 0x1ef   : > { %v2260_v19 = vpop.f32.mrb[28].mxu0 }
 0x1f0   : > { %v2282_v20 = vpop.f32.mrb[28].mxu1  ;;  %v2261_v21 = vpop.f32.mrb[29].mxu0 }
 0x1f1   : > { %v2283_v24 = vpop.f32.mrb[29].mxu1  ;;  %v2262_v25 = vadd.f32 %v2261_v21, %v2260_v19  ;;  %v2263_v26 = vpop.f32.mrb[30].mxu0 }
 0x1f2   : > { %v2284_v23 = vadd.f32 %v2283_v24, %v2282_v20  ;;  %v2285_v14 = vpop.f32.mrb[30].mxu1  ;;  %v2264_v13 = vpop.f32.mrb[31].mxu0 }
 0x1f3   : > { %v2286_v27 = vpop.f32.mrb[31].mxu1  ;;  %v1590_v28 = vadd.f32 %v2262_v25, %v1550_v18 }
 0x1f5   : > { %v1630_v37 = vadd.f32 %v2284_v23, %v1590_v28 }
 0x20f   : > { %v2304_v2 = vpop.f32.mrb[32].mxu0 }
 0x210   : > { %v2326_v6 = vpop.f32.mrb[32].mxu1  ;;  %v2305_v29 = vpop.f32.mrb[33].mxu0 }
 0x211   : > { %v2327_v31 = vpop.f32.mrb[33].mxu1  ;;  %v2306_v32 = vadd.f32 %v2305_v29, %v2304_v2  ;;  %v2307_v34 = vpop.f32.mrb[34].mxu0 }
 0x212   : > { %v2328_v33 = vadd.f32 %v2327_v31, %v2326_v6  ;;  %v2329_v22 = vpop.f32.mrb[34].mxu1  ;;  %v2308_v35 = vpop.f32.mrb[35].mxu0 }
 0x213   : > { %v2330_v36 = vpop.f32.mrb[35].mxu1  ;;  %v1670_v38 = vadd.f32 %v2306_v32, %v1630_v37  ;;  %1720 = sbr.rel (%p1928_p7) target bundleno = 1084 (0x43c), region = 52 }
 0x215   : > { %v1710_v42 = vadd.f32 %v2328_v33, %v1670_v38 }
 0x217   : > { %v1715_v40 = vadd.f32 %v1710_v42, %v728_v41 }
 0x219   : > { %1716 = vst [vmem:[#allocation2] sm:$0x3] %v1715_v40 }
 0x220   : > { %v1721_v62 = vld [vmem:[#allocation2] sm:$0x3] }
 0x221   : > { %v1729_v55 = vmul.f32 %v1929_v63, %v1721_v62 }
 0x223   : > { %v1737_v9 = vadd.f32 %v1930_v4, %v1729_v55 }
 0x225   : > { %v1738_v10 = vmax.f32 %v1737_v9, 0.0 }
 0x227   : > { %2382 = vmatmul.mubr.f32.vlgmr.msra.gmra.mrb[0].mxu0 %v1738_v10 }
 0x2fa   : > { %v1828_v12 = vpop.f32.mrb[0].mxu0 }
 0x2fb   : > { %v1829_v15 = vadd.f32 %v1931_v11, %v1828_v12  ;;  %v2383_v16 = vpop.f32.mrb[1].mxu0 }
 0x2fd   : > { %v1833_v17 = vsel %vm1832_vm1, %v1829_v15, -inf }
 0x2fe   : > { %1834 = vmax.xlane.f32.xlu0 %v1833_v17 }
 0x38b   : > { %v1835_v18 = vpop.xlane.xlu0 %1834 }
 0x38c   : > { %v1836_v19 = vsub.f32 %v1829_v15, %v1835_v18 }
 0x38e   : > { %v1837_v20 = vmul.f32 1.442695, %v1836_v19 }
 0x390   : > { %2448 = vpow2.f32 %v1837_v20 }
 0x39a   : > { %v2449_v21 = vpop.eup %2448 }
 0x39b   : > { %v1839_v24 = vsel %vm1832_vm1, %v2449_v21, 0.0 }
 0x39c   : > { %1840 = vadd.xlane.f32.xlu0 %v1839_v24 }
 0x429   : > { %v1841_v25 = vpop.xlane.xlu0 %1840 }
 0x42a   : > { %2450 = vlog2.f32 %v1841_v25 }
 0x434   : > { %v2451_v23 = vpop.eup %2450 }
 0x435   : > { %v1843_v26 = vmul.f32 0.6931472, %v2451_v23 }
 0x437   : > { %v1844_v14 = vadd.f32 %v1843_v26, %v1835_v18 }
 0x439   : > { %v1845_v13 = vsub.f32 %v1829_v15, %v1844_v14 }
 0x43b   : > { %1846 = vst.msk [vmem:[#allocation3] sm:$0x3] %vm1832_vm1, %v1845_v13 }
 0x43c PF: > { %p2879_p8 = scmp.eq.s32.totalorder %s1921_s24, 1  ;;  %s2511_s10 = smov [#allocation3]  }
 0x43d   : > { %s1856_s11 = sshll.u32 %s2511_s10, 4  ;;  %s1857_s11 = int_to_ptr.vmem [resolvable:$true] %s1856_s11 }
 0x43e   : > { %s2452_s12 = scalar_lea.vmem %s1857_s11, 32  ;;  %p2459_p12 = scmp.lt.s32.totalorder %s1857_s11, %s1857_s11 }
 0x43f   : > { %p2453_p9 = scmp.ne.s32.totalorder %s1857_s11, %s2452_s12  ;;  %p2460_p13 = scmp.lt.s32.totalorder %s2452_s12, %s2452_s12 }
 0x441   : > { %p2454_p10 = pnand %p2453_p9, %p2879_p8  ;;  %p2461_p0 = por %p2460_p13, %p2459_p12 }
 0x443   : > { %p2455_p11 = pneg %p2454_p10 }
 0x445   : > { %p2462_p1 = pnand %p2461_p0, %p2455_p11 }
 0x447   : > { %2465 = shalt.err (!%p2462_p1)
}
 0x448   : > { %s2466_s24 = scalar_lea.hbm %s2920_s6, 32 }
 0x449   : > { %p2467_p2 = scmp.ne.s32.totalorder %s2920_s6, %s2466_s24  ;;  %p2472_p5 = scmp.lt.u32.totalorder %s2466_s24, %s2920_s6 }
 0x44b   : > { %p2468_p3 = pnand %p2467_p2, %p2879_p8 }
 0x44d   : > { %p2469_p4 = pneg %p2468_p3 }
 0x44f   : > { %p2474_p6 = pnand %p2472_p5, %p2469_p4 }
 0x451   : > { %2477 = shalt.err (!%p2474_p6)
}
 0x452   : > { %2409 = dma.vmem_to_hbm [thread:$0]  (%p2879_p8), %s1857_s11, 32, %s2920_s6, [#allocation4]  }
 0x453   : > { %2491 = dma.done.wait (%p2879_p8), [#allocation4], 32  }
 0x454   : > { %2493 = vsyncadd (%p2879_p8), [#allocation4], 4294967264 }
 0x455 PF: > { %s17_s23 = sadd.s32 1, %s2504_s23   ;;  %s2922_s21 = smov %s2500_s22 }
 0x456   : > { %p14_p7 = scmp.ge.s32.totalorder %s17_s23, 4   ;;  %s2923_s22 = smov %s2925_s25 }
 0x458   :  { %16 = sbr.rel (!%p14_p7) target bundleno = 2 (0x2), region = 83 }
 0x45f   :  { %1869 = vsyncpa [#allocation4], 1 }
 0x460   :  { %1871 = vsyncpa [#allocation4 + $0x1], 1 }

// kernel: net_forward.2
= control target key start
LH: loop header
LB: loop body
LE: loop exit
PB: predicated region body
PF: predicated region fallthrough
CT: control target
= control target key end

     0   :  { %s7107_s18 = smov 0   ;;  %s10402_s0 = inlined_call_operand.vmem [shape: bf16[2,680,9], index: 0, kind: input, shape index: {}]   ;;  %s10403_s1 = inlined_call_operand.vmem [shape: bf16[9,32], index: 1, kind: input, shape index: {}]   ;;  %s10404_s2 = inlined_call_operand.vmem [shape: f32[1,32], index: 2, kind: input, shape index: {}]   ;;  %s10405_s3 = inlined_call_operand.vmem [shape: bf16[288,64], index: 3, kind: input, shape index: {}]   ;;  %s10406_s4 = inlined_call_operand.vmem [shape: f32[1,64], index: 4, kind: input, shape index: {}]   ;;  %s10407_s5 = inlined_call_operand.vmem [shape: bf16[2,144,64], index: 5, kind: output, shape index: {}]  }
   0x1 LB: > { %s5845_s19 = sadd.s32 4294967295, %s7068_s18   ;;  %p5849_p0 = scmp.ge.s32.totalorder %s7068_s18, 1  ;;  %s7068_s18 = sphi %s7107_s18, %s15_s18  }
   0x2   : > { %p187_p1 = scmp.lt.s32.totalorder %s7068_s18, 3 }
   0x4   : > { %p188_p2 = pnand %p5849_p0, %p187_p1 }
   0x6   : > { %191 = sbr.rel (%p188_p2) target bundleno = 1336 (0x538), region = 40 }
   0xd   : > { %vm669_vm0 = vcmask 1043456   ;;  %v10409_v0 = vmov 0.0   ;;  %v6890_v1 = vld [vmem:[%s10403_s1] sm:$0x1f]   ;;  %vm670_vm1 = vcmask 1044480   ;;  %p215_p3 = scmp.lt.s32.totalorder %s5845_s19, 1 }
   0xe   : > { %6393 = vmatprep.subr.bf16.mxu0 %v10409_v0  ;;  %v7071_v2 = vmov 65535   ;;  %vm7072_vm2 = vmmov 0   ;;  %vm539_vm3 = vcmask 72704   ;;  %v7239_v33 = vld [vmem:[%s10404_s2] ss:$0 sm:$0xff]  ;;  %vm1478_vm4 = vcmask 257024  }
   0xf   : > { %v671_v3 = vsel %vm669_vm0, 4294967295, %v7071_v2  ;;  %6395 = vmatprep.mubr.msk.bf16.mxu0 %vm7072_vm2, %v10409_v0  ;;  %s10796_s19 = smov (!%p215_p3, %s5845_s19), 1  ;;  %vm2622_vm5 = vsmask.f32 6400  ;;  %vm2254_vm6 = vcmask 1046528   ;;  %s7074_s29 = smov 64  }
  0x10   : > { %v672_v4 = vsel %vm670_vm1, %v671_v3, 0  ;;  %s6873_s22 = smul.u32 340, %s10796_s19  ;;  %vm1856_vm7 = vsmask.f32 7424  ;;  %s7075_s30 = smov 32   ;;  %vm2985_vm9 = vcmask 1045504  }
  0x11   : > { %v674_v5 = vand.u32 %v6890_v1, %v672_v4  ;;  %vm3318_vm8 = vsmask.f32 5376  ;;  %s7076_s14 = smov 96   ;;  %vm3664_vm10 = vcmask 261120   ;;  %vm3743_vm11 = vcmask 523264   ;;  %s6874_s27 = smul.u32 72, %s10796_s19 }
  0x12   : > { %s7128_s25 = scalar_lea.vmem %s10402_s0, %s6873_s22  ;;  %vm3822_vm12 = vcmask 785408   ;;  %vm5538_vm13 = vcmask 519168   ;;  %vm5540_vm14 = vcmask 517120   ;;  %vm5567_vm15 = vcmask 519170  }
  0x13   : > { %6394 = vmatpush3.bf16.msra.mxu0 %v674_v5  ;;  %v6891_v6 = vld [vmem:[%s7128_s25] sm:$0xff]   ;;  %v6892_v7 = vld [vmem:[%s7128_s25 + $0x8] sm:$0xff]   ;;  %v6893_v8 = vld [vmem:[%s7128_s25 + $0x10] sm:$0xff]   ;;  %vm5558_vm0 = vcmask 1041408  }
  0x14   : > { %v6894_v9 = vld [vmem:[%s7128_s25 + $0x18] sm:$0xff]   ;;  %v6895_v10 = vld [vmem:[%s7128_s25 + $0x20] sm:$0xff]   ;;  %v6896_v11 = vld [vmem:[%s7128_s25 + $0x28] sm:$0xff]  }
  0x15   : > { %v6897_v12 = vld [vmem:[%s7128_s25 + $0x30] sm:$0xff]   ;;  %v6898_v13 = vld [vmem:[%s7128_s25 + $0x38] sm:$0xff]   ;;  %v6899_v14 = vld [vmem:[%s7128_s25 + $0x40] sm:$0xff]  }
  0x16   : > { %6396 = vmatmul.mubr.msk.bf16.vlgmr.msra.gmra.mrb[0].mxu0 %vm539_vm3, %v6891_v6  ;;  %v6900_v15 = vld [vmem:[%s7128_s25 + $0x48] sm:$0xff]   ;;  %v6901_v16 = vld [vmem:[%s7128_s25 + $0x50] sm:$0xff]   ;;  %v6902_v17 = vld [vmem:[%s7128_s25 + $0x58] sm:$0xff]  }
  0x17   : > { %6399 = vmatprep.mubr.msk.bf16.mxu0 %vm7072_vm2, %v10409_v0  ;;  %v6903_v18 = vld [vmem:[%s7128_s25 + $0x60] sm:$0xff]   ;;  %v6904_v19 = vld [vmem:[%s7128_s25 + $0x68] sm:$0xff]   ;;  %v6905_v20 = vld [vmem:[%s7128_s25 + $0x70] sm:$0xff]  }
  0x18   : > { %v6906_v21 = vld [vmem:[%s7128_s25 + $0x78] sm:$0xff]   ;;  %v6907_v22 = vld [vmem:[%s7128_s25 + $0x80] sm:$0xff]   ;;  %v6908_v23 = vld [vmem:[%s7128_s25 + $0x88] sm:$0xff]  }
  0x19   : > { %v6909_v24 = vld [vmem:[%s7128_s25 + $0x90] sm:$0xff]   ;;  %v6910_v25 = vld [vmem:[%s7128_s25 + $0x98] sm:$0xff]   ;;  %v6911_v26 = vld [vmem:[%s7128_s25 + $0xa0] sm:$0xff]  }
  0x1a   : > { %v6912_v27 = vld [vmem:[%s7128_s25 + $0xa8] sm:$0xff]   ;;  %v6913_v28 = vld [vmem:[%s7128_s25 + $0xb0] sm:$0xff]   ;;  %v6914_v29 = vld [vmem:[%s7128_s25 + $0xb8] sm:$0xff]  }
  0x1b   : > { %v6915_v30 = vld [vmem:[%s7128_s25 + $0xc0] sm:$0xff]   ;;  %v6916_v31 = vld [vmem:[%s7128_s25 + $0xc8] sm:$0xff]   ;;  %v6917_v32 = vld [vmem:[%s7128_s25 + $0xd0] sm:$0xff]  }
  0x1c   : > { %v6918_v37 = vld [vmem:[%s7128_s25 + $0xd8] sm:$0xff]   ;;  %v6919_v48 = vld [vmem:[%s7128_s25 + $0xe0] sm:$0xff]   ;;  %v6920_v59 = vld [vmem:[%s7128_s25 + $0xe8] sm:$0xff]  }
  0x1e   : > { %6400 = vmatmul.mubr.msk.bf16.gmra.mrb[4].mxu0 %vm539_vm3, %v6892_v7  ;;  %v6921_v7 = vld [vmem:[%s7128_s25 + $0xf0] sm:$0xff]  }
  0x1f   : > { %6403 = vmatprep.mubr.msk.bf16.mxu0 %vm7072_vm2, %v10409_v0 }
  0x26   : > { %6404 = vmatmul.mubr.msk.bf16.gmra.mrb[8].mxu0 %vm539_vm3, %v6893_v8 }
  0x27   : > { %6407 = vmatprep.mubr.msk.bf16.mxu0 %vm7072_vm2, %v10409_v0 }
  0x2e   : > { %6408 = vmatmul.mubr.msk.bf16.gmra.mrb[12].mxu0 %vm539_vm3, %v6894_v9 }
  0x2f   : > { %6411 = vmatprep.mubr.msk.bf16.mxu0 %vm7072_vm2, %v10409_v0 }
  0x36   : > { %6412 = vmatmul.mubr.msk.bf16.gmra.mrb[16].mxu0 %vm539_vm3, %v6895_v10 }
  0x37   : > { %6415 = vmatprep.mubr.msk.bf16.mxu0 %vm7072_vm2, %v10409_v0 }
  0x3e   : > { %6416 = vmatmul.mubr.msk.bf16.gmra.mrb[20].mxu0 %vm539_vm3, %v6896_v11 }
  0x3f   : > { %6419 = vmatprep.mubr.msk.bf16.mxu0 %vm7072_vm2, %v10409_v0 }
  0x46   : > { %6420 = vmatmul.mubr.msk.bf16.gmra.mrb[24].mxu0 %vm539_vm3, %v6897_v12 }
  0x47   : > { %6423 = vmatprep.mubr.msk.bf16.mxu0 %vm7072_vm2, %v10409_v0 }
  0x4e   : > { %6424 = vmatmul.mubr.msk.bf16.gmra.mrb[28].mxu0 %vm539_vm3, %v6898_v13 }
  0x4f   : > { %6427 = vmatprep.mubr.msk.bf16.mxu0 %vm7072_vm2, %v10409_v0 }
  0x56   : > { %6428 = vmatmul.mubr.msk.bf16.gmra.mrb[32].mxu0 %vm539_vm3, %v6899_v14 }
  0x57   : > { %6431 = vmatprep.mubr.msk.bf16.mxu0 %vm7072_vm2, %v10409_v0 }
  0x5e   : > { %6432 = vmatmul.mubr.msk.bf16.gmra.mrb[36].mxu0 %vm539_vm3, %v6900_v15 }
  0x5f   : > { %6435 = vmatprep.mubr.msk.bf16.mxu0 %vm7072_vm2, %v10409_v0 }
  0x66   : > { %6436 = vmatmul.mubr.msk.bf16.gmra.mrb[40].mxu0 %vm539_vm3, %v6901_v16 }
  0x67   : > { %6439 = vmatprep.mubr.msk.bf16.mxu0 %vm7072_vm2, %v10409_v0 }
  0x6e   : > { %6440 = vmatmul.mubr.msk.bf16.gmra.mrb[44].mxu0 %vm539_vm3, %v6902_v17 }
  0x6f   : > { %6443 = vmatprep.mubr.msk.bf16.mxu0 %vm7072_vm2, %v10409_v0 }
  0x76   : > { %6444 = vmatmul.mubr.msk.bf16.gmra.mrb[48].mxu0 %vm539_vm3, %v6903_v18  ;;  %v6922_v18 = vld [vmem:[%s7128_s25 + $0xf8] sm:$0xff]  }
  0x77   : > { %6447 = vmatprep.mubr.msk.bf16.mxu0 %vm7072_vm2, %v10409_v0 }
  0x7e   : > { %6448 = vmatmul.mubr.msk.bf16.gmra.mrb[52].mxu0 %vm539_vm3, %v6904_v19 }
  0x7f   : > { %6451 = vmatprep.mubr.msk.bf16.mxu0 %vm7072_vm2, %v10409_v0 }
  0x86   : > { %6452 = vmatmul.mubr.msk.bf16.gmra.mrb[56].mxu0 %vm539_vm3, %v6905_v20 }
  0x87   : > { %6455 = vmatprep.mubr.msk.bf16.mxu0 %vm7072_vm2, %v10409_v0 }
  0x8e   : > { %6456 = vmatmul.mubr.msk.bf16.gmra.mrb[60].mxu0 %vm539_vm3, %v6906_v21 }
  0x8f   : > { %6459 = vmatprep.mubr.msk.bf16.mxu0 %vm7072_vm2, %v10409_v0 }
  0x96   : > { %6460 = vmatmul.mubr.msk.bf16.gmra.mrb[64].mxu0 %vm539_vm3, %v6907_v22 }
  0x97   : > { %6463 = vmatprep.mubr.msk.bf16.mxu0 %vm7072_vm2, %v10409_v0 }
  0x9e   : > { %6464 = vmatmul.mubr.msk.bf16.gmra.mrb[68].mxu0 %vm539_vm3, %v6908_v23 }
  0x9f   : > { %6467 = vmatprep.mubr.msk.bf16.mxu0 %vm7072_vm2, %v10409_v0 }
  0xa6   : > { %6468 = vmatmul.mubr.msk.bf16.gmra.mrb[72].mxu0 %vm539_vm3, %v6909_v24 }
  0xa7   : > { %6471 = vmatprep.mubr.msk.bf16.mxu0 %vm7072_vm2, %v10409_v0 }
  0xae   : > { %6472 = vmatmul.mubr.msk.bf16.gmra.mrb[76].mxu0 %vm539_vm3, %v6910_v25 }
  0xaf   : > { %6475 = vmatprep.mubr.msk.bf16.mxu0 %vm7072_vm2, %v10409_v0 }
  0xb6   : > { %6476 = vmatmul.mubr.msk.bf16.gmra.mrb[80].mxu0 %vm539_vm3, %v6911_v26 }
  0xb7   : > { %6479 = vmatprep.mubr.msk.bf16.mxu0 %vm7072_vm2, %v10409_v0 }
  0xbe   : > { %6480 = vmatmul.mubr.msk.bf16.gmra.mrb[84].mxu0 %vm539_vm3, %v6912_v27 }
  0xbf   : > { %6483 = vmatprep.mubr.msk.bf16.mxu0 %vm7072_vm2, %v10409_v0 }
  0xc6   : > { %6484 = vmatmul.mubr.msk.bf16.gmra.mrb[88].mxu0 %vm539_vm3, %v6913_v28 }
  0xc7   : > { %6487 = vmatprep.mubr.msk.bf16.mxu0 %vm7072_vm2, %v10409_v0 }
  0xce   : > { %6488 = vmatmul.mubr.msk.bf16.gmra.mrb[92].mxu0 %vm539_vm3, %v6914_v29 }
  0xcf   : > { %6491 = vmatprep.mubr.msk.bf16.mxu0 %vm7072_vm2, %v10409_v0 }
  0xd6   : > { %6492 = vmatmul.mubr.msk.bf16.gmra.mrb[96].mxu0 %vm539_vm3, %v6915_v30 }
  0xd7   : > { %6495 = vmatprep.mubr.msk.bf16.mxu0 %vm7072_vm2, %v10409_v0 }
  0xde   : > { %6496 = vmatmul.mubr.msk.bf16.gmra.mrb[100].mxu0 %vm539_vm3, %v6916_v31 }
  0xdf   : > { %6499 = vmatprep.mubr.msk.bf16.mxu0 %vm7072_vm2, %v10409_v0 }
  0xe6   : > { %6500 = vmatmul.mubr.msk.bf16.gmra.mrb[104].mxu0 %vm539_vm3, %v6917_v32 }
  0xe7   : > { %6503 = vmatprep.mubr.msk.bf16.mxu0 %vm7072_vm2, %v10409_v0 }
  0xe9   : > { %v710_v34 = vpop.f32.mrb[0].mxu0 }
  0xea   : > { %v711_v35 = vadd.f32 %v7239_v33, %v710_v34  ;;  %v6397_v36 = vpop.f32.mrb[1].mxu0 }
  0xeb   : > { %v713_v38 = vpop.f32.mrb[2].mxu0  ;;  %v6923_v36 = vld [vmem:[%s7128_s25 + $0x100] sm:$0xff]  }
  0xec   : > { %v1052_v39 = vmax.f32 %v711_v35, 0.0  ;;  %v714_v40 = vadd.f32 %v7239_v33, %v713_v38  ;;  %v6398_v41 = vpop.f32.mrb[3].mxu0 }
  0xee   : > { %v6199_v42 = vpack.c.bf16 %v1052_v39, %v1052_v39  ;;  %v1053_v43 = vmax.f32 %v714_v40, 0.0  ;;  %6504 = vmatmul.mubr.msk.bf16.gmra.mrb[108].mxu0 %vm539_vm3, %v6918_v37 }
  0xef   : > { %6507 = vmatprep.mubr.msk.bf16.mxu0 %vm7072_vm2, %v10409_v0 }
  0xf0   : > { %1479 = vst.msk [vmem:[#allocation2] sm:$0xf] %vm1478_vm4, %v6199_v42  ;;  %v6200_v44 = vpack.c.bf16 %v1053_v43, %v1053_v43 }
  0xf1   : > { %v718_v45 = vpop.f32.mrb[4].mxu0 }
  0xf2   : > { %1480 = vst.msk [vmem:[#allocation2 + $0x4] sm:$0xf] %vm1478_vm4, %v6200_v44  ;;  %v719_v46 = vadd.f32 %v7239_v33, %v718_v45  ;;  %v6401_v47 = vpop.f32.mrb[5].mxu0 }
  0xf3   : > { %v721_v49 = vpop.f32.mrb[6].mxu0 }
  0xf4   : > { %v1054_v50 = vmax.f32 %v719_v46, 0.0  ;;  %v722_v51 = vadd.f32 %v7239_v33, %v721_v49  ;;  %v6402_v52 = vpop.f32.mrb[7].mxu0 }
  0xf6   : > { %v6201_v53 = vpack.c.bf16 %v1054_v50, %v1054_v50  ;;  %v1055_v54 = vmax.f32 %v722_v51, 0.0  ;;  %6508 = vmatmul.mubr.msk.bf16.gmra.mrb[112].mxu0 %vm539_vm3, %v6919_v48 }
  0xf7   : > { %6511 = vmatprep.mubr.msk.bf16.mxu0 %vm7072_vm2, %v10409_v0 }
  0xf8   : > { %1481 = vst.msk [vmem:[#allocation2 + $0x8] sm:$0xf] %vm1478_vm4, %v6201_v53  ;;  %v6202_v55 = vpack.c.bf16 %v1055_v54, %v1055_v54 }
  0xf9   : > { %v726_v56 = vpop.f32.mrb[8].mxu0 }
  0xfa   : > { %1482 = vst.msk [vmem:[#allocation2 + $0xc] sm:$0xf] %vm1478_vm4, %v6202_v55  ;;  %v727_v57 = vadd.f32 %v7239_v33, %v726_v56  ;;  %v6405_v58 = vpop.f32.mrb[9].mxu0 }
  0xfb   : > { %v729_v60 = vpop.f32.mrb[10].mxu0  ;;  %v6924_v58 = vld [vmem:[%s7128_s25 + $0x108] sm:$0xff]  }
  0xfc   : > { %v1056_v61 = vmax.f32 %v727_v57, 0.0  ;;  %v730_v62 = vadd.f32 %v7239_v33, %v729_v60  ;;  %v6406_v63 = vpop.f32.mrb[11].mxu0 }
  0xfe   : > { %v6203_v1 = vpack.c.bf16 %v1056_v61, %v1056_v61  ;;  %v1057_v2 = vmax.f32 %v730_v62, 0.0  ;;  %6512 = vmatmul.mubr.msk.bf16.gmra.mrb[116].mxu0 %vm539_vm3, %v6920_v59 }
  0xff   : > { %6515 = vmatprep.mubr.msk.bf16.mxu0 %vm7072_vm2, %v10409_v0 }
 0x100   : > { %1483 = vst.msk [vmem:[#allocation2 + $0x10] sm:$0xf] %vm1478_vm4, %v6203_v1  ;;  %v6204_v3 = vpack.c.bf16 %v1057_v2, %v1057_v2 }
 0x101   : > { %v734_v4 = vpop.f32.mrb[12].mxu0  ;;  %v1644_v26 = vld [vmem:[#allocation2 + $0xc] sm:$0xe] }
 0x102   : > { %1484 = vst.msk [vmem:[#allocation2 + $0x14] sm:$0xf] %vm1478_vm4, %v6204_v3  ;;  %v735_v5 = vadd.f32 %v7239_v33, %v734_v4  ;;  %v6409_v6 = vpop.f32.mrb[13].mxu0 }
 0x103   : > { %v737_v8 = vpop.f32.mrb[14].mxu0 }
 0x104   : > { %v1058_v9 = vmax.f32 %v735_v5, 0.0  ;;  %v738_v10 = vadd.f32 %v7239_v33, %v737_v8  ;;  %v6410_v11 = vpop.f32.mrb[15].mxu0 }
 0x106   : > { %v6205_v12 = vpack.c.bf16 %v1058_v9, %v1058_v9  ;;  %v1059_v13 = vmax.f32 %v738_v10, 0.0  ;;  %6516 = vmatmul.mubr.msk.bf16.gmra.mrb[120].mxu0 %vm539_vm3, %v6921_v7 }
 0x107   : > { %6519 = vmatprep.mubr.msk.bf16.mxu0 %vm7072_vm2, %v10409_v0  ;;  %v1568_v23 = vld [vmem:[#allocation2 + $0x10] sm:$0xf] }
 0x108   : > { %1485 = vst.msk [vmem:[#allocation2 + $0x18] sm:$0xf] %vm1478_vm4, %v6205_v12  ;;  %v6206_v14 = vpack.c.bf16 %v1059_v13, %v1059_v13  ;;  %v7281_v29 = vcombine.low %v1644_v26, %v1568_v23 }
 0x109   : > { %v742_v15 = vpop.f32.mrb[16].mxu0  ;;  %v1569_v27 = vld [vmem:[#allocation2 + $0x14] sm:$0xf] }
 0x10a   : > { %1486 = vst.msk [vmem:[#allocation2 + $0x1c] sm:$0xf] %vm1478_vm4, %v6206_v14  ;;  %v743_v16 = vadd.f32 %v7239_v33, %v742_v15  ;;  %v6413_v17 = vpop.f32.mrb[17].mxu0  ;;  %10538 = vst [vmem:[#allocation5_spill] sm:$0xff] %v7281_v29  ;;  %v2624_v38 = vshrl.u32 %v7281_v29, 16  ;;  %v2627_v43 = vshll.u32 %v7281_v29, 16 }
 0x10b   : > { %v745_v19 = vpop.f32.mrb[18].mxu0  ;;  %v6925_v14 = vld [vmem:[%s7128_s25 + $0x110] sm:$0xff]  }
 0x10c   : > { %v1060_v20 = vmax.f32 %v743_v16, 0.0  ;;  %v746_v21 = vadd.f32 %v7239_v33, %v745_v19  ;;  %v6414_v22 = vpop.f32.mrb[19].mxu0  ;;  %v2626_v49 = vrot.slane %v2624_v38, 1  ;;  %v2629_v53 = vrot.slane %v2627_v43, 2 }
 0x10e   : > { %v6207_v24 = vpack.c.bf16 %v1060_v20, %v1060_v20  ;;  %v1061_v25 = vmax.f32 %v746_v21, 0.0  ;;  %6520 = vmatmul.mubr.msk.bf16.gmra.mrb[124].mxu0 %vm539_vm3, %v6922_v18  ;;  %v2630_v1 = vor.u32 %v2629_v53, %v2626_v49 }
 0x10f   : > { %6523 = vmatprep.mubr.msk.bf16.mxu0 %vm7072_vm2, %v10409_v0  ;;  %v1570_v28 = vld [vmem:[#allocation2 + $0x18] sm:$0xf] }
 0x110   : > { %1487 = vst.msk [vmem:[#allocation2 + $0x20] sm:$0xf] %vm1478_vm4, %v6207_v24  ;;  %v6208_v30 = vpack.c.bf16 %v1061_v25, %v1061_v25  ;;  %v7284_v31 = vcombine.low %v1569_v27, %v1570_v28 }
 0x111   : > { %v750_v32 = vpop.f32.mrb[20].mxu0  ;;  %v1571_v47 = vld [vmem:[#allocation2 + $0x1c] sm:$0xf] }
 0x112   : > { %10539 = vst [vmem:[#allocation6_spill] sm:$0xff] %v7284_v31  ;;  %1488 = vst.msk [vmem:[#allocation2 + $0x24] sm:$0xf] %vm1478_vm4, %v6208_v30  ;;  %v751_v34 = vadd.f32 %v7239_v33, %v750_v32  ;;  %v6417_v35 = vpop.f32.mrb[21].mxu0  ;;  %v2632_v39 = vshrl.u32 %v7284_v31, 16  ;;  %v2635_v44 = vshll.u32 %v7284_v31, 16 }
 0x113   : > { %v753_v37 = vpop.f32.mrb[22].mxu0 }
 0x114   : > { %v1062_v40 = vmax.f32 %v751_v34, 0.0  ;;  %v754_v41 = vadd.f32 %v7239_v33, %v753_v37  ;;  %v6418_v42 = vpop.f32.mrb[23].mxu0  ;;  %v2634_v50 = vrot.slane %v2632_v39, 1  ;;  %v2637_v54 = vrot.slane %v2635_v44, 2  ;;  %v6926_v34 = vld [vmem:[%s7128_s25 + $0x118] sm:$0xff]  }
 0x116   : > { %v6209_v45 = vpack.c.bf16 %v1062_v40, %v1062_v40  ;;  %v1063_v46 = vmax.f32 %v754_v41, 0.0  ;;  %6524 = vmatmul.mubr.msk.bf16.gmra.mrb[128].mxu0 %vm539_vm3, %v6923_v36  ;;  %v2638_v60 = vor.u32 %v2637_v54, %v2634_v50 }
 0x117   : > { %6527 = vmatprep.mubr.msk.bf16.mxu0 %vm7072_vm2, %v10409_v0  ;;  %v1572_v48 = vld [vmem:[#allocation2 + $0x20] sm:$0xf] }
 0x118   : > { %1489 = vst.msk [vmem:[#allocation2 + $0x28] sm:$0xf] %vm1478_vm4, %v6209_v45  ;;  %v6210_v51 = vpack.c.bf16 %v1063_v46, %v1063_v46  ;;  %v7298_v52 = vcombine.low %v1571_v47, %v1572_v48  ;;  %v7308_v6 = vsel %vm2622_vm5, %v2630_v1, %v2638_v60 }
 0x119   : > { %v758_v55 = vpop.f32.mrb[24].mxu0  ;;  %10541 = vst [vmem:[#allocation8_spill] sm:$0xff] %v7308_v6  ;;  %v1573_v16 = vld [vmem:[#allocation2 + $0x24] sm:$0xf] }
 0x11a   : > { %10540 = vst [vmem:[#allocation7_spill] sm:$0xff] %v7298_v52  ;;  %1490 = vst.msk [vmem:[#allocation2 + $0x2c] sm:$0xf] %vm1478_vm4, %v6210_v51  ;;  %v759_v56 = vadd.f32 %v7239_v33, %v758_v55  ;;  %v6421_v57 = vpop.f32.mrb[25].mxu0  ;;  %v2641_v2 = vshrl.u32 %v7298_v52, 16  ;;  %v2644_v3 = vshll.u32 %v7298_v52, 16 }
 0x11b   : > { %v761_v59 = vpop.f32.mrb[26].mxu0  ;;  %v6927_v51 = vld [vmem:[%s7128_s25 + $0x120] sm:$0xff]  }
 0x11c   : > { %v1064_v61 = vmax.f32 %v759_v56, 0.0  ;;  %v762_v62 = vadd.f32 %v7239_v33, %v761_v59  ;;  %v6422_v63 = vpop.f32.mrb[27].mxu0  ;;  %v2643_v8 = vrot.slane %v2641_v2, 1  ;;  %v2646_v11 = vrot.slane %v2644_v3, 2 }
 0x11e   : > { %v6211_v4 = vpack.c.bf16 %v1064_v61, %v1064_v61  ;;  %v1065_v5 = vmax.f32 %v762_v62, 0.0  ;;  %6528 = vmatmul.mubr.msk.bf16.gmra.mrb[132].mxu0 %vm539_vm3, %v6924_v58  ;;  %v2647_v17 = vor.u32 %v2646_v11, %v2643_v8 }
 0x11f   : > { %6531 = vmatprep.mubr.msk.bf16.mxu0 %vm7072_vm2, %v10409_v0  ;;  %v1574_v10 = vld [vmem:[#allocation2 + $0x28] sm:$0xf] }
 0x120   : > { %1491 = vst.msk [vmem:[#allocation2 + $0x30] sm:$0xf] %vm1478_vm4, %v6211_v4  ;;  %v6212_v7 = vpack.c.bf16 %v1065_v5, %v1065_v5  ;;  %v7317_v21 = vcombine.low %v1573_v16, %v1574_v10  ;;  %v7321_v24 = vsel %vm2622_vm5, %v2638_v60, %v2647_v17 }
 0x121   : > { %v766_v9 = vpop.f32.mrb[28].mxu0  ;;  %10543 = vst [vmem:[#allocation10_spill] sm:$0xff] %v7321_v24  ;;  %v1575_v44 = vld [vmem:[#allocation2 + $0x2c] sm:$0xf] }
 0x122   : > { %1492 = vst.msk [vmem:[#allocation2 + $0x34] sm:$0xf] %vm1478_vm4, %v6212_v7  ;;  %v767_v12 = vadd.f32 %v7239_v33, %v766_v9  ;;  %v6425_v13 = vpop.f32.mrb[29].mxu0  ;;  %10542 = vst [vmem:[#allocation9_spill] sm:$0xff] %v7317_v21  ;;  %v2650_v26 = vshrl.u32 %v7317_v21, 16  ;;  %v2653_v28 = vshll.u32 %v7317_v21, 16 }
 0x123   : > { %v769_v15 = vpop.f32.mrb[30].mxu0  ;;  %v6928_v9 = vld [vmem:[%s7128_s25 + $0x128] sm:$0xff]  }
 0x124   : > { %v1066_v18 = vmax.f32 %v767_v12, 0.0  ;;  %v770_v19 = vadd.f32 %v7239_v33, %v769_v15  ;;  %v6426_v20 = vpop.f32.mrb[31].mxu0  ;;  %v2652_v40 = vrot.slane %v2650_v26, 1  ;;  %v2655_v41 = vrot.slane %v2653_v28, 2 }
 0x126   : > { %v6213_v22 = vpack.c.bf16 %v1066_v18, %v1066_v18  ;;  %v1067_v23 = vmax.f32 %v770_v19, 0.0  ;;  %6532 = vmatmul.mubr.msk.bf16.gmra.mrb[136].mxu0 %vm539_vm3, %v6925_v14  ;;  %v2656_v47 = vor.u32 %v2655_v41, %v2652_v40 }
 0x127   : > { %6535 = vmatprep.mubr.msk.bf16.mxu0 %vm7072_vm2, %v10409_v0  ;;  %v1576_v39 = vld [vmem:[#allocation2 + $0x30] sm:$0xf] }
 0x128   : > { %1493 = vst.msk [vmem:[#allocation2 + $0x38] sm:$0xf] %vm1478_vm4, %v6213_v22  ;;  %v6214_v25 = vpack.c.bf16 %v1067_v23, %v1067_v23  ;;  %v7335_v45 = vcombine.low %v1575_v44, %v1576_v39  ;;  %v7342_v54 = vsel %vm2622_vm5, %v2647_v17, %v2656_v47 }
 0x129   : > { %v774_v27 = vpop.f32.mrb[32].mxu0  ;;  %10545 = vst [vmem:[#allocation12_spill] sm:$0xff] %v7342_v54  ;;  %v1577_v63 = vld [vmem:[#allocation2 + $0x34] sm:$0xf] }
 0x12a   : > { %1494 = vst.msk [vmem:[#allocation2 + $0x3c] sm:$0xf] %vm1478_vm4, %v6214_v25  ;;  %v775_v30 = vadd.f32 %v7239_v33, %v774_v27  ;;  %v6429_v32 = vpop.f32.mrb[33].mxu0  ;;  %10544 = vst [vmem:[#allocation11_spill] sm:$0xff] %v7335_v45  ;;  %v2659_v55 = vshrl.u32 %v7335_v45, 16  ;;  %v2662_v59 = vshll.u32 %v7335_v45, 16 }
 0x12b   : > { %v777_v35 = vpop.f32.mrb[34].mxu0 }
 0x12c   : > { %v1068_v36 = vmax.f32 %v775_v30, 0.0  ;;  %v778_v37 = vadd.f32 %v7239_v33, %v777_v35  ;;  %v6430_v38 = vpop.f32.mrb[35].mxu0  ;;  %v2661_v1 = vrot.slane %v2659_v55, 1  ;;  %v2664_v4 = vrot.slane %v2662_v59, 2  ;;  %v6930_v55 = vld [vmem:[%s7128_s25 + $0x138] sm:$0xff]  }
 0x12e   : > { %v6215_v42 = vpack.c.bf16 %v1068_v36, %v1068_v36  ;;  %v1069_v43 = vmax.f32 %v778_v37, 0.0  ;;  %6536 = vmatmul.mubr.msk.bf16.gmra.mrb[140].mxu0 %vm539_vm3, %v6926_v34  ;;  %v2665_v11 = vor.u32 %v2664_v4, %v2661_v1  ;;  %v6929_v34 = vld [vmem:[%s7128_s25 + $0x130] sm:$0xff]  }
 0x12f   : > { %6539 = vmatprep.mubr.msk.bf16.mxu0 %vm7072_vm2, %v10409_v0  ;;  %v1578_v60 = vld [vmem:[#allocation2 + $0x38] sm:$0xf] }
 0x130   : > { %1495 = vst.msk [vmem:[#allocation2 + $0x40] sm:$0xf] %vm1478_vm4, %v6215_v42  ;;  %v6216_v46 = vpack.c.bf16 %v1069_v43, %v1069_v43  ;;  %v7351_v3 = vcombine.low %v1577_v63, %v1578_v60  ;;  %v7361_v20 = vsel %vm2622_vm5, %v2656_v47, %v2665_v11 }
 0x131   : > { %v782_v48 = vpop.f32.mrb[36].mxu0  ;;  %10547 = vst [vmem:[#allocation14_spill] sm:$0xff] %v7361_v20  ;;  %v1579_v22 = vld [vmem:[#allocation2 + $0x3c] sm:$0xf] }
 0x132   : > { %1496 = vst.msk [vmem:[#allocation2 + $0x44] sm:$0xf] %vm1478_vm4, %v6216_v46  ;;  %v783_v49 = vadd.f32 %v7239_v33, %v782_v48  ;;  %v6433_v50 = vpop.f32.mrb[37].mxu0  ;;  %10546 = vst [vmem:[#allocation13_spill] sm:$0xff] %v7351_v3  ;;  %v2668_v15 = vshrl.u32 %v7351_v3, 16  ;;  %v2671_v16 = vshll.u32 %v7351_v3, 16 }
 0x133   : > { %v785_v53 = vpop.f32.mrb[38].mxu0 }
 0x134   : > { %v1070_v56 = vmax.f32 %v783_v49, 0.0  ;;  %v786_v57 = vadd.f32 %v7239_v33, %v785_v53  ;;  %v6434_v58 = vpop.f32.mrb[39].mxu0  ;;  %v2670_v26 = vrot.slane %v2668_v15, 1  ;;  %v2673_v27 = vrot.slane %v2671_v16, 2 }
 0x136   : > { %v6217_v61 = vpack.c.bf16 %v1070_v56, %v1070_v56  ;;  %v1071_v62 = vmax.f32 %v786_v57, 0.0  ;;  %6540 = vmatmul.mubr.msk.bf16.gmra.mrb[144].mxu0 %vm539_vm3, %v6927_v51  ;;  %v2674_v39 = vor.u32 %v2673_v27, %v2670_v26 }
 0x137   : > { %6543 = vmatprep.mubr.msk.bf16.mxu0 %vm7072_vm2, %v10409_v0  ;;  %v1580_v17 = vld [vmem:[#allocation2 + $0x40] sm:$0xf] }
 0x138   : > { %1497 = vst.msk [vmem:[#allocation2 + $0x48] sm:$0xf] %vm1478_vm4, %v6217_v61  ;;  %v6218_v2 = vpack.c.bf16 %v1071_v62, %v1071_v62  ;;  %v7366_v25 = vcombine.low %v1579_v22, %v1580_v17  ;;  %v7379_v46 = vsel %vm2622_vm5, %v2665_v11, %v2674_v39 }
 0x139   : > { %v790_v5 = vpop.f32.mrb[40].mxu0  ;;  %10549 = vst [vmem:[#allocation16_spill] sm:$0xff] %v7379_v46  ;;  %v1581_v57 = vld [vmem:[#allocation2 + $0x44] sm:$0xf] }
 0x13a   : > { %1498 = vst.msk [vmem:[#allocation2 + $0x4c] sm:$0xf] %vm1478_vm4, %v6218_v2  ;;  %v791_v7 = vadd.f32 %v7239_v33, %v790_v5  ;;  %v6437_v8 = vpop.f32.mrb[41].mxu0  ;;  %10548 = vst [vmem:[#allocation15_spill] sm:$0xff] %v7366_v25  ;;  %v2677_v40 = vshrl.u32 %v7366_v25, 16  ;;  %v2680_v41 = vshll.u32 %v7366_v25, 16 }
 0x13b   : > { %v793_v10 = vpop.f32.mrb[42].mxu0 }
 0x13c   : > { %v1072_v12 = vmax.f32 %v791_v7, 0.0  ;;  %v794_v13 = vadd.f32 %v7239_v33, %v793_v10  ;;  %v6438_v14 = vpop.f32.mrb[43].mxu0  ;;  %v2679_v47 = vrot.slane %v2677_v40, 1  ;;  %v2682_v50 = vrot.slane %v2680_v41, 2 }
 0x13e   : > { %v6219_v18 = vpack.c.bf16 %v1072_v12, %v1072_v12  ;;  %v1073_v19 = vmax.f32 %v794_v13, 0.0  ;;  %6544 = vmatmul.mubr.msk.bf16.gmra.mrb[148].mxu0 %vm539_vm3, %v6928_v9  ;;  %v2683_v62 = vor.u32 %v2682_v50, %v2679_v47  ;;  %v6931_v12 = vld [vmem:[%s7128_s25 + $0x140] sm:$0xff]  }
 0x13f   : > { %6547 = vmatprep.mubr.msk.bf16.mxu0 %vm7072_vm2, %v10409_v0  ;;  %v1582_v49 = vld [vmem:[#allocation2 + $0x48] sm:$0xf] }
 0x140   : > { %1499 = vst.msk [vmem:[#allocation2 + $0x50] sm:$0xf] %vm1478_vm4, %v6219_v18  ;;  %v6220_v23 = vpack.c.bf16 %v1073_v19, %v1073_v19  ;;  %v7385_v61 = vcombine.low %v1581_v57, %v1582_v49  ;;  %v7392_v5 = vsel %vm2622_vm5, %v2674_v39, %v2683_v62 }
 0x141   : > { %v798_v28 = vpop.f32.mrb[44].mxu0  ;;  %10551 = vst [vmem:[#allocation18_spill] sm:$0xff] %v7392_v5  ;;  %v1583_v13 = vld [vmem:[#allocation2 + $0x4c] sm:$0xf] }
 0x142   : > { %1500 = vst.msk [vmem:[#allocation2 + $0x54] sm:$0xf] %vm1478_vm4, %v6220_v23  ;;  %v799_v30 = vadd.f32 %v7239_v33, %v798_v28  ;;  %v6441_v32 = vpop.f32.mrb[45].mxu0  ;;  %10550 = vst [vmem:[#allocation17_spill] sm:$0xff] %v7385_v61  ;;  %v2686_v7 = vshrl.u32 %v7385_v61, 16  ;;  %v2689_v8 = vshll.u32 %v7385_v61, 16 }
 0x143   : > { %v801_v35 = vpop.f32.mrb[46].mxu0 }
 0x144   : > { %v1074_v36 = vmax.f32 %v799_v30, 0.0  ;;  %v802_v37 = vadd.f32 %v7239_v33, %v801_v35  ;;  %v6442_v38 = vpop.f32.mrb[47].mxu0  ;;  %v2688_v19 = vrot.slane %v2686_v7, 1  ;;  %v2691_v22 = vrot.slane %v2689_v8, 2 }
 0x146   : > { %v6221_v42 = vpack.c.bf16 %v1074_v36, %v1074_v36  ;;  %v1075_v43 = vmax.f32 %v802_v37, 0.0  ;;  %6548 = vmatmul.mubr.msk.bf16.gmra.mrb[152].mxu0 %vm539_vm3, %v6929_v34  ;;  %v2692_v28 = vor.u32 %v2691_v22, %v2688_v19  ;;  %v6932_v37 = vld [vmem:[%s7128_s25 + $0x148] sm:$0xff]  }
 0x147   : > { %6551 = vmatprep.mubr.msk.bf16.mxu0 %vm7072_vm2, %v10409_v0  ;;  %v1584_v4 = vld [vmem:[#allocation2 + $0x50] sm:$0xf] }
 0x148   : > { %1501 = vst.msk [vmem:[#allocation2 + $0x58] sm:$0xf] %vm1478_vm4, %v6221_v42  ;;  %v6222_v44 = vpack.c.bf16 %v1075_v43, %v1075_v43  ;;  %v7399_v15 = vcombine.low %v1583_v13, %v1584_v4  ;;  %v7412_v39 = vsel %vm2622_vm5, %v2683_v62, %v2692_v28 }
 0x149   : > { %v806_v48 = vpop.f32.mrb[48].mxu0  ;;  %10553 = vst [vmem:[#allocation20_spill] sm:$0xff] %v7412_v39  ;;  %v1585_v50 = vld [vmem:[#allocation2 + $0x54] sm:$0xf] }
 0x14a   : > { %1502 = vst.msk [vmem:[#allocation2 + $0x5c] sm:$0xf] %vm1478_vm4, %v6222_v44  ;;  %v807_v51 = vadd.f32 %v7239_v33, %v806_v48  ;;  %v6445_v53 = vpop.f32.mrb[49].mxu0  ;;  %10552 = vst [vmem:[#allocation19_spill] sm:$0xff] %v7399_v15  ;;  %v2695_v30 = vshrl.u32 %v7399_v15, 16  ;;  %v2698_v32 = vshll.u32 %v7399_v15, 16 }
 0x14b   : > { %v809_v56 = vpop.f32.mrb[50].mxu0 }
 0x14c   : > { %v1076_v58 = vmax.f32 %v807_v51, 0.0  ;;  %v810_v59 = vadd.f32 %v7239_v33, %v809_v56  ;;  %v6446_v60 = vpop.f32.mrb[51].mxu0  ;;  %v2697_v43 = vrot.slane %v2695_v30, 1  ;;  %v2700_v44 = vrot.slane %v2698_v32, 2 }
 0x14e   : > { %v6223_v63 = vpack.c.bf16 %v1076_v58, %v1076_v58  ;;  %v1077_v1 = vmax.f32 %v810_v59, 0.0  ;;  %6552 = vmatmul.mubr.msk.bf16.gmra.mrb[156].mxu0 %vm539_vm3, %v6930_v55  ;;  %v2701_v55 = vor.u32 %v2700_v44, %v2697_v43  ;;  %v6933_v59 = vld [vmem:[%s7128_s25 + $0x150] ss:$0 sps:$4 sm:$0xff]  }
 0x14f   : > { %6555 = vmatprep.mubr.msk.bf16.mxu0 %vm7072_vm2, %v10409_v0  ;;  %v1586_v47 = vld [vmem:[#allocation2 + $0x58] sm:$0xf] }
 0x150   : > { %1503 = vst.msk [vmem:[#allocation2 + $0x60] sm:$0xf] %vm1478_vm4, %v6223_v63  ;;  %v6224_v2 = vpack.c.bf16 %v1077_v1, %v1077_v1  ;;  %v7419_v53 = vcombine.low %v1585_v50, %v1586_v47  ;;  %v7425_v62 = vsel %vm2622_vm5, %v2692_v28, %v2701_v55 }
 0x151   : > { %v814_v9 = vpop.f32.mrb[52].mxu0  ;;  %10555 = vst [vmem:[#allocation22_spill] sm:$0xff] %v7425_v62 }
 0x152   : > { %1504 = vst.msk [vmem:[#allocation2 + $0x64] sm:$0xf] %vm1478_vm4, %v6224_v2  ;;  %v815_v10 = vadd.f32 %v7239_v33, %v814_v9  ;;  %v6449_v11 = vpop.f32.mrb[53].mxu0  ;;  %10554 = vst [vmem:[#allocation21_spill] sm:$0xff] %v7419_v53  ;;  %v2704_v4 = vshrl.u32 %v7419_v53, 16  ;;  %v2707_v7 = vshll.u32 %v7419_v53, 16 }
 0x153   : > { %v817_v14 = vpop.f32.mrb[54].mxu0  ;;  %v1587_v11 = vld [vmem:[#allocation2 + $0x5c] sm:$0xf] }
 0x154   : > { %v1078_v16 = vmax.f32 %v815_v10, 0.0  ;;  %v818_v17 = vadd.f32 %v7239_v33, %v817_v14  ;;  %v6450_v18 = vpop.f32.mrb[55].mxu0  ;;  %v2706_v14 = vrot.slane %v2704_v4, 1 }
 0x156   : > { %v6225_v23 = vpack.c.bf16 %v1078_v16, %v1078_v16  ;;  %v1079_v26 = vmax.f32 %v818_v17, 0.0  ;;  %6556 = vmatmul.mubr.msk.bf16.gmra.mrb[160].mxu0 %vm539_vm3, %v6931_v12  ;;  %v2709_v16 = vrot.slane %v2707_v7, 2 }
 0x157   : > { %6559 = vmatprep.mubr.msk.bf16.mxu0 %vm7072_vm2, %v10409_v0  ;;  %v1588_v8 = vld [vmem:[#allocation2 + $0x60] sm:$0xf] }
 0x158   : > { %1505 = vst.msk [vmem:[#allocation2 + $0x68] sm:$0xf] %vm1478_vm4, %v6225_v23  ;;  %v6226_v27 = vpack.c.bf16 %v1079_v26, %v1079_v26  ;;  %v7432_v13 = vcombine.low %v1587_v11, %v1588_v8  ;;  %v2710_v28 = vor.u32 %v2709_v16, %v2706_v14 }
 0x159   : > { %v822_v34 = vpop.f32.mrb[56].mxu0 }
 0x15a   : > { %1506 = vst.msk [vmem:[#allocation2 + $0x6c] sm:$0xf] %vm1478_vm4, %v6226_v27  ;;  %v823_v35 = vadd.f32 %v7239_v33, %v822_v34  ;;  %v6453_v36 = vpop.f32.mrb[57].mxu0  ;;  %10556 = vst [vmem:[#allocation23_spill] sm:$0xff] %v7432_v13  ;;  %v2713_v30 = vshrl.u32 %v7432_v13, 16  ;;  %v2716_v34 = vshll.u32 %v7432_v13, 16 }
 0x15b   : > { %v825_v38 = vpop.f32.mrb[58].mxu0 }
 0x15c   : > { %v1080_v40 = vmax.f32 %v823_v35, 0.0  ;;  %v826_v41 = vadd.f32 %v7239_v33, %v825_v38  ;;  %v6454_v42 = vpop.f32.mrb[59].mxu0  ;;  %v2718_v44 = vrot.slane %v2716_v34, 2 }
 0x15d   : > { %v2715_v42 = vrot.slane %v2713_v30, 1 }
 0x15e   : > { %v6227_v48 = vpack.c.bf16 %v1080_v40, %v1080_v40  ;;  %v1081_v49 = vmax.f32 %v826_v41, 0.0  ;;  %6560 = vmatmul.mubr.msk.bf16.gmra.mrb[164].mxu0 %vm539_vm3, %v6932_v37  ;;  %v1589_v37 = vld [vmem:[#allocation2 + $0x64] sm:$0xf]  ;;  %v7443_v41 = vsel %vm2622_vm5, %v2701_v55, %v2710_v28 }
 0x15f   : > { %6563 = vmatprep.mubr.msk.bf16.mxu0 %vm7072_vm2, %v10409_v0  ;;  %v1590_v32 = vld [vmem:[#allocation2 + $0x68] sm:$0xf]  ;;  %10558 = vst [vmem:[#allocation25_spill] sm:$0xff] %v7443_v41 }
 0x160   : > { %1507 = vst.msk [vmem:[#allocation2 + $0x70] sm:$0xf] %vm1478_vm4, %v6227_v48  ;;  %v6228_v51 = vpack.c.bf16 %v1081_v49, %v1081_v49  ;;  %v7440_v40 = vcombine.low %v1589_v37, %v1590_v32 }
 0x161   : > { %v830_v56 = vpop.f32.mrb[60].mxu0  ;;  %v1591_v11 = vld [vmem:[#allocation2 + $0x6c] sm:$0xf] }
 0x162   : > { %1508 = vst.msk [vmem:[#allocation2 + $0x74] sm:$0xf] %vm1478_vm4, %v6228_v51  ;;  %v831_v57 = vadd.f32 %v7239_v33, %v830_v56  ;;  %v6457_v58 = vpop.f32.mrb[61].mxu0  ;;  %10557 = vst [vmem:[#allocation24_spill] sm:$0xff] %v7440_v40 }
 0x163   : > { %v833_v60 = vpop.f32.mrb[62].mxu0  ;;  %v2722_v58 = vshrl.u32 %v7440_v40, 16 }
 0x164   : > { %v1082_v63 = vmax.f32 %v831_v57, 0.0  ;;  %v834_v1 = vadd.f32 %v7239_v33, %v833_v60  ;;  %v6458_v2 = vpop.f32.mrb[63].mxu0  ;;  %v2719_v57 = vor.u32 %v2718_v44, %v2715_v42 }
 0x165   : > { %v2724_v4 = vrot.slane %v2722_v58, 1 }
 0x166   : > { %v6229_v9 = vpack.c.bf16 %v1082_v63, %v1082_v63  ;;  %v1083_v10 = vmax.f32 %v834_v1, 0.0  ;;  %6564 = vmatmul.mubr.msk.bf16.gmra.mrb[168].mxu0 %vm539_vm3, %v6933_v59  ;;  %v2725_v59 = vshll.u32 %v7440_v40, 16  ;;  %v7452_v2 = vsel %vm2622_vm5, %v2710_v28, %v2719_v57 }
 0x167   : > { %v1592_v1 = vld [vmem:[#allocation2 + $0x70] sm:$0xf]  ;;  %10559 = vst [vmem:[#allocation26_spill] sm:$0xff] %v7452_v2  ;;  %v10586_v2 = vmov 0.0  }
 0x168   : > { %1509 = vst.msk [vmem:[#allocation2 + $0x78] sm:$0xf] %vm1478_vm4, %v6229_v9  ;;  %v6230_v12 = vpack.c.bf16 %v1083_v10, %v1083_v10  ;;  %v2727_v8 = vrot.slane %v2725_v59, 2  ;;  %v7456_v14 = vcombine.low %v1591_v11, %v1592_v1  ;;  %v6945_v59 = vld [vmem:[%s10405_s3 + $0x8] sm:$0xff]  }
 0x169   : > { %v838_v17 = vpop.f32.mrb[64].mxu0  ;;  %v1593_v37 = vld [vmem:[#allocation2 + $0x74] sm:$0xf] }
 0x16a   : > { %1510 = vst.msk [vmem:[#allocation2 + $0x7c] sm:$0xf] %vm1478_vm4, %v6230_v12  ;;  %v839_v18 = vadd.f32 %v7239_v33, %v838_v17  ;;  %v6461_v19 = vpop.f32.mrb[65].mxu0  ;;  %10560 = vst [vmem:[#allocation27_spill] sm:$0xff] %v7456_v14  ;;  %v2734_v32 = vshll.u32 %v7456_v14, 16 }
 0x16b   : > { %v841_v22 = vpop.f32.mrb[66].mxu0  ;;  %v2728_v19 = vor.u32 %v2727_v8, %v2724_v4 }
 0x16c   : > { %v1084_v23 = vmax.f32 %v839_v18, 0.0  ;;  %v842_v26 = vadd.f32 %v7239_v33, %v841_v22  ;;  %v6462_v27 = vpop.f32.mrb[67].mxu0 }
 0x16d   : > { %v7462_v30 = vsel %vm2622_vm5, %v2719_v57, %v2728_v19 }
 0x16e   : > { %v6231_v35 = vpack.c.bf16 %v1084_v23, %v1084_v23  ;;  %v1085_v36 = vmax.f32 %v842_v26, 0.0  ;;  %v2731_v26 = vshrl.u32 %v7456_v14, 16  ;;  %10561 = vst [vmem:[#allocation28_spill] sm:$0xff] %v7462_v30 }
 0x16f   : > { %v1594_v28 = vld [vmem:[#allocation2 + $0x78] sm:$0xf] }
 0x170   : > { %1511 = vst.msk [vmem:[#allocation2 + $0x80] sm:$0xf] %vm1478_vm4, %v6231_v35  ;;  %v6232_v38 = vpack.c.bf16 %v1085_v36, %v1085_v36  ;;  %v7467_v42 = vcombine.low %v1593_v37, %v1594_v28  ;;  %v6948_v28 = vld [vmem:[%s10405_s3 + $0x18] sm:$0xff]  }
 0x171   : > { %v846_v43 = vpop.f32.mrb[68].mxu0 }
 0x172   : > { %1512 = vst.msk [vmem:[#allocation2 + $0x84] sm:$0xf] %vm1478_vm4, %v6232_v38  ;;  %v847_v47 = vadd.f32 %v7239_v33, %v846_v43  ;;  %v6465_v48 = vpop.f32.mrb[69].mxu0  ;;  %10562 = vst [vmem:[#allocation29_spill] sm:$0xff] %v7467_v42  ;;  %v2733_v43 = vrot.slane %v2731_v26, 1 }
 0x173   : > { %v849_v49 = vpop.f32.mrb[70].mxu0 }
 0x174   : > { %v1086_v50 = vmax.f32 %v847_v47, 0.0  ;;  %v850_v51 = vadd.f32 %v7239_v33, %v849_v49  ;;  %v6466_v56 = vpop.f32.mrb[71].mxu0  ;;  %v6944_v49 = vld [vmem:[%s10405_s3] sm:$0xff]  }
 0x176   : > { %v6233_v55 = vpack.c.bf16 %v1086_v50, %v1086_v50  ;;  %v1087_v60 = vmax.f32 %v850_v51, 0.0  ;;  %v2736_v50 = vrot.slane %v2734_v32, 2  ;;  %v10418_v51 = vmov 0  }
 0x177   : > { %6727 = vmatprep.subr.bf16.mxu1 %v10418_v51  ;;  %4513 = vmatprep.subr.bf16.mxu0 %v10418_v51 }
 0x178   : > { %1513 = vst.msk [vmem:[#allocation2 + $0x88] sm:$0xf] %vm1478_vm4, %v6233_v55  ;;  %v6234_v63 = vpack.c.bf16 %v1087_v60, %v1087_v60  ;;  %6743 = vmatpush1.bf16.msra.mxu1 %v6944_v49  ;;  %4514 = vmatpush1.bf16.msra.mxu0 %v6944_v49  ;;  %v2737_v55 = vor.u32 %v2736_v50, %v2733_v43  ;;  %v2740_v60 = vshrl.u32 %v7467_v42, 16  ;;  %v6949_v49 = vld [vmem:[%s10405_s3 + $0x20] sm:$0xff]  }
 0x179   : > { %v854_v7 = vpop.f32.mrb[72].mxu0  ;;  %6728 = vmatprep.subr.bf16.mxu1 %v10418_v51  ;;  %4515 = vmatprep.subr.bf16.mxu0 %v10418_v51 }
 0x17a   : > { %1514 = vst.msk [vmem:[#allocation2 + $0x8c] sm:$0xf] %vm1478_vm4, %v6234_v63  ;;  %v855_v9 = vadd.f32 %v7239_v33, %v854_v7  ;;  %v6469_v10 = vpop.f32.mrb[73].mxu0  ;;  %v2743_v63 = vshll.u32 %v7467_v42, 16 }
 0x17b   : > { %v857_v12 = vpop.f32.mrb[74].mxu0 }
 0x17c   : > { %v1088_v16 = vmax.f32 %v855_v9, 0.0  ;;  %v858_v17 = vadd.f32 %v7239_v33, %v857_v12  ;;  %v6470_v18 = vpop.f32.mrb[75].mxu0  ;;  %6744 = vmatpush1.bf16.msra.mxu1 %v6945_v59  ;;  %4516 = vmatpush1.bf16.msra.mxu0 %v6945_v59  ;;  %v7488_v9 = vsel %vm2622_vm5, %v2728_v19, %v2737_v55  ;;  %v1595_v19 = vld [vmem:[#allocation2 + $0x7c] sm:$0xf] }
 0x17d   : > { %6729 = vmatprep.subr.bf16.mxu1 %v10418_v51  ;;  %4517 = vmatprep.subr.bf16.mxu0 %v10418_v51  ;;  %10563 = vst [vmem:[#allocation30_spill] sm:$0xff] %v7488_v9  ;;  %v2745_v18 = vrot.slane %v2743_v63, 2 }
 0x17e   : > { %v6235_v22 = vpack.c.bf16 %v1088_v16, %v1088_v16  ;;  %v1089_v23 = vmax.f32 %v858_v17, 0.0  ;;  %v6947_v16 = vld [vmem:[%s10405_s3 + $0x10] sm:$0xff]   ;;  %v2742_v17 = vrot.slane %v2740_v60, 1 }
 0x180   : > { %1515 = vst.msk [vmem:[#allocation2 + $0x90] sm:$0xf] %vm1478_vm4, %v6235_v22  ;;  %v6236_v27 = vpack.c.bf16 %v1089_v23, %v1089_v23  ;;  %v1596_v22 = vld [vmem:[#allocation2 + $0x80] sm:$0xf]  ;;  %6745 = vmatpush1.bf16.msra.mxu1 %v6947_v16  ;;  %4518 = vmatpush1.bf16.msra.mxu0 %v6947_v16 }
 0x181   : > { %v862_v34 = vpop.f32.mrb[76].mxu0  ;;  %6730 = vmatprep.subr.bf16.mxu1 %v10418_v51  ;;  %4519 = vmatprep.subr.bf16.mxu0 %v10418_v51  ;;  %v7500_v32 = vcombine.low %v1595_v19, %v1596_v22 }
 0x182   : > { %1516 = vst.msk [vmem:[#allocation2 + $0x94] sm:$0xf] %vm1478_vm4, %v6236_v27  ;;  %v863_v35 = vadd.f32 %v7239_v33, %v862_v34  ;;  %v6473_v36 = vpop.f32.mrb[77].mxu0  ;;  %v2746_v34 = vor.u32 %v2745_v18, %v2742_v17  ;;  %v6952_v18 = vld [vmem:[%s10405_s3 + $0x30] sm:$0xff]  }
 0x183   : > { %v865_v38 = vpop.f32.mrb[78].mxu0  ;;  %10564 = vst [vmem:[#allocation31_spill] sm:$0xff] %v7500_v32  ;;  %v2749_v50 = vshrl.u32 %v7500_v32, 16 }
 0x184   : > { %v1090_v44 = vmax.f32 %v863_v35, 0.0  ;;  %v866_v47 = vadd.f32 %v7239_v33, %v865_v38  ;;  %v6474_v48 = vpop.f32.mrb[79].mxu0  ;;  %6746 = vmatpush1.bf16.msra.mxu1 %v6948_v28  ;;  %4520 = vmatpush1.bf16.msra.mxu0 %v6948_v28  ;;  %v7507_v43 = vsel %vm2622_vm5, %v2737_v55, %v2746_v34  ;;  %v6951_v55 = vld [vmem:[%s10405_s3 + $0x28] sm:$0xff]  }
 0x185   : > { %6731 = vmatprep.subr.bf16.mxu1 %v10418_v51  ;;  %4521 = vmatprep.subr.bf16.mxu0 %v10418_v51  ;;  %10565 = vst [vmem:[#allocation32_spill] sm:$0xff] %v7507_v43  ;;  %v2751_v60 = vrot.slane %v2749_v50, 1 }
 0x186   : > { %v6237_v56 = vpack.c.bf16 %v1090_v44, %v1090_v44  ;;  %v1091_v57 = vmax.f32 %v866_v47, 0.0 }
 0x187   : > { %v1600_v28 = vld [vmem:[#allocation2 + $0x90] sm:$0xf] }
 0x188   : > { %1517 = vst.msk [vmem:[#allocation2 + $0x98] sm:$0xf] %vm1478_vm4, %v6237_v56  ;;  %v6238_v58 = vpack.c.bf16 %v1091_v57, %v1091_v57  ;;  %v2752_v56 = vshll.u32 %v7500_v32, 16  ;;  %6747 = vmatpush1.bf16.msra.mxu1 %v6949_v49  ;;  %4522 = vmatpush1.bf16.msra.mxu0 %v6949_v49 }
 0x189   : > { %v870_v1 = vpop.f32.mrb[80].mxu0  ;;  %6732 = vmatprep.subr.bf16.mxu1 %v10418_v51  ;;  %4523 = vmatprep.subr.bf16.mxu0 %v10418_v51 }
 0x18a   : > { %1518 = vst.msk [vmem:[#allocation2 + $0x9c] sm:$0xf] %vm1478_vm4, %v6238_v58  ;;  %v871_v4 = vadd.f32 %v7239_v33, %v870_v1  ;;  %v6477_v7 = vpop.f32.mrb[81].mxu0  ;;  %v2754_v63 = vrot.slane %v2752_v56, 2 }
 0x18b   : > { %v873_v8 = vpop.f32.mrb[82].mxu0 }
 0x18c   : > { %v1092_v10 = vmax.f32 %v871_v4, 0.0  ;;  %v874_v11 = vadd.f32 %v7239_v33, %v873_v8  ;;  %v6478_v12 = vpop.f32.mrb[83].mxu0  ;;  %v1598_v4 = vld [vmem:[#allocation2 + $0x88] sm:$0xf]  ;;  %6748 = vmatpush1.bf16.msra.mxu1 %v6951_v55  ;;  %4524 = vmatpush1.bf16.msra.mxu0 %v6951_v55 }
 0x18d   : > { %6733 = vmatprep.subr.bf16.mxu1 %v10418_v51  ;;  %4525 = vmatprep.subr.bf16.mxu0 %v10418_v51 }
 0x18e   : > { %v6239_v23 = vpack.c.bf16 %v1092_v10, %v1092_v10  ;;  %v1093_v26 = vmax.f32 %v874_v11, 0.0  ;;  %v1597_v11 = vld [vmem:[#allocation2 + $0x84] sm:$0xf] }
 0x18f   : > { %v7529_v22 = vcombine.low %v1597_v11, %v1598_v4 }
 0x190   : > { %1519 = vst.msk [vmem:[#allocation2 + $0xa0] sm:$0xf] %vm1478_vm4, %v6239_v23  ;;  %v6240_v27 = vpack.c.bf16 %v1093_v26, %v1093_v26  ;;  %v7531_v23 = vor.u32 %v2754_v63, %v2751_v60  ;;  %6749 = vmatpush1.bf16.msra.mxu1 %v6952_v18  ;;  %4526 = vmatpush1.bf16.msra.mxu0 %v6952_v18 }
 0x191   : > { %v878_v35 = vpop.f32.mrb[84].mxu0  ;;  %10566 = vst [vmem:[#allocation33_spill] sm:$0xff] %v7529_v22  ;;  %6734 = vmatprep.subr.bf16.mxu1 %v10418_v51  ;;  %4527 = vmatprep.subr.bf16.mxu0 %v10418_v51 }
 0x192   : > { %1520 = vst.msk [vmem:[#allocation2 + $0xa4] sm:$0xf] %vm1478_vm4, %v6240_v27  ;;  %v879_v36 = vadd.f32 %v7239_v33, %v878_v35  ;;  %v6481_v37 = vpop.f32.mrb[85].mxu0  ;;  %v7538_v35 = vsel %vm2622_vm5, %v2746_v34, %v7531_v23 }
 0x193   : > { %v881_v38 = vpop.f32.mrb[86].mxu0  ;;  %10567 = vst [vmem:[#allocation34_spill] sm:$0xff] %v7538_v35  ;;  %v2761_v37 = vshll.u32 %v7529_v22, 16  ;;  %v10581_v35 = vmov 0  }
 0x194   : > { %v1094_v44 = vmax.f32 %v879_v36, 0.0  ;;  %v882_v47 = vadd.f32 %v7239_v33, %v881_v38  ;;  %v6482_v48 = vpop.f32.mrb[87].mxu0  ;;  %v2758_v36 = vshrl.u32 %v7529_v22, 16 }
 0x195   : > { %v6953_v48 = vld [vmem:[%s10405_s3 + $0x38] sm:$0xff]  }
 0x196   : > { %v6241_v57 = vpack.c.bf16 %v1094_v44, %v1094_v44  ;;  %v1095_v58 = vmax.f32 %v882_v47, 0.0  ;;  %6750 = vmatpush1.bf16.msra.mxu1 %v6953_v48  ;;  %4528 = vmatpush1.bf16.msra.mxu0 %v6953_v48 }
 0x197   : > { %6735 = vmatprep.subr.bf16.mxu1 %v10418_v51  ;;  %4529 = vmatprep.subr.bf16.mxu0 %v10418_v51 }
 0x198   : > { %1521 = vst.msk [vmem:[#allocation2 + $0xa8] sm:$0xf] %vm1478_vm4, %v6241_v57  ;;  %v6242_v59 = vpack.c.bf16 %v1095_v58, %v1095_v58  ;;  %v1599_v57 = vld [vmem:[#allocation2 + $0x8c] sm:$0xf] }
 0x199   : > { %v886_v1 = vpop.f32.mrb[88].mxu0 }
 0x19a   : > { %1522 = vst.msk [vmem:[#allocation2 + $0xac] sm:$0xf] %vm1478_vm4, %v6242_v59  ;;  %v887_v7 = vadd.f32 %v7239_v33, %v886_v1  ;;  %v6485_v8 = vpop.f32.mrb[89].mxu0  ;;  %v7552_v59 = vld [vmem:[%s10404_s2] ss:$0 sm:$0xff]  ;;  %v7561_v1 = vcombine.low %v1599_v57, %v1600_v28 }
 0x19b   : > { %v889_v10 = vpop.f32.mrb[90].mxu0  ;;  %v2763_v8 = vrot.slane %v2761_v37, 2  ;;  %v6956_v37 = vld [vmem:[%s10405_s3 + $0x48] sm:$0xff]  }
 0x19c   : > { %v1096_v12 = vmax.f32 %v887_v7, 0.0  ;;  %v890_v16 = vadd.f32 %v7239_v33, %v889_v10  ;;  %v6486_v17 = vpop.f32.mrb[91].mxu0  ;;  %10569 = vst [vmem:[#allocation36_spill] sm:$0xff] %v7561_v1  ;;  %v2760_v7 = vrot.slane %v2758_v36, 1  ;;  %v2770_v48 = vshll.u32 %v7561_v1, 16 }
 0x19e   : > { %v6243_v26 = vpack.c.bf16 %v1096_v12, %v1096_v12  ;;  %v1097_v19 = vmax.f32 %v890_v16, 0.0 }
 0x19f   : > { %v1606_v44 = vld [vmem:[#allocation2 + $0xa8] sm:$0xf] }
 0x1a0   : > { %1523 = vst.msk [vmem:[#allocation2 + $0xb0] sm:$0xf] %vm1478_vm4, %v6243_v26  ;;  %v6244_v27 = vpack.c.bf16 %v1097_v19, %v1097_v19  ;;  %v2767_v19 = vshrl.u32 %v7561_v1, 16 }
 0x1a1   : > { %v894_v38 = vpop.f32.mrb[92].mxu0  ;;  %v1607_v47 = vld [vmem:[#allocation2 + $0xac] sm:$0xf] }
 0x1a2   : > { %1524 = vst.msk [vmem:[#allocation2 + $0xb4] sm:$0xf] %vm1478_vm4, %v6244_v27  ;;  %v895_v49 = vadd.f32 %v7239_v33, %v894_v38  ;;  %v6489_v50 = vpop.f32.mrb[93].mxu0  ;;  %v7547_v56 = vcombine.low %v1606_v44, %v1607_v47  ;;  %v6955_v33 = vld [vmem:[%s10405_s3 + $0x40] sm:$0xff]   ;;  %v2764_v44 = vor.u32 %v2763_v8, %v2760_v7 }
 0x1a3   : > { %v897_v34 = vpop.f32.mrb[94].mxu0  ;;  %6751 = vmatpush1.bf16.msra.mxu1 %v6955_v33  ;;  %4530 = vmatpush1.bf16.msra.mxu0 %v6955_v33 }
 0x1a4   : > { %10568 = vst [vmem:[#allocation35_spill] sm:$0xff] %v7547_v56  ;;  %v1098_v58 = vmax.f32 %v895_v49, 0.0  ;;  %v898_v55 = vadd.f32 %v7552_v59, %v897_v34  ;;  %v6490_v60 = vpop.f32.mrb[95].mxu0  ;;  %v2025_v63 = vshll.u32 %v7547_v56, 16  ;;  %v2029_v4 = vshrl.u32 %v7547_v56, 16  ;;  %6736 = vmatprep.subr.bf16.mxu1 %v10418_v51  ;;  %4531 = vmatprep.subr.bf16.mxu0 %v10418_v51 }
 0x1a5   : > { %v10408_v57 = vrot.slane %v7547_v56, 1 }
 0x1a6   : > { %v6245_v10 = vpack.c.bf16 %v1098_v58, %v1098_v58  ;;  %v1099_v11 = vmax.f32 %v898_v55, 0.0  ;;  %v3396_v12 = vrot.slane %v2025_v63, 3  ;;  %v3395_v17 = vrot.slane %v2029_v4, 2 }
 0x1a7   : > { %v1608_v16 = vld [vmem:[#allocation2 + $0xb0] sm:$0xf]  ;;  %v7572_v36 = vrot.slane %v2025_v63, 1  ;;  %6752 = vmatpush1.bf16.msra.mxu1 %v6956_v37  ;;  %4532 = vmatpush1.bf16.msra.mxu0 %v6956_v37  ;;  %v7588_v58 = vsel %vm2622_vm5, %v7531_v23, %v2764_v44 }
 0x1a8   : > { %1525 = vst.msk [vmem:[#allocation2 + $0xb8] sm:$0xf] %vm1478_vm4, %v6245_v10  ;;  %v6246_v18 = vpack.c.bf16 %v1099_v11, %v1099_v11  ;;  %v7567_v26 = vcombine.low %v1607_v47, %v1608_v16  ;;  %v7577_v38 = vor.u32 %v3396_v12, %v3395_v17  ;;  %10573 = vst [vmem:[#allocation40_spill] sm:$0xff] %v7588_v58  ;;  %6737 = vmatprep.subr.bf16.mxu1 %v10418_v51 }
 0x1a9   : > { %v902_v27 = vpop.f32.mrb[96].mxu0  ;;  %v7570_v28 = vld [vmem:[#allocation2 + $0xb4] sm:$0xf]  ;;  %10571 = vst [vmem:[#allocation38_spill] sm:$0xff] %v7572_v36  ;;  %4533 = vmatprep.subr.bf16.mxu0 %v10418_v51  ;;  %v2031_v8 = vor.u32 %v2029_v4, %v7572_v36  ;;  %v2769_v11 = vrot.slane %v2767_v19, 1  ;;  %v2772_v12 = vrot.slane %v2770_v48, 2 }
 0x1aa   : > { %10570 = vst [vmem:[#allocation37_spill] sm:$0xff] %v7567_v26  ;;  %10572 = vst [vmem:[#allocation39_spill] sm:$0xff] %v7577_v38  ;;  %v903_v47 = vadd.f32 %v7552_v59, %v902_v27  ;;  %v6493_v49 = vpop.f32.mrb[97].mxu0  ;;  %v7583_v50 = vcombine.low %v1608_v16, %v7570_v28  ;;  %v6957_v27 = vld [vmem:[%s10405_s3 + $0x50] sm:$0xff]  }
 0x1ab   : > { %1526 = vst.msk [vmem:[#allocation2 + $0xbc] sm:$0xf] %vm1478_vm4, %v6246_v18  ;;  %v905_v34 = vpop.f32.mrb[98].mxu0  ;;  %6753 = vmatpush1.bf16.msra.mxu1 %v6957_v27  ;;  %4534 = vmatpush1.bf16.msra.mxu0 %v6957_v27 }
 0x1ac   : > { %v1100_v55 = vmax.f32 %v903_v47, 0.0  ;;  %v906_v60 = vadd.f32 %v7552_v59, %v905_v34  ;;  %v6494_v63 = vpop.f32.mrb[99].mxu0  ;;  %v2298_v33 = vrot.slane %v7583_v50, 1  ;;  %v2033_v7 = vshll.u32 %v7583_v50, 16  ;;  %6738 = vmatprep.subr.bf16.mxu1 %v10418_v51  ;;  %4535 = vmatprep.subr.bf16.mxu0 %v10418_v51 }
 0x1ad   : > { %v2037_v10 = vshrl.u32 %v7583_v50, 16  ;;  %v7613_v63 = vor.u32 %v2772_v12, %v2769_v11 }
 0x1ae   : > { %v6247_v23 = vpack.c.bf16 %v1100_v55, %v1100_v55  ;;  %v1101_v16 = vmax.f32 %v906_v60, 0.0  ;;  %v2299_v17 = vsel %vm2254_vm6, %v10408_v57, %v2298_v33  ;;  %v2035_v18 = vrot.slane %v2033_v7, 1  ;;  %v6959_v55 = vld [vmem:[%s10405_s3 + $0x58] sm:$0xff]  }
 0x1af   : > { %2376 = vrot.lane.b32.xlu1 %v2299_v17, %s7074_s29  ;;  %v3400_v4 = vrot.slane %v2033_v7, 3  ;;  %v3399_v37 = vrot.slane %v2037_v10, 2  ;;  %v1610_v49 = vld [vmem:[#allocation2 + $0xb8] sm:$0xf]  ;;  %10574 = vst [vmem:[#allocation41_spill] sm:$0xff] %v7613_v63  ;;  %v7627_v11 = vsel %vm2622_vm5, %v2764_v44, %v7613_v63  ;;  %6754 = vmatpush1.bf16.msra.mxu1 %v6959_v55  ;;  %v6960_v44 = vld [vmem:[%s10405_s3 + $0x60] sm:$0xff]  }
 0x1b0   : > { %1527 = vst.msk [vmem:[#allocation2 + $0xc0] sm:$0xf] %vm1478_vm4, %v6247_v23  ;;  %v6248_v19 = vpack.c.bf16 %v1101_v16, %v1101_v16  ;;  %v2036_v48 = vsel %vm1856_vm7, %v2031_v8, %v2035_v18  ;;  %10576 = vst [vmem:[#allocation43_spill] sm:$0xff] %v7627_v11  ;;  %6739 = vmatprep.subr.bf16.mxu1 %v10418_v51  ;;  %4536 = vmatpush1.bf16.msra.mxu0 %v6959_v55 }
 0x1b1   : > { %2215 = vrot.lane.b32.xlu0 %v2036_v48, %s7075_s30  ;;  %v910_v47 = vpop.f32.mrb[100].mxu0  ;;  %v7611_v60 = vor.u32 %v3400_v4, %v3399_v37  ;;  %v7633_v48 = vcombine.low %v7570_v28, %v1610_v49  ;;  %v2039_v28 = vor.u32 %v2037_v10, %v2035_v18  ;;  %4537 = vmatprep.subr.bf16.mxu0 %v10418_v51 }
 0x1b2   : > { %v1611_v34 = vld [vmem:[#allocation2 + $0xbc] sm:$0xf]  ;;  %1528 = vst.msk [vmem:[#allocation2 + $0xc4] sm:$0xf] %vm1478_vm4, %v6248_v19  ;;  %v911_v7 = vadd.f32 %v7552_v59, %v910_v47  ;;  %v6497_v8 = vpop.f32.mrb[101].mxu0 }
 0x1b3   : > { %v7617_v23 = vcombine.low %v1610_v49, %v1611_v34  ;;  %v913_v16 = vpop.f32.mrb[102].mxu0  ;;  %v7623_v17 = vsel %vm3318_vm8, %v7577_v38, %v7611_v60  ;;  %10577 = vst [vmem:[#allocation44_spill] sm:$0xff] %v7633_v48  ;;  %6755 = vmatpush1.bf16.msra.mxu1 %v6960_v44  ;;  %v10413_v55 = vrot.slane %v7633_v48, 2 }
 0x1b4   : > { %10575 = vst [vmem:[#allocation42_spill] sm:$0xff] %v7623_v17  ;;  %v1102_v12 = vmax.f32 %v911_v7, 0.0  ;;  %v914_v4 = vadd.f32 %v7552_v59, %v913_v16  ;;  %v6498_v37 = vpop.f32.mrb[103].mxu0  ;;  %6740 = vmatprep.subr.bf16.mxu1 %v10418_v51  ;;  %4538 = vmatpush1.bf16.msra.mxu0 %v6960_v44 }
 0x1b5   : > { %v10411_v19 = vrot.slane %v7617_v23, 1  ;;  %v2041_v27 = vshll.u32 %v7617_v23, 16  ;;  %v10412_v47 = vshrl.u32 %v7617_v23, 16  ;;  %4539 = vmatprep.subr.bf16.mxu0 %v10418_v51 }
 0x1b6   : > { %v6249_v7 = vpack.c.bf16 %v1102_v12, %v1102_v12  ;;  %v1103_v8 = vmax.f32 %v914_v4, 0.0 }
 0x1b7   : > { %v2301_v16 = vsel %vm2254_vm6, %v2298_v33, %v10411_v19  ;;  %v2043_v37 = vrot.slane %v2041_v27, 1  ;;  %v1612_v49 = vld [vmem:[#allocation2 + $0xc0] sm:$0xf]  ;;  %v3403_v57 = vrot.slane %v10412_v47, 2  ;;  %v3404_v10 = vrot.slane %v2041_v27, 3 }
 0x1b8   : > { %2378 = vrot.lane.b32.xlu1 %v2301_v16, %s7074_s29  ;;  %1529 = vst.msk [vmem:[#allocation2 + $0xc8] sm:$0xf] %vm1478_vm4, %v6249_v7  ;;  %v6250_v0 = vpack.c.bf16 %v1103_v8, %v1103_v8  ;;  %v7648_v12 = vcombine.low %v1611_v34, %v1612_v49  ;;  %v10415_v34 = vrot.slane %v7633_v48, 1 }
 0x1b9   : > { %v918_v4 = vpop.f32.mrb[104].mxu0  ;;  %v2044_v33 = vsel %vm1856_vm7, %v2039_v28, %v2043_v37  ;;  %v1613_v19 = vld [vmem:[#allocation2 + $0xc4] sm:$0xf]  ;;  %v6961_v28 = vld [vmem:[%s10405_s3 + $0x68] sm:$0xff]  }
 0x1ba   : > { %1530 = vst.msk [vmem:[#allocation2 + $0xcc] sm:$0xf] %vm1478_vm4, %v6250_v0  ;;  %v919_v18 = vadd.f32 %v7552_v59, %v918_v4  ;;  %v6501_v16 = vpop.f32.mrb[105].mxu0  ;;  %v10414_v7 = vrot.slane %v7648_v12, 2  ;;  %v7656_v8 = vcombine.low %v1612_v49, %v1613_v19  ;;  %v3405_v0 = vor.u32 %v3404_v10, %v3403_v57  ;;  %6756 = vmatpush1.bf16.msra.mxu1 %v6961_v28 }
 0x1bb   : > { %v921_v47 = vpop.f32.mrb[106].mxu0  ;;  %6741 = vmatprep.subr.bf16.mxu1 %v10418_v51  ;;  %v10578_v10 = vrot.slane %v7648_v12, 1  ;;  %4540 = vmatpush1.bf16.msra.mxu0 %v6961_v28 }
 0x1bc   : > { %2217 = vrot.lane.b32.xlu1 %v2044_v33, %s7075_s30  ;;  %v1104_v27 = vmax.f32 %v919_v18, 0.0  ;;  %v922_v4 = vadd.f32 %v7552_v59, %v921_v47  ;;  %v6502_v16 = vpop.f32.mrb[107].mxu0  ;;  %v3030_v49 = vsel %vm2985_vm9, %v10413_v55, %v10414_v7  ;;  %v2049_v44 = vshll.u32 %v7656_v8, 16  ;;  %4541 = vmatprep.subr.bf16.mxu0 %v10418_v51 }
 0x1bd   : > { %3107 = vrot.lane.b32.xlu0 %v3030_v49, %s7075_s30  ;;  %v10417_v33 = vshrl.u32 %v7656_v8, 16  ;;  %v2506_v18 = vsel %vm2254_vm6, %v10415_v34, %v10578_v10  ;;  %v6963_v49 = vld [vmem:[%s10405_s3 + $0x70] sm:$0xff]   ;;  %v2821_v7 = vshrl.u32 %v7648_v12, 16  ;;  %v2824_v16 = vshll.u32 %v7648_v12, 16 }
 0x1be   : > { %v6251_v57 = vpack.c.bf16 %v1104_v27, %v1104_v27  ;;  %v1105_v47 = vmax.f32 %v922_v4, 0.0  ;;  %v3408_v4 = vrot.slane %v2049_v44, 3  ;;  %6757 = vmatpush1.bf16.msra.mxu1 %v6963_v49  ;;  %v7695_v28 = vsel %vm3318_vm8, %v7611_v60, %v3405_v0 }
 0x1bf   : > { %v1614_v55 = vld [vmem:[#allocation2 + $0xc8] sm:$0xf]  ;;  %v3407_v27 = vrot.slane %v10417_v33, 2  ;;  %10579 = vst [vmem:[#allocation45_spill] sm:$0xff] %v7695_v28  ;;  %v10580_v33 = vshrl.u32 %v7617_v23, 16  ;;  %v7699_v58 = vrot.slane %v2049_v44, 1  ;;  %6742 = vmatprep.subr.bf16.mxu1 %v10581_v35  ;;  %4542 = vmatpush1.bf16.msra.mxu0 %v6963_v49 }
 0x1c0   : > { %2583 = vrot.lane.b32.xlu1 %v2506_v18, %s7076_s14  ;;  %1531 = vst.msk [vmem:[#allocation2 + $0xd0] sm:$0xf] %vm1478_vm4, %v6251_v57  ;;  %v6252_v10 = vpack.c.bf16 %v1105_v47, %v1105_v47  ;;  %v7690_v34 = vcombine.low %v1613_v19, %v1614_v55  ;;  %v10582_v47 = vrot.slane %v7656_v8, 1  ;;  %v10583_v60 = vrot.slane %v7617_v23, 1  ;;  %4543 = vmatprep.subr.bf16.mxu0 %v10581_v35 }
 0x1c1   : > { %v926_v18 = vpop.f32.mrb[108].mxu0  ;;  %v1615_v63 = vld [vmem:[#allocation2 + $0xcc] sm:$0xf]  ;;  %v2047_v11 = vor.u32 %v10580_v33, %v2043_v37  ;;  %v3409_v51 = vor.u32 %v3408_v4, %v3407_v27  ;;  %v2823_v44 = vrot.slane %v2821_v7, 1  ;;  %v6964_v4 = vld [vmem:[%s10405_s3 + $0x78] sm:$0xff]  }
 0x1c2   : > { %1532 = vst.msk [vmem:[#allocation2 + $0xd4] sm:$0xf] %vm1478_vm4, %v6252_v10  ;;  %v927_v19 = vadd.f32 %v7552_v59, %v926_v18  ;;  %v6505_v57 = vpop.f32.mrb[109].mxu0  ;;  %v2303_v43 = vsel %vm2254_vm6, %v10583_v60, %v10582_v47  ;;  %v10420_v9 = vrot.slane %v7690_v34, 2  ;;  %v7710_v30 = vcombine.low %v1614_v55, %v1615_v63  ;;  %6758 = vmatpush1.bf16.msra.mxu1 %v6964_v4 }
 0x1c3   : > { %v929_v37 = vpop.f32.mrb[110].mxu0  ;;  %v2830_v33 = vshrl.u32 %v7690_v34, 16  ;;  %v2833_v27 = vshll.u32 %v7690_v34, 16  ;;  %v7720_v10 = vsel %vm3318_vm8, %v3405_v0, %v3409_v51  ;;  %v2826_v57 = vrot.slane %v2824_v16, 2  ;;  %6567 = vmatprep.subr.bf16.mxu1 %v10586_v2  ;;  %4544 = vmatpush1.bf16.msra.mxu0 %v6964_v4 }
 0x1c4   : > { %2380 = vrot.lane.b32.xlu1 %v2303_v43, %s7074_s29  ;;  %10584 = vst [vmem:[#allocation46_spill] sm:$0xff] %v7720_v10  ;;  %v1106_v55 = vmax.f32 %v927_v19, 0.0  ;;  %v930_v49 = vadd.f32 %v7552_v59, %v929_v37  ;;  %v10585_v43 = vrot.slane %v7648_v12, 2  ;;  %v6506_v18 = vpop.f32.mrb[111].mxu0  ;;  %v2052_v47 = vsel %vm1856_vm7, %v2047_v11, %v7699_v58 }
 0x1c5   : > { %v10422_v35 = vrot.slane %v7690_v34, 1  ;;  %v2057_v0 = vshll.u32 %v7710_v30, 16  ;;  %v10421_v19 = vshrl.u32 %v7710_v30, 16  ;;  %v2832_v10 = vrot.slane %v2830_v33, 1 }
 0x1c6   : > { %v3032_v7 = vsel %vm2985_vm9, %v10585_v43, %v10420_v9  ;;  %v6253_v60 = vpack.c.bf16 %v1106_v55, %v1106_v55  ;;  %v1107_v37 = vmax.f32 %v930_v49, 0.0  ;;  %v2835_v28 = vrot.slane %v2833_v27, 2 }
 0x1c7   : > { %3109 = vrot.lane.b32.xlu0 %v3032_v7, %s7075_s30  ;;  %v3411_v16 = vrot.slane %v10421_v19, 2  ;;  %v3412_v11 = vrot.slane %v2057_v0, 3  ;;  %v1616_v43 = vld [vmem:[#allocation2 + $0xd0] sm:$0xf]  ;;  %v7745_v49 = vor.u32 %v2826_v57, %v2823_v44  ;;  %v10599_v62 = vshrl.u32 %v7710_v30, 16 }
 0x1c8   : > { %2219 = vrot.lane.b32.xlu1 %v2052_v47, %s7075_s30  ;;  %1533 = vst.msk [vmem:[#allocation2 + $0xd8] sm:$0xf] %vm1478_vm4, %v6253_v60  ;;  %v6254_v7 = vpack.c.bf16 %v1107_v37, %v1107_v37  ;;  %v7739_v18 = vcombine.low %v1615_v63, %v1616_v43  ;;  %v7741_v9 = vor.u32 %v2835_v28, %v2832_v10  ;;  %v10587_v60 = vrot.slane %v7648_v12, 1 }
 0x1c9   : > { %v934_v55 = vpop.f32.mrb[112].mxu0  ;;  %v7743_v33 = vor.u32 %v3412_v11, %v3411_v16  ;;  %v1617_v27 = vld [vmem:[#allocation2 + $0xd4] sm:$0xf]  ;;  %v3201_v28 = vrot.slane %v7710_v30, 2 }
 0x1ca   : > { %1534 = vst.msk [vmem:[#allocation2 + $0xdc] sm:$0xf] %vm1478_vm4, %v6254_v7  ;;  %v935_v4 = vadd.f32 %v7552_v59, %v934_v55  ;;  %v6509_v47 = vpop.f32.mrb[113].mxu0  ;;  %v2508_v63 = vsel %vm2254_vm6, %v10587_v60, %v10422_v35  ;;  %v7755_v10 = vcombine.low %v1616_v43, %v1617_v27  ;;  %v10425_v37 = vrot.slane %v7739_v18, 2 }
 0x1cb   : > { %v3414_v44 = vsel %vm3318_vm8, %v3409_v51, %v7743_v33  ;;  %v937_v57 = vpop.f32.mrb[114].mxu0  ;;  %v7764_v16 = vsel %vm2622_vm5, %v7745_v49, %v7741_v9  ;;  %v10423_v43 = vrot.slane %v7656_v8, 2  ;;  %v2842_v55 = vshll.u32 %v7739_v18, 16 }
 0x1cc   : > { %2585 = vrot.lane.b32.xlu1 %v2508_v63, %s7076_s14  ;;  %v1108_v12 = vmax.f32 %v935_v4, 0.0  ;;  %3545 = vrot.lane.b32.xlu0 %v3414_v44, %s7076_s14  ;;  %v938_v11 = vadd.f32 %v7552_v59, %v937_v57  ;;  %v6510_v7 = vpop.f32.mrb[115].mxu0  ;;  %v10427_v51 = vshll.u32 %v7755_v10, 16  ;;  %v10426_v47 = vshrl.u32 %v7755_v10, 16 }
 0x1cd   : > { %v3202_v19 = vsel %vm2985_vm9, %v10423_v43, %v3201_v28  ;;  %v2839_v4 = vshrl.u32 %v7739_v18, 16  ;;  %v10588_v44 = vrot.slane %v7690_v34, 2  ;;  %v2844_v41 = vrot.slane %v2842_v55, 2 }
 0x1ce   : > { %v6255_v60 = vpack.c.bf16 %v1108_v12, %v1108_v12  ;;  %v1109_v63 = vmax.f32 %v938_v11, 0.0  ;;  %v3415_v12 = vrot.slane %v10426_v47, 2  ;;  %v3416_v11 = vrot.slane %v10427_v51, 3 }
 0x1cf   : > { %v3034_v57 = vsel %vm2985_vm9, %v10588_v44, %v10425_v37  ;;  %v1618_v35 = vld [vmem:[#allocation2 + $0xd8] sm:$0xf]  ;;  %v7792_v44 = vrot.slane %v2057_v0, 1  ;;  %v10589_v51 = vrot.slane %v7710_v30, 1  ;;  %v2841_v17 = vrot.slane %v2839_v4, 1 }
 0x1d0   : > { %3279 = vrot.lane.b32.xlu1 %v3202_v19, %s7074_s29  ;;  %1535 = vst.msk [vmem:[#allocation2 + $0xe0] sm:$0xf] %vm1478_vm4, %v6255_v60  ;;  %v6256_v43 = vpack.c.bf16 %v1109_v63, %v1109_v63  ;;  %3111 = vrot.lane.b32.xlu0 %v3034_v57, %s7075_s30  ;;  %v7789_v19 = vcombine.low %v1617_v27, %v1618_v35  ;;  %v10590_v60 = vrot.slane %v7656_v8, 1  ;;  %v10591_v27 = vshrl.u32 %v7656_v8, 16 }
 0x1d1   : > { %v942_v36 = vpop.f32.mrb[116].mxu0  ;;  %v1619_v37 = vld [vmem:[#allocation2 + $0xdc] sm:$0xf]  ;;  %v10592_v0 = vrot.slane %v7755_v10, 2  ;;  %v2845_v55 = vor.u32 %v2844_v41, %v2841_v17 }
 0x1d2   : > { %1536 = vst.msk [vmem:[#allocation2 + $0xe4] sm:$0xf] %vm1478_vm4, %v6256_v43  ;;  %v943_v47 = vadd.f32 %v7552_v59, %v942_v36  ;;  %v6513_v7 = vpop.f32.mrb[117].mxu0  ;;  %v2305_v63 = vsel %vm2254_vm6, %v10590_v60, %v10589_v51  ;;  %v2055_v57 = vor.u32 %v10591_v27, %v7699_v58  ;;  %v7808_v36 = vor.u32 %v3416_v11, %v3415_v12 }
 0x1d3   : > { %v3204_v43 = vsel %vm2985_vm9, %v3201_v28, %v10592_v0  ;;  %v945_v26 = vpop.f32.mrb[118].mxu0  ;;  %v7810_v7 = vcombine.low %v1618_v35, %v1619_v37  ;;  %v2848_v58 = vshrl.u32 %v7789_v19, 16  ;;  %v2851_v28 = vshll.u32 %v7789_v19, 16 }
 0x1d4   : > { %2382 = vrot.lane.b32.xlu1 %v2305_v63, %s7074_s29  ;;  %v1110_v38 = vmax.f32 %v943_v47, 0.0  ;;  %3281 = vrot.lane.b32.xlu0 %v3204_v43, %s7074_s29  ;;  %v946_v51 = vadd.f32 %v7552_v59, %v945_v26  ;;  %v6514_v60 = vpop.f32.mrb[119].mxu0  ;;  %v2060_v4 = vsel %vm1856_vm7, %v2055_v57, %v7792_v44  ;;  %v10430_v63 = vrot.slane %v7739_v18, 1 }
 0x1d5   : > { %v10431_v35 = vrot.slane %v7789_v19, 2  ;;  %v3418_v26 = vsel %vm3318_vm8, %v7743_v33, %v7808_v36  ;;  %v10433_v47 = vshll.u32 %v7810_v7, 16  ;;  %v10432_v27 = vshrl.u32 %v7810_v7, 16 }
 0x1d6   : > { %v6257_v12 = vpack.c.bf16 %v1110_v38, %v1110_v38  ;;  %v1111_v11 = vmax.f32 %v946_v51, 0.0  ;;  %v7832_v41 = vsel %vm2622_vm5, %v7741_v9, %v2845_v55  ;;  %v2850_v17 = vrot.slane %v2848_v58, 1 }
 0x1d7   : > { %v1620_v57 = vld [vmem:[#allocation2 + $0xe0] sm:$0xf]  ;;  %v10434_v33 = vrot.slane %v7755_v10, 1  ;;  %v2853_v51 = vrot.slane %v2851_v28, 2  ;;  %v10594_v9 = vrot.slane %v7739_v18, 2 }
 0x1d8   : > { %2221 = vrot.lane.b32.xlu1 %v2060_v4, %s7075_s30  ;;  %1537 = vst.msk [vmem:[#allocation2 + $0xe8] sm:$0xf] %vm1478_vm4, %v6257_v12  ;;  %v6258_v0 = vpack.c.bf16 %v1111_v11, %v1111_v11  ;;  %3547 = vrot.lane.b32.xlu0 %v3418_v26, %s7076_s14  ;;  %v7828_v38 = vcombine.low %v1619_v37, %v1620_v57  ;;  %v10593_v4 = vrot.slane %v7690_v34, 1  ;;  %v3419_v26 = vrot.slane %v10432_v27, 2 }
 0x1d9   : > { %v950_v43 = vpop.f32.mrb[120].mxu0  ;;  %v3036_v58 = vsel %vm2985_vm9, %v10594_v9, %v10431_v35  ;;  %v3420_v34 = vrot.slane %v10433_v47, 3  ;;  %v1621_v9 = vld [vmem:[#allocation2 + $0xe4] sm:$0xf]  ;;  %v10595_v35 = vrot.slane %v7710_v30, 1 }
 0x1da   : > { %1538 = vst.msk [vmem:[#allocation2 + $0xec] sm:$0xf] %vm1478_vm4, %v6258_v0  ;;  %v951_v60 = vadd.f32 %v7552_v59, %v950_v43  ;;  %v2510_v37 = vsel %vm2254_vm6, %v10593_v4, %v10430_v63  ;;  %v6517_v12 = vpop.f32.mrb[121].mxu0  ;;  %v2854_v0 = vor.u32 %v2853_v51, %v2850_v17  ;;  %v10596_v17 = vshll.u32 %v7755_v10, 16 }
 0x1db   : > { %v953_v11 = vpop.f32.mrb[122].mxu0  ;;  %v2857_v12 = vshrl.u32 %v7828_v38, 16  ;;  %v2307_v27 = vsel %vm2254_vm6, %v10595_v35, %v10434_v33  ;;  %v2063_v35 = vor.u32 %v10599_v62, %v7792_v44 }
 0x1dc   : > { %2587 = vrot.lane.b32.xlu1 %v2510_v37, %s7076_s14  ;;  %v1112_v43 = vmax.f32 %v951_v60, 0.0  ;;  %3113 = vrot.lane.b32.xlu0 %v3036_v58, %s7075_s30  ;;  %v954_v4 = vadd.f32 %v7552_v59, %v953_v11  ;;  %v6518_v63 = vpop.f32.mrb[123].mxu0  ;;  %v2860_v37 = vshll.u32 %v7828_v38, 16  ;;  %v2067_v51 = vrot.slane %v10596_v17, 1 }
 0x1dd   : > { %v7865_v60 = vsel %vm2622_vm5, %v2845_v55, %v2854_v0  ;;  %v10597_v63 = vrot.slane %v7810_v7, 2  ;;  %v10598_v58 = vrot.slane %v7755_v10, 2  ;;  %v2859_v33 = vrot.slane %v2857_v12, 1 }
 0x1de   : > { %v6259_v28 = vpack.c.bf16 %v1112_v43, %v1112_v43  ;;  %v1113_v47 = vmax.f32 %v954_v4, 0.0  ;;  %v7876_v43 = vor.u32 %v3420_v34, %v3419_v26  ;;  %v7878_v4 = vcombine.low %v1620_v57, %v1621_v9 }
 0x1df   : > { %v3206_v11 = vsel %vm2985_vm9, %v10598_v58, %v10597_v63  ;;  %v1622_v17 = vld [vmem:[#allocation2 + $0xe8] sm:$0xf]  ;;  %v2862_v39 = vrot.slane %v2860_v37, 2  ;;  %v10435_v63 = vrot.slane %v7789_v19, 1  ;;  %v2068_v44 = vsel %vm1856_vm7, %v2063_v35, %v2067_v51 }
 0x1e0   : > { %2384 = vrot.lane.b32.xlu1 %v2307_v27, %s7074_s29  ;;  %10600 = vst [vmem:[#allocation47_spill] sm:$0xff] %v7878_v4  ;;  %1539 = vst.msk [vmem:[#allocation2 + $0xf0] sm:$0xf] %vm1478_vm4, %v6259_v28  ;;  %3283 = vrot.lane.b32.xlu0 %v3206_v11, %s7074_s29  ;;  %v6260_v55 = vpack.c.bf16 %v1113_v47, %v1113_v47  ;;  %v7882_v27 = vcombine.low %v1621_v9, %v1622_v17  ;;  %v10436_v57 = vrot.slane %v7828_v38, 2 }
 0x1e1   : > { %v958_v5 = vpop.f32.mrb[124].mxu0  ;;  %v3422_v47 = vsel %vm3318_vm8, %v7808_v36, %v7876_v43  ;;  %v10438_v34 = vshll.u32 %v7878_v4, 16  ;;  %v10437_v9 = vshrl.u32 %v7878_v4, 16  ;;  %v2863_v12 = vor.u32 %v2862_v39, %v2859_v33 }
 0x1e2   : > { %1540 = vst.msk [vmem:[#allocation2 + $0xf4] sm:$0xf] %vm1478_vm4, %v6260_v55  ;;  %v959_v62 = vadd.f32 %v7552_v59, %v958_v5  ;;  %v6521_v26 = vpop.f32.mrb[125].mxu0  ;;  %v2866_v11 = vshrl.u32 %v7882_v27, 16  ;;  %v2869_v35 = vshll.u32 %v7882_v27, 16  ;;  %v10601_v36 = vrot.slane %v7739_v18, 1 }
 0x1e3   : > { %v961_v28 = vpop.f32.mrb[126].mxu0  ;;  %v3423_v18 = vrot.slane %v10437_v9, 2 }
 0x1e4   : > { %2223 = vrot.lane.b32.xlu1 %v2068_v44, %s7075_s30  ;;  %v1114_v37 = vmax.f32 %v959_v62, 0.0  ;;  %3549 = vrot.lane.b32.xlu0 %v3422_v47, %s7076_s14  ;;  %v962_v5 = vadd.f32 %v7552_v59, %v961_v28  ;;  %v6522_v58 = vpop.f32.mrb[127].mxu0  ;;  %v2512_v55 = vsel %vm2254_vm6, %v10601_v36, %v10435_v63  ;;  %v10443_v44 = vrot.slane %v7810_v7, 1 }
 0x1e5   : > { %v7907_v62 = vsel %vm2622_vm5, %v2854_v0, %v2863_v12  ;;  %v10602_v47 = vrot.slane %v7789_v19, 2  ;;  %v2871_v63 = vrot.slane %v2869_v35, 2  ;;  %v10606_v35 = vrot.slane %v7878_v4, 2 }
 0x1e6   : > { %v6261_v26 = vpack.c.bf16 %v1114_v37, %v1114_v37  ;;  %v1115_v39 = vmax.f32 %v962_v5, 0.0  ;;  %v3424_v37 = vrot.slane %v10438_v34, 3  ;;  %v1623_v5 = vld [vmem:[#allocation2 + $0xec] sm:$0xf]  ;;  %v10604_v34 = vrot.slane %v7755_v10, 1 }
 0x1e7   : > { %v3038_v28 = vsel %vm2985_vm9, %v10602_v47, %v10436_v57  ;;  %v7919_v58 = vld [vmem:[#allocation2 + $0xf0] sm:$0xf]  ;;  %v10603_v57 = vshll.u32 %v7810_v7, 16  ;;  %v7947_v46 = vcombine.low %v1622_v17, %v1623_v5  ;;  %v10445_v17 = vrot.slane %v7882_v27, 2 }
 0x1e8   : > { %2589 = vrot.lane.b32.xlu1 %v2512_v55, %s7076_s14  ;;  %1541 = vst.msk [vmem:[#allocation2 + $0xf8] sm:$0xf] %vm1478_vm4, %v6261_v26  ;;  %3115 = vrot.lane.b32.xlu0 %v3038_v28, %s7075_s30  ;;  %v6262_v0 = vpack.c.bf16 %v1115_v39, %v1115_v39  ;;  %v7924_v36 = vcombine.low %v1623_v5, %v7919_v58  ;;  %v2868_v55 = vrot.slane %v2866_v11, 1  ;;  %v10605_v28 = vshrl.u32 %v7755_v10, 16 }
 0x1e9   : > { %v966_v47 = vpop.f32.mrb[128].mxu0  ;;  %v7928_v9 = vrot.slane %v10603_v57, 1  ;;  %v2309_v26 = vsel %vm2254_vm6, %v10604_v34, %v10443_v44  ;;  %v10607_v57 = vrot.slane %v7810_v7, 2  ;;  %v7945_v1 = vor.u32 %v3424_v37, %v3423_v18  ;;  %10608 = vst [vmem:[#allocation48_spill] sm:$0xff] %v7947_v46 }
 0x1ea   : > { %1542 = vst.msk [vmem:[#allocation2 + $0xfc] sm:$0xf] %vm1478_vm4, %v6262_v0  ;;  %v967_v39 = vadd.f32 %v7552_v59, %v966_v47  ;;  %v2071_v33 = vor.u32 %v10605_v28, %v2067_v51  ;;  %v6525_v11 = vpop.f32.mrb[129].mxu0  ;;  %v2872_v34 = vor.u32 %v2871_v63, %v2868_v55  ;;  %v10444_v18 = vrot.slane %v7828_v38, 1 }
 0x1eb   : > { %v3208_v0 = vsel %vm2985_vm9, %v10607_v57, %v10606_v35  ;;  %v969_v22 = vpop.f32.mrb[130].mxu0  ;;  %v2878_v11 = vshll.u32 %v7924_v36, 16  ;;  %v10447_v55 = vshll.u32 %v7947_v46, 16  ;;  %v10626_v24 = vrot.slane %v7947_v46, 1 }
 0x1ec   : > { %2386 = vrot.lane.b32.xlu1 %v2309_v26, %s7074_s29  ;;  %3285 = vrot.lane.b32.xlu0 %v3208_v0, %s7074_s29  ;;  %v1116_v47 = vmax.f32 %v967_v39, 0.0  ;;  %v970_v51 = vadd.f32 %v7552_v59, %v969_v22  ;;  %v6526_v28 = vpop.f32.mrb[131].mxu0  ;;  %v2875_v26 = vshrl.u32 %v7924_v36, 16  ;;  %v2076_v44 = vsel %vm1856_vm7, %v2071_v33, %v7928_v9  ;;  %v1625_v33 = vld [vmem:[#allocation2 + $0xf4] sm:$0xf] }
 0x1ed   : > { %v7958_v63 = vsel %vm2622_vm5, %v2863_v12, %v2872_v34  ;;  %v3426_v22 = vsel %vm3318_vm8, %v7876_v43, %v7945_v1  ;;  %v10446_v39 = vshrl.u32 %v7947_v46, 16  ;;  %v2880_v0 = vrot.slane %v2878_v11, 2 }
 0x1ee   : > { %v6263_v37 = vpack.c.bf16 %v1116_v47, %v1116_v47  ;;  %v1117_v5 = vmax.f32 %v970_v51, 0.0  ;;  %v10609_v51 = vrot.slane %v7789_v19, 1 }
 0x1ef   : > { %v7966_v35 = vld [vmem:[#allocation2 + $0xf8] sm:$0xf]  ;;  %v3427_v19 = vrot.slane %v10446_v39, 2 }
 0x1f0   : > { %2225 = vrot.lane.b32.xlu1 %v2076_v44, %s7075_s30  ;;  %1543 = vst.msk [vmem:[#allocation2 + $0x100] sm:$0xf] %vm1478_vm4, %v6263_v37  ;;  %3551 = vrot.lane.b32.xlu0 %v3426_v22, %s7076_s14  ;;  %v6264_v57 = vpack.c.bf16 %v1117_v5, %v1117_v5  ;;  %v7971_v12 = vcombine.low %v1625_v33, %v7966_v35  ;;  %v2877_v44 = vrot.slane %v2875_v26, 1  ;;  %v10610_v37 = vrot.slane %v7828_v38, 2 }
 0x1f1   : > { %v974_v43 = vpop.f32.mrb[132].mxu0  ;;  %v2514_v28 = vsel %vm2254_vm6, %v10609_v51, %v10444_v18  ;;  %v3428_v51 = vrot.slane %v10447_v55, 3  ;;  %v10612_v22 = vrot.slane %v7810_v7, 1  ;;  %v8001_v20 = vld [vmem:[#allocation2 + $0xfc] sm:$0xf] }
 0x1f2   : > { %v3040_v5 = vsel %vm2985_vm9, %v10610_v37, %v10445_v17  ;;  %1544 = vst.msk [vmem:[#allocation2 + $0x104] sm:$0xf] %vm1478_vm4, %v6264_v57  ;;  %v975_v26 = vadd.f32 %v7552_v59, %v974_v43  ;;  %v6529_v11 = vpop.f32.mrb[133].mxu0  ;;  %v2881_v47 = vor.u32 %v2880_v0, %v2877_v44  ;;  %v2884_v43 = vshrl.u32 %v7971_v12, 16 }
 0x1f3   : > { %v977_v18 = vpop.f32.mrb[134].mxu0  ;;  %v10611_v11 = vrot.slane %v7878_v4, 1  ;;  %v10613_v44 = vshll.u32 %v7878_v4, 16 }
 0x1f4   : > { %2591 = vrot.lane.b32.xlu1 %v2514_v28, %s7076_s14  ;;  %3117 = vrot.lane.b32.xlu0 %v3040_v5, %s7075_s30  ;;  %v1118_v37 = vmax.f32 %v975_v26, 0.0  ;;  %v978_v57 = vadd.f32 %v7552_v59, %v977_v18  ;;  %v6530_v17 = vpop.f32.mrb[135].mxu0  ;;  %v2887_v28 = vshll.u32 %v7971_v12, 16  ;;  %v8006_v18 = vsel %vm2622_vm5, %v2872_v34, %v2881_v47 }
 0x1f5   : > { %v2311_v39 = vsel %vm2254_vm6, %v10612_v22, %v10611_v11  ;;  %v2083_v0 = vrot.slane %v10613_v44, 1  ;;  %v10614_v17 = vrot.slane %v7947_v46, 2  ;;  %v10615_v26 = vrot.slane %v7878_v4, 2 }
 0x1f6   : > { %v6265_v55 = vpack.c.bf16 %v1118_v37, %v1118_v37  ;;  %v1119_v5 = vmax.f32 %v978_v57, 0.0  ;;  %v10616_v22 = vshrl.u32 %v7810_v7, 16  ;;  %v8017_v37 = vor.u32 %v3428_v51, %v3427_v19 }
 0x1f7   : > { %v3210_v32 = vsel %vm2985_vm9, %v10615_v26, %v10614_v17  ;;  %v8020_v44 = vcombine.low %v7919_v58, %v1625_v33  ;;  %v8022_v57 = vld [vmem:[#allocation2 + $0x100] sm:$0xf]  ;;  %v2886_v17 = vrot.slane %v2884_v43, 1  ;;  %v2889_v26 = vrot.slane %v2887_v28, 2 }
 0x1f8   : > { %2388 = vrot.lane.b32.xlu1 %v2311_v39, %s7074_s29  ;;  %v2079_v11 = vor.u32 %v10616_v22, %v7928_v9  ;;  %3287 = vrot.lane.b32.xlu0 %v3210_v32, %s7074_s29  ;;  %1545 = vst.msk [vmem:[#allocation2 + $0x108] sm:$0xf] %vm1478_vm4, %v6265_v55  ;;  %v6266_v34 = vpack.c.bf16 %v1119_v5, %v1119_v5  ;;  %v10450_v9 = vrot.slane %v7882_v27, 1 }
 0x1f9   : > { %10617 = vst [vmem:[#allocation49_spill] sm:$0xff] %v8020_v44  ;;  %v8028_v39 = vcombine.low %v8001_v20, %v8022_v57  ;;  %v982_v19 = vpop.f32.mrb[136].mxu0  ;;  %v3430_v55 = vsel %vm3318_vm8, %v7945_v1, %v8017_v37  ;;  %v2890_v22 = vor.u32 %v2889_v26, %v2886_v17  ;;  %v10618_v1 = vrot.slane %v7828_v38, 1  ;;  %v8050_v43 = vld [vmem:[#allocation2 + $0x104] sm:$0xf] }
 0x1fa   : > { %v2084_v51 = vsel %vm1856_vm7, %v2079_v11, %v2083_v0  ;;  %1546 = vst.msk [vmem:[#allocation2 + $0x10c] sm:$0xf] %vm1478_vm4, %v6266_v34  ;;  %v983_v32 = vadd.f32 %v7552_v59, %v982_v19  ;;  %v6533_v33 = vpop.f32.mrb[137].mxu0  ;;  %v10623_v17 = vshll.u32 %v8020_v44, 16  ;;  %v10624_v38 = vshrl.u32 %v7878_v4, 16 }
 0x1fb   : > { %v985_v5 = vpop.f32.mrb[138].mxu0  ;;  %v2893_v19 = vshrl.u32 %v8028_v39, 16  ;;  %v2516_v33 = vsel %vm2254_vm6, %v10618_v1, %v10450_v9  ;;  %v10622_v1 = vshrl.u32 %v8020_v44, 16  ;;  %v10641_v15 = vrot.slane %v8020_v44, 2 }
 0x1fc   : > { %2227 = vrot.lane.b32.xlu1 %v2084_v51, %s7075_s30  ;;  %3553 = vrot.lane.b32.xlu0 %v3430_v55, %s7076_s14  ;;  %v1120_v11 = vmax.f32 %v983_v32, 0.0  ;;  %v986_v34 = vadd.f32 %v7552_v59, %v985_v5  ;;  %v6534_v58 = vpop.f32.mrb[139].mxu0  ;;  %v2896_v51 = vshll.u32 %v8028_v39, 16  ;;  %v8054_v32 = vsel %vm2622_vm5, %v2881_v47, %v2890_v22 }
 0x1fd   : > { %10619 = vst [vmem:[#allocation50_spill] sm:$0xff] %v8054_v32  ;;  %v10620_v58 = vrot.slane %v7924_v36, 2  ;;  %v10621_v5 = vrot.slane %v7882_v27, 2  ;;  %v3431_v9 = vrot.slane %v10622_v1, 2  ;;  %v2087_v54 = vor.u32 %v10624_v38, %v2083_v0 }
 0x1fe   : > { %v6267_v26 = vpack.c.bf16 %v1120_v11, %v1120_v11  ;;  %v1121_v55 = vmax.f32 %v986_v34, 0.0  ;;  %v3432_v11 = vrot.slane %v10623_v17, 3  ;;  %v10625_v1 = vshll.u32 %v7947_v46, 16 }
 0x1ff   : > { %v3042_v28 = vsel %vm2985_vm9, %v10621_v5, %v10620_v58  ;;  %v8067_v34 = vld [vmem:[#allocation2 + $0x108] sm:$0xf]  ;;  %v2895_v58 = vrot.slane %v2893_v19, 1  ;;  %v2898_v5 = vrot.slane %v2896_v51, 2  ;;  %v10628_v19 = vrot.slane %v8020_v44, 2 }
 0x200   : > { %2593 = vrot.lane.b32.xlu1 %v2516_v33, %s7076_s14  ;;  %3119 = vrot.lane.b32.xlu0 %v3042_v28, %s7075_s30  ;;  %1547 = vst.msk [vmem:[#allocation2 + $0x110] sm:$0xf] %vm1478_vm4, %v6267_v26  ;;  %v6268_v47 = vpack.c.bf16 %v1121_v55, %v1121_v55  ;;  %v8073_v33 = vcombine.low %v8050_v43, %v8067_v34  ;;  %v2091_v42 = vrot.slane %v10625_v1, 1  ;;  %v10627_v28 = vrot.slane %v7878_v4, 1 }
 0x201   : > { %v990_v17 = vpop.f32.mrb[140].mxu0  ;;  %v10629_v0 = vrot.slane %v7947_v46, 2  ;;  %v8092_v38 = vor.u32 %v3432_v11, %v3431_v9  ;;  %v8096_v1 = vcombine.low %v7966_v35, %v8001_v20  ;;  %v10455_v9 = vrot.slane %v7924_v36, 1  ;;  %v8104_v11 = vld [vmem:[#allocation2 + $0x10c] sm:$0xf] }
 0x202   : > { %v2313_v26 = vsel %vm2254_vm6, %v10627_v28, %v10626_v24  ;;  %1548 = vst.msk [vmem:[#allocation2 + $0x114] sm:$0xf] %vm1478_vm4, %v6268_v47  ;;  %v991_v55 = vadd.f32 %v7552_v59, %v990_v17  ;;  %v6537_v14 = vpop.f32.mrb[141].mxu0  ;;  %v2899_v28 = vor.u32 %v2898_v5, %v2895_v58  ;;  %v2905_v6 = vshll.u32 %v8073_v33, 16 }
 0x203   : > { %v3212_v51 = vsel %vm2985_vm9, %v10629_v0, %v10628_v19  ;;  %10630 = vst [vmem:[#allocation51_spill] sm:$0xff] %v8096_v1  ;;  %v993_v24 = vpop.f32.mrb[142].mxu0  ;;  %v2092_v19 = vsel %vm1856_vm7, %v2087_v54, %v2091_v42  ;;  %v10459_v20 = vrot.slane %v7971_v12, 2  ;;  %v10458_v54 = vshrl.u32 %v8096_v1, 16 }
 0x204   : > { %2390 = vrot.lane.b32.xlu1 %v2313_v26, %s7074_s29  ;;  %3289 = vrot.lane.b32.xlu0 %v3212_v51, %s7074_s29  ;;  %v1122_v47 = vmax.f32 %v991_v55, 0.0  ;;  %v994_v14 = vadd.f32 %v7552_v59, %v993_v24  ;;  %v6538_v17 = vpop.f32.mrb[143].mxu0  ;;  %v2902_v26 = vshrl.u32 %v8073_v33, 16  ;;  %v8108_v5 = vsel %vm2622_vm5, %v2890_v22, %v2899_v28 }
 0x205   : > { %10631 = vst [vmem:[#allocation52_spill] sm:$0xff] %v8108_v5  ;;  %v3434_v55 = vsel %vm3318_vm8, %v8017_v37, %v8092_v38  ;;  %v10640_v53 = vrot.slane %v8096_v1, 2 }
 0x206   : > { %v6269_v35 = vpack.c.bf16 %v1122_v47, %v1122_v47  ;;  %v1123_v58 = vmax.f32 %v994_v14, 0.0  ;;  %v2904_v47 = vrot.slane %v2902_v26, 1  ;;  %v2907_v14 = vrot.slane %v2905_v6, 2 }
 0x207   : > { %v8116_v51 = vld [vmem:[#allocation2 + $0x110] sm:$0xf] }
 0x208   : > { %2229 = vrot.lane.b32.xlu1 %v2092_v19, %s7075_s30  ;;  %3555 = vrot.lane.b32.xlu0 %v3434_v55, %s7076_s14  ;;  %1549 = vst.msk [vmem:[#allocation2 + $0x118] sm:$0xf] %vm1478_vm4, %v6269_v35  ;;  %v6270_v24 = vpack.c.bf16 %v1123_v58, %v1123_v58  ;;  %v8122_v22 = vcombine.low %v8104_v11, %v8116_v51  ;;  %v10632_v19 = vrot.slane %v7882_v27, 1  ;;  %v10633_v35 = vrot.slane %v7924_v36, 2 }
 0x209   : > { %v998_v37 = vpop.f32.mrb[144].mxu0  ;;  %v3435_v27 = vrot.slane %v10458_v54, 2  ;;  %v2908_v40 = vor.u32 %v2907_v14, %v2904_v47  ;;  %v10635_v54 = vrot.slane %v8020_v44, 1  ;;  %v10637_v14 = vshrl.u32 %v7947_v46, 16 }
 0x20a   : > { %v2518_v0 = vsel %vm2254_vm6, %v10632_v19, %v10455_v9  ;;  %v3044_v58 = vsel %vm2985_vm9, %v10633_v35, %v10459_v20  ;;  %1550 = vst.msk [vmem:[#allocation2 + $0x11c] sm:$0xf] %vm1478_vm4, %v6270_v24  ;;  %v999_v26 = vadd.f32 %v7552_v59, %v998_v37  ;;  %v6541_v6 = vpop.f32.mrb[145].mxu0  ;;  %v10634_v19 = vshll.u32 %v8096_v1, 16  ;;  %v8147_v59 = vld [vmem:[%s10404_s2] ss:$0 sm:$0xff] }
 0x20b   : > { %v1001_v17 = vpop.f32.mrb[146].mxu0  ;;  %v2911_v37 = vshrl.u32 %v8122_v22, 16  ;;  %v2914_v6 = vshll.u32 %v8122_v22, 16  ;;  %v10638_v20 = vshll.u32 %v8020_v44, 16  ;;  %v8164_v13 = vsel %vm2622_vm5, %v2899_v28, %v2908_v40 }
 0x20c   : > { %2595 = vrot.lane.b32.xlu1 %v2518_v0, %s7076_s14  ;;  %v3436_v9 = vrot.slane %v10634_v19, 3  ;;  %3121 = vrot.lane.b32.xlu0 %v3044_v58, %s7075_s30  ;;  %v1124_v35 = vmax.f32 %v999_v26, 0.0  ;;  %v1002_v0 = vadd.f32 %v8147_v59, %v1001_v17  ;;  %v6542_v24 = vpop.f32.mrb[147].mxu0  ;;  %v10636_v19 = vrot.slane %v7947_v46, 1  ;;  %v8159_v26 = vld [vmem:[#allocation2 + $0x114] sm:$0xf] }
 0x20d   : > { %v2095_v58 = vor.u32 %v10637_v14, %v2091_v42  ;;  %v2099_v55 = vrot.slane %v10638_v20, 1  ;;  %10639 = vst [vmem:[#allocation53_spill] sm:$0xff] %v8164_v13  ;;  %v8176_v42 = vcombine.low %v8022_v57, %v8050_v43  ;;  %v10467_v57 = vrot.slane %v8028_v39, 2 }
 0x20e   : > { %v2315_v47 = vsel %vm2254_vm6, %v10636_v19, %v10635_v54  ;;  %v6271_v17 = vpack.c.bf16 %v1124_v35, %v1124_v35  ;;  %v1125_v24 = vmax.f32 %v1002_v0, 0.0  ;;  %v3214_v54 = vsel %vm2985_vm9, %v10641_v15, %v10640_v53 }
 0x20f   : > { %v8172_v19 = vor.u32 %v3436_v9, %v3435_v27  ;;  %10642 = vst [vmem:[#allocation54_spill] sm:$0xff] %v8176_v42  ;;  %v8178_v20 = vld [vmem:[#allocation2 + $0x118] sm:$0xf]  ;;  %v2913_v0 = vrot.slane %v2911_v37, 1  ;;  %v10466_v15 = vrot.slane %v7971_v12, 1  ;;  %v2100_v9 = vsel %vm1856_vm7, %v2095_v58, %v2099_v55 }
 0x210   : > { %2392 = vrot.lane.b32.xlu1 %v2315_v47, %s7074_s29  ;;  %3291 = vrot.lane.b32.xlu0 %v3214_v54, %s7074_s29  ;;  %1551 = vst.msk [vmem:[#allocation2 + $0x120] sm:$0xf] %vm1478_vm4, %v6271_v17  ;;  %v6272_v28 = vpack.c.bf16 %v1125_v24, %v1125_v24  ;;  %v8184_v35 = vcombine.low %v8159_v26, %v8178_v20  ;;  %v2916_v47 = vrot.slane %v2914_v6, 2  ;;  %v10468_v6 = vshrl.u32 %v8176_v42, 16 }
 0x211   : > { %v1006_v53 = vpop.f32.mrb[148].mxu0  ;;  %v3438_v14 = vsel %vm3318_vm8, %v8092_v38, %v8172_v19  ;;  %v10643_v38 = vrot.slane %v7924_v36, 1  ;;  %v8206_v37 = vld [vmem:[#allocation2 + $0x11c] sm:$0xf]  ;;  %v10647_v36 = vshrl.u32 %v8020_v44, 16 }
 0x212   : > { %1552 = vst.msk [vmem:[#allocation2 + $0x124] sm:$0xf] %vm1478_vm4, %v6272_v28  ;;  %v1007_v43 = vadd.f32 %v8147_v59, %v1006_v53  ;;  %v6545_v27 = vpop.f32.mrb[149].mxu0  ;;  %v2917_v24 = vor.u32 %v2916_v47, %v2913_v0  ;;  %v2920_v53 = vshrl.u32 %v8184_v35, 16  ;;  %v8380_v5 = vcombine.low %v8178_v20, %v8206_v37 }
 0x213   : > { %v1009_v17 = vpop.f32.mrb[150].mxu0  ;;  %v2520_v27 = vsel %vm2254_vm6, %v10643_v38, %v10466_v15  ;;  %v3439_v38 = vrot.slane %v10468_v6, 2  ;;  %v10646_v15 = vshll.u32 %v8176_v42, 16  ;;  %v2103_v0 = vor.u32 %v10647_v36, %v2099_v55 }
 0x214   : > { %2231 = vrot.lane.b32.xlu1 %v2100_v9, %s7075_s30  ;;  %3557 = vrot.lane.b32.xlu0 %v3438_v14, %s7076_s14  ;;  %v1126_v58 = vmax.f32 %v1007_v43, 0.0  ;;  %v1010_v54 = vadd.f32 %v8147_v59, %v1009_v17  ;;  %v6546_v28 = vpop.f32.mrb[151].mxu0  ;;  %v2923_v9 = vshll.u32 %v8184_v35, 16  ;;  %v8210_v43 = vsel %vm2622_vm5, %v2908_v40, %v2917_v24  ;;  %10668 = vst [vmem:[#allocation59_spill] sm:$0xff] %v8380_v5 }
 0x215   : > { %10644 = vst [vmem:[#allocation55_spill] sm:$0xff] %v8210_v43  ;;  %v10645_v17 = vrot.slane %v7971_v12, 2  ;;  %v10648_v6 = vshll.u32 %v8096_v1, 16  ;;  %v10652_v55 = vrot.slane %v8176_v42, 2  ;;  %v10478_v43 = vrot.slane %v8028_v39, 1 }
 0x216   : > { %v6273_v47 = vpack.c.bf16 %v1126_v58, %v1126_v58  ;;  %v1127_v14 = vmax.f32 %v1010_v54, 0.0  ;;  %v3440_v58 = vrot.slane %v10646_v15, 3  ;;  %v8237_v15 = vcombine.low %v8067_v34, %v8104_v11 }
 0x217   : > { %v3046_v28 = vsel %vm2985_vm9, %v10645_v17, %v10467_v57  ;;  %v8223_v54 = vld [vmem:[#allocation2 + $0x120] sm:$0xf]  ;;  %v2922_v17 = vrot.slane %v2920_v53, 1  ;;  %v2925_v57 = vrot.slane %v2923_v9, 2  ;;  %v2107_v61 = vrot.slane %v10648_v6, 1 }
 0x218   : > { %2597 = vrot.lane.b32.xlu1 %v2520_v27, %s7076_s14  ;;  %3123 = vrot.lane.b32.xlu0 %v3046_v28, %s7075_s30  ;;  %1553 = vst.msk [vmem:[#allocation2 + $0x128] sm:$0xf] %vm1478_vm4, %v6273_v47  ;;  %v6274_v40 = vpack.c.bf16 %v1127_v14, %v1127_v14  ;;  %v8229_v27 = vcombine.low %v8206_v37, %v8223_v54  ;;  %10649 = vst [vmem:[#allocation56_spill] sm:$0xff] %v8237_v15  ;;  %v10650_v47 = vrot.slane %v8096_v1, 1 }
 0x219   : > { %v1014_v28 = vpop.f32.mrb[152].mxu0  ;;  %v10651_v14 = vrot.slane %v8020_v44, 1  ;;  %v10653_v6 = vrot.slane %v8096_v1, 2  ;;  %v8252_v11 = vor.u32 %v3440_v58, %v3439_v38  ;;  %v2926_v3 = vor.u32 %v2925_v57, %v2922_v17 }
 0x21a   : > { %1554 = vst.msk [vmem:[#allocation2 + $0x12c] sm:$0xf] %vm1478_vm4, %v6274_v40  ;;  %v1015_v53 = vadd.f32 %v8147_v59, %v1014_v28  ;;  %v6549_v9 = vpop.f32.mrb[153].mxu0  ;;  %v2929_v28 = vshrl.u32 %v8229_v27, 16  ;;  %v10475_v38 = vshrl.u32 %v8237_v15, 16  ;;  %v10672_v37 = vshll.u32 %v8237_v15, 16 }
 0x21b   : > { %v2317_v25 = vsel %vm2254_vm6, %v10651_v14, %v10650_v47  ;;  %v3216_v34 = vsel %vm2985_vm9, %v10653_v6, %v10652_v55  ;;  %v1017_v36 = vpop.f32.mrb[154].mxu0  ;;  %v2108_v9 = vsel %vm1856_vm7, %v2103_v0, %v2107_v61  ;;  %v10476_v55 = vshll.u32 %v8237_v15, 16 }
 0x21c   : > { %2394 = vrot.lane.b32.xlu1 %v2317_v25, %s7074_s29  ;;  %3293 = vrot.lane.b32.xlu0 %v3216_v34, %s7074_s29  ;;  %v1128_v47 = vmax.f32 %v1015_v53, 0.0  ;;  %v1018_v40 = vadd.f32 %v8147_v59, %v1017_v36  ;;  %v6550_v14 = vpop.f32.mrb[155].mxu0  ;;  %v2932_v25 = vshll.u32 %v8229_v27, 16  ;;  %v8263_v17 = vsel %vm2622_vm5, %v2917_v24, %v2926_v3 }
 0x21d   : > { %10654 = vst [vmem:[#allocation57_spill] sm:$0xff] %v8263_v17  ;;  %v3442_v53 = vsel %vm3318_vm8, %v8172_v19, %v8252_v11  ;;  %v10477_v6 = vrot.slane %v8073_v33, 2  ;;  %v2931_v34 = vrot.slane %v2929_v28, 1  ;;  %v10655_v24 = vrot.slane %v7971_v12, 1 }
 0x21e   : > { %v6275_v58 = vpack.c.bf16 %v1128_v47, %v1128_v47  ;;  %v1129_v57 = vmax.f32 %v1018_v40, 0.0  ;;  %v2934_v36 = vrot.slane %v2932_v25, 2  ;;  %v10481_v47 = vrot.slane %v8176_v42, 1 }
 0x21f   : > { %v2522_v14 = vsel %vm2254_vm6, %v10655_v24, %v10478_v43  ;;  %v3443_v19 = vrot.slane %v10475_v38, 2  ;;  %v8292_v38 = vld [vmem:[#allocation2 + $0x124] sm:$0xf]  ;;  %v10659_v43 = vshll.u32 %v8176_v42, 16  ;;  %v10674_v32 = vrot.slane %v8237_v15, 2 }
 0x220   : > { %2233 = vrot.lane.b32.xlu1 %v2108_v9, %s7075_s30  ;;  %3559 = vrot.lane.b32.xlu0 %v3442_v53, %s7076_s14  ;;  %1555 = vst.msk [vmem:[#allocation2 + $0x130] sm:$0xf] %vm1478_vm4, %v6275_v58  ;;  %v6276_v0 = vpack.c.bf16 %v1129_v57, %v1129_v57  ;;  %v3444_v9 = vrot.slane %v10476_v55, 3  ;;  %v10656_v58 = vrot.slane %v8028_v39, 2 }
 0x221   : > { %v1022_v40 = vpop.f32.mrb[156].mxu0  ;;  %v8299_v55 = vpop.permute.xlu1 %2376  ;;  %v2115_v57 = vrot.slane %v10659_v43, 1 }
 0x222   : > { %1556 = vst.msk [vmem:[#allocation2 + $0x134] sm:$0xf] %vm1478_vm4, %v6276_v0  ;;  %v1023_v28 = vadd.f32 %v8147_v59, %v1022_v40  ;;  %v6553_v25 = vpop.f32.mrb[157].mxu0  ;;  %v3048_v12 = vsel %vm2985_vm9, %v10656_v58, %v10477_v6  ;;  %v10657_v58 = vrot.slane %v8096_v1, 1 }
 0x223   : > { %v1025_v53 = vpop.f32.mrb[158].mxu0  ;;  %v8295_v25 = vld [vmem:[#allocation2 + $0x128] sm:$0xf] }
 0x224   : > { %2599 = vrot.lane.b32.xlu1 %v2522_v14, %s7076_s14  ;;  %3125 = vrot.lane.b32.xlu0 %v3048_v12, %s7075_s30  ;;  %v1130_v24 = vmax.f32 %v1023_v28, 0.0  ;;  %v1026_v0 = vadd.f32 %v8147_v59, %v1025_v53  ;;  %v6554_v40 = vpop.f32.mrb[159].mxu0  ;;  %v8297_v14 = vor.u32 %v2934_v36, %v2931_v34  ;;  %v2319_v6 = vsel %vm2254_vm6, %v10657_v58, %v10481_v47 }
 0x225   : > { %v10658_v12 = vshrl.u32 %v8096_v1, 16  ;;  %v8310_v53 = vor.u32 %v3444_v9, %v3443_v19  ;;  %v10660_v34 = vrot.slane %v8237_v15, 2  ;;  %v10661_v36 = vrot.slane %v8176_v42, 2 }
 0x226   : > { %v6277_v40 = vpack.c.bf16 %v1130_v24, %v1130_v24  ;;  %v1131_v17 = vmax.f32 %v1026_v0, 0.0  ;;  %v8320_v58 = vcombine.low %v8116_v51, %v8159_v26  ;;  %v10484_v9 = vrot.slane %v8073_v33, 1  ;;  %v8342_v0 = vld [vmem:[#allocation2 + $0x12c] sm:$0xf] }
 0x227   : > { %v2111_v28 = vor.u32 %v10658_v12, %v2107_v61  ;;  %v3218_v45 = vsel %vm2985_vm9, %v10661_v36, %v10660_v34  ;;  %v8324_v61 = vcombine.low %v8292_v38, %v8295_v25  ;;  %v3446_v26 = vsel %vm3318_vm8, %v8252_v11, %v8310_v53  ;;  %v8344_v12 = vld [vmem:[#allocation2 + $0x130] sm:$0xf] }
 0x228   : > { %2396 = vrot.lane.b32.xlu1 %v2319_v6, %s7074_s29  ;;  %3295 = vrot.lane.b32.xlu0 %v3218_v45, %s7074_s29  ;;  %1557 = vst.msk [vmem:[#allocation2 + $0x138] sm:$0xf] %vm1478_vm4, %v6277_v40  ;;  %v6278_v43 = vpack.c.bf16 %v1131_v17, %v1131_v17  ;;  %v8330_v6 = vsel %vm2622_vm5, %v2926_v3, %v8297_v14  ;;  %v2812_v45 = vshrl.u32 %v7633_v48, 16  ;;  %v10673_v52 = vrot.slane %v8320_v58, 2 }
 0x229   : > { %10662 = vst [vmem:[#allocation58_spill] sm:$0xff] %v8330_v6  ;;  %v1030_v24 = vpop.f32.mrb[160].mxu0  ;;  %v2116_v51 = vsel %vm1856_vm7, %v2111_v28, %v2115_v57  ;;  %v2938_v11 = vshrl.u32 %v8324_v61, 16  ;;  %v2941_v36 = vshll.u32 %v8324_v61, 16  ;;  %v8364_v6 = vcombine.low %v8342_v0, %v8344_v12 }
 0x22a   : > { %v8332_v19 = vpop.permute.xlu1 %2378  ;;  %1558 = vst.msk [vmem:[#allocation2 + $0x13c] sm:$0xf] %vm1478_vm4, %v6278_v43  ;;  %v1031_v17 = vadd.f32 %v8147_v59, %v1030_v24  ;;  %v6557_v3 = vpop.f32.mrb[161].mxu0  ;;  %v2814_v46 = vrot.slane %v2812_v45, 1  ;;  %v10679_v4 = vshll.u32 %v8320_v58, 16 }
 0x22b   : > { %v1033_v34 = vpop.f32.mrb[162].mxu0  ;;  %v2940_v44 = vrot.slane %v2938_v11, 1  ;;  %v2943_v21 = vrot.slane %v2941_v36, 2  ;;  %v8388_v11 = vpop.permute.xlu0 %2215  ;;  %v10669_v36 = vrot.slane %v8237_v15, 1 }
 0x22c   : > { %2235 = vrot.lane.b32.xlu1 %v2116_v51, %s7075_s30  ;;  %3561 = vrot.lane.b32.xlu0 %v3446_v26, %s7076_s14  ;;  %v1132_v43 = vmax.f32 %v1031_v17, 0.0  ;;  %v1034_v24 = vadd.f32 %v8147_v59, %v1033_v34  ;;  %v6558_v47 = vpop.f32.mrb[163].mxu0  ;;  %v10663_v51 = vrot.slane %v8028_v39, 1  ;;  %v10664_v26 = vrot.slane %v8122_v22, 2 }
 0x22d   : > { %v10665_v47 = vrot.slane %v8073_v33, 2  ;;  %v10666_v39 = vshrl.u32 %v8320_v58, 16  ;;  %v8462_v31 = vrot.slane %v10679_v4, 1 }
 0x22e   : > { %v8353_v3 = vpop.permute.xlu1 %2217  ;;  %v2524_v40 = vsel %vm2254_vm6, %v10663_v51, %v10484_v9  ;;  %v6279_v1 = vpack.c.bf16 %v1132_v43, %v1132_v43  ;;  %v1133_v13 = vmax.f32 %v1034_v24, 0.0  ;;  %v10667_v9 = vshll.u32 %v8320_v58, 16 }
 0x22f   : > { %v3050_v17 = vsel %vm2985_vm9, %v10665_v47, %v10664_v26  ;;  %v3447_v51 = vrot.slane %v10666_v39, 2  ;;  %v2815_v24 = vshll.u32 %v7633_v48, 16  ;;  %v2947_v47 = vshrl.u32 %v8364_v6, 16 }
 0x230   : > { %2601 = vrot.lane.b32.xlu1 %v2524_v40, %s7076_s14  ;;  %v3448_v28 = vrot.slane %v10667_v9, 3  ;;  %3127 = vrot.lane.b32.xlu0 %v3050_v17, %s7075_s30  ;;  %1559 = vst.msk [vmem:[#allocation2 + $0x140] sm:$0xf] %vm1478_vm4, %v6279_v1  ;;  %v6280_v43 = vpack.c.bf16 %v1133_v13, %v1133_v13  ;;  %v2950_v9 = vshll.u32 %v8364_v6, 16  ;;  %v10670_v17 = vrot.slane %v8176_v42, 1 }
 0x231   : > { %v1038_v26 = vpop.f32.mrb[164].mxu0  ;;  %v10671_v1 = vshrl.u32 %v8176_v42, 16  ;;  %v2123_v39 = vrot.slane %v10672_v37, 1  ;;  %v8415_v42 = vld [vmem:[#allocation2 + $0x134] sm:$0xf] }
 0x232   : > { %v8384_v40 = vpop.permute.xlu1 %2583  ;;  %v2321_v20 = vsel %vm2254_vm6, %v10670_v17, %v10669_v36  ;;  %1560 = vst.msk [vmem:[#allocation2 + $0x144] sm:$0xf] %vm1478_vm4, %v6280_v43  ;;  %v1039_v34 = vadd.f32 %v8147_v59, %v1038_v26  ;;  %v6561_v48 = vpop.f32.mrb[165].mxu0  ;;  %v3220_v36 = vsel %vm2985_vm9, %v10674_v32, %v10673_v52  ;;  %v8407_v17 = vor.u32 %v3448_v28, %v3447_v51  ;;  %v8417_v52 = vld [vmem:[#allocation2 + $0x138] sm:$0xf] }
 0x233   : > { %v2119_v13 = vor.u32 %v10671_v1, %v2115_v57  ;;  %v1041_v57 = vpop.f32.mrb[166].mxu0  ;;  %v2944_v1 = vor.u32 %v2943_v21, %v2940_v44  ;;  %v10497_v48 = vshrl.u32 %v8380_v5, 16  ;;  %v2949_v32 = vrot.slane %v2947_v47, 1  ;;  %v8419_v21 = vpop.permute.xlu0 %3107 }
 0x234   : > { %2398 = vrot.lane.b32.xlu1 %v2321_v20, %s7074_s29  ;;  %3297 = vrot.lane.b32.xlu0 %v3220_v36, %s7074_s29  ;;  %v1134_v45 = vmax.f32 %v1039_v34, 0.0  ;;  %v1042_v26 = vadd.f32 %v8147_v59, %v1041_v57  ;;  %v6562_v20 = vpop.f32.mrb[167].mxu0  ;;  %v2952_v28 = vrot.slane %v2950_v9, 2  ;;  %v10503_v51 = vrot.slane %v8122_v22, 1 }
 0x235   : > { %v2124_v44 = vsel %vm1856_vm7, %v2119_v13, %v2123_v39  ;;  %v2817_v34 = vrot.slane %v2815_v24, 2  ;;  %v3450_v57 = vsel %vm3318_vm8, %v8310_v53, %v8407_v17  ;;  %v8430_v47 = vsel %vm2622_vm5, %v8297_v14, %v2944_v1 }
 0x236   : > { %v8413_v37 = vpop.permute.xlu1 %2380  ;;  %v6281_v36 = vpack.c.bf16 %v1134_v45, %v1134_v45  ;;  %v1135_v43 = vmax.f32 %v1042_v26, 0.0  ;;  %10675 = vst [vmem:[#allocation60_spill] sm:$0xff] %v8430_v47  ;;  %v3451_v24 = vrot.slane %v10497_v48, 2  ;;  %v8439_v53 = vcombine.low %v8415_v42, %v8417_v52  ;;  %v8441_v45 = vld [vmem:[#allocation2 + $0x13c] sm:$0xf] }
 0x237   : > { %v10676_v14 = vshll.u32 %v8380_v5, 16  ;;  %v8447_v9 = vld [vmem:[#allocation2 + $0x140] sm:$0xf]  ;;  %v8449_v20 = vor.u32 %v2952_v28, %v2949_v32  ;;  %v10678_v47 = vshrl.u32 %v8237_v15, 16 }
 0x238   : > { %2237 = vrot.lane.b32.xlu1 %v2124_v44, %s7075_s30  ;;  %3563 = vrot.lane.b32.xlu0 %v3450_v57, %s7076_s14  ;;  %1561 = vst.msk [vmem:[#allocation2 + $0x148] sm:$0xf] %vm1478_vm4, %v6281_v36  ;;  %v6282_v13 = vpack.c.bf16 %v1135_v43, %v1135_v43  ;;  %v10677_v43 = vrot.slane %v8073_v33, 1  ;;  %v10681_v33 = vrot.slane %v8184_v35, 2 }
 0x239   : > { %v3452_v44 = vrot.slane %v10676_v14, 3  ;;  %v1046_v57 = vpop.f32.mrb[168].mxu0  ;;  %v8451_v48 = vpop.permute.xlu0 %3109  ;;  %v2127_v29 = vor.u32 %v10678_v47, %v2123_v39  ;;  %v8466_v14 = vor.u32 %v2817_v34, %v2814_v46  ;;  %v8477_v4 = vsel %vm2622_vm5, %v2944_v1, %v8449_v20 }
 0x23a   : > { %v8443_v26 = vpop.permute.xlu1 %2219  ;;  %v2526_v36 = vsel %vm2254_vm6, %v10677_v43, %v10503_v51  ;;  %1562 = vst.msk [vmem:[#allocation2 + $0x14c] sm:$0xf] %vm1478_vm4, %v6282_v13  ;;  %v1047_v32 = vadd.f32 %v8147_v59, %v1046_v57  ;;  %v6565_v28 = vpop.f32.mrb[169].mxu0  ;;  %v10682_v43 = vrot.slane %v8122_v22, 2  ;;  %10683 = vst [vmem:[#allocation62_spill] sm:$0xff] %v8477_v4  ;;  %v8482_v46 = vcombine.low %v8441_v45, %v8447_v9 }
 0x23b   : > { %10680 = vst [vmem:[#allocation61_spill] sm:$0xff] %v8466_v14  ;;  %v1049_v47 = vpop.f32.mrb[170].mxu0  ;;  %v8484_v13 = vld [vmem:[#allocation2 + $0x144] ss:$0 sps:$4 sm:$0x33]   ;;  %v2956_v57 = vshrl.u32 %v8439_v53, 16 }
 0x23c   : > { %2603 = vrot.lane.b32.xlu1 %v2526_v36, %s7076_s14  ;;  %v3052_v51 = vsel %vm2985_vm9, %v10682_v43, %v10681_v33  ;;  %v1136_v59 = vmax.f32 %v1047_v32, 0.0  ;;  %v6566_v34 = vpop.f32.mrb[171].mxu0  ;;  %v2828_v36 = vsel %vm2622_vm5, %v8466_v14, %v7745_v49  ;;  %v10684_v1 = vrot.slane %v8320_v58, 1 }
 0x23d   : > { %3129 = vrot.lane.b32.xlu0 %v3052_v51, %s7075_s30  ;;  %v10685_v51 = vrot.slane %v8237_v15, 1  ;;  %v8497_v33 = vor.u32 %v3452_v44, %v3451_v24  ;;  %v2132_v47 = vsel %vm1856_vm7, %v2127_v29, %v8462_v31  ;;  %v8504_v49 = vcombine.low %v8223_v54, %v8292_v38 }
 0x23e   : > { %v8490_v28 = vpop.permute.xlu1 %2585  ;;  %v3546_v43 = vpop.permute.xlu0 %3545  ;;  %v6283_v39 = vpack.c.bf16 %v1136_v59, %v1136_v59  ;;  %v3708_v14 = vsel %vm3664_vm10, %v7547_v56, %v8388_v11  ;;  %v10686_v24 = vrot.slane %v8380_v5, 2  ;;  %v10687_v44 = vrot.slane %v8320_v58, 2  ;;  %v6972_v56 = vld [vmem:[%s10405_s3 + $0x80] sm:$0xff]  }
 0x23f   : > { %v2323_v32 = vsel %vm2254_vm6, %v10685_v51, %v10684_v1  ;;  %v2959_v51 = vshll.u32 %v8439_v53, 16  ;;  %v2958_v54 = vrot.slane %v2956_v57, 1  ;;  %v2965_v38 = vshrl.u32 %v8482_v46, 16 }
 0x240   : > { %2400 = vrot.lane.b32.xlu1 %v2323_v32, %s7074_s29  ;;  %v3222_v1 = vsel %vm2985_vm9, %v10687_v44, %v10686_v24  ;;  %1563 = vst.msk [vmem:[#allocation2 + $0x150] sm:$0xf] %vm1478_vm4, %v6283_v39  ;;  %v2968_v11 = vshll.u32 %v8482_v46, 16  ;;  %v2974_v59 = vshrl.u32 %v8484_v13, 16  ;;  %v4005_v32 = vsel %vm3664_vm10, %v2828_v36, %v8419_v21 }
 0x241   : > { %3299 = vrot.lane.b32.xlu0 %v3222_v1, %s7074_s29  ;;  %v3454_v24 = vsel %vm3318_vm8, %v8407_v17, %v8497_v33  ;;  %v2961_v44 = vrot.slane %v2959_v51, 2  ;;  %v2977_v1 = vshll.u32 %v8484_v13, 16  ;;  %v2967_v4 = vrot.slane %v2965_v38, 1 }
 0x242   : > { %v3280_v34 = vpop.permute.xlu1 %3279  ;;  %v8529_v57 = vpop.permute.xlu0 %3111  ;;  %v2970_v21 = vrot.slane %v2968_v11, 2  ;;  %v3787_v17 = vsel %vm3743_vm11, %v3708_v14, %v8299_v55  ;;  %v2149_v51 = vshrl.u32 %v8504_v49, 16 }
 0x243   : > { %v4100_v39 = vsel %vm3743_vm11, %v4005_v32, %v3280_v34  ;;  %v2976_v34 = vrot.slane %v2974_v59, 1  ;;  %v3887_v32 = vsel %vm3822_vm12, %v3787_v17, %v8384_v40  ;;  %v2962_v29 = vor.u32 %v2961_v44, %v2958_v54 }
 0x244   : > { %2239 = vrot.lane.b32.xlu1 %v2132_v47, %s7075_s30  ;;  %v4199_v36 = vsel %vm3822_vm12, %v4100_v39, %v3546_v43  ;;  %v2971_v15 = vor.u32 %v2970_v21, %v2967_v4  ;;  %v10688_v47 = vrot.slane %v8184_v35, 1  ;;  %v10689_v43 = vrot.slane %v8122_v22, 1  ;;  %v6994_v21 = vld [vmem:[%s10405_s3 + $0x88] sm:$0xff]  }
 0x245   : > { %3565 = vrot.lane.b32.xlu0 %v3454_v24, %s7076_s14  ;;  %4713 = vmatprep.mubr.bf16.mxu1 %v4199_v36  ;;  %v2979_v14 = vrot.slane %v2977_v1, 2  ;;  %v2324_v59 = vrot.slane %v8380_v5, 1  ;;  %v3223_v24 = vrot.slane %v8504_v49, 2  ;;  %v8554_v40 = vsel %vm2622_vm5, %v8449_v20, %v2962_v29 }
 0x246   : > { %v8543_v38 = vpop.permute.xlu1 %2382  ;;  %4714 = vmatmul.mubr.bf16.vlgmr.msra.gmra.mrb[0].mxu1 %v3887_v32  ;;  %v2528_v55 = vsel %vm2254_vm6, %v10689_v43, %v10688_v47  ;;  %v3282_v11 = vpop.permute.xlu0 %3281  ;;  %v8557_v4 = vsel %vm2622_vm5, %v2962_v29, %v2971_v15  ;;  %v10690_v22 = vrot.slane %v8229_v27, 2  ;;  %v10691_v54 = vrot.slane %v8184_v35, 2 }
 0x247   : > { %6568 = vmatpush3.bf16.msra.mxu1 %v6972_v56  ;;  %v3455_v1 = vrot.slane %v2149_v51, 2  ;;  %v10692_v56 = vshll.u32 %v8504_v49, 16  ;;  %v2980_v20 = vor.u32 %v2979_v14, %v2976_v34  ;;  %v3710_v29 = vsel %vm3664_vm10, %v7583_v50, %v8353_v3 }
 0x248   : > { %2605 = vrot.lane.b32.xlu1 %v2528_v55, %s7076_s14  ;;  %v3054_v44 = vsel %vm2985_vm9, %v10691_v54, %v10690_v22  ;;  %6569 = vmatprep.subr.bf16.mxu1 %v10586_v2  ;;  %v4008_v36 = vsel %vm3664_vm10, %v7764_v16, %v8451_v48  ;;  %v10693_v32 = vshrl.u32 %v8320_v58, 16  ;;  %v10694_v55 = vrot.slane %v8320_v58, 1 }
 0x249   : > { %v3456_v39 = vrot.slane %v10692_v56, 3  ;;  %3131 = vrot.lane.b32.xlu0 %v3054_v44, %s7075_s30  ;;  %v8586_v47 = vsel %vm2622_vm5, %v2971_v15, %v2980_v20  ;;  %v4102_v3 = vsel %vm3743_vm11, %v4008_v36, %v3282_v11  ;;  %v10695_v22 = vrot.slane %v8380_v5, 2 }
 0x24a   : > { %v8580_v17 = vpop.permute.xlu1 %2221  ;;  %v2135_v34 = vor.u32 %v10693_v32, %v8462_v31  ;;  %v3548_v43 = vpop.permute.xlu0 %3547  ;;  %v2325_v14 = vsel %vm2254_vm6, %v10694_v55, %v2324_v59  ;;  %v10696_v48 = vshll.u32 %v8380_v5, 16  ;;  %v3789_v15 = vsel %vm3743_vm11, %v3710_v29, %v8332_v19 }
 0x24b   : > { %v3224_v16 = vsel %vm2985_vm9, %v10695_v22, %v3223_v24  ;;  %6570 = vmatpush3.bf16.msra.mxu1 %v6994_v21  ;;  %v4202_v31 = vsel %vm3822_vm12, %v4102_v3, %v3548_v43  ;;  %v3457_v11 = vor.u32 %v3456_v39, %v3455_v1  ;;  %v8603_v44 = vcombine.low %v8295_v25, %v8342_v0 }
 0x24c   : > { %v2139_v54 = vrot.slane %v10696_v48, 1  ;;  %2402 = vrot.lane.b32.xlu1 %v2325_v14, %s7074_s29  ;;  %4721 = vmatprep.mubr.bf16.mxu1 %v4202_v31  ;;  %v3890_v56 = vsel %vm3822_vm12, %v3789_v15, %v8490_v28  ;;  %v2529_v32 = vrot.slane %v8229_v27, 1  ;;  %v3055_v25 = vrot.slane %v8324_v61, 2 }
 0x24d   : > { %3301 = vrot.lane.b32.xlu0 %v3224_v16, %s7074_s29  ;;  %v3458_v19 = vsel %vm3318_vm8, %v8497_v33, %v3457_v11  ;;  %v2153_v0 = vshll.u32 %v8603_v44, 16  ;;  %v2157_v1 = vshrl.u32 %v8603_v44, 16  ;;  %v10697_v29 = vrot.slane %v8184_v35, 1 }
 0x24e   : > { %v2588_v20 = vpop.permute.xlu1 %2587  ;;  %4722 = vmatmul.mubr.bf16.gmra.mrb[4].mxu1 %v3890_v56  ;;  %v3114_v21 = vpop.permute.xlu0 %3113  ;;  %v2140_v36 = vsel %vm1856_vm7, %v2135_v34, %v2139_v54  ;;  %v2326_v3 = vrot.slane %v8504_v49, 1  ;;  %v3225_v43 = vrot.slane %v8603_v44, 2  ;;  %v10698_v33 = vrot.slane %v8229_v27, 2 }
 0x24f   : > { %v2530_v34 = vsel %vm2254_vm6, %v10697_v29, %v2529_v32  ;;  %v3459_v14 = vrot.slane %v2157_v1, 2  ;;  %v3460_v22 = vrot.slane %v2153_v0, 3  ;;  %v3712_v35 = vsel %vm3664_vm10, %v7617_v23, %v8443_v26 }
 0x250   : > { %2241 = vrot.lane.b32.xlu1 %v2140_v36, %s7075_s30  ;;  %v3056_v55 = vsel %vm2985_vm9, %v10698_v33, %v3055_v25  ;;  %v4011_v16 = vsel %vm3664_vm10, %v7832_v41, %v8529_v57  ;;  %v10699_v27 = vshrl.u32 %v8380_v5, 16  ;;  %v2327_v36 = vsel %vm2254_vm6, %v2324_v59, %v2326_v3 }
 0x251   : > { %3567 = vrot.lane.b32.xlu0 %v3458_v19, %s7076_s14  ;;  %v3226_v19 = vsel %vm2985_vm9, %v3223_v24, %v3225_v43  ;;  %v10700_v26 = vshll.u32 %v8504_v49, 16  ;;  %v3791_v41 = vsel %vm3743_vm11, %v3712_v35, %v8413_v37  ;;  %v3461_v57 = vor.u32 %v3460_v22, %v3459_v14 }
 0x252   : > { %v8617_v28 = vpop.permute.xlu1 %2384  ;;  %v3284_v39 = vpop.permute.xlu0 %3283  ;;  %v2143_v31 = vor.u32 %v10699_v27, %v2139_v54  ;;  %v8652_v54 = vcombine.low %v8344_v12, %v8415_v42  ;;  %v3893_v59 = vsel %vm3822_vm12, %v3791_v41, %v2588_v20  ;;  %v3057_v14 = vrot.slane %v8364_v6, 2 }
 0x253   : > { %v4104_v15 = vsel %vm3743_vm11, %v4011_v16, %v3284_v39  ;;  %v2147_v29 = vrot.slane %v10700_v26, 1  ;;  %v3462_v37 = vsel %vm3318_vm8, %v3457_v11, %v3461_v57  ;;  %v2328_v16 = vrot.slane %v8603_v44, 1 }
 0x254   : > { %2607 = vrot.lane.b32.xlu1 %v2530_v34, %s7076_s14  ;;  %v2161_v42 = vshll.u32 %v8652_v54, 16  ;;  %v2165_v12 = vshrl.u32 %v8652_v54, 16  ;;  %v3058_v11 = vsel %vm2985_vm9, %v3055_v25, %v3057_v14  ;;  %v2155_v41 = vrot.slane %v2153_v0, 1 }
 0x255   : > { %3133 = vrot.lane.b32.xlu0 %v3056_v55, %s7075_s30  ;;  %v2148_v33 = vsel %vm1856_vm7, %v2143_v31, %v2147_v29  ;;  %v2531_v55 = vrot.slane %v8324_v61, 1  ;;  %v3227_v61 = vrot.slane %v8652_v54, 2  ;;  %v2329_v26 = vsel %vm2254_vm6, %v2326_v3, %v2328_v16 }
 0x256   : > { %v8637_v48 = vpop.permute.xlu1 %2223  ;;  %v3550_v56 = vpop.permute.xlu0 %3549  ;;  %v3463_v27 = vrot.slane %v2165_v12, 2  ;;  %v3464_v31 = vrot.slane %v2161_v42, 3 }
 0x257   : > { %v4205_v34 = vsel %vm3822_vm12, %v4104_v15, %v3550_v56  ;;  %v2532_v35 = vsel %vm2254_vm6, %v2529_v32, %v2531_v55  ;;  %v3714_v15 = vsel %vm3664_vm10, %v7656_v8, %v8580_v17  ;;  %v4014_v32 = vsel %vm3664_vm10, %v7865_v60, %v3114_v21 }
 0x258   : > { %2404 = vrot.lane.b32.xlu1 %v2327_v36, %s7074_s29  ;;  %4729 = vmatprep.mubr.bf16.mxu1 %v4205_v34  ;;  %v2151_v36 = vor.u32 %v2149_v51, %v2147_v29  ;;  %v3228_v34 = vsel %vm2985_vm9, %v3225_v43, %v3227_v61  ;;  %v3793_v60 = vsel %vm3743_vm11, %v3714_v15, %v8543_v38  ;;  %v2533_v29 = vrot.slane %v8364_v6, 1 }
 0x259   : > { %3303 = vrot.lane.b32.xlu0 %v3226_v19, %s7074_s29  ;;  %4730 = vmatmul.mubr.bf16.gmra.mrb[8].mxu1 %v3893_v59  ;;  %v3465_v21 = vor.u32 %v3464_v31, %v3463_v27  ;;  %v8692_v59 = vcombine.low %v8417_v52, %v8441_v45  ;;  %v3716_v31 = vsel %vm3664_vm10, %v7710_v30, %v8637_v48  ;;  %v2163_v48 = vrot.slane %v2161_v42, 1 }
 0x25a   : > { %v2590_v24 = vpop.permute.xlu1 %2589  ;;  %v3116_v39 = vpop.permute.xlu0 %3115  ;;  %v2156_v43 = vsel %vm1856_vm7, %v2151_v36, %v2155_v41 }
 0x25b   : > { %10701 = vst [vmem:[#allocation63_spill] sm:$0xff] %v8692_v59  ;;  %v3896_v51 = vsel %vm3822_vm12, %v3793_v60, %v2590_v24  ;;  %v3466_v38 = vsel %vm3318_vm8, %v3461_v57, %v3465_v21  ;;  %v3468_v52 = vshrl.u32 %v8692_v59, 16  ;;  %v3471_v45 = vshll.u32 %v8692_v59, 16 }
 0x25c   : > { %2243 = vrot.lane.b32.xlu1 %v2148_v33, %s7075_s30  ;;  %v3059_v33 = vrot.slane %v8439_v53, 2  ;;  %v3229_v57 = vrot.slane %v8692_v59, 2  ;;  %v4017_v15 = vsel %vm3664_vm10, %v7907_v62, %v3116_v39  ;;  %v3795_v39 = vsel %vm3743_vm11, %v3716_v31, %v8617_v28 }
 0x25d   : > { %3569 = vrot.lane.b32.xlu0 %v3462_v37, %s7076_s14  ;;  %v3473_v27 = vrot.slane %v3471_v45, 3 }
 0x25e   : > { %v8664_v20 = vpop.permute.xlu1 %2386  ;;  %v3286_v22 = vpop.permute.xlu0 %3285  ;;  %v3060_v6 = vsel %vm2985_vm9, %v3057_v14, %v3059_v33  ;;  %v3230_v62 = vsel %vm2985_vm9, %v3227_v61, %v3229_v57  ;;  %v2535_v61 = vrot.slane %v8439_v53, 1 }
 0x25f   : > { %v4106_v25 = vsel %vm3743_vm11, %v4014_v32, %v3286_v22  ;;  %v2534_v22 = vsel %vm2254_vm6, %v2531_v55, %v2533_v29  ;;  %v8719_v32 = vld [vmem:[#allocation2 + $0x138] ss:$0 sps:$4 sm:$0x11]  }
 0x260   : > { %2609 = vrot.lane.b32.xlu1 %v2532_v35, %s7076_s14  ;;  %v2330_v35 = vrot.slane %v8652_v54, 1  ;;  %v2169_v42 = vshll.u32 %v8719_v32, 16  ;;  %v2536_v53 = vsel %vm2254_vm6, %v2533_v29, %v2535_v61 }
 0x261   : > { %3135 = vrot.lane.b32.xlu0 %v3058_v11, %s7075_s30  ;;  %v3470_v11 = vrot.slane %v3468_v52, 2 }
 0x262   : > { %v8679_v56 = vpop.permute.xlu1 %2225  ;;  %v3552_v19 = vpop.permute.xlu0 %3551  ;;  %v2171_v52 = vrot.slane %v2169_v42, 1 }
 0x263   : > { %v4208_v17 = vsel %vm3822_vm12, %v4106_v25, %v3552_v19  ;;  %v2331_v25 = vsel %vm2254_vm6, %v2328_v16, %v2330_v35  ;;  %v2159_v19 = vor.u32 %v2157_v1, %v2155_v41 }
 0x264   : > { %2406 = vrot.lane.b32.xlu1 %v2329_v26, %s7074_s29  ;;  %4737 = vmatprep.mubr.bf16.mxu1 %v4208_v17  ;;  %v1652_v17 = vld [vmem:[#allocation2 + $0x144] sm:$0xf] }
 0x265   : > { %3305 = vrot.lane.b32.xlu0 %v3228_v34, %s7074_s29  ;;  %4738 = vmatmul.mubr.bf16.gmra.mrb[12].mxu1 %v3896_v51  ;;  %v8732_v34 = vor.u32 %v3473_v27, %v3470_v11  ;;  %v2164_v60 = vsel %vm1856_vm7, %v2159_v19, %v2163_v48  ;;  %v8742_v28 = vcombine.low %v8447_v9, %v1652_v17  ;;  %v8768_v27 = vld [vmem:[#allocation2 + $0x4] sm:$0xf] }
 0x266   : > { %v2592_v3 = vpop.permute.xlu1 %2591  ;;  %v3118_v0 = vpop.permute.xlu0 %3117  ;;  %v6973_v17 = vld [vmem:[#allocation2 + $0x144] ss:$0 sps:$4 sm:$0x11]  }
 0x267   : > { %v3899_v16 = vsel %vm3822_vm12, %v3795_v39, %v2592_v3  ;;  %10702 = vst [vmem:[#allocation64_spill] sm:$0xff] %v8742_v28  ;;  %v3475_v51 = vsel %vm3318_vm8, %v3465_v21, %v8732_v34  ;;  %v3061_v3 = vrot.slane %v8482_v46, 2  ;;  %v3231_v9 = vrot.slane %v8742_v28, 2 }
 0x268   : > { %2245 = vrot.lane.b32.xlu1 %v2156_v43, %s7075_s30  ;;  %v3477_v21 = vshrl.u32 %v8742_v28, 16 }
 0x269   : > { %3571 = vrot.lane.b32.xlu0 %v3466_v38, %s7076_s14  ;;  %v2167_v38 = vor.u32 %v2165_v12, %v2163_v48  ;;  %v4020_v12 = vsel %vm3664_vm10, %v7958_v63, %v3118_v0  ;;  %v1564_v48 = vld [vmem:[#allocation2] sm:$0xf] }
 0x26a   : > { %v8704_v24 = vpop.permute.xlu1 %2388  ;;  %v3288_v37 = vpop.permute.xlu0 %3287 }
 0x26b   : > { %v4108_v36 = vsel %vm3743_vm11, %v4017_v15, %v3288_v37  ;;  %v3062_v37 = vsel %vm2985_vm9, %v3059_v33, %v3061_v3  ;;  %v2172_v11 = vsel %vm1856_vm7, %v2167_v38, %v2171_v52  ;;  %v3232_v15 = vsel %vm2985_vm9, %v3229_v57, %v3231_v9 }
 0x26c   : > { %2611 = vrot.lane.b32.xlu1 %v2534_v22, %s7076_s14  ;;  %v3480_v22 = vshll.u32 %v8742_v28, 16 }
 0x26d   : > { %3137 = vrot.lane.b32.xlu0 %v3060_v6, %s7075_s30  ;;  %v3718_v6 = vsel %vm3664_vm10, %v7755_v10, %v8679_v56  ;;  %v2537_v56 = vrot.slane %v8482_v46, 1  ;;  %v8785_v46 = vcombine.low %v1564_v48, %v8768_v27 }
 0x26e   : > { %v8717_v55 = vpop.permute.xlu1 %2227  ;;  %v3554_v14 = vpop.permute.xlu0 %3553  ;;  %v3797_v0 = vsel %vm3743_vm11, %v3718_v6, %v8664_v20  ;;  %v3482_v19 = vrot.slane %v3480_v22, 3  ;;  %v6981_v22 = vld [vmem:[#allocation2 + $0x150] ss:$0 sps:$4 sm:$0x77]  }
 0x26f   : > { %v4211_v26 = vsel %vm3822_vm12, %v4108_v36, %v3554_v14  ;;  %v3063_v36 = vrot.slane %v8484_v13, 2  ;;  %v8776_v14 = vld [vmem:[#allocation2 + $0x148] sm:$0xff]   ;;  %v2538_v20 = vsel %vm2254_vm6, %v2535_v61, %v2537_v56  ;;  %v3720_v6 = vsel %vm3664_vm10, %v7810_v7, %v8717_v55 }
 0x270   : > { %2408 = vrot.lane.b32.xlu1 %v2331_v25, %s7074_s29  ;;  %4745 = vmatprep.mubr.bf16.mxu1 %v4211_v26  ;;  %v3479_v25 = vrot.slane %v3477_v21, 2  ;;  %v2332_v26 = vrot.slane %v8719_v32, 1  ;;  %v3489_v42 = vshll.u32 %v8776_v14, 16  ;;  %v1860_v32 = vshll.u32 %v8785_v46, 16 }
 0x271   : > { %3307 = vrot.lane.b32.xlu0 %v3230_v62, %s7074_s29  ;;  %4746 = vmatmul.mubr.bf16.gmra.mrb[16].mxu1 %v3899_v16  ;;  %v8788_v62 = vld [vmem:[#allocation2 + $0x8] sm:$0xff]   ;;  %v3486_v16 = vshrl.u32 %v8776_v14, 16 }
 0x272   : > { %v2594_v1 = vpop.permute.xlu1 %2593  ;;  %v8737_v41 = vpop.permute.xlu0 %3119  ;;  %v2333_v61 = vsel %vm2254_vm6, %v2330_v35, %v2332_v26  ;;  %v1865_v38 = vshll.u32 %v8788_v62, 16  ;;  %v3491_v21 = vrot.slane %v3489_v42, 3  ;;  %v1862_v35 = vrot.slane %v1860_v32, 1  ;;  %v7024_v26 = vld [vmem:[#allocation2 + $0x10] sm:$0xf] }
 0x273   : > { %v3902_v57 = vsel %vm3822_vm12, %v3797_v0, %v2594_v1  ;;  %v3064_v1 = vsel %vm2985_vm9, %v3061_v3, %v3063_v36  ;;  %v2256_v42 = vrot.slane %v8788_v62, 1 }
 0x274   : > { %2247 = vrot.lane.b32.xlu1 %v2164_v60, %s7075_s30  ;;  %v3483_v60 = vor.u32 %v3482_v19, %v3479_v25  ;;  %v3495_v25 = vshrl.u32 %v6981_v22, 16  ;;  %v3498_v19 = vshll.u32 %v6981_v22, 16  ;;  %v7026_v22 = vld [vmem:[#allocation2 + $0x20] sm:$0xf] }
 0x275   : > { %3573 = vrot.lane.b32.xlu0 %v3475_v51, %s7076_s14 }
 0x276   : > { %v8749_v43 = vpop.permute.xlu1 %2390  ;;  %v3290_v45 = vpop.permute.xlu0 %3289  ;;  %v3484_v3 = vsel %vm3318_vm8, %v8732_v34, %v3483_v60  ;;  %v3497_v32 = vrot.slane %v3495_v25, 2 }
 0x277   : > { %v4110_v33 = vsel %vm3743_vm11, %v4020_v12, %v3290_v45  ;;  %v2539_v45 = vrot.slane %v6973_v17, 1  ;;  %v4023_v12 = vsel %vm3664_vm10, %v8006_v18, %v8737_v41  ;;  %v3799_v18 = vsel %vm3743_vm11, %v3720_v6, %v8704_v24  ;;  %v6978_v41 = vld [vmem:[#allocation2 + $0x150] ss:$0 sps:$4 sm:$0x33]   ;;  %v7027_v6 = vld [vmem:[#allocation2 + $0x24] sm:$0xf] }
 0x278   : > { %2613 = vrot.lane.b32.xlu1 %v2536_v53, %s7076_s14  ;;  %v3233_v53 = vrot.slane %v8776_v14, 2 }
 0x279   : > { %3139 = vrot.lane.b32.xlu0 %v3062_v37, %s7075_s30  ;;  %v3488_v37 = vrot.slane %v3486_v16, 2  ;;  %v2540_v36 = vsel %vm2254_vm6, %v2537_v56, %v2539_v45 }
 0x27a   : > { %v8765_v29 = vpop.permute.xlu1 %2229  ;;  %v3556_v31 = vpop.permute.xlu0 %3555  ;;  %v3234_v55 = vsel %vm2985_vm9, %v3231_v9, %v3233_v53 }
 0x27b   : > { %v4214_v63 = vsel %vm3822_vm12, %v4110_v33, %v3556_v31  ;;  %v1858_v33 = vshrl.u32 %v8785_v46, 16  ;;  %v8819_v31 = vrot.slane %v1865_v38, 1  ;;  %v3492_v14 = vor.u32 %v3491_v21, %v3488_v37  ;;  %v10703_v21 = vld [vmem:[#allocation6_spill] sm:$0xff] }
 0x27c   : > { %2249 = vrot.lane.b32.xlu1 %v2172_v11, %s7075_s30  ;;  %4753 = vmatprep.mubr.bf16.mxu1 %v4214_v63  ;;  %v1643_v63 = vld [vmem:[#allocation2] sm:$0xe] }
 0x27d   : > { %3309 = vrot.lane.b32.xlu0 %v3232_v15, %s7074_s29  ;;  %4754 = vmatmul.mubr.bf16.gmra.mrb[20].mxu1 %v3902_v57  ;;  %v1863_v48 = vor.u32 %v1862_v35, %v1858_v33  ;;  %v6065_v9 = vcombine.low %v1643_v63, %v8768_v27  ;;  %v3500_v27 = vrot.slane %v3498_v19, 3  ;;  %v1651_v33 = vld [vmem:[#allocation2 + $0x18] sm:$0xc]  ;;  %v1650_v63 = vld [vmem:[#allocation2 + $0xc] sm:$0xc]  ;;  %v1869_v19 = vshrl.u32 %v8788_v62, 16 }
 0x27e   : > { %v2596_v13 = vpop.permute.xlu1 %2595  ;;  %v8790_v39 = vpop.permute.xlu0 %3121 }
 0x27f   : > { %v3905_v56 = vsel %vm3822_vm12, %v3799_v18, %v2596_v13  ;;  %v1868_v24 = vsel %vm1856_vm7, %v1863_v48, %v8819_v31  ;;  %v3493_v13 = vsel %vm3318_vm8, %v3483_v60, %v3492_v14  ;;  %v8850_v60 = vcombine.low %v7026_v22, %v7027_v6  ;;  %v7029_v6 = vld [vmem:[#allocation2 + $0x18] sm:$0xf] }
 0x280   : > { %2615 = vrot.lane.b32.xlu1 %v2538_v20, %s7076_s14  ;;  %v7025_v20 = vld [vmem:[#allocation2 + $0x14] sm:$0xf] }
 0x281   : > { %3141 = vrot.lane.b32.xlu0 %v3064_v1, %s7075_s30  ;;  %v8833_v17 = vcombine.low %v7024_v26, %v7025_v20  ;;  %v3235_v1 = vrot.slane %v6978_v41, 2  ;;  %v10706_v41 = vld [vmem:[#allocation50_spill] sm:$0xff] }
 0x282   : > { %v8799_v51 = vpop.permute.xlu1 %2392  ;;  %v3292_v52 = vpop.permute.xlu0 %3291  ;;  %v4026_v25 = vsel %vm3664_vm10, %v10706_v41, %v8790_v39 }
 0x283   : > { %v4112_v34 = vsel %vm3743_vm11, %v4023_v12, %v3292_v52  ;;  %v1873_v52 = vshll.u32 %v8833_v17, 16  ;;  %v3236_v35 = vsel %vm2985_vm9, %v3233_v53, %v3235_v1  ;;  %v3501_v12 = vor.u32 %v3500_v27, %v3497_v32 }
 0x284   : > { %2410 = vrot.lane.b32.xlu1 %v2333_v61, %s7074_s29  ;;  %v2255_v61 = vrot.slane %v6065_v9, 1  ;;  %v2987_v32 = vrot.slane %v10703_v21, 2 }
 0x285   : > { %3575 = vrot.lane.b32.xlu0 %v3484_v3, %s7076_s14  ;;  %v2463_v3 = vrot.slane %v10703_v21, 1  ;;  %v3502_v1 = vsel %vm3318_vm8, %v3492_v14, %v3501_v12  ;;  %v2258_v12 = vrot.slane %v8833_v17, 1  ;;  %v7032_v21 = vld [vmem:[#allocation2 + $0x30] sm:$0xf] }
 0x286   : > { %v8816_v11 = vpop.permute.xlu1 %2231  ;;  %v3558_v15 = vpop.permute.xlu0 %3557  ;;  %v2257_v37 = vsel %vm2254_vm6, %v2255_v61, %v2256_v42  ;;  %v1871_v61 = vor.u32 %v1869_v19, %v8819_v31 }
 0x287   : > { %v4217_v0 = vsel %vm3822_vm12, %v4112_v34, %v3558_v15  ;;  %v10704_v34 = vld [vmem:[#allocation47_spill] sm:$0xff] }
 0x288   : > { %2617 = vrot.lane.b32.xlu1 %v2540_v36, %s7076_s14  ;;  %4761 = vmatprep.mubr.bf16.mxu1 %v4217_v0  ;;  %v3722_v15 = vsel %vm3664_vm10, %v10704_v34, %v8765_v29  ;;  %v10705_v36 = vld [vmem:[#allocation5_spill] sm:$0xff]  ;;  %v6107_v29 = vcombine.low %v1650_v63, %v7024_v26 }
 0x289   : > { %3311 = vrot.lane.b32.xlu0 %v3234_v55, %s7074_s29  ;;  %4762 = vmatmul.mubr.bf16.gmra.mrb[24].mxu1 %v3905_v56  ;;  %v2462_v55 = vrot.slane %v10705_v36, 1  ;;  %v8859_v0 = vld [vmem:[#allocation2 + $0x1c] sm:$0xf]  ;;  %v8868_v56 = vrot.slane %v1873_v52, 1  ;;  %v3801_v26 = vsel %vm3743_vm11, %v3722_v15, %v8749_v43  ;;  %v3159_v15 = vrot.slane %v8850_v60, 2 }
 0x28a   : > { %v2598_v57 = vpop.permute.xlu1 %2597  ;;  %v8835_v16 = vpop.permute.xlu0 %3123  ;;  %v6108_v18 = vcombine.low %v1651_v33, %v8859_v0  ;;  %v2986_v22 = vrot.slane %v6107_v29, 2  ;;  %v8886_v14 = vcombine.low %v7029_v6, %v8859_v0  ;;  %v2259_v29 = vsel %vm2254_vm6, %v2256_v42, %v2258_v12  ;;  %v10709_v42 = vld [vmem:[#allocation52_spill] sm:$0xff] }
 0x28b   : > { %v2464_v20 = vsel %vm2254_vm6, %v2462_v55, %v2463_v3  ;;  %v3908_v27 = vsel %vm3822_vm12, %v3801_v26, %v2598_v57  ;;  %v1876_v43 = vsel %vm1856_vm7, %v1871_v61, %v8868_v56  ;;  %v7031_v26 = vld [vmem:[#allocation2 + $0x2c] sm:$0xf] }
 0x28c   : > { %2173 = vrot.lane.b32.xlu1 %v1868_v24, %s7075_s30  ;;  %v1889_v24 = vshll.u32 %v8850_v60, 16  ;;  %v3320_v52 = vshrl.u32 %v6108_v18, 16  ;;  %v2988_v33 = vsel %vm2985_vm9, %v2986_v22, %v2987_v32  ;;  %v3158_v41 = vrot.slane %v6108_v18, 2 }
 0x28d   : > { %3577 = vrot.lane.b32.xlu0 %v3493_v13, %s7076_s14  ;;  %v1893_v13 = vshrl.u32 %v8850_v60, 16  ;;  %v1877_v22 = vshrl.u32 %v8833_v17, 16 }
 0x28e   : > { %v8843_v38 = vpop.permute.xlu1 %2394  ;;  %v3294_v45 = vpop.permute.xlu0 %3293  ;;  %v3328_v31 = vrot.slane %v1889_v24, 3  ;;  %v3322_v36 = vrot.slane %v3320_v52, 2  ;;  %v4029_v52 = vsel %vm3664_vm10, %v10709_v42, %v8835_v16  ;;  %v10710_v42 = vld [vmem:[#allocation9_spill] sm:$0xff] }
 0x28f   : > { %v4114_v48 = vsel %vm3743_vm11, %v4026_v25, %v3294_v45  ;;  %v3323_v45 = vshll.u32 %v6108_v18, 16  ;;  %v3327_v57 = vrot.slane %v1893_v13, 2  ;;  %v1881_v25 = vshll.u32 %v8886_v14, 16  ;;  %v10708_v18 = vld [vmem:[#allocation48_spill] sm:$0xff] }
 0x290   : > { %2334 = vrot.lane.b32.xlu1 %v2257_v37, %s7074_s29  ;;  %v3724_v61 = vsel %vm3664_vm10, %v10708_v18, %v8816_v11 }
 0x291   : > { %3313 = vrot.lane.b32.xlu0 %v3236_v35, %s7074_s29  ;;  %v3325_v55 = vrot.slane %v3323_v45, 3  ;;  %v1883_v6 = vrot.slane %v1881_v25, 1  ;;  %v3803_v16 = vsel %vm3743_vm11, %v3724_v61, %v8799_v51  ;;  %v1879_v25 = vor.u32 %v1877_v22, %v8868_v56  ;;  %v7033_v22 = vld [vmem:[#allocation2 + $0x34] sm:$0xf] }
 0x292   : > { %v8865_v53 = vpop.permute.xlu1 %2233  ;;  %v3560_v9 = vpop.permute.xlu0 %3559 }
 0x293   : > { %v4220_v39 = vsel %vm3822_vm12, %v4114_v48, %v3560_v9  ;;  %v10707_v48 = vld [vmem:[#allocation7_spill] sm:$0xff]  ;;  %v3326_v62 = vor.u32 %v3325_v55, %v3322_v36 }
 0x294   : > { %2541 = vrot.lane.b32.xlu1 %v2464_v20, %s7076_s14  ;;  %4769 = vmatprep.mubr.bf16.mxu1 %v4220_v39  ;;  %v2465_v9 = vrot.slane %v10707_v48, 1  ;;  %v3329_v20 = vor.u32 %v3328_v31, %v3327_v57  ;;  %v3160_v39 = vsel %vm2985_vm9, %v3158_v41, %v3159_v15 }
 0x295   : > { %3579 = vrot.lane.b32.xlu0 %v3502_v1, %s7076_s14  ;;  %4770 = vmatmul.mubr.bf16.gmra.mrb[28].mxu1 %v3908_v27  ;;  %v7030_v1 = vld [vmem:[#allocation2 + $0x28] sm:$0xf] }
 0x296   : > { %v2600_v37 = vpop.permute.xlu1 %2599  ;;  %v8888_v35 = vpop.permute.xlu0 %3125  ;;  %v8912_v27 = vcombine.low %v7030_v1, %v7031_v26  ;;  %v2466_v31 = vsel %vm2254_vm6, %v2463_v3, %v2465_v9  ;;  %v3330_v11 = vsel %vm3318_vm8, %v3326_v62, %v3329_v20 }
 0x297   : > { %v3911_v3 = vsel %vm3822_vm12, %v3803_v16, %v2600_v37 }
 0x298   : > { %2175 = vrot.lane.b32.xlu1 %v1876_v43, %s7075_s30  ;;  %v1897_v55 = vshll.u32 %v8912_v27, 16  ;;  %v1901_v41 = vshrl.u32 %v8912_v27, 16  ;;  %v3161_v1 = vrot.slane %v8912_v27, 2 }
 0x299   : > { %3065 = vrot.lane.b32.xlu0 %v2988_v33, %s7075_s30  ;;  %v2989_v33 = vrot.slane %v10707_v48, 2  ;;  %v1884_v48 = vsel %vm1856_vm7, %v1879_v25, %v1883_v6  ;;  %v1891_v25 = vrot.slane %v1889_v24, 1  ;;  %v2991_v24 = vrot.slane %v10710_v42, 2 }
 0x29a   : > { %v8903_v63 = vpop.permute.xlu1 %2396  ;;  %v3296_v19 = vpop.permute.xlu0 %3295  ;;  %v3331_v37 = vrot.slane %v1901_v41, 2  ;;  %v3332_v56 = vrot.slane %v1897_v55, 3 }
 0x29b   : > { %v4116_v43 = vsel %vm3743_vm11, %v4029_v52, %v3296_v19  ;;  %v2990_v51 = vsel %vm2985_vm9, %v2987_v32, %v2989_v33  ;;  %v2467_v52 = vrot.slane %v10710_v42, 1  ;;  %v8957_v32 = vcombine.low %v7032_v21, %v7033_v22 }
 0x29c   : > { %2336 = vrot.lane.b32.xlu1 %v2259_v29, %s7074_s29  ;;  %v2992_v42 = vsel %vm2985_vm9, %v2989_v33, %v2991_v24  ;;  %v10714_v33 = vld [vmem:[#allocation51_spill] sm:$0xff] }
 0x29d   : > { %3237 = vrot.lane.b32.xlu0 %v3160_v39, %s7074_s29  ;;  %v2260_v39 = vrot.slane %v8886_v14, 1 }
 0x29e   : > { %v8921_v45 = vpop.permute.xlu1 %2235  ;;  %v3562_v57 = vpop.permute.xlu0 %3561 }
 0x29f   : > { %v4223_v36 = vsel %vm3822_vm12, %v4116_v43, %v3562_v57  ;;  %v2261_v62 = vsel %vm2254_vm6, %v2258_v12, %v2260_v39  ;;  %v3162_v43 = vsel %vm2985_vm9, %v3159_v15, %v3161_v1  ;;  %v3333_v57 = vor.u32 %v3332_v56, %v3331_v37 }
 0x2a0   : > { %2543 = vrot.lane.b32.xlu1 %v2466_v31, %s7076_s14  ;;  %4777 = vmatprep.mubr.bf16.mxu1 %v4223_v36  ;;  %v10711_v31 = vld [vmem:[#allocation49_spill] sm:$0xff]  ;;  %v1909_v37 = vshrl.u32 %v8957_v32, 16 }
 0x2a1   : > { %3503 = vrot.lane.b32.xlu0 %v3330_v11, %s7076_s14  ;;  %4778 = vmatmul.mubr.bf16.gmra.mrb[32].mxu1 %v3911_v3  ;;  %v3726_v11 = vsel %vm3664_vm10, %v10711_v31, %v8865_v53  ;;  %v10712_v36 = vld [vmem:[#allocation53_spill] sm:$0xff]  ;;  %v1885_v3 = vshrl.u32 %v8886_v14, 16  ;;  %v1905_v53 = vshll.u32 %v8957_v32, 16 }
 0x2a2   : > { %v2602_v19 = vpop.permute.xlu1 %2601  ;;  %v8939_v29 = vpop.permute.xlu0 %3127  ;;  %v4032_v12 = vsel %vm3664_vm10, %v10712_v36, %v8888_v35  ;;  %v3334_v35 = vsel %vm3318_vm8, %v3329_v20, %v3333_v57  ;;  %v2262_v36 = vrot.slane %v8850_v60, 1  ;;  %v3335_v20 = vrot.slane %v1909_v37, 2 }
 0x2a4   : > { %2177 = vrot.lane.b32.xlu1 %v1884_v48, %s7075_s30 }
 0x2a5   : > { %3067 = vrot.lane.b32.xlu0 %v2990_v51, %s7075_s30  ;;  %v2468_v51 = vsel %vm2254_vm6, %v2465_v9, %v2467_v52 }
 0x2a6   : > { %v8953_v26 = vpop.permute.xlu1 %2398  ;;  %v3298_v61 = vpop.permute.xlu0 %3297 }
 0x2a7   : > { %v4118_v15 = vsel %vm3743_vm11, %v4032_v12, %v3298_v61  ;;  %v1887_v61 = vor.u32 %v1885_v3, %v1883_v6  ;;  %v2263_v12 = vsel %vm2254_vm6, %v2260_v39, %v2262_v36  ;;  %v10713_v3 = vld [vmem:[#allocation11_spill] sm:$0xff] }
 0x2a8   : > { %2338 = vrot.lane.b32.xlu1 %v2261_v62, %s7074_s29  ;;  %v3805_v62 = vsel %vm3743_vm11, %v3726_v11, %v8843_v38  ;;  %v3336_v38 = vrot.slane %v1905_v53, 3 }
 0x2a9   : > { %3239 = vrot.lane.b32.xlu0 %v3162_v43, %s7074_s29  ;;  %v3914_v9 = vsel %vm3822_vm12, %v3805_v62, %v2602_v19  ;;  %v1892_v43 = vsel %vm1856_vm7, %v1887_v61, %v1891_v25  ;;  %v3163_v19 = vrot.slane %v8957_v32, 2  ;;  %v10715_v61 = vld [vmem:[#allocation55_spill] sm:$0xff] }
 0x2aa   : > { %v8968_v16 = vpop.permute.xlu1 %2237  ;;  %v3564_v48 = vpop.permute.xlu0 %3563  ;;  %v4035_v39 = vsel %vm3664_vm10, %v10715_v61, %v8939_v29  ;;  %v2264_v61 = vrot.slane %v8912_v27, 1 }
 0x2ab   : > { %v4226_v56 = vsel %vm3822_vm12, %v4118_v15, %v3564_v48  ;;  %v2469_v15 = vrot.slane %v10713_v3, 1  ;;  %v3337_v48 = vor.u32 %v3336_v38, %v3335_v20  ;;  %v1899_v20 = vrot.slane %v1897_v55, 1 }
 0x2ac   : > { %2545 = vrot.lane.b32.xlu1 %v2468_v51, %s7076_s14  ;;  %4785 = vmatprep.mubr.bf16.mxu1 %v4226_v56  ;;  %v3164_v51 = vsel %vm2985_vm9, %v3161_v1, %v3163_v19  ;;  %v7034_v56 = vld [vmem:[#allocation2 + $0x38] sm:$0xf] }
 0x2ad   : > { %3505 = vrot.lane.b32.xlu0 %v3334_v35, %s7076_s14  ;;  %4786 = vmatmul.mubr.bf16.gmra.mrb[36].mxu1 %v3914_v9  ;;  %v7035_v35 = vld [vmem:[#allocation2 + $0x3c] sm:$0xf]  ;;  %v3728_v9 = vsel %vm3664_vm10, %v10714_v33, %v8921_v45  ;;  %v2993_v45 = vrot.slane %v10713_v3, 2 }
 0x2ae   : > { %v2604_v21 = vpop.permute.xlu1 %2603  ;;  %v9001_v62 = vcombine.low %v7034_v56, %v7035_v35  ;;  %v3807_v29 = vsel %vm3743_vm11, %v3728_v9, %v8903_v63 }
 0x2af   : > { %v3130_v22 = vpop.permute.xlu0 %3129  ;;  %v2994_v63 = vsel %vm2985_vm9, %v2991_v24, %v2993_v45 }
 0x2b0   : > { %2179 = vrot.lane.b32.xlu1 %v1892_v43, %s7075_s30  ;;  %v1913_v56 = vshll.u32 %v9001_v62, 16  ;;  %v10509_v55 = vshrl.u32 %v9001_v62, 16  ;;  %v3165_v9 = vrot.slane %v9001_v62, 2 }
 0x2b1   : > { %3069 = vrot.lane.b32.xlu0 %v2992_v42, %s7075_s30  ;;  %v2470_v42 = vsel %vm2254_vm6, %v2467_v52, %v2469_v15  ;;  %v3917_v52 = vsel %vm3822_vm12, %v3807_v29, %v2604_v21 }
 0x2b2   : > { %v8995_v6 = vpop.permute.xlu1 %2400  ;;  %v3340_v21 = vrot.slane %v1913_v56, 3  ;;  %v3166_v29 = vsel %vm2985_vm9, %v3163_v19, %v3165_v9 }
 0x2b3   : > { %v3300_v11 = vpop.permute.xlu0 %3299 }
 0x2b4   : > { %2340 = vrot.lane.b32.xlu1 %v2263_v12, %s7074_s29  ;;  %v4120_v1 = vsel %vm3743_vm11, %v4035_v39, %v3300_v11  ;;  %v3338_v12 = vsel %vm3318_vm8, %v3333_v57, %v3337_v48  ;;  %v1895_v57 = vor.u32 %v1893_v13, %v1891_v25  ;;  %v3339_v39 = vrot.slane %v10509_v55, 2 }
 0x2b5   : > { %3241 = vrot.lane.b32.xlu0 %v3164_v51, %s7074_s29 }
 0x2b6   : > { %v9010_v43 = vpop.permute.xlu1 %2239  ;;  %v1900_v35 = vsel %vm1856_vm7, %v1895_v57, %v1899_v20  ;;  %v10717_v57 = vld [vmem:[#allocation54_spill] sm:$0xff] }
 0x2b7   : > { %v3566_v38 = vpop.permute.xlu0 %3565 }
 0x2b8   : > { %v4229_v51 = vsel %vm3822_vm12, %v4120_v1, %v3566_v38  ;;  %2547 = vrot.lane.b32.xlu1 %v2470_v42, %s7076_s14  ;;  %v2265_v1 = vsel %vm2254_vm6, %v2262_v36, %v2264_v61  ;;  %v10716_v38 = vld [vmem:[#allocation13_spill] sm:$0xff] }
 0x2b9   : > { %4793 = vmatprep.mubr.bf16.mxu1 %v4229_v51  ;;  %3507 = vrot.lane.b32.xlu0 %v3338_v12, %s7076_s14  ;;  %v2471_v42 = vrot.slane %v10716_v38, 1  ;;  %v7036_v12 = vld [vmem:[#allocation2 + $0x40] sm:$0xf]  ;;  %v7037_v51 = vld [vmem:[#allocation2 + $0x44] sm:$0xf] }
 0x2ba   : > { %4794 = vmatmul.mubr.bf16.gmra.mrb[40].mxu1 %v3917_v52  ;;  %v2606_v11 = vpop.permute.xlu1 %2605  ;;  %v9042_v24 = vcombine.low %v7036_v12, %v7037_v51  ;;  %v3341_v52 = vor.u32 %v3340_v21, %v3339_v39  ;;  %v1907_v12 = vrot.slane %v1905_v53, 1  ;;  %v2995_v53 = vrot.slane %v10716_v38, 2 }
 0x2bb   : > { %v3132_v3 = vpop.permute.xlu0 %3131  ;;  %v2472_v19 = vsel %vm2254_vm6, %v2469_v15, %v2471_v42 }
 0x2bc   : > { %2181 = vrot.lane.b32.xlu1 %v1900_v35, %s7075_s30  ;;  %v3730_v35 = vsel %vm3664_vm10, %v10717_v57, %v8968_v16  ;;  %v10511_v39 = vshll.u32 %v9042_v24, 16  ;;  %v10510_v21 = vshrl.u32 %v9042_v24, 16 }
 0x2bd   : > { %3071 = vrot.lane.b32.xlu0 %v2994_v63, %s7075_s30  ;;  %v10718_v63 = vld [vmem:[#allocation57_spill] sm:$0xff] }
 0x2be   : > { %v9038_v13 = vpop.permute.xlu1 %2402  ;;  %v4038_v36 = vsel %vm3664_vm10, %v10718_v63, %v3130_v22  ;;  %v3342_v22 = vsel %vm3318_vm8, %v3337_v48, %v3341_v52  ;;  %v2266_v48 = vrot.slane %v8957_v32, 1  ;;  %v3344_v38 = vrot.slane %v10511_v39, 3 }
 0x2bf   : > { %v3302_v25 = vpop.permute.xlu0 %3301 }
 0x2c0   : > { %2342 = vrot.lane.b32.xlu1 %v2265_v1, %s7074_s29  ;;  %v4122_v51 = vsel %vm3743_vm11, %v4038_v36, %v3302_v25  ;;  %v1903_v25 = vor.u32 %v1901_v41, %v1899_v20 }
 0x2c1   : > { %3243 = vrot.lane.b32.xlu0 %v3166_v29, %s7074_s29  ;;  %v3809_v29 = vsel %vm3743_vm11, %v3730_v35, %v8953_v26  ;;  %v3343_v26 = vrot.slane %v10510_v21, 2  ;;  %v3167_v35 = vrot.slane %v9042_v24, 2  ;;  %v10721_v21 = vld [vmem:[#allocation58_spill] sm:$0xff] }
 0x2c2   : > { %v9052_v55 = vpop.permute.xlu1 %2241  ;;  %v3920_v15 = vsel %vm3822_vm12, %v3809_v29, %v2606_v11  ;;  %v2996_v11 = vsel %vm2985_vm9, %v2993_v45, %v2995_v53  ;;  %v10720_v45 = vld [vmem:[#allocation56_spill] sm:$0xff] }
 0x2c3   : > { %v3568_v1 = vpop.permute.xlu0 %3567  ;;  %v3168_v29 = vsel %vm2985_vm9, %v3165_v9, %v3167_v35 }
 0x2c4   : > { %v4232_v16 = vsel %vm3822_vm12, %v4122_v51, %v3568_v1  ;;  %2549 = vrot.lane.b32.xlu1 %v2472_v19, %s7076_s14  ;;  %v1908_v51 = vsel %vm1856_vm7, %v1903_v25, %v1907_v12  ;;  %v2267_v1 = vsel %vm2254_vm6, %v2264_v61, %v2266_v48  ;;  %v10719_v19 = vld [vmem:[#allocation15_spill] sm:$0xff]  ;;  %v4041_v61 = vsel %vm3664_vm10, %v10721_v21, %v3132_v3 }
 0x2c5   : > { %4801 = vmatprep.mubr.bf16.mxu1 %v4232_v16  ;;  %3509 = vrot.lane.b32.xlu0 %v3342_v22, %s7076_s14  ;;  %v2473_v16 = vrot.slane %v10719_v19, 1  ;;  %v3345_v22 = vor.u32 %v3344_v38, %v3343_v26  ;;  %v7039_v25 = vld [vmem:[#allocation2 + $0x4c] sm:$0xf]  ;;  %v1915_v26 = vrot.slane %v1913_v56, 1 }
 0x2c6   : > { %4802 = vmatmul.mubr.bf16.gmra.mrb[44].mxu1 %v3920_v15  ;;  %v2608_v63 = vpop.permute.xlu1 %2607  ;;  %v7038_v15 = vld [vmem:[#allocation2 + $0x48] sm:$0xf] }
 0x2c7   : > { %v3134_v36 = vpop.permute.xlu0 %3133 }
 0x2c8   : > { %2183 = vrot.lane.b32.xlu1 %v1908_v51, %s7075_s30  ;;  %v9086_v51 = vcombine.low %v7038_v15, %v7039_v25  ;;  %v3346_v15 = vsel %vm3318_vm8, %v3341_v52, %v3345_v22  ;;  %v2997_v25 = vrot.slane %v10719_v19, 2  ;;  %v1911_v52 = vor.u32 %v1909_v37, %v1907_v12 }
 0x2c9   : > { %3073 = vrot.lane.b32.xlu0 %v2996_v11, %s7075_s30  ;;  %v3732_v11 = vsel %vm3664_vm10, %v10720_v45, %v9010_v43 }
 0x2ca   : > { %v9080_v41 = vpop.permute.xlu1 %2404  ;;  %v3811_v3 = vsel %vm3743_vm11, %v3732_v11, %v8995_v6  ;;  %v10513_v21 = vshll.u32 %v9086_v51, 16  ;;  %v10512_v56 = vshrl.u32 %v9086_v51, 16  ;;  %v2998_v6 = vsel %vm2985_vm9, %v2995_v53, %v2997_v25 }
 0x2cb   : > { %v3304_v20 = vpop.permute.xlu0 %3303  ;;  %v3169_v11 = vrot.slane %v9086_v51, 2 }
 0x2cc   : > { %2344 = vrot.lane.b32.xlu1 %v2267_v1, %s7074_s29  ;;  %v4124_v9 = vsel %vm3743_vm11, %v4041_v61, %v3304_v20  ;;  %v2474_v1 = vsel %vm2254_vm6, %v2471_v42, %v2473_v16  ;;  %v3923_v42 = vsel %vm3822_vm12, %v3811_v3, %v2608_v63  ;;  %v2268_v61 = vrot.slane %v9001_v62, 1  ;;  %v7041_v3 = vld [vmem:[#allocation2 + $0x54] sm:$0xf] }
 0x2cd   : > { %3245 = vrot.lane.b32.xlu0 %v3168_v29, %s7074_s29  ;;  %v1916_v29 = vsel %vm1856_vm7, %v1911_v52, %v1915_v26  ;;  %v3348_v63 = vrot.slane %v10513_v21, 3  ;;  %v10724_v21 = vshll.u32 %v9042_v24, 16 }
 0x2ce   : > { %v9094_v39 = vpop.permute.xlu1 %2243 }
 0x2cf   : > { %v3570_v38 = vpop.permute.xlu0 %3569 }
 0x2d0   : > { %v4235_v43 = vsel %vm3822_vm12, %v4124_v9, %v3570_v38  ;;  %2551 = vrot.lane.b32.xlu1 %v2474_v1, %s7076_s14  ;;  %v3347_v9 = vrot.slane %v10512_v56, 2  ;;  %v2269_v38 = vsel %vm2254_vm6, %v2266_v48, %v2268_v61  ;;  %v10722_v1 = vld [vmem:[#allocation17_spill] sm:$0xff] }
 0x2d1   : > { %4809 = vmatprep.mubr.bf16.mxu1 %v4235_v43  ;;  %3511 = vrot.lane.b32.xlu0 %v3346_v15, %s7076_s14  ;;  %v2475_v15 = vrot.slane %v10722_v1, 1  ;;  %v7040_v43 = vld [vmem:[#allocation2 + $0x50] sm:$0xf] }
 0x2d2   : > { %4810 = vmatmul.mubr.bf16.gmra.mrb[48].mxu1 %v3923_v42  ;;  %v2610_v20 = vpop.permute.xlu1 %2609  ;;  %v9126_v53 = vcombine.low %v7040_v43, %v7041_v3  ;;  %v3170_v42 = vsel %vm2985_vm9, %v3167_v35, %v3169_v11  ;;  %v3349_v52 = vor.u32 %v3348_v63, %v3347_v9  ;;  %v1923_v43 = vrot.slane %v10724_v21, 1 }
 0x2d3   : > { %v3136_v19 = vpop.permute.xlu0 %3135  ;;  %v2476_v35 = vsel %vm2254_vm6, %v2473_v16, %v2475_v15  ;;  %v2999_v21 = vrot.slane %v10722_v1, 2 }
 0x2d4   : > { %2185 = vrot.lane.b32.xlu1 %v1916_v29, %s7075_s30  ;;  %v3734_v29 = vsel %vm3664_vm10, %v8320_v58, %v9052_v55  ;;  %v10515_v9 = vshll.u32 %v9126_v53, 16  ;;  %v10514_v63 = vshrl.u32 %v9126_v53, 16 }
 0x2d5   : > { %3075 = vrot.lane.b32.xlu0 %v2998_v6, %s7075_s30  ;;  %v10723_v6 = vld [vmem:[#allocation60_spill] sm:$0xff] }
 0x2d6   : > { %v9122_v37 = vpop.permute.xlu1 %2406  ;;  %v4044_v48 = vsel %vm3664_vm10, %v10723_v6, %v3134_v36  ;;  %v3350_v36 = vsel %vm3318_vm8, %v3345_v22, %v3349_v52  ;;  %v2270_v22 = vrot.slane %v9042_v24, 1  ;;  %v3352_v1 = vrot.slane %v10515_v9, 3 }
 0x2d7   : > { %v3306_v12 = vpop.permute.xlu0 %3305 }
 0x2d8   : > { %2346 = vrot.lane.b32.xlu1 %v2269_v38, %s7074_s29  ;;  %v4126_v3 = vsel %vm3743_vm11, %v4044_v48, %v3306_v12  ;;  %v10725_v12 = vshrl.u32 %v9001_v62, 16 }
 0x2d9   : > { %3247 = vrot.lane.b32.xlu0 %v3170_v42, %s7074_s29  ;;  %v3813_v42 = vsel %vm3743_vm11, %v3734_v29, %v9038_v13  ;;  %v3351_v13 = vrot.slane %v10514_v63, 2 }
 0x2da   : > { %v9136_v56 = vpop.permute.xlu1 %2245  ;;  %v3926_v16 = vsel %vm3822_vm12, %v3813_v42, %v2610_v20  ;;  %v1919_v6 = vor.u32 %v10725_v12, %v1915_v26  ;;  %v3000_v20 = vsel %vm2985_vm9, %v2997_v25, %v2999_v21  ;;  %v3171_v26 = vrot.slane %v9126_v53, 2 }
 0x2db   : > { %v3572_v38 = vpop.permute.xlu0 %3571  ;;  %v3736_v25 = vsel %vm3664_vm10, %v8380_v5, %v9094_v39 }
 0x2dc   : > { %v4238_v55 = vsel %vm3822_vm12, %v4126_v3, %v3572_v38  ;;  %2553 = vrot.lane.b32.xlu1 %v2476_v35, %s7076_s14  ;;  %v1924_v38 = vsel %vm1856_vm7, %v1919_v6, %v1923_v43  ;;  %v3172_v12 = vsel %vm2985_vm9, %v3169_v11, %v3171_v26  ;;  %v7042_v6 = vld [vmem:[#allocation2 + $0x58] sm:$0xf] }
 0x2dd   : > { %4817 = vmatprep.mubr.bf16.mxu1 %v4238_v55  ;;  %3513 = vrot.lane.b32.xlu0 %v3350_v36, %s7076_s14  ;;  %v2271_v55 = vsel %vm2254_vm6, %v2268_v61, %v2270_v22  ;;  %v10726_v36 = vld [vmem:[#allocation19_spill] sm:$0xff] }
 0x2de   : > { %4818 = vmatmul.mubr.bf16.gmra.mrb[52].mxu1 %v3926_v16  ;;  %v2612_v48 = vpop.permute.xlu1 %2611  ;;  %v2477_v42 = vrot.slane %v10726_v36, 1  ;;  %v3353_v16 = vor.u32 %v3352_v1, %v3351_v13  ;;  %v10728_v13 = vshll.u32 %v9086_v51, 16  ;;  %v3001_v28 = vrot.slane %v10726_v36, 2 }
 0x2df   : > { %v9154_v3 = vpop.permute.xlu0 %3137 }
 0x2e0   : > { %2187 = vrot.lane.b32.xlu1 %v1924_v38, %s7075_s30  ;;  %v7043_v38 = vld [vmem:[#allocation2 + $0x5c] sm:$0xf]  ;;  %v1931_v1 = vrot.slane %v10728_v13, 1 }
 0x2e1   : > { %3077 = vrot.lane.b32.xlu0 %v3000_v20, %s7075_s30  ;;  %v9172_v63 = vcombine.low %v7042_v6, %v7043_v38  ;;  %v10727_v20 = vld [vmem:[#allocation62_spill] sm:$0xff]  ;;  %v2478_v6 = vsel %vm2254_vm6, %v2475_v15, %v2477_v42  ;;  %v3354_v38 = vsel %vm3318_vm8, %v3349_v52, %v3353_v16  ;;  %v10729_v52 = vshrl.u32 %v9042_v24, 16 }
 0x2e2   : > { %v9166_v29 = vpop.permute.xlu1 %2408  ;;  %v4047_v61 = vsel %vm3664_vm10, %v10727_v20, %v3136_v19  ;;  %v3815_v19 = vsel %vm3743_vm11, %v3736_v25, %v9080_v41  ;;  %v3002_v41 = vsel %vm2985_vm9, %v2999_v21, %v3001_v28 }
 0x2e3   : > { %v3308_v35 = vpop.permute.xlu0 %3307  ;;  %v10517_v20 = vshrl.u32 %v9172_v63, 16  ;;  %v3929_v15 = vsel %vm3822_vm12, %v3815_v19, %v2612_v48  ;;  %v3173_v25 = vrot.slane %v9172_v63, 2 }
 0x2e4   : > { %2348 = vrot.lane.b32.xlu1 %v2271_v55, %s7074_s29  ;;  %v4128_v11 = vsel %vm3743_vm11, %v4047_v61, %v3308_v35  ;;  %v1927_v35 = vor.u32 %v10729_v52, %v1923_v43  ;;  %v7045_v52 = vld [vmem:[#allocation2 + $0x64] sm:$0xf] }
 0x2e5   : > { %3249 = vrot.lane.b32.xlu0 %v3172_v12, %s7074_s29  ;;  %v10518_v12 = vshll.u32 %v9172_v63, 16 }
 0x2e6   : > { %v9180_v9 = vpop.permute.xlu1 %2247  ;;  %v1932_v13 = vsel %vm1856_vm7, %v1927_v35, %v1931_v1  ;;  %v3174_v35 = vsel %vm2985_vm9, %v3171_v26, %v3173_v25 }
 0x2e7   : > { %v3574_v55 = vpop.permute.xlu0 %3573  ;;  %v3356_v48 = vrot.slane %v10518_v12, 3 }
 0x2e8   : > { %v4241_v39 = vsel %vm3822_vm12, %v4128_v11, %v3574_v55  ;;  %2555 = vrot.lane.b32.xlu1 %v2478_v6, %s7076_s14  ;;  %v2272_v11 = vrot.slane %v9086_v51, 1  ;;  %v3355_v55 = vrot.slane %v10517_v20, 2 }
 0x2e9   : > { %4825 = vmatprep.mubr.bf16.mxu1 %v4241_v39  ;;  %3515 = vrot.lane.b32.xlu0 %v3354_v38, %s7076_s14  ;;  %v10730_v39 = vld [vmem:[#allocation21_spill] sm:$0xff] }
 0x2ea   : > { %4826 = vmatmul.mubr.bf16.gmra.mrb[56].mxu1 %v3929_v15  ;;  %v2614_v36 = vpop.permute.xlu1 %2613  ;;  %v2273_v38 = vsel %vm2254_vm6, %v2270_v22, %v2272_v11  ;;  %v2479_v19 = vrot.slane %v10730_v39, 1  ;;  %v7044_v15 = vld [vmem:[#allocation2 + $0x60] sm:$0xf]  ;;  %v10731_v22 = vshll.u32 %v9126_v53, 16  ;;  %v3003_v26 = vrot.slane %v10730_v39, 2 }
 0x2eb   : > { %v3140_v61 = vpop.permute.xlu0 %3139  ;;  %v9212_v21 = vcombine.low %v7044_v15, %v7045_v52  ;;  %v4050_v52 = vsel %vm3664_vm10, %v8554_v40, %v9154_v3 }
 0x2ec   : > { %2189 = vrot.lane.b32.xlu1 %v1932_v13, %s7075_s30  ;;  %v3357_v13 = vor.u32 %v3356_v48, %v3355_v55  ;;  %v2480_v12 = vsel %vm2254_vm6, %v2477_v42, %v2479_v19  ;;  %v1939_v59 = vrot.slane %v10731_v22, 1  ;;  %v3738_v55 = vsel %vm3664_vm10, %v8504_v49, %v9136_v56 }
 0x2ed   : > { %3079 = vrot.lane.b32.xlu0 %v3002_v41, %s7075_s30  ;;  %v1953_v5 = vshll.u32 %v9212_v21, 16  ;;  %v10521_v15 = vshrl.u32 %v9212_v21, 16  ;;  %v10732_v42 = vshrl.u32 %v9086_v51, 16  ;;  %v3004_v40 = vsel %vm2985_vm9, %v3001_v28, %v3003_v26 }
 0x2ee   : > { %v9208_v43 = vpop.permute.xlu1 %2249  ;;  %v3817_v3 = vsel %vm3743_vm11, %v3738_v55, %v9122_v37  ;;  %v7046_v37 = vld [vmem:[#allocation2 + $0x68] sm:$0xf]  ;;  %v7047_v55 = vld [vmem:[#allocation2 + $0x6c] sm:$0xf] }
 0x2ef   : > { %v3310_v6 = vpop.permute.xlu0 %3309  ;;  %v1935_v48 = vor.u32 %v10732_v42, %v1931_v1  ;;  %v3359_v56 = vrot.slane %v10521_v15, 2  ;;  %v3932_v42 = vsel %vm3822_vm12, %v3817_v3, %v2614_v36  ;;  %v3740_v36 = vsel %vm3664_vm10, %v8603_v44, %v9180_v9 }
 0x2f0   : > { %2350 = vrot.lane.b32.xlu1 %v2273_v38, %s7074_s29  ;;  %v3358_v38 = vsel %vm3318_vm8, %v3353_v16, %v3357_v13  ;;  %v4130_v16 = vsel %vm3743_vm11, %v4050_v52, %v3310_v6  ;;  %v3175_v6 = vrot.slane %v9212_v21, 2 }
 0x2f1   : > { %3251 = vrot.lane.b32.xlu0 %v3174_v35, %s7074_s29  ;;  %v1940_v22 = vsel %vm1856_vm7, %v1935_v48, %v1939_v59 }
 0x2f2   : > { %v2616_v20 = vpop.permute.xlu1 %2615  ;;  %v3176_v28 = vsel %vm2985_vm9, %v3173_v25, %v3175_v6 }
 0x2f3   : > { %v9217_v41 = vpop.permute.xlu0 %3141 }
 0x2f4   : > { %2557 = vrot.lane.b32.xlu1 %v2480_v12, %s7076_s14  ;;  %v2274_v12 = vrot.slane %v9126_v53, 1 }
 0x2f5   : > { %3517 = vrot.lane.b32.xlu0 %v3358_v38, %s7076_s14  ;;  %v3360_v38 = vrot.slane %v1953_v5, 3 }
 0x2f6   : > { %v9236_v35 = vpop.permute.xlu1 %2410  ;;  %v2275_v15 = vsel %vm2254_vm6, %v2272_v11, %v2274_v12  ;;  %v4053_v11 = vsel %vm3664_vm10, %v8557_v4, %v3140_v61  ;;  %v3819_v4 = vsel %vm3743_vm11, %v3740_v36, %v9166_v29 }
 0x2f7   : > { %v3576_v39 = vpop.permute.xlu0 %3575 }
 0x2f8   : > { %v4244_v1 = vsel %vm3822_vm12, %v4130_v16, %v3576_v39  ;;  %2191 = vrot.lane.b32.xlu1 %v1940_v22, %s7075_s30  ;;  %v10733_v16 = vld [vmem:[#allocation23_spill] sm:$0xff]  ;;  %v9255_v22 = vor.u32 %v3360_v38, %v3359_v56  ;;  %v10734_v56 = vshll.u32 %v9172_v63, 16 }
 0x2f9   : > { %4833 = vmatprep.mubr.bf16.mxu1 %v4244_v1  ;;  %3081 = vrot.lane.b32.xlu0 %v3004_v40, %s7075_s30  ;;  %v2481_v39 = vrot.slane %v10733_v16, 1  ;;  %v9259_v1 = vcombine.low %v7046_v37, %v7047_v55  ;;  %v3005_v9 = vrot.slane %v10733_v16, 2 }
 0x2fa   : > { %4834 = vmatmul.mubr.bf16.gmra.mrb[60].mxu1 %v3932_v42  ;;  %v2618_v48 = vpop.permute.xlu1 %2617  ;;  %v3362_v42 = vsel %vm3318_vm8, %v3357_v13, %v9255_v22  ;;  %v10735_v13 = vshrl.u32 %v9126_v53, 16 }
 0x2fb   : > { %v3312_v52 = vpop.permute.xlu0 %3311  ;;  %v2482_v3 = vsel %vm2254_vm6, %v2479_v19, %v2481_v39  ;;  %v1961_v61 = vshll.u32 %v9259_v1, 16  ;;  %v10522_v37 = vshrl.u32 %v9259_v1, 16  ;;  %v3935_v19 = vsel %vm3822_vm12, %v3819_v4, %v2616_v20 }
 0x2fc   : > { %2352 = vrot.lane.b32.xlu1 %v2275_v15, %s7074_s29  ;;  %v1947_v15 = vrot.slane %v10734_v56, 1  ;;  %v4132_v25 = vsel %vm3743_vm11, %v4053_v11, %v3312_v52  ;;  %v1943_v52 = vor.u32 %v10735_v13, %v1939_v59  ;;  %v2276_v11 = vrot.slane %v9172_v63, 1  ;;  %v10736_v13 = vld [vmem:[#allocation24_spill] sm:$0xff] }
 0x2fd   : > { %3253 = vrot.lane.b32.xlu0 %v3176_v28, %s7074_s29  ;;  %v3177_v36 = vrot.slane %v9259_v1, 2  ;;  %v3363_v20 = vrot.slane %v10522_v37, 2  ;;  %v3364_v59 = vrot.slane %v1961_v61, 3 }
 0x2fe   : > { %v9267_v40 = vpop.permute.xlu1 %2173  ;;  %v1948_v29 = vsel %vm1856_vm7, %v1943_v52, %v1947_v15  ;;  %v2483_v52 = vrot.slane %v10736_v13, 1 }
 0x2ff   : > { %v3578_v38 = vpop.permute.xlu0 %3577 }
 0x300   : > { %2559 = vrot.lane.b32.xlu1 %v2482_v3, %s7076_s14  ;;  %v4247_v28 = vsel %vm3822_vm12, %v4132_v25, %v3578_v38  ;;  %v3006_v25 = vsel %vm2985_vm9, %v3003_v26, %v3005_v9  ;;  %v4056_v38 = vsel %vm3664_vm10, %v8586_v47, %v9217_v41  ;;  %v3742_v26 = vsel %vm3664_vm10, %v8652_v54, %v9208_v43 }
 0x301   : > { %4841 = vmatprep.mubr.bf16.mxu1 %v4247_v28  ;;  %3519 = vrot.lane.b32.xlu0 %v3362_v42, %s7076_s14  ;;  %v2277_v42 = vsel %vm2254_vm6, %v2274_v12, %v2276_v11  ;;  %v9316_v41 = vor.u32 %v3364_v59, %v3363_v20  ;;  %v7048_v12 = vld [vmem:[#allocation2 + $0x70] sm:$0xf]  ;;  %v1955_v20 = vrot.slane %v1953_v5, 1  ;;  %v10737_v5 = vshrl.u32 %v9172_v63, 16 }
 0x302   : > { %4842 = vmatmul.mubr.bf16.gmra.mrb[64].mxu1 %v3935_v19  ;;  %v9286_v55 = vpop.permute.xlu1 %2334  ;;  %v3178_v19 = vsel %vm2985_vm9, %v3175_v6, %v3177_v36 }
 0x303   : > { %v3314_v56 = vpop.permute.xlu0 %3313 }
 0x304   : > { %2193 = vrot.lane.b32.xlu1 %v1948_v29, %s7075_s30  ;;  %v4134_v28 = vsel %vm3743_vm11, %v4056_v38, %v3314_v56  ;;  %v3821_v29 = vsel %vm3743_vm11, %v3742_v26, %v9236_v35  ;;  %v1657_v56 = vld [vmem:[#allocation2 + $0x18] sm:$0x8]  ;;  %v2484_v38 = vsel %vm2254_vm6, %v2481_v39, %v2483_v52 }
 0x305   : > { %3083 = vrot.lane.b32.xlu0 %v3006_v25, %s7075_s30  ;;  %v7049_v25 = vld [vmem:[#allocation2 + $0x74] sm:$0xf]  ;;  %v3938_v43 = vsel %vm3822_vm12, %v3821_v29, %v2618_v48  ;;  %v6114_v59 = vcombine.low %v1657_v56, %v8859_v0  ;;  %v3366_v48 = vsel %vm3318_vm8, %v9255_v22, %v9316_v41 }
 0x306   : > { %v9303_v3 = vpop.permute.xlu1 %2541  ;;  %v9318_v37 = vcombine.low %v7048_v12, %v7049_v25 }
 0x307   : > { %v3580_v4 = vpop.permute.xlu0 %3579 }
 0x308   : > { %2354 = vrot.lane.b32.xlu1 %v2277_v42, %s7074_s29  ;;  %v4250_v47 = vsel %vm3822_vm12, %v4134_v28, %v3580_v4  ;;  %v3007_v42 = vrot.slane %v10736_v13, 2  ;;  %v10526_v26 = vshll.u32 %v9318_v37, 16  ;;  %v10524_v39 = vshrl.u32 %v9318_v37, 16 }
 0x309   : > { %3255 = vrot.lane.b32.xlu0 %v3178_v19, %s7074_s29  ;;  %4849 = vmatprep.mubr.bf16.mxu1 %v4250_v47  ;;  %v1951_v28 = vor.u32 %v10737_v5, %v1947_v15  ;;  %v3586_v4 = vrot.slane %v8850_v60, 3  ;;  %v2278_v19 = vrot.slane %v9212_v21, 1  ;;  %v3585_v47 = vrot.slane %v6114_v59, 3 }
 0x30a   : > { %4850 = vmatmul.mubr.bf16.gmra.mrb[68].mxu1 %v3938_v43  ;;  %v9322_v6 = vpop.permute.xlu1 %2175  ;;  %v3179_v12 = vrot.slane %v9318_v37, 2  ;;  %v3008_v25 = vsel %vm2985_vm9, %v3005_v9, %v3007_v42  ;;  %v3367_v15 = vrot.slane %v10524_v39, 2  ;;  %v3368_v43 = vrot.slane %v10526_v26, 3  ;;  %v10742_v39 = vld [vmem:[#allocation29_spill] sm:$0xff]  ;;  %v7054_v26 = vld [vmem:[#allocation2 + $0x84] sm:$0xf] }
 0x30b   : > { %v3066_v35 = vpop.permute.xlu0 %3065  ;;  %6571 = vmatprep.mubr.msk.bf16.mxu1 %vm7072_vm2, %v10586_v2  ;;  %v1956_v22 = vsel %vm1856_vm7, %v1951_v28, %v1955_v20  ;;  %v3587_v56 = vsel %vm670_vm1, %v3585_v47, %v3586_v4  ;;  %v2279_v16 = vsel %vm2254_vm6, %v2276_v11, %v2278_v19  ;;  %v3666_v9 = vsel %vm3664_vm10, %v8785_v46, %v9267_v40  ;;  %v7050_v46 = vld [vmem:[#allocation2 + $0x78] sm:$0xf]  ;;  %v7051_v40 = vld [vmem:[#allocation2 + $0x7c] sm:$0xf] }
 0x30c   : > { %2561 = vrot.lane.b32.xlu1 %v2484_v38, %s7076_s14  ;;  %v10738_v38 = vld [vmem:[#allocation8_spill] sm:$0xff] }
 0x30d   : > { %3521 = vrot.lane.b32.xlu0 %v3366_v48, %s7076_s14  ;;  %v3942_v59 = vsel %vm3664_vm10, %v10738_v38, %v3066_v35  ;;  %v3745_v35 = vsel %vm3743_vm11, %v3666_v9, %v9286_v55  ;;  %v3588_v38 = vrot.slane %v8912_v27, 3 }
 0x30e   : > { %v9343_v0 = vpop.permute.xlu1 %2336 }
 0x30f   : > { %v3238_v29 = vpop.permute.xlu0 %3237  ;;  %v3589_v13 = vsel %vm670_vm1, %v3586_v4, %v3588_v38 }
 0x310   : > { %2195 = vrot.lane.b32.xlu1 %v1956_v22, %s7075_s30  ;;  %v4058_v5 = vsel %vm3743_vm11, %v3942_v59, %v3238_v29  ;;  %v3180_v22 = vsel %vm2985_vm9, %v3177_v36, %v3179_v12  ;;  %v9378_v29 = vcombine.low %v7050_v46, %v7051_v40  ;;  %v3824_v36 = vsel %vm3822_vm12, %v3745_v35, %v9303_v3 }
 0x311   : > { %3085 = vrot.lane.b32.xlu0 %v3008_v25, %s7075_s30  ;;  %v10739_v25 = vld [vmem:[#allocation27_spill] sm:$0xff]  ;;  %v3590_v40 = vrot.slane %v8957_v32, 3 }
 0x312   : > { %6572 = vmatmul.mubr.msk.bf16.vlgmr.msra.gmra.mrb[72].mxu1 %vm3664_vm10, %v3587_v56  ;;  %v9361_v48 = vpop.permute.xlu1 %2543  ;;  %v10527_v47 = vrot.slane %v10739_v25, 1  ;;  %v9376_v56 = vor.u32 %v3368_v43, %v3367_v15  ;;  %v1963_v43 = vrot.slane %v1961_v61, 1  ;;  %v10525_v9 = vshll.u32 %v9378_v29, 16 }
 0x313   : > { %v3504_v28 = vpop.permute.xlu0 %3503  ;;  %6575 = vmatprep.mubr.msk.bf16.mxu1 %vm7072_vm2, %v10586_v2 }
 0x314   : > { %2356 = vrot.lane.b32.xlu1 %v2279_v16, %s7074_s29  ;;  %v4136_v11 = vsel %vm3822_vm12, %v4058_v5, %v3504_v28  ;;  %v2486_v15 = vsel %vm2254_vm6, %v2483_v52, %v10527_v47  ;;  %v3370_v3 = vsel %vm3318_vm8, %v9316_v41, %v9376_v56  ;;  %v3009_v16 = vrot.slane %v10739_v25, 2 }
 0x315   : > { %3257 = vrot.lane.b32.xlu0 %v3180_v22, %s7074_s29  ;;  %4545 = vmatprep.mubr.bf16.mxu0 %v4136_v11  ;;  %v10523_v5 = vshrl.u32 %v9378_v29, 16  ;;  %v10740_v52 = vshrl.u32 %v9212_v21, 16  ;;  %v2280_v22 = vrot.slane %v9259_v1, 1  ;;  %v3181_v11 = vrot.slane %v9378_v29, 2 }
 0x316   : > { %4546 = vmatmul.mubr.bf16.vlgmr.msra.gmra.mrb[172].mxu0 %v3824_v36  ;;  %v9384_v55 = vpop.permute.xlu1 %2177  ;;  %v3010_v4 = vsel %vm2985_vm9, %v3007_v42, %v3009_v16  ;;  %v3372_v46 = vrot.slane %v10525_v9, 3  ;;  %v10741_v36 = vld [vmem:[#allocation10_spill] sm:$0xff] }
 0x317   : > { %v3068_v59 = vpop.permute.xlu0 %3067  ;;  %v1959_v28 = vor.u32 %v10740_v52, %v1955_v20  ;;  %v3371_v20 = vrot.slane %v10523_v5, 2  ;;  %v7052_v52 = vld [vmem:[#allocation2 + $0x8] sm:$0xff]   ;;  %v3182_v5 = vsel %vm2985_vm9, %v3179_v12, %v3181_v11  ;;  %v3591_v12 = vsel %vm670_vm1, %v3588_v38, %v3590_v40 }
 0x318   : > { %2563 = vrot.lane.b32.xlu1 %v2486_v15, %s7076_s14  ;;  %v3945_v15 = vsel %vm3664_vm10, %v10741_v36, %v3068_v59  ;;  %v3668_v42 = vsel %vm3664_vm10, %v7052_v52, %v9322_v6  ;;  %v3011_v38 = vrot.slane %v10742_v39, 2  ;;  %v3592_v52 = vrot.slane %v9001_v62, 3 }
 0x319   : > { %3523 = vrot.lane.b32.xlu0 %v3370_v3, %s7076_s14  ;;  %v1964_v35 = vsel %vm1856_vm7, %v1959_v28, %v1963_v43  ;;  %v3747_v9 = vsel %vm3743_vm11, %v3668_v42, %v9343_v0  ;;  %v3373_v36 = vor.u32 %v3372_v46, %v3371_v20  ;;  %v10743_v20 = vrot.slane %v10739_v25, 1 }
 0x31a   : > { %6576 = vmatmul.mubr.msk.bf16.gmra.mrb[76].mxu1 %vm3664_vm10, %v3589_v13  ;;  %v9405_v61 = vpop.permute.xlu1 %2338  ;;  %v2281_v13 = vsel %vm2254_vm6, %v2278_v19, %v2280_v22  ;;  %v7053_v19 = vld [vmem:[#allocation2 + $0x80] sm:$0xf]  ;;  %v3827_v6 = vsel %vm3822_vm12, %v3747_v9, %v9361_v48  ;;  %v10745_v25 = vshrl.u32 %v9259_v1, 16 }
 0x31b   : > { %v3240_v41 = vpop.permute.xlu0 %3239  ;;  %6579 = vmatprep.mubr.msk.bf16.mxu1 %vm7072_vm2, %v10586_v2  ;;  %v9434_v47 = vcombine.low %v7053_v19, %v7054_v26  ;;  %v3374_v48 = vsel %vm3318_vm8, %v9376_v56, %v3373_v36  ;;  %v3012_v19 = vsel %vm2985_vm9, %v3009_v16, %v3011_v38  ;;  %v3670_v16 = vsel %vm3664_vm10, %v8833_v17, %v9384_v55  ;;  %v7056_v17 = vld [vmem:[#allocation2 + $0x8c] sm:$0xf] }
 0x31c   : > { %2197 = vrot.lane.b32.xlu1 %v1964_v35, %s7075_s30  ;;  %v4060_v28 = vsel %vm3743_vm11, %v3945_v15, %v3240_v41 }
 0x31d   : > { %3087 = vrot.lane.b32.xlu0 %v3010_v4, %s7075_s30  ;;  %v2487_v4 = vrot.slane %v10742_v39, 1  ;;  %v10531_v9 = vshll.u32 %v9434_v47, 16  ;;  %v10529_v15 = vshrl.u32 %v9434_v47, 16  ;;  %v10749_v39 = vshrl.u32 %v9318_v37, 16 }
 0x31e   : > { %v9422_v3 = vpop.permute.xlu1 %2545 }
 0x31f   : > { %v3506_v35 = vpop.permute.xlu0 %3505  ;;  %v2488_v26 = vsel %vm2254_vm6, %v10743_v20, %v2487_v4  ;;  %v10746_v20 = vld [vmem:[#allocation12_spill] sm:$0xff] }
 0x320   : > { %2358 = vrot.lane.b32.xlu1 %v2281_v13, %s7074_s29  ;;  %v4139_v59 = vsel %vm3822_vm12, %v4060_v28, %v3506_v35  ;;  %v1967_v13 = vor.u32 %v10745_v25, %v1963_v43  ;;  %v2282_v28 = vrot.slane %v9318_v37, 1  ;;  %v3376_v43 = vrot.slane %v10531_v9, 3 }
 0x321   : > { %3259 = vrot.lane.b32.xlu0 %v3182_v5, %s7074_s29  ;;  %4553 = vmatprep.mubr.bf16.mxu0 %v4139_v59  ;;  %v10744_v5 = vshll.u32 %v9318_v37, 16  ;;  %v3183_v59 = vrot.slane %v9434_v47, 2 }
 0x322   : > { %4554 = vmatmul.mubr.bf16.gmra.mrb[176].mxu0 %v3827_v6  ;;  %6580 = vmatmul.mubr.msk.bf16.gmra.mrb[80].mxu1 %vm3664_vm10, %v3591_v12  ;;  %v9441_v0 = vpop.permute.xlu1 %2179  ;;  %v3375_v6 = vrot.slane %v10529_v15, 2  ;;  %v3593_v12 = vsel %vm670_vm1, %v3590_v40, %v3592_v52  ;;  %v10751_v15 = vld [vmem:[#allocation33_spill] sm:$0xff] }
 0x323   : > { %v3070_v41 = vpop.permute.xlu0 %3069  ;;  %v1971_v46 = vrot.slane %v10744_v5, 1  ;;  %6583 = vmatprep.mubr.msk.bf16.mxu1 %vm7072_vm2, %v10586_v2 }
 0x324   : > { %2565 = vrot.lane.b32.xlu1 %v2488_v26, %s7076_s14  ;;  %v3948_v26 = vsel %vm3664_vm10, %v10746_v20, %v3070_v41  ;;  %v3749_v41 = vsel %vm3743_vm11, %v3670_v16, %v9405_v61  ;;  %v7055_v20 = vld [vmem:[#allocation2 + $0x88] sm:$0xf] }
 0x325   : > { %3525 = vrot.lane.b32.xlu0 %v3374_v48, %s7076_s14  ;;  %v1972_v56 = vsel %vm1856_vm7, %v1967_v13, %v1971_v46  ;;  %v2283_v48 = vsel %vm2254_vm6, %v2280_v22, %v2282_v28  ;;  %v9493_v55 = vcombine.low %v7055_v20, %v7056_v17 }
 0x326   : > { %v9462_v42 = vpop.permute.xlu1 %2340 }
 0x327   : > { %v3242_v35 = vpop.permute.xlu0 %3241  ;;  %v3185_v17 = vrot.slane %v9493_v55, 2 }
 0x328   : > { %2199 = vrot.lane.b32.xlu1 %v1972_v56, %s7075_s30  ;;  %v4062_v25 = vsel %vm3743_vm11, %v3948_v26, %v3242_v35  ;;  %v3184_v56 = vsel %vm2985_vm9, %v3181_v11, %v3183_v59  ;;  %v3830_v11 = vsel %vm3822_vm12, %v3749_v41, %v9422_v3  ;;  %v3594_v35 = vrot.slane %v9042_v24, 3 }
 0x329   : > { %3089 = vrot.lane.b32.xlu0 %v3012_v19, %s7075_s30  ;;  %v10747_v19 = vld [vmem:[#allocation31_spill] sm:$0xff] }
 0x32a   : > { %6584 = vmatmul.mubr.msk.bf16.gmra.mrb[84].mxu1 %vm3664_vm10, %v3593_v12  ;;  %v9478_v5 = vpop.permute.xlu1 %2547  ;;  %v10532_v40 = vrot.slane %v10747_v19, 1  ;;  %v3377_v12 = vor.u32 %v3376_v43, %v3375_v6  ;;  %v10748_v43 = vshll.u32 %v9378_v29, 16  ;;  %v3013_v3 = vrot.slane %v10747_v19, 2 }
 0x32b   : > { %v3508_v13 = vpop.permute.xlu0 %3507  ;;  %6587 = vmatprep.mubr.msk.bf16.mxu1 %vm7072_vm2, %v10586_v2 }
 0x32c   : > { %2360 = vrot.lane.b32.xlu1 %v2283_v48, %s7074_s29  ;;  %v4142_v22 = vsel %vm3822_vm12, %v4062_v25, %v3508_v13  ;;  %v2490_v6 = vsel %vm2254_vm6, %v2487_v4, %v10532_v40  ;;  %v1979_v48 = vrot.slane %v10748_v43, 1  ;;  %v3378_v16 = vsel %vm3318_vm8, %v3373_v36, %v3377_v12  ;;  %v9533_v43 = vld [vmem:[#allocation2 + $0x94] sm:$0xf] }
 0x32d   : > { %3261 = vrot.lane.b32.xlu0 %v3184_v56, %s7074_s29  ;;  %4561 = vmatprep.mubr.bf16.mxu0 %v4142_v22  ;;  %v10530_v25 = vshll.u32 %v9493_v55, 16  ;;  %v10528_v13 = vshrl.u32 %v9493_v55, 16  ;;  %v3595_v56 = vsel %vm670_vm1, %v3592_v52, %v3594_v35  ;;  %v1975_v4 = vor.u32 %v10749_v39, %v1971_v46 }
 0x32e   : > { %4562 = vmatmul.mubr.bf16.gmra.mrb[180].mxu0 %v3830_v11  ;;  %v9499_v26 = vpop.permute.xlu1 %2181  ;;  %v2284_v22 = vrot.slane %v9378_v29, 1  ;;  %v3014_v52 = vsel %vm2985_vm9, %v3011_v38, %v3013_v3  ;;  %v3672_v38 = vsel %vm3664_vm10, %v8886_v14, %v9441_v0 }
 0x32f   : > { %v3072_v61 = vpop.permute.xlu0 %3071  ;;  %v1980_v20 = vsel %vm1856_vm7, %v1975_v4, %v1979_v48  ;;  %v3379_v46 = vrot.slane %v10528_v13, 2  ;;  %v3380_v11 = vrot.slane %v10530_v25, 3  ;;  %v2491_v25 = vrot.slane %v10751_v15, 1 }
 0x330   : > { %2567 = vrot.lane.b32.xlu1 %v2490_v6, %s7076_s14  ;;  %v3596_v6 = vrot.slane %v9086_v51, 3  ;;  %v2285_v4 = vsel %vm2254_vm6, %v2282_v28, %v2284_v22  ;;  %v3751_v9 = vsel %vm3743_vm11, %v3672_v38, %v9462_v42  ;;  %v7057_v28 = vld [vmem:[#allocation2 + $0x90] sm:$0xf]  ;;  %v3598_v38 = vrot.slane %v9126_v53, 3 }
 0x331   : > { %3527 = vrot.lane.b32.xlu0 %v3378_v16, %s7076_s14  ;;  %v10750_v16 = vld [vmem:[#allocation14_spill] sm:$0xff]  ;;  %v9551_v40 = vcombine.low %v7057_v28, %v9533_v43  ;;  %v3833_v14 = vsel %vm3822_vm12, %v3751_v9, %v9478_v5  ;;  %v3015_v5 = vrot.slane %v10751_v15, 2 }
 0x332   : > { %6588 = vmatmul.mubr.msk.bf16.gmra.mrb[88].mxu1 %vm3664_vm10, %v3595_v56  ;;  %v9518_v41 = vpop.permute.xlu1 %2342  ;;  %v3951_v56 = vsel %vm3664_vm10, %v10750_v16, %v3072_v61  ;;  %v3381_v16 = vor.u32 %v3380_v11, %v3379_v46  ;;  %v3597_v0 = vsel %vm670_vm1, %v3594_v35, %v3596_v6  ;;  %v10753_v46 = vshll.u32 %v9434_v47, 16 }
 0x333   : > { %v3244_v36 = vpop.permute.xlu0 %3243  ;;  %6591 = vmatprep.mubr.msk.bf16.mxu1 %vm7072_vm2, %v10586_v2  ;;  %v10536_v35 = vshll.u32 %v9551_v40, 16  ;;  %v3187_v15 = vrot.slane %v9551_v40, 2  ;;  %v3016_v28 = vsel %vm2985_vm9, %v3013_v3, %v3015_v5 }
 0x334   : > { %2201 = vrot.lane.b32.xlu1 %v1980_v20, %s7075_s30  ;;  %v4064_v20 = vsel %vm3743_vm11, %v3951_v56, %v3244_v36  ;;  %v1987_v11 = vrot.slane %v10753_v46, 1  ;;  %v3382_v9 = vsel %vm3318_vm8, %v3377_v12, %v3381_v16  ;;  %v10533_v56 = vshrl.u32 %v9551_v40, 16 }
 0x335   : > { %3091 = vrot.lane.b32.xlu0 %v3014_v52, %s7075_s30  ;;  %v3186_v52 = vsel %vm2985_vm9, %v3183_v59, %v3185_v17 }
 0x336   : > { %v9537_v39 = vpop.permute.xlu1 %2549 }
 0x337   : > { %v3510_v13 = vpop.permute.xlu0 %3509 }
 0x338   : > { %2362 = vrot.lane.b32.xlu1 %v2285_v4, %s7074_s29  ;;  %v4145_v61 = vsel %vm3822_vm12, %v4064_v20, %v3510_v13  ;;  %v10752_v13 = vrot.slane %v10747_v19, 1  ;;  %v10754_v19 = vshrl.u32 %v9378_v29, 16 }
 0x339   : > { %3263 = vrot.lane.b32.xlu0 %v3186_v52, %s7074_s29  ;;  %4569 = vmatprep.mubr.bf16.mxu0 %v4145_v61  ;;  %v2286_v52 = vrot.slane %v9434_v47, 1 }
 0x33a   : > { %4570 = vmatmul.mubr.bf16.gmra.mrb[184].mxu0 %v3833_v14  ;;  %6592 = vmatmul.mubr.msk.bf16.gmra.mrb[92].mxu1 %vm3664_vm10, %v3597_v0  ;;  %v9558_v42 = vpop.permute.xlu1 %2183  ;;  %v2492_v36 = vsel %vm2254_vm6, %v10752_v13, %v2491_v25  ;;  %v1983_v4 = vor.u32 %v10754_v19, %v1979_v48  ;;  %v3383_v14 = vrot.slane %v10533_v56, 2  ;;  %v3384_v48 = vrot.slane %v10536_v35, 3  ;;  %v9589_v13 = vld [vmem:[#allocation2 + $0x9c] sm:$0xf] }
 0x33b   : > { %v3074_v59 = vpop.permute.xlu0 %3073  ;;  %6595 = vmatprep.mubr.msk.bf16.mxu1 %vm7072_vm2, %v10586_v2  ;;  %v3599_v0 = vsel %vm670_vm1, %v3596_v6, %v3598_v38  ;;  %v2287_v3 = vsel %vm2254_vm6, %v2284_v22, %v2286_v52  ;;  %v3674_v19 = vsel %vm3664_vm10, %v8850_v60, %v9499_v26  ;;  %v3188_v6 = vsel %vm2985_vm9, %v3185_v17, %v3187_v15 }
 0x33c   : > { %2569 = vrot.lane.b32.xlu1 %v2492_v36, %s7076_s14  ;;  %v1988_v12 = vsel %vm1856_vm7, %v1983_v4, %v1987_v11  ;;  %v10755_v36 = vld [vmem:[#allocation16_spill] sm:$0xff]  ;;  %v3753_v22 = vsel %vm3743_vm11, %v3674_v19, %v9518_v41  ;;  %v3385_v26 = vor.u32 %v3384_v48, %v3383_v14  ;;  %v10757_v14 = vshll.u32 %v9493_v55, 16 }
 0x33d   : > { %3529 = vrot.lane.b32.xlu0 %v3382_v9, %s7076_s14  ;;  %v3954_v46 = vsel %vm3664_vm10, %v10755_v36, %v3074_v59  ;;  %v1602_v59 = vld [vmem:[#allocation2 + $0x98] sm:$0xf]  ;;  %v3836_v17 = vsel %vm3822_vm12, %v3753_v22, %v9537_v39 }
 0x33e   : > { %v9576_v20 = vpop.permute.xlu1 %2344  ;;  %v1995_v48 = vrot.slane %v10757_v14, 1  ;;  %v9643_v14 = vcombine.low %v9533_v43, %v1602_v59 }
 0x33f   : > { %v3246_v61 = vpop.permute.xlu0 %3245 }
 0x340   : > { %2203 = vrot.lane.b32.xlu1 %v1988_v12, %s7075_s30  ;;  %v4066_v4 = vsel %vm3743_vm11, %v3954_v46, %v3246_v61  ;;  %v9612_v61 = vcombine.low %v1602_v59, %v9589_v13 }
 0x341   : > { %3093 = vrot.lane.b32.xlu0 %v3016_v28, %s7075_s30  ;;  %v10756_v28 = vld [vmem:[#allocation36_spill] sm:$0xff] }
 0x342   : > { %6596 = vmatmul.mubr.msk.bf16.gmra.mrb[96].mxu1 %vm3664_vm10, %v3599_v0  ;;  %v9594_v9 = vpop.permute.xlu1 %2551  ;;  %v2493_v56 = vrot.slane %v10756_v28, 1  ;;  %v3600_v0 = vrot.slane %v9172_v63, 3  ;;  %v3017_v19 = vrot.slane %v10756_v28, 2  ;;  %v10535_v39 = vshll.u32 %v9612_v61, 16 }
 0x343   : > { %v3512_v12 = vpop.permute.xlu0 %3511  ;;  %6599 = vmatprep.mubr.msk.bf16.mxu1 %vm7072_vm2, %v10586_v2 }
 0x344   : > { %2364 = vrot.lane.b32.xlu1 %v2287_v3, %s7074_s29  ;;  %v4148_v60 = vsel %vm3822_vm12, %v4066_v4, %v3512_v12  ;;  %v2494_v46 = vsel %vm2254_vm6, %v2491_v25, %v2493_v56  ;;  %v3386_v3 = vsel %vm3318_vm8, %v3381_v16, %v3385_v26  ;;  %v10534_v4 = vshrl.u32 %v9612_v61, 16 }
 0x345   : > { %3265 = vrot.lane.b32.xlu0 %v3188_v6, %s7074_s29  ;;  %4577 = vmatprep.mubr.bf16.mxu0 %v4148_v60  ;;  %v3601_v12 = vsel %vm670_vm1, %v3598_v38, %v3600_v0  ;;  %v10758_v6 = vshrl.u32 %v9434_v47, 16  ;;  %v2288_v60 = vrot.slane %v9493_v55, 1 }
 0x346   : > { %4578 = vmatmul.mubr.bf16.gmra.mrb[188].mxu0 %v3836_v17  ;;  %v9618_v36 = vpop.permute.xlu1 %2185  ;;  %v3387_v38 = vrot.slane %v10534_v4, 2 }
 0x347   : > { %v3076_v41 = vpop.permute.xlu0 %3075  ;;  %v1991_v25 = vor.u32 %v10758_v6, %v1987_v11  ;;  %v3018_v11 = vsel %vm2985_vm9, %v3015_v5, %v3017_v19  ;;  %v9653_v6 = vld [vmem:[#allocation2 + $0xa4] sm:$0xf]  ;;  %v2289_v5 = vsel %vm2254_vm6, %v2286_v52, %v2288_v60 }
 0x348   : > { %2571 = vrot.lane.b32.xlu1 %v2494_v46, %s7076_s14  ;;  %v3189_v46 = vrot.slane %v9612_v61, 2 }
 0x349   : > { %3531 = vrot.lane.b32.xlu0 %v3386_v3, %s7076_s14  ;;  %v1996_v17 = vsel %vm1856_vm7, %v1991_v25, %v1995_v48  ;;  %v3388_v3 = vrot.slane %v10535_v39, 3  ;;  %v10759_v25 = vld [vmem:[#allocation18_spill] sm:$0xff] }
 0x34a   : > { %6600 = vmatmul.mubr.msk.bf16.gmra.mrb[100].mxu1 %vm3664_vm10, %v3601_v12  ;;  %v9635_v22 = vpop.permute.xlu1 %2346  ;;  %v3602_v12 = vrot.slane %v9212_v21, 3  ;;  %v3957_v43 = vsel %vm3664_vm10, %v10759_v25, %v3076_v41  ;;  %v2495_v41 = vrot.slane %v9643_v14, 1  ;;  %v1604_v25 = vld [vmem:[#allocation2 + $0xa0] sm:$0xf] }
 0x34b   : > { %v3248_v16 = vpop.permute.xlu0 %3247  ;;  %6603 = vmatprep.mubr.msk.bf16.mxu1 %vm7072_vm2, %v10586_v2 }
 0x34c   : > { %2205 = vrot.lane.b32.xlu1 %v1996_v17, %s7075_s30  ;;  %v3676_v17 = vsel %vm3664_vm10, %v8912_v27, %v9558_v42  ;;  %v4068_v4 = vsel %vm3743_vm11, %v3957_v43, %v3248_v16  ;;  %v3389_v27 = vor.u32 %v3388_v3, %v3387_v38  ;;  %v9675_v42 = vcombine.low %v1604_v25, %v9653_v6 }
 0x34d   : > { %3095 = vrot.lane.b32.xlu0 %v3018_v11, %s7075_s30  ;;  %v3190_v11 = vsel %vm2985_vm9, %v3187_v15, %v3189_v46  ;;  %v3755_v35 = vsel %vm3743_vm11, %v3676_v17, %v9576_v20  ;;  %v3603_v16 = vsel %vm670_vm1, %v3600_v0, %v3602_v12 }
 0x34e   : > { %v2554_v59 = vpop.permute.xlu1 %2553  ;;  %v3839_v15 = vsel %vm3822_vm12, %v3755_v35, %v9594_v9  ;;  %v3390_v35 = vsel %vm3318_vm8, %v3385_v26, %v3389_v27  ;;  %v3019_v9 = vrot.slane %v9643_v14, 2  ;;  %v2017_v0 = vshll.u32 %v9675_v42, 16 }
 0x34f   : > { %v3514_v39 = vpop.permute.xlu0 %3513  ;;  %v10537_v3 = vshrl.u32 %v9675_v42, 16  ;;  %v9703_v26 = vcombine.low %v9589_v13, %v1604_v25 }
 0x350   : > { %2366 = vrot.lane.b32.xlu1 %v2289_v5, %s7074_s29  ;;  %v4151_v52 = vsel %vm3822_vm12, %v4068_v4, %v3514_v39  ;;  %v2496_v39 = vsel %vm2254_vm6, %v2493_v56, %v2495_v41  ;;  %v10760_v4 = vshll.u32 %v9551_v40, 16  ;;  %v10761_v56 = vshrl.u32 %v9493_v55, 16 }
 0x351   : > { %3267 = vrot.lane.b32.xlu0 %v3190_v11, %s7074_s29  ;;  %4585 = vmatprep.mubr.bf16.mxu0 %v4151_v52  ;;  %v3604_v5 = vrot.slane %v9259_v1, 3 }
 0x352   : > { %4586 = vmatmul.mubr.bf16.gmra.mrb[192].mxu0 %v3839_v15  ;;  %6604 = vmatmul.mubr.msk.bf16.gmra.mrb[104].mxu1 %vm3664_vm10, %v3603_v16  ;;  %v9682_v20 = vpop.permute.xlu1 %2187  ;;  %v2003_v38 = vrot.slane %v10760_v4, 1  ;;  %v1999_v28 = vor.u32 %v10761_v56, %v1995_v48  ;;  %v2290_v15 = vrot.slane %v9551_v40, 1  ;;  %v3020_v16 = vsel %vm2985_vm9, %v3017_v19, %v3019_v9  ;;  %v10762_v56 = vld [vmem:[#allocation20_spill] sm:$0xff] }
 0x353   : > { %v3078_v43 = vpop.permute.xlu0 %3077  ;;  %6607 = vmatprep.mubr.msk.bf16.mxu1 %vm7072_vm2, %v10586_v2  ;;  %v3391_v48 = vrot.slane %v10537_v3, 2  ;;  %v3392_v4 = vrot.slane %v2017_v0, 3  ;;  %v3678_v19 = vsel %vm3664_vm10, %v8957_v32, %v9618_v36 }
 0x354   : > { %2573 = vrot.lane.b32.xlu1 %v2496_v39, %s7076_s14  ;;  %v2004_v52 = vsel %vm1856_vm7, %v1999_v28, %v2003_v38  ;;  %v3191_v39 = vrot.slane %v9675_v42, 2  ;;  %v3960_v13 = vsel %vm3664_vm10, %v10762_v56, %v3078_v43  ;;  %v2291_v3 = vsel %vm2254_vm6, %v2288_v60, %v2290_v15 }
 0x355   : > { %3533 = vrot.lane.b32.xlu0 %v3390_v35, %s7076_s14  ;;  %v3605_v35 = vsel %vm670_vm1, %v3602_v12, %v3604_v5  ;;  %v3757_v12 = vsel %vm3743_vm11, %v3678_v19, %v9635_v22  ;;  %v3393_v43 = vor.u32 %v3392_v4, %v3391_v48  ;;  %v10763_v56 = vshll.u32 %v9612_v61, 16 }
 0x356   : > { %v2349_v17 = vpop.permute.xlu1 %2348  ;;  %v3192_v32 = vsel %vm2985_vm9, %v3189_v46, %v3191_v39  ;;  %v3842_v60 = vsel %vm3822_vm12, %v3757_v12, %v2554_v59  ;;  %v3021_v48 = vrot.slane %v9703_v26, 2  ;;  %v10764_v4 = vshrl.u32 %v9551_v40, 16 }
 0x357   : > { %v3250_v11 = vpop.permute.xlu0 %3249  ;;  %v3394_v46 = vsel %vm3318_vm8, %v3389_v27, %v3393_v43  ;;  %v2292_v12 = vrot.slane %v9612_v61, 1  ;;  %v7058_v27 = vld [vmem:[#allocation2 + $0xa8] sm:$0xf] }
 0x358   : > { %2207 = vrot.lane.b32.xlu1 %v2004_v52, %s7075_s30  ;;  %v4070_v28 = vsel %vm3743_vm11, %v3960_v13, %v3250_v11  ;;  %v3606_v11 = vrot.slane %v9318_v37, 3  ;;  %v2011_v13 = vrot.slane %v10763_v56, 1  ;;  %v2007_v19 = vor.u32 %v10764_v4, %v2003_v38  ;;  %v10765_v38 = vld [vmem:[#allocation35_spill] sm:$0xff] }
 0x359   : > { %3097 = vrot.lane.b32.xlu0 %v3020_v16, %s7075_s30  ;;  %v2497_v16 = vrot.slane %v9703_v26, 1 }
 0x35a   : > { %6608 = vmatmul.mubr.msk.bf16.gmra.mrb[108].mxu1 %vm3664_vm10, %v3605_v35  ;;  %v2556_v25 = vpop.permute.xlu1 %2555  ;;  %v3607_v59 = vsel %vm670_vm1, %v3604_v5, %v3606_v11  ;;  %v3022_v5 = vsel %vm2985_vm9, %v3019_v9, %v3021_v48 }
 0x35b   : > { %v3516_v52 = vpop.permute.xlu0 %3515  ;;  %6611 = vmatprep.mubr.msk.bf16.mxu1 %vm7072_vm2, %v10586_v2 }
 0x35c   : > { %2368 = vrot.lane.b32.xlu1 %v2291_v3, %s7074_s29  ;;  %v4154_v36 = vsel %vm3822_vm12, %v4070_v28, %v3516_v52  ;;  %v2498_v3 = vsel %vm2254_vm6, %v2495_v41, %v2497_v16  ;;  %v2012_v52 = vsel %vm1856_vm7, %v2007_v19, %v2011_v13  ;;  %v2293_v19 = vsel %vm2254_vm6, %v2290_v15, %v2292_v12 }
 0x35d   : > { %3269 = vrot.lane.b32.xlu0 %v3192_v32, %s7074_s29  ;;  %4593 = vmatprep.mubr.bf16.mxu0 %v4154_v36  ;;  %v9755_v32 = vcombine.low %v9653_v6, %v7058_v27  ;;  %v3193_v36 = vrot.slane %v10765_v38, 2 }
 0x35e   : > { %4594 = vmatmul.mubr.bf16.gmra.mrb[196].mxu0 %v3842_v60  ;;  %v9737_v35 = vpop.permute.xlu1 %2189  ;;  %v3608_v60 = vrot.slane %v9378_v29, 3 }
 0x35f   : > { %v3080_v22 = vpop.permute.xlu0 %3079  ;;  %v2499_v9 = vrot.slane %v9755_v32, 1  ;;  %v3194_v27 = vsel %vm2985_vm9, %v3191_v39, %v3193_v36  ;;  %v10767_v39 = vld [vmem:[#allocation39_spill] sm:$0xff] }
 0x360   : > { %2575 = vrot.lane.b32.xlu1 %v2498_v3, %s7076_s14  ;;  %v10766_v3 = vld [vmem:[#allocation22_spill] sm:$0xff] }
 0x361   : > { %3535 = vrot.lane.b32.xlu0 %v3394_v46, %s7076_s14  ;;  %v3963_v56 = vsel %vm3664_vm10, %v10766_v3, %v3080_v22  ;;  %v10768_v3 = vshrl.u32 %v9612_v61, 16 }
 0x362   : > { %6612 = vmatmul.mubr.msk.bf16.gmra.mrb[112].mxu1 %vm3664_vm10, %v3607_v59  ;;  %v2351_v28 = vpop.permute.xlu1 %2350  ;;  %v3680_v59 = vsel %vm3664_vm10, %v9001_v62, %v9682_v20  ;;  %v3609_v20 = vsel %vm670_vm1, %v3606_v11, %v3608_v60  ;;  %v3023_v11 = vrot.slane %v9755_v32, 2 }
 0x363   : > { %v3252_v41 = vpop.permute.xlu0 %3251  ;;  %6615 = vmatprep.mubr.msk.bf16.mxu1 %vm7072_vm2, %v10586_v2 }
 0x364   : > { %2209 = vrot.lane.b32.xlu1 %v2012_v52, %s7075_s30  ;;  %v4072_v6 = vsel %vm3743_vm11, %v3963_v56, %v3252_v41  ;;  %v3759_v52 = vsel %vm3743_vm11, %v3680_v59, %v2349_v17  ;;  %v2500_v17 = vsel %vm2254_vm6, %v2497_v16, %v2499_v9  ;;  %v2015_v56 = vor.u32 %v10768_v3, %v2011_v13 }
 0x365   : > { %3099 = vrot.lane.b32.xlu0 %v3022_v5, %s7075_s30  ;;  %v3845_v62 = vsel %vm3822_vm12, %v3759_v52, %v2556_v25  ;;  %v2019_v5 = vrot.slane %v2017_v0, 1  ;;  %v3398_v25 = vsel %vm3318_vm8, %v3393_v43, %v10767_v39  ;;  %v3610_v16 = vrot.slane %v9434_v47, 3  ;;  %v10770_v39 = vld [vmem:[#allocation37_spill] sm:$0xff] }
 0x366   : > { %v2558_v46 = vpop.permute.xlu1 %2557  ;;  %v3195_v43 = vrot.slane %v7583_v50, 2 }
 0x367   : > { %v3518_v4 = vpop.permute.xlu0 %3517  ;;  %v2020_v0 = vsel %vm1856_vm7, %v2015_v56, %v2019_v5  ;;  %v3611_v52 = vsel %vm670_vm1, %v3608_v60, %v3610_v16 }
 0x368   : > { %2370 = vrot.lane.b32.xlu1 %v2293_v19, %s7074_s29  ;;  %v4157_v22 = vsel %vm3822_vm12, %v4072_v6, %v3518_v4  ;;  %v2294_v4 = vrot.slane %v9675_v42, 1  ;;  %v3024_v19 = vsel %vm2985_vm9, %v3021_v48, %v3023_v11 }
 0x369   : > { %3271 = vrot.lane.b32.xlu0 %v3194_v27, %s7074_s29  ;;  %4601 = vmatprep.mubr.bf16.mxu0 %v4157_v22  ;;  %v10769_v27 = vld [vmem:[#allocation25_spill] sm:$0xff] }
 0x36a   : > { %4602 = vmatmul.mubr.bf16.gmra.mrb[200].mxu0 %v3845_v62  ;;  %6616 = vmatmul.mubr.msk.bf16.gmra.mrb[116].mxu1 %vm3664_vm10, %v3609_v20  ;;  %v2192_v15 = vpop.permute.xlu1 %2191  ;;  %v3682_v62 = vsel %vm3664_vm10, %v9042_v24, %v9737_v35  ;;  %v2295_v48 = vsel %vm2254_vm6, %v2292_v12, %v2294_v4  ;;  %v3612_v35 = vrot.slane %v9493_v55, 3 }
 0x36b   : > { %v3082_v41 = vpop.permute.xlu0 %3081  ;;  %6619 = vmatprep.mubr.msk.bf16.mxu1 %vm7072_vm2, %v10586_v2  ;;  %v3761_v60 = vsel %vm3743_vm11, %v3682_v62, %v2351_v28  ;;  %v3025_v28 = vrot.slane %v10770_v39, 2 }
 0x36c   : > { %2577 = vrot.lane.b32.xlu1 %v2500_v17, %s7076_s14  ;;  %v3966_v13 = vsel %vm3664_vm10, %v10769_v27, %v3082_v41  ;;  %v3196_v41 = vsel %vm2985_vm9, %v3193_v36, %v3195_v43  ;;  %v3848_v24 = vsel %vm3822_vm12, %v3761_v60, %v2558_v46  ;;  %v10771_v36 = vld [vmem:[#allocation42_spill] sm:$0xff]  ;;  %v3684_v60 = vsel %vm3664_vm10, %v9086_v51, %v2192_v15 }
 0x36d   : > { %3537 = vrot.lane.b32.xlu0 %v3398_v25, %s7076_s14  ;;  %v2501_v25 = vrot.slane %v10770_v39, 1 }
 0x36e   : > { %v2353_v59 = vpop.permute.xlu1 %2352 }
 0x36f   : > { %v3254_v6 = vpop.permute.xlu0 %3253 }
 0x370   : > { %2211 = vrot.lane.b32.xlu1 %v2020_v0, %s7075_s30  ;;  %v4074_v20 = vsel %vm3743_vm11, %v3966_v13, %v3254_v6  ;;  %v2502_v6 = vsel %vm2254_vm6, %v2499_v9, %v2501_v25  ;;  %v3613_v0 = vsel %vm670_vm1, %v3610_v16, %v3612_v35  ;;  %v10773_v13 = vld [vmem:[#allocation38_spill] sm:$0xff]  ;;  %v3026_v9 = vsel %vm2985_vm9, %v3023_v11, %v3025_v28 }
 0x371   : > { %3101 = vrot.lane.b32.xlu0 %v3024_v19, %s7075_s30  ;;  %v10772_v19 = vshrl.u32 %v9675_v42, 16  ;;  %v10774_v16 = vld [vmem:[#allocation26_spill] sm:$0xff] }
 0x372   : > { %6620 = vmatmul.mubr.msk.bf16.gmra.mrb[120].mxu1 %vm3664_vm10, %v3611_v52  ;;  %v2560_v22 = vpop.permute.xlu1 %2559 }
 0x373   : > { %v3520_v17 = vpop.permute.xlu0 %3519  ;;  %6623 = vmatprep.mubr.msk.bf16.mxu1 %vm7072_vm2, %v10586_v2  ;;  %v2023_v52 = vor.u32 %v10772_v19, %v2019_v5  ;;  %v3614_v5 = vrot.slane %v9551_v40, 3  ;;  %v10776_v19 = vld [vmem:[#allocation44_spill] sm:$0xff] }
 0x374   : > { %2372 = vrot.lane.b32.xlu1 %v2295_v48, %s7074_s29  ;;  %v4160_v3 = vsel %vm3822_vm12, %v4074_v20, %v3520_v17  ;;  %v3197_v20 = vrot.slane %v7617_v23, 2 }
 0x375   : > { %3273 = vrot.lane.b32.xlu0 %v3196_v41, %s7074_s29  ;;  %4609 = vmatprep.mubr.bf16.mxu0 %v4160_v3  ;;  %v2028_v62 = vsel %vm1856_vm7, %v2023_v52, %v10773_v13  ;;  %v3615_v15 = vsel %vm670_vm1, %v3612_v35, %v3614_v5  ;;  %v10779_v13 = vrot.slane %v10776_v19, 2 }
 0x376   : > { %4610 = vmatmul.mubr.bf16.gmra.mrb[204].mxu0 %v3848_v24  ;;  %v2194_v12 = vpop.permute.xlu1 %2193  ;;  %v10775_v24 = vrot.slane %v10765_v38, 1 }
 0x377   : > { %v3084_v56 = vpop.permute.xlu0 %3083 }
 0x378   : > { %2579 = vrot.lane.b32.xlu1 %v2502_v6, %s7076_s14  ;;  %v3969_v17 = vsel %vm3664_vm10, %v10774_v16, %v3084_v56  ;;  %v2297_v11 = vsel %vm2254_vm6, %v2294_v4, %v10775_v24  ;;  %v3763_v6 = vsel %vm3743_vm11, %v3684_v60, %v2353_v59  ;;  %v10777_v59 = vrot.slane %v10776_v19, 1 }
 0x379   : > { %3539 = vrot.lane.b32.xlu0 %v10771_v36, %s7076_s14  ;;  %v3198_v36 = vsel %vm2985_vm9, %v3195_v43, %v3197_v20  ;;  %v3851_v51 = vsel %vm3822_vm12, %v3763_v6, %v2560_v22  ;;  %v10778_v43 = vld [vmem:[#allocation45_spill] sm:$0xff]  ;;  %v3616_v22 = vrot.slane %v9612_v61, 3  ;;  %v3686_v60 = vsel %vm3664_vm10, %v9126_v53, %v2194_v12 }
 0x37a   : > { %6624 = vmatmul.mubr.msk.bf16.gmra.mrb[124].mxu1 %vm3664_vm10, %v3613_v0  ;;  %v2355_v46 = vpop.permute.xlu1 %2354  ;;  %v2504_v52 = vsel %vm2254_vm6, %v2501_v25, %v10777_v59  ;;  %v10781_v24 = vrot.slane %v7656_v8, 2  ;;  %v3618_v53 = vrot.slane %v9675_v42, 3 }
 0x37b   : > { %v3256_v27 = vpop.permute.xlu0 %3255  ;;  %6627 = vmatprep.mubr.msk.bf16.mxu1 %vm7072_vm2, %v10586_v2  ;;  %v3617_v25 = vsel %vm670_vm1, %v3614_v5, %v3616_v22 }
 0x37c   : > { %2213 = vrot.lane.b32.xlu1 %v2028_v62, %s7075_s30  ;;  %v4076_v41 = vsel %vm3743_vm11, %v3969_v17, %v3256_v27  ;;  %v3028_v62 = vsel %vm2985_vm9, %v3025_v28, %v10779_v13  ;;  %v3765_v28 = vsel %vm3743_vm11, %v3686_v60, %v2355_v46  ;;  %v3200_v5 = vsel %vm2985_vm9, %v3197_v20, %v10781_v24 }
 0x37d   : > { %3103 = vrot.lane.b32.xlu0 %v3026_v9, %s7075_s30  ;;  %v10780_v9 = vld [vmem:[#allocation28_spill] sm:$0xff]  ;;  %v3619_v46 = vsel %vm670_vm1, %v3616_v22, %v3618_v53 }
 0x37e   : > { %v2562_v48 = vpop.permute.xlu1 %2561 }
 0x37f   : > { %v3522_v3 = vpop.permute.xlu0 %3521  ;;  %v3854_v6 = vsel %vm3822_vm12, %v3765_v28, %v2562_v48  ;;  %v10783_v48 = vld [vmem:[#allocation30_spill] sm:$0xff] }
 0x380   : > { %2374 = vrot.lane.b32.xlu1 %v2297_v11, %s7074_s29  ;;  %v4163_v0 = vsel %vm3822_vm12, %v4076_v41, %v3522_v3 }
 0x381   : > { %3275 = vrot.lane.b32.xlu0 %v3198_v36, %s7074_s29  ;;  %4617 = vmatprep.mubr.bf16.mxu0 %v4163_v0  ;;  %v10782_v0 = vld [vmem:[#allocation46_spill] sm:$0xff] }
 0x382   : > { %4618 = vmatmul.mubr.bf16.gmra.mrb[208].mxu0 %v3851_v51  ;;  %6628 = vmatmul.mubr.msk.bf16.gmra.mrb[128].mxu1 %vm3664_vm10, %v3615_v15  ;;  %v2196_v56 = vpop.permute.xlu1 %2195  ;;  %v3620_v15 = vrot.slane %v10765_v38, 3 }
 0x383   : > { %v3086_v4 = vpop.permute.xlu0 %3085  ;;  %6631 = vmatprep.mubr.msk.bf16.mxu1 %vm7072_vm2, %v10586_v2  ;;  %v3688_v59 = vsel %vm3664_vm10, %v9172_v63, %v2196_v56  ;;  %v3622_v63 = vrot.slane %v7583_v50, 3 }
 0x384   : > { %2581 = vrot.lane.b32.xlu1 %v2504_v52, %s7076_s14  ;;  %v3972_v16 = vsel %vm3664_vm10, %v10780_v9, %v3086_v4 }
 0x385   : > { %3541 = vrot.lane.b32.xlu0 %v10778_v43, %s7076_s14 }
 0x386   : > { %v2357_v35 = vpop.permute.xlu1 %2356 }
 0x387   : > { %v3258_v27 = vpop.permute.xlu0 %3257  ;;  %v3767_v22 = vsel %vm3743_vm11, %v3688_v59, %v2357_v35  ;;  %v3623_v35 = vsel %vm670_vm1, %v3620_v15, %v3622_v63 }
 0x388   : > { %v4078_v41 = vsel %vm3743_vm11, %v3972_v16, %v3258_v27  ;;  %v10784_v16 = vld [vmem:[#allocation32_spill] sm:$0xff] }
 0x389   : > { %3105 = vrot.lane.b32.xlu0 %v3028_v62, %s7075_s30  ;;  %v3621_v62 = vsel %vm670_vm1, %v3618_v53, %v3620_v15 }
 0x38a   : > { %6632 = vmatmul.mubr.msk.bf16.gmra.mrb[132].mxu1 %vm3664_vm10, %v3617_v25  ;;  %v2564_v17 = vpop.permute.xlu1 %2563 }
 0x38b   : > { %v3524_v3 = vpop.permute.xlu0 %3523  ;;  %6635 = vmatprep.mubr.msk.bf16.mxu1 %vm7072_vm2, %v10586_v2  ;;  %v3857_v13 = vsel %vm3822_vm12, %v3767_v22, %v2564_v17 }
 0x38c   : > { %v4166_v11 = vsel %vm3822_vm12, %v4078_v41, %v3524_v3 }
 0x38d   : > { %3277 = vrot.lane.b32.xlu0 %v3200_v5, %s7074_s29  ;;  %4625 = vmatprep.mubr.bf16.mxu0 %v4166_v11  ;;  %v3624_v11 = vrot.slane %v7617_v23, 3  ;;  %s10092_s29 = scalar_lea.vmem %s10407_s5, %s6874_s27 }
 0x38e   : > { %4626 = vmatmul.mubr.bf16.gmra.mrb[212].mxu0 %v3854_v6  ;;  %v2198_v12 = vpop.permute.xlu1 %2197 }
 0x38f   : > { %v3088_v36 = vpop.permute.xlu0 %3087  ;;  %v3690_v41 = vsel %vm3664_vm10, %v9212_v21, %v2198_v12  ;;  %v3625_v21 = vsel %vm670_vm1, %v3622_v63, %v3624_v11 }
 0x390   : > { %v3975_v4 = vsel %vm3664_vm10, %v10783_v48, %v3088_v36 }
 0x391   : > { %3543 = vrot.lane.b32.xlu0 %v10782_v0, %s7076_s14  ;;  %v3626_v0 = vrot.slane %v7656_v8, 3 }
 0x392   : > { %6636 = vmatmul.mubr.msk.bf16.gmra.mrb[136].mxu1 %vm3664_vm10, %v3619_v46  ;;  %v2359_v20 = vpop.permute.xlu1 %2358  ;;  %v10785_v46 = vld [vmem:[#allocation34_spill] sm:$0xff] }
 0x393   : > { %v3260_v51 = vpop.permute.xlu0 %3259  ;;  %6639 = vmatprep.mubr.msk.bf16.mxu1 %vm7072_vm2, %v10586_v2  ;;  %v3769_v50 = vsel %vm3743_vm11, %v3690_v41, %v2359_v20 }
 0x394   : > { %v4080_v52 = vsel %vm3743_vm11, %v3975_v4, %v3260_v51 }
 0x396   : > { %v2566_v19 = vpop.permute.xlu1 %2565 }
 0x397   : > { %v3526_v43 = vpop.permute.xlu0 %3525  ;;  %v3860_v5 = vsel %vm3822_vm12, %v3769_v50, %v2566_v19  ;;  %v3632_v50 = vrot.slane %v7810_v7, 3 }
 0x398   : > { %v4169_v27 = vsel %vm3822_vm12, %v4080_v52, %v3526_v43  ;;  %v3627_v52 = vsel %vm670_vm1, %v3624_v11, %v3626_v0  ;;  %v10787_v11 = vld [vmem:[#allocation43_spill] sm:$0xff] }
 0x399   : > { %4633 = vmatprep.mubr.bf16.mxu0 %v4169_v27 }
 0x39a   : > { %4634 = vmatmul.mubr.bf16.gmra.mrb[216].mxu0 %v3857_v13  ;;  %6640 = vmatmul.mubr.msk.bf16.gmra.mrb[140].mxu1 %vm3664_vm10, %v3621_v62  ;;  %v2200_v38 = vpop.permute.xlu1 %2199  ;;  %v10786_v62 = vld [vmem:[#allocation40_spill] sm:$0xff] }
 0x39b   : > { %v3090_v25 = vpop.permute.xlu0 %3089  ;;  %6643 = vmatprep.mubr.msk.bf16.mxu1 %vm7072_vm2, %v10586_v2  ;;  %v3692_v23 = vsel %vm3664_vm10, %v9259_v1, %v2200_v38  ;;  %v3628_v1 = vrot.slane %v7710_v30, 3 }
 0x39c   : > { %v3978_v60 = vsel %vm3664_vm10, %v10784_v16, %v3090_v25 }
 0x39d   : > { %v3629_v13 = vsel %vm670_vm1, %v3626_v0, %v3628_v1 }
 0x39e   : > { %v2361_v56 = vpop.permute.xlu1 %2360 }
 0x39f   : > { %v3262_v9 = vpop.permute.xlu0 %3261  ;;  %v3771_v4 = vsel %vm3743_vm11, %v3692_v23, %v2361_v56 }
 0x3a0   : > { %v4082_v3 = vsel %vm3743_vm11, %v3978_v60, %v3262_v9  ;;  %v3630_v60 = vrot.slane %v7755_v10, 3 }
 0x3a2   : > { %6644 = vmatmul.mubr.msk.bf16.gmra.mrb[144].mxu1 %vm3664_vm10, %v3623_v35  ;;  %v2568_v17 = vpop.permute.xlu1 %2567 }
 0x3a3   : > { %v3528_v28 = vpop.permute.xlu0 %3527  ;;  %6647 = vmatprep.mubr.msk.bf16.mxu1 %vm7072_vm2, %v10586_v2  ;;  %v3863_v59 = vsel %vm3822_vm12, %v3771_v4, %v2568_v17 }
 0x3a4   : > { %v4172_v24 = vsel %vm3822_vm12, %v4082_v3, %v3528_v28 }
 0x3a5   : > { %4641 = vmatprep.mubr.bf16.mxu0 %v4172_v24  ;;  %v2776_v24 = vshrl.u32 %v9643_v14, 16 }
 0x3a6   : > { %4642 = vmatmul.mubr.bf16.gmra.mrb[220].mxu0 %v3860_v5  ;;  %v2202_v6 = vpop.permute.xlu1 %2201  ;;  %v2779_v5 = vshll.u32 %v9643_v14, 16 }
 0x3a7   : > { %v3092_v53 = vpop.permute.xlu0 %3091  ;;  %v3694_v63 = vsel %vm3664_vm10, %v9318_v37, %v2202_v6  ;;  %v3631_v37 = vsel %vm670_vm1, %v3628_v1, %v3630_v60  ;;  %v2778_v14 = vrot.slane %v2776_v24, 1 }
 0x3a8   : > { %v3981_v20 = vsel %vm3664_vm10, %v10785_v46, %v3092_v53  ;;  %v3633_v46 = vsel %vm670_vm1, %v3630_v60, %v3632_v50 }
 0x3aa   : > { %6648 = vmatmul.mubr.msk.bf16.gmra.mrb[148].mxu1 %vm3664_vm10, %v3625_v21  ;;  %v2363_v12 = vpop.permute.xlu1 %2362 }
 0x3ab   : > { %v3264_v36 = vpop.permute.xlu0 %3263  ;;  %6651 = vmatprep.mubr.msk.bf16.mxu1 %vm7072_vm2, %v10586_v2  ;;  %v3773_v30 = vsel %vm3743_vm11, %v3694_v63, %v2363_v12 }
 0x3ac   : > { %v4084_v15 = vsel %vm3743_vm11, %v3981_v20, %v3264_v36  ;;  %v2781_v20 = vrot.slane %v2779_v5, 2 }
 0x3ae   : > { %v2570_v51 = vpop.permute.xlu1 %2569 }
 0x3af   : > { %v3530_v48 = vpop.permute.xlu0 %3529  ;;  %v3866_v16 = vsel %vm3822_vm12, %v3773_v30, %v2570_v51 }
 0x3b0   : > { %v4175_v19 = vsel %vm3822_vm12, %v4084_v15, %v3530_v48  ;;  %v3634_v15 = vrot.slane %v10704_v34, 3 }
 0x3b1   : > { %4649 = vmatprep.mubr.bf16.mxu0 %v4175_v19  ;;  %v10788_v19 = vld [vmem:[#allocation41_spill] sm:$0xff] }
 0x3b2   : > { %4650 = vmatmul.mubr.bf16.gmra.mrb[224].mxu0 %v3863_v59  ;;  %6652 = vmatmul.mubr.msk.bf16.gmra.mrb[152].mxu1 %vm3664_vm10, %v3627_v52  ;;  %v2204_v8 = vpop.permute.xlu1 %2203  ;;  %v3635_v52 = vsel %vm670_vm1, %v3632_v50, %v3634_v15 }
 0x3b3   : > { %v3094_v43 = vpop.permute.xlu0 %3093  ;;  %6655 = vmatprep.mubr.msk.bf16.mxu1 %vm7072_vm2, %v10586_v2  ;;  %v3696_v53 = vsel %vm3664_vm10, %v9378_v29, %v2204_v8  ;;  %v2782_v29 = vor.u32 %v2781_v20, %v2778_v14  ;;  %v2785_v8 = vshrl.u32 %v9703_v26, 16 }
 0x3b4   : > { %v3984_v38 = vsel %vm3664_vm10, %v10786_v62, %v3094_v43  ;;  %v2788_v43 = vshll.u32 %v9703_v26, 16 }
 0x3b5   : > { %v2783_v59 = vsel %vm2622_vm5, %v10788_v19, %v2782_v29 }
 0x3b6   : > { %v2365_v22 = vpop.permute.xlu1 %2364  ;;  %v2790_v63 = vrot.slane %v2788_v43, 2 }
 0x3b7   : > { %v3266_v27 = vpop.permute.xlu0 %3265  ;;  %v3775_v36 = vsel %vm3743_vm11, %v3696_v53, %v2365_v22 }
 0x3b8   : > { %v4086_v56 = vsel %vm3743_vm11, %v3984_v38, %v3266_v27 }
 0x3ba   : > { %6656 = vmatmul.mubr.msk.bf16.gmra.mrb[0].mxu1 %vm3664_vm10, %v3629_v13  ;;  %v2572_v25 = vpop.permute.xlu1 %2571 }
 0x3bb   : > { %v3532_v9 = vpop.permute.xlu0 %3531  ;;  %6659 = vmatprep.mubr.msk.bf16.mxu1 %vm7072_vm2, %v10586_v2  ;;  %v3869_v7 = vsel %vm3822_vm12, %v3775_v36, %v2572_v25  ;;  %v2787_v25 = vrot.slane %v2785_v8, 1 }
 0x3bc   : > { %v4178_v35 = vsel %vm3822_vm12, %v4086_v56, %v3532_v9  ;;  %v3636_v56 = vrot.slane %v10708_v18, 3  ;;  %v2797_v18 = vshll.u32 %v9755_v32, 16 }
 0x3bd   : > { %4657 = vmatprep.mubr.bf16.mxu0 %v4178_v35  ;;  %v2791_v30 = vor.u32 %v2790_v63, %v2787_v25 }
 0x3be   : > { %4658 = vmatmul.mubr.bf16.gmra.mrb[228].mxu0 %v3866_v16  ;;  %v2206_v17 = vpop.permute.xlu1 %2205  ;;  %v3637_v35 = vsel %vm670_vm1, %v3634_v15, %v3636_v56 }
 0x3bf   : > { %v3096_v41 = vpop.permute.xlu0 %3095  ;;  %v3698_v27 = vsel %vm3664_vm10, %v9434_v47, %v2206_v17  ;;  %v2792_v17 = vsel %vm2622_vm5, %v2782_v29, %v2791_v30 }
 0x3c0   : > { %v3987_v10 = vsel %vm3664_vm10, %v10787_v11, %v3096_v41  ;;  %v3638_v41 = vrot.slane %v10711_v31, 3 }
 0x3c2   : > { %6660 = vmatmul.mubr.msk.bf16.gmra.mrb[4].mxu1 %vm3664_vm10, %v3631_v37  ;;  %v2367_v3 = vpop.permute.xlu1 %2366  ;;  %v2794_v37 = vshrl.u32 %v9755_v32, 16  ;;  %v2799_v32 = vrot.slane %v2797_v18, 2 }
 0x3c3   : > { %v3268_v28 = vpop.permute.xlu0 %3267  ;;  %6663 = vmatprep.mubr.msk.bf16.mxu1 %vm7072_vm2, %v10586_v2  ;;  %v3777_v62 = vsel %vm3743_vm11, %v3698_v27, %v2367_v3 }
 0x3c4   : > { %v4088_v21 = vsel %vm3743_vm11, %v3987_v10, %v3268_v28  ;;  %v2796_v53 = vrot.slane %v2794_v37, 1 }
 0x3c6   : > { %v2574_v6 = vpop.permute.xlu1 %2573 }
 0x3c7   : > { %v3534_v12 = vpop.permute.xlu0 %3533  ;;  %v3872_v26 = vsel %vm3822_vm12, %v3777_v62, %v2574_v6  ;;  %v3639_v6 = vsel %vm670_vm1, %v3636_v56, %v3638_v41 }
 0x3c8   : > { %v4181_v0 = vsel %vm3822_vm12, %v4088_v21, %v3534_v12  ;;  %v2800_v12 = vor.u32 %v2799_v32, %v2796_v53 }
 0x3c9   : > { %4665 = vmatprep.mubr.bf16.mxu0 %v4181_v0  ;;  %v3640_v0 = vrot.slane %v10714_v33, 3  ;;  %v2806_v33 = vshll.u32 %v10770_v39, 16 }
 0x3ca   : > { %4666 = vmatmul.mubr.bf16.gmra.mrb[232].mxu0 %v3869_v7  ;;  %6664 = vmatmul.mubr.msk.bf16.gmra.mrb[8].mxu1 %vm3664_vm10, %v3633_v46  ;;  %v2208_v51 = vpop.permute.xlu1 %2207 }
 0x3cb   : > { %v3098_v23 = vpop.permute.xlu0 %3097  ;;  %6667 = vmatprep.mubr.msk.bf16.mxu1 %vm7072_vm2, %v10586_v2  ;;  %v3700_v50 = vsel %vm3664_vm10, %v9493_v55, %v2208_v51  ;;  %v2801_v51 = vsel %vm2622_vm5, %v2791_v30, %v2800_v12  ;;  %v3641_v29 = vsel %vm670_vm1, %v3638_v41, %v3640_v0  ;;  %v2808_v25 = vrot.slane %v2806_v33, 2  ;;  %v10789_v33 = vld [vmem:[#allocation61_spill] sm:$0xff] }
 0x3cc   : > { %v3990_v1 = vsel %vm3664_vm10, %v2783_v59, %v3098_v23  ;;  %v2803_v59 = vshrl.u32 %v10770_v39, 16 }
 0x3ce   : > { %v2369_v48 = vpop.permute.xlu1 %2368 }
 0x3cf   : > { %v3270_v4 = vpop.permute.xlu0 %3269  ;;  %v3779_v11 = vsel %vm3743_vm11, %v3700_v50, %v2369_v48 }
 0x3d0   : > { %v4090_v34 = vsel %vm3743_vm11, %v3990_v1, %v3270_v4 }
 0x3d2   : > { %6668 = vmatmul.mubr.msk.bf16.gmra.mrb[12].mxu1 %vm3664_vm10, %v3635_v52  ;;  %v2576_v22 = vpop.permute.xlu1 %2575 }
 0x3d3   : > { %v3536_v13 = vpop.permute.xlu0 %3535  ;;  %6671 = vmatprep.mubr.msk.bf16.mxu1 %vm7072_vm2, %v10586_v2  ;;  %v3875_v31 = vsel %vm3822_vm12, %v3779_v11, %v2576_v22 }
 0x3d4   : > { %v4184_v38 = vsel %vm3822_vm12, %v4090_v34, %v3536_v13 }
 0x3d5   : > { %4673 = vmatprep.mubr.bf16.mxu0 %v4184_v38 }
 0x3d6   : > { %4674 = vmatmul.mubr.bf16.gmra.mrb[236].mxu0 %v3872_v26  ;;  %v2210_v9 = vpop.permute.xlu1 %2209  ;;  %v2805_v26 = vrot.slane %v2803_v59, 1 }
 0x3d7   : > { %v3100_v47 = vpop.permute.xlu0 %3099  ;;  %v3702_v52 = vsel %vm3664_vm10, %v9551_v40, %v2210_v9  ;;  %v3642_v40 = vrot.slane %v10717_v57, 3  ;;  %v3644_v57 = vrot.slane %v10720_v45, 3 }
 0x3d8   : > { %v3993_v3 = vsel %vm3664_vm10, %v2792_v17, %v3100_v47 }
 0x3d9   : > { %v3643_v30 = vsel %vm670_vm1, %v3640_v0, %v3642_v40 }
 0x3da   : > { %6672 = vmatmul.mubr.msk.bf16.gmra.mrb[16].mxu1 %vm3664_vm10, %v3637_v35  ;;  %v2371_v16 = vpop.permute.xlu1 %2370  ;;  %v2809_v35 = vor.u32 %v2808_v25, %v2805_v26 }
 0x3db   : > { %v3272_v60 = vpop.permute.xlu0 %3271  ;;  %6675 = vmatprep.mubr.msk.bf16.mxu1 %vm7072_vm2, %v10586_v2  ;;  %v3781_v22 = vsel %vm3743_vm11, %v3702_v52, %v2371_v16 }
 0x3dc   : > { %v4092_v24 = vsel %vm3743_vm11, %v3993_v3, %v3272_v60  ;;  %v2810_v3 = vsel %vm2622_vm5, %v2800_v12, %v2809_v35  ;;  %v2819_v52 = vsel %vm2622_vm5, %v2809_v35, %v10789_v33 }
 0x3de   : > { %v2578_v28 = vpop.permute.xlu1 %2577 }
 0x3df   : > { %v3538_v5 = vpop.permute.xlu0 %3537  ;;  %v3878_v62 = vsel %vm3822_vm12, %v3781_v22, %v2578_v28 }
 0x3e0   : > { %v4187_v10 = vsel %vm3822_vm12, %v4092_v24, %v3538_v5 }
 0x3e1   : > { %4681 = vmatprep.mubr.bf16.mxu0 %v4187_v10 }
 0x3e2   : > { %4682 = vmatmul.mubr.bf16.gmra.mrb[240].mxu0 %v3875_v31  ;;  %6676 = vmatmul.mubr.msk.bf16.gmra.mrb[20].mxu1 %vm3664_vm10, %v3639_v6  ;;  %v2212_v55 = vpop.permute.xlu1 %2211 }
 0x3e3   : > { %v3102_v21 = vpop.permute.xlu0 %3101  ;;  %6679 = vmatprep.mubr.msk.bf16.mxu1 %vm7072_vm2, %v10586_v2  ;;  %v3704_v31 = vsel %vm3664_vm10, %v9612_v61, %v2212_v55 }
 0x3e4   : > { %v3996_v15 = vsel %vm3664_vm10, %v2801_v51, %v3102_v21 }
 0x3e5   : > { %v4892_v36 = vpop.f32.mrb[72].mxu1 }
 0x3e6   : > { %v6573_v7 = vpop.f32.mrb[73].mxu1  ;;  %v2373_v48 = vpop.permute.xlu1 %2372 }
 0x3e7   : > { %v4895_v46 = vpop.f32.mrb[74].mxu1  ;;  %v3274_v14 = vpop.permute.xlu0 %3273  ;;  %v3783_v32 = vsel %vm3743_vm11, %v3704_v31, %v2373_v48  ;;  %v3645_v7 = vsel %vm670_vm1, %v3642_v40, %v3644_v57 }
 0x3e8   : > { %v6574_v20 = vpop.f32.mrb[75].mxu1  ;;  %v4094_v8 = vsel %vm3743_vm11, %v3996_v15, %v3274_v14 }
 0x3e9   : > { %v4547_v23 = vpop.f32.mrb[172].mxu0  ;;  %v3646_v20 = vrot.slane %v8320_v58, 3 }
 0x3ea   : > { %v4893_v4 = vadd.f32 %v4892_v36, %v4547_v23  ;;  %v4549_v19 = vpop.f32.mrb[173].mxu0  ;;  %6680 = vmatmul.mubr.msk.bf16.gmra.mrb[24].mxu1 %vm3664_vm10, %v3641_v29  ;;  %v2580_v47 = vpop.permute.xlu1 %2579 }
 0x3eb   : > { %v3540_v43 = vpop.permute.xlu0 %3539  ;;  %v4550_v1 = vpop.f32.mrb[174].mxu0  ;;  %6683 = vmatprep.mubr.msk.bf16.mxu1 %vm7072_vm2, %v10586_v2  ;;  %v3881_v61 = vsel %vm3822_vm12, %v3783_v32, %v2580_v47  ;;  %v10077_v32 = vld [vmem:[%s10406_s4] ss:$0 sm:$0xff] }
 0x3ec   : > { %5203 = vst.msk [vmem:[#allocation3] sm:$0xff] %vm3743_vm11, %v4893_v4  ;;  %v4896_v27 = vadd.f32 %v4895_v46, %v4550_v1  ;;  %v4552_v34 = vpop.f32.mrb[175].mxu0  ;;  %v4190_v13 = vsel %vm3822_vm12, %v4094_v8, %v3540_v43  ;;  %v3647_v4 = vsel %vm670_vm1, %v3644_v57, %v3646_v20 }
 0x3ed   : > { %4689 = vmatprep.mubr.bf16.mxu0 %v4190_v13  ;;  %v4900_v39 = vpop.f32.mrb[76].mxu1 }
 0x3ee   : > { %5204 = vst.msk [vmem:[#allocation3 + $0x8] sm:$0xff] %vm3743_vm11, %v4896_v27  ;;  %4690 = vmatmul.mubr.bf16.gmra.mrb[244].mxu0 %v3878_v62  ;;  %v6577_v38 = vpop.f32.mrb[77].mxu1  ;;  %v2214_v5 = vpop.permute.xlu1 %2213 }
 0x3ef   : > { %v4903_v63 = vpop.f32.mrb[78].mxu1  ;;  %v3104_v56 = vpop.permute.xlu0 %3103  ;;  %v3706_v34 = vsel %vm3664_vm10, %v9675_v42, %v2214_v5 }
 0x3f0   : > { %v6578_v9 = vpop.f32.mrb[79].mxu1  ;;  %v3999_v11 = vsel %vm3664_vm10, %v2810_v3, %v3104_v56 }
 0x3f2   : > { %6684 = vmatmul.mubr.msk.bf16.gmra.mrb[28].mxu1 %vm3664_vm10, %v3643_v30  ;;  %v2375_v46 = vpop.permute.xlu1 %2374 }
 0x3f3   : > { %v3276_v16 = vpop.permute.xlu0 %3275  ;;  %6687 = vmatprep.mubr.msk.bf16.mxu1 %vm7072_vm2, %v10586_v2  ;;  %v3785_v38 = vsel %vm3743_vm11, %v3706_v34, %v2375_v46 }
 0x3f4   : > { %v4096_v45 = vsel %vm3743_vm11, %v3999_v11, %v3276_v16  ;;  %v3650_v16 = vrot.slane %v8504_v49, 3 }
 0x3f5   : > { %v5281_v60 = vld [vmem:[#allocation3] ss:$2 sm:$0xff]  ;;  %v5359_v17 = vld [vmem:[#allocation3 + $0x1] ss:$2 sm:$0xff]  ;;  %v4555_v41 = vpop.f32.mrb[176].mxu0  ;;  %v4908_v37 = vpop.f32.mrb[80].mxu1 }
 0x3f6   : > { %v5436_v18 = vmax.f32 %v5281_v60, %v5359_v17  ;;  %v4901_v28 = vadd.f32 %v4900_v39, %v4555_v41  ;;  %v4557_v50 = vpop.f32.mrb[177].mxu0  ;;  %v6581_v24 = vpop.f32.mrb[81].mxu1 }
 0x3f7   : > { %v4911_v10 = vpop.f32.mrb[82].mxu1  ;;  %v3542_v6 = vpop.permute.xlu0 %3541 }
 0x3f8   : > { %5475 = vst.msk [vmem:[#allocation4] sm:$0xff] %vm3743_vm11, %v5436_v18  ;;  %5205 = vst.msk [vmem:[#allocation3 + $0x10] sm:$0xff] %vm3743_vm11, %v4901_v28  ;;  %v4558_v53 = vpop.f32.mrb[178].mxu0  ;;  %v6582_v36 = vpop.f32.mrb[83].mxu1  ;;  %v4193_v0 = vsel %vm3822_vm12, %v4096_v45, %v3542_v6  ;;  %v3652_v45 = vrot.slane %v8603_v44, 3 }
 0x3f9   : > { %v4904_v21 = vadd.f32 %v4903_v63, %v4558_v53  ;;  %v4560_v12 = vpop.f32.mrb[179].mxu0  ;;  %4697 = vmatprep.mubr.bf16.mxu0 %v4193_v0  ;;  %v2582_v1 = vpop.permute.xlu1 %2581  ;;  %v10790_v63 = vld [vmem:[#allocation59_spill] sm:$0xff] }
 0x3fa   : > { %6688 = vmatmul.mubr.msk.bf16.gmra.mrb[32].mxu1 %vm3664_vm10, %v3645_v7  ;;  %4698 = vmatmul.mubr.bf16.gmra.mrb[248].mxu0 %v3881_v61  ;;  %v3648_v56 = vrot.slane %v10790_v63, 3  ;;  %v3884_v42 = vsel %vm3822_vm12, %v3785_v38, %v2582_v1  ;;  %v3653_v46 = vsel %vm670_vm1, %v3650_v16, %v3652_v45 }
 0x3fb   : > { %5206 = vst.msk [vmem:[#allocation3 + $0x18] sm:$0xff] %vm3743_vm11, %v4904_v21  ;;  %6691 = vmatprep.mubr.msk.bf16.mxu1 %vm7072_vm2, %v10586_v2  ;;  %v3106_v55 = vpop.permute.xlu0 %3105 }
 0x3fc   : > { %v4002_v58 = vsel %vm3664_vm10, %v2819_v52, %v3106_v55  ;;  %v3649_v35 = vsel %vm670_vm1, %v3646_v20, %v3648_v56 }
 0x3fd   : > { %v4916_v14 = vpop.f32.mrb[84].mxu1 }
 0x3fe   : > { %v6585_v51 = vpop.f32.mrb[85].mxu1 }
 0x3ff   : > { %v4919_v23 = vpop.f32.mrb[86].mxu1  ;;  %v3278_v29 = vpop.permute.xlu0 %3277  ;;  %v5514_v53 = vld [vmem:[#allocation4] sm:$0xff] }
 0x400   : > { %v6586_v15 = vpop.f32.mrb[87].mxu1  ;;  %v4098_v13 = vsel %vm3743_vm11, %v4002_v58, %v3278_v29 }
 0x401   : > { %v4563_v48 = vpop.f32.mrb[180].mxu0 }
 0x402   : > { %v5283_v19 = vld [vmem:[#allocation3 + $0x10] ss:$2 sm:$0xff]  ;;  %v5361_v59 = vld [vmem:[#allocation3 + $0x11] ss:$2 sm:$0xff]  ;;  %v4909_v8 = vadd.f32 %v4908_v37, %v4563_v48  ;;  %v4565_v43 = vpop.f32.mrb[181].mxu0  ;;  %6692 = vmatmul.mubr.msk.bf16.gmra.mrb[36].mxu1 %vm3664_vm10, %v3647_v4 }
 0x403   : > { %v5437_v22 = vmax.f32 %v5283_v19, %v5361_v59  ;;  %v4566_v27 = vpop.f32.mrb[182].mxu0  ;;  %6695 = vmatprep.mubr.msk.bf16.mxu1 %vm7072_vm2, %v10586_v2  ;;  %v3544_v39 = vpop.permute.xlu0 %3543  ;;  %v3654_v19 = vrot.slane %v8652_v54, 3  ;;  %v10791_v54 = vld [vmem:[#allocation63_spill] sm:$0xff] }
 0x404   : > { %5207 = vst.msk [vmem:[#allocation3 + $0x20] sm:$0xff] %vm3743_vm11, %v4909_v8  ;;  %v4912_v62 = vadd.f32 %v4911_v10, %v4566_v27  ;;  %v4568_v40 = vpop.f32.mrb[183].mxu0  ;;  %v4196_v26 = vsel %vm3822_vm12, %v4098_v13, %v3544_v39  ;;  %v3651_v10 = vsel %vm670_vm1, %v3648_v56, %v3650_v16  ;;  %v3656_v27 = vrot.slane %v10791_v54, 3 }
 0x405   : > { %5476 = vst.msk [vmem:[#allocation4 + $0x8] sm:$0xff] %vm3743_vm11, %v5437_v22  ;;  %v4924_v25 = vpop.f32.mrb[88].mxu1  ;;  %4705 = vmatprep.mubr.bf16.mxu0 %v4196_v26  ;;  %v3655_v43 = vsel %vm670_vm1, %v3652_v45, %v3654_v19 }
 0x406   : > { %5208 = vst.msk [vmem:[#allocation3 + $0x28] sm:$0xff] %vm3743_vm11, %v4912_v62  ;;  %v6589_v9 = vpop.f32.mrb[89].mxu1  ;;  %4706 = vmatmul.mubr.bf16.gmra.mrb[252].mxu0 %v3884_v42  ;;  %v3657_v16 = vsel %vm670_vm1, %v3654_v19, %v3656_v27 }
 0x407   : > { %v4927_v47 = vpop.f32.mrb[90].mxu1 }
 0x408   : > { %v6590_v30 = vpop.f32.mrb[91].mxu1 }
 0x40a   : > { %6696 = vmatmul.mubr.msk.bf16.gmra.mrb[40].mxu1 %vm3664_vm10, %v3649_v35 }
 0x40b   : > { %6699 = vmatprep.mubr.msk.bf16.mxu1 %vm7072_vm2, %v10586_v2 }
 0x40c   : > { %v5515_v1 = vld [vmem:[#allocation4 + $0x8] sm:$0xf] }
 0x40d   : > { %v5285_v57 = vld [vmem:[#allocation3 + $0x20] ss:$2 sm:$0xff]  ;;  %v5363_v60 = vld [vmem:[#allocation3 + $0x21] ss:$2 sm:$0xff]  ;;  %v4571_v17 = vpop.f32.mrb[184].mxu0  ;;  %v10060_v41 = vpop.f32.mrb[92].mxu1 }
 0x40e   : > { %v5438_v37 = vmax.f32 %v5285_v57, %v5363_v60  ;;  %v4917_v18 = vadd.f32 %v4916_v14, %v4571_v17  ;;  %v4573_v3 = vpop.f32.mrb[185].mxu0  ;;  %v6593_v28 = vpop.f32.mrb[93].mxu1  ;;  %v10792_v17 = vld [vmem:[#allocation64_spill] sm:$0xff] }
 0x40f   : > { %v4574_v50 = vpop.f32.mrb[186].mxu0  ;;  %v10062_v24 = vpop.f32.mrb[94].mxu1 }
 0x410   : > { %5477 = vst.msk [vmem:[#allocation4 + $0x10] sm:$0xff] %vm3743_vm11, %v5438_v37  ;;  %5209 = vst.msk [vmem:[#allocation3 + $0x30] sm:$0xff] %vm3743_vm11, %v4917_v18  ;;  %v4920_v5 = vadd.f32 %v4919_v23, %v4574_v50  ;;  %v4576_v11 = vpop.f32.mrb[187].mxu0  ;;  %v6594_v49 = vpop.f32.mrb[95].mxu1 }
 0x412   : > { %5210 = vst.msk [vmem:[#allocation3 + $0x38] sm:$0xff] %vm3743_vm11, %v4920_v5  ;;  %6700 = vmatmul.mubr.msk.bf16.gmra.mrb[44].mxu1 %vm3664_vm10, %v3651_v10 }
 0x413   : > { %6703 = vmatprep.mubr.msk.bf16.mxu1 %vm7072_vm2, %v10586_v2 }
 0x415   : > { %v10071_v31 = vpop.f32.mrb[96].mxu1 }
 0x416   : > { %v6597_v6 = vpop.f32.mrb[97].mxu1 }
 0x417   : > { %v5516_v21 = vld [vmem:[#allocation4 + $0xd] sm:$0xff]  ;;  %v10079_v12 = vpop.f32.mrb[98].mxu1 }
 0x418   : > { %v5518_v36 = vmax.f32 %v5514_v53, %v5516_v21  ;;  %v6598_v0 = vpop.f32.mrb[99].mxu1 }
 0x419   : > { %v5287_v7 = vld [vmem:[#allocation3 + $0x30] ss:$2 sm:$0xff]  ;;  %v5365_v61 = vld [vmem:[#allocation3 + $0x31] ss:$2 sm:$0xff]  ;;  %v4579_v55 = vpop.f32.mrb[188].mxu0 }
 0x41a   : > { %v5526_v44 = vadd.f32 %v10077_v32, %v5518_v36  ;;  %v5439_v14 = vmax.f32 %v5287_v7, %v5365_v61  ;;  %v4925_v20 = vadd.f32 %v4924_v25, %v4579_v55  ;;  %v4581_v51 = vpop.f32.mrb[189].mxu0  ;;  %6704 = vmatmul.mubr.msk.bf16.gmra.mrb[48].mxu1 %vm3664_vm10, %v3653_v46  ;;  %v7059_v36 = vld [vmem:[#allocation2 + $0x148] sm:$0xff]  }
 0x41b   : > { %v4582_v23 = vpop.f32.mrb[190].mxu0  ;;  %6707 = vmatprep.mubr.msk.bf16.mxu1 %vm7072_vm2, %v10586_v2  ;;  %v3660_v0 = vrot.slane %v7059_v36, 3 }
 0x41c   : > { %v5528_v29 = vmax.f32 %v5526_v44, 0.0  ;;  %5478 = vst.msk [vmem:[#allocation4 + $0x18] sm:$0xff] %vm3743_vm11, %v5439_v14  ;;  %5211 = vst.msk [vmem:[#allocation3 + $0x40] sm:$0xff] %vm3743_vm11, %v4925_v20  ;;  %v4928_v15 = vadd.f32 %v4927_v47, %v4582_v23  ;;  %v4584_v48 = vpop.f32.mrb[191].mxu0 }
 0x41d   : > { %v10094_v4 = vpop.f32.mrb[100].mxu1  ;;  %v7060_v14 = vld [vmem:[#allocation2 + $0x150] ss:$0 sps:$4 sm:$0x77]  }
 0x41e   : > { %v6284_v59 = vpack.c.bf16 %v5528_v29, %v5528_v29  ;;  %5212 = vst.msk [vmem:[#allocation3 + $0x48] sm:$0xff] %vm3743_vm11, %v4928_v15  ;;  %v6601_v33 = vpop.f32.mrb[101].mxu1  ;;  %v3662_v20 = vrot.slane %v7060_v14, 3 }
 0x41f   : > { %v10098_v52 = vpop.f32.mrb[102].mxu1 }
 0x420   : > { %5539 = vst.msk [vmem:[%s10092_s29] sm:$0xf] %vm5538_vm13, %v6284_v59  ;;  %v6602_v8 = vpop.f32.mrb[103].mxu1 }
 0x422   : > { %6708 = vmatmul.mubr.msk.bf16.gmra.mrb[52].mxu1 %vm3664_vm10, %v3655_v43 }
 0x423   : > { %v5517_v22 = vld [vmem:[#allocation4 + $0x15] sm:$0xf]  ;;  %6711 = vmatprep.mubr.msk.bf16.mxu1 %vm7072_vm2, %v10586_v2 }
 0x424   : > { %v5519_v58 = vmax.f32 %v5515_v1, %v5517_v22 }
 0x425   : > { %v5289_v34 = vld [vmem:[#allocation3 + $0x40] ss:$2 sm:$0xff]  ;;  %v5367_v13 = vld [vmem:[#allocation3 + $0x41] ss:$2 sm:$0xff]  ;;  %v4587_v39 = vpop.f32.mrb[192].mxu0  ;;  %v10107_v62 = vpop.f32.mrb[104].mxu1 }
 0x426   : > { %v5527_v40 = vadd.f32 %v10077_v32, %v5519_v58  ;;  %v5440_v38 = vmax.f32 %v5289_v34, %v5367_v13  ;;  %v4933_v26 = vadd.f32 %v10060_v41, %v4587_v39  ;;  %v4589_v25 = vpop.f32.mrb[193].mxu0  ;;  %v6605_v63 = vpop.f32.mrb[105].mxu1  ;;  %v3658_v41 = vrot.slane %v10792_v17, 3 }
 0x427   : > { %v4590_v56 = vpop.f32.mrb[194].mxu0  ;;  %v10111_v42 = vpop.f32.mrb[106].mxu1 }
 0x428   : > { %v5529_v9 = vmax.f32 %v5527_v40, 0.0  ;;  %5479 = vst.msk [vmem:[#allocation4 + $0x20] sm:$0xff] %vm3743_vm11, %v5440_v38  ;;  %5213 = vst.msk [vmem:[#allocation3 + $0x50] sm:$0xff] %vm3743_vm11, %v4933_v26  ;;  %v4936_v47 = vadd.f32 %v10062_v24, %v4590_v56  ;;  %v4592_v30 = vpop.f32.mrb[195].mxu0  ;;  %v6606_v35 = vpop.f32.mrb[107].mxu1  ;;  %v3659_v5 = vsel %vm670_vm1, %v3656_v27, %v3658_v41  ;;  %v3661_v55 = vsel %vm670_vm1, %v3658_v41, %v3660_v0 }
 0x429   : > { %v3663_v27 = vsel %vm670_vm1, %v3660_v0, %v3662_v20  ;;  %vm5559_vm1 = vcmask 1045508  }
 0x42a   : > { %v6285_v57 = vpack.c.bf16 %v5529_v9, %v5529_v9  ;;  %5214 = vst.msk [vmem:[#allocation3 + $0x58] sm:$0xff] %vm3743_vm11, %v4936_v47  ;;  %6712 = vmatmul.mubr.msk.bf16.gmra.mrb[56].mxu1 %vm3664_vm10, %v3657_v16 }
 0x42b   : > { %6715 = vmatprep.mubr.msk.bf16.mxu1 %vm7072_vm2, %v10586_v2 }
 0x42c   : > { %5541 = vst.msk [vmem:[%s10092_s29 + $0x4] sm:$0x3] %vm5540_vm14, %v6285_v57 }
 0x42d   : > { %v10123_v60 = vpop.f32.mrb[108].mxu1 }
 0x42e   : > { %v6609_v37 = vpop.f32.mrb[109].mxu1 }
 0x42f   : > { %v10126_v18 = vpop.f32.mrb[110].mxu1  ;;  %v5542_v46 = vld [vmem:[#allocation4 + $0x1a] sm:$0xff]  ;;  %v5543_v40 = vld [vmem:[#allocation4 + $0x22] sm:$0xf] }
 0x430   : > { %v6610_v3 = vpop.f32.mrb[111].mxu1 }
 0x431   : > { %v5291_v28 = vld [vmem:[#allocation3 + $0x50] ss:$2 sm:$0xff]  ;;  %v5369_v50 = vld [vmem:[#allocation3 + $0x51] ss:$2 sm:$0xff]  ;;  %v4595_v24 = vpop.f32.mrb[196].mxu0 }
 0x432   : > { %v5441_v11 = vmax.f32 %v5291_v28, %v5369_v50  ;;  %v4941_v49 = vadd.f32 %v10071_v31, %v4595_v24  ;;  %v4597_v10 = vpop.f32.mrb[197].mxu0  ;;  %6716 = vmatmul.mubr.msk.bf16.gmra.mrb[60].mxu1 %vm3664_vm10, %v3659_v5 }
 0x433   : > { %v4598_v45 = vpop.f32.mrb[198].mxu0  ;;  %6719 = vmatprep.mubr.msk.bf16.mxu1 %vm7072_vm2, %v10586_v2 }
 0x434   : > { %5480 = vst.msk [vmem:[#allocation4 + $0x28] sm:$0xff] %vm3743_vm11, %v5441_v11  ;;  %5215 = vst.msk [vmem:[#allocation3 + $0x60] sm:$0xff] %vm3743_vm11, %v4941_v49  ;;  %v4944_v6 = vadd.f32 %v10079_v12, %v4598_v45  ;;  %v4600_v53 = vpop.f32.mrb[199].mxu0 }
 0x435   : > { %v10136_v21 = vpop.f32.mrb[112].mxu1 }
 0x436   : > { %5216 = vst.msk [vmem:[#allocation3 + $0x68] sm:$0xff] %vm3743_vm11, %v4944_v6  ;;  %v6613_v31 = vpop.f32.mrb[113].mxu1 }
 0x437   : > { %v10139_v7 = vpop.f32.mrb[114].mxu1 }
 0x438   : > { %v6614_v61 = vpop.f32.mrb[115].mxu1 }
 0x43a   : > { %6720 = vmatmul.mubr.msk.bf16.gmra.mrb[64].mxu1 %vm3664_vm10, %v3661_v55 }
 0x43b   : > { %v5544_v44 = vld [vmem:[#allocation4 + $0x27] sm:$0xff]  ;;  %6723 = vmatprep.mubr.msk.bf16.mxu1 %vm7072_vm2, %v10586_v2  ;;  %vm10171_vm2 = vmor %vm5558_vm0, %vm5559_vm1 }
 0x43c   : > { %v5546_v12 = vmax.f32 %v5542_v46, %v5544_v44 }
 0x43d   : > { %v5293_v51 = vld [vmem:[#allocation3 + $0x60] ss:$2 sm:$0xff]  ;;  %v5371_v23 = vld [vmem:[#allocation3 + $0x61] ss:$2 sm:$0xff]  ;;  %v4603_v29 = vpop.f32.mrb[200].mxu0  ;;  %v10145_v15 = vpop.f32.mrb[116].mxu1 }
 0x43e   : > { %v5548_v48 = vadd.f32 %v10077_v32, %v5546_v12  ;;  %v5442_v19 = vmax.f32 %v5293_v51, %v5371_v23  ;;  %v4949_v59 = vadd.f32 %v10094_v4, %v4603_v29  ;;  %v4605_v33 = vpop.f32.mrb[201].mxu0  ;;  %v6617_v8 = vpop.f32.mrb[117].mxu1 }
 0x43f   : > { %v4606_v43 = vpop.f32.mrb[202].mxu0  ;;  %v10149_v1 = vpop.f32.mrb[118].mxu1 }
 0x440   : > { %v5550_v2 = vmax.f32 %v5548_v48, 0.0  ;;  %5481 = vst.msk [vmem:[#allocation4 + $0x30] sm:$0xff] %vm3743_vm11, %v5442_v19  ;;  %5217 = vst.msk [vmem:[#allocation3 + $0x70] sm:$0xff] %vm3743_vm11, %v4949_v59  ;;  %v4952_v22 = vadd.f32 %v10098_v52, %v4606_v43  ;;  %v4608_v58 = vpop.f32.mrb[203].mxu0  ;;  %v6618_v54 = vpop.f32.mrb[119].mxu1 }
 0x442   : > { %v6286_v34 = vpack.c.bf16 %v5550_v2, %v5550_v2  ;;  %5218 = vst.msk [vmem:[#allocation3 + $0x78] sm:$0xff] %vm3743_vm11, %v4952_v22  ;;  %6724 = vmatmul.mubr.msk.bf16.gmra.mrb[68].mxu1 %vm3664_vm10, %v3663_v27 }
 0x444   : > { %v5561_v4 = vrot.slane %v6286_v34, 6 }
 0x445   : > { %v10157_v13 = vpop.f32.mrb[120].mxu1 }
 0x446   : > { %5568 = vst.msk [vmem:[%s10092_s29 + $0x4] sm:$0xc] %vm5567_vm15, %v5561_v4  ;;  %v6621_v39 = vpop.f32.mrb[121].mxu1  ;;  %v5562_v5 = vrot.slane %v5561_v4, 4 }
 0x447   : > { %v5545_v38 = vld [vmem:[#allocation4 + $0x2f] sm:$0xf]  ;;  %v10161_v26 = vpop.f32.mrb[122].mxu1 }
 0x448   : > { %v5547_v52 = vmax.f32 %v5543_v40, %v5545_v38  ;;  %v6622_v25 = vpop.f32.mrb[123].mxu1 }
 0x449   : > { %v5295_v63 = vld [vmem:[#allocation3 + $0x70] ss:$2 sm:$0xff]  ;;  %v5373_v56 = vld [vmem:[#allocation3 + $0x71] ss:$2 sm:$0xff]  ;;  %v4611_v9 = vpop.f32.mrb[204].mxu0 }
 0x44a   : > { %v5549_v47 = vadd.f32 %v10077_v32, %v5547_v52  ;;  %v5443_v30 = vmax.f32 %v5295_v63, %v5373_v56  ;;  %v4957_v35 = vadd.f32 %v10107_v62, %v4611_v9  ;;  %v4613_v16 = vpop.f32.mrb[205].mxu0 }
 0x44b   : > { %v4614_v57 = vpop.f32.mrb[206].mxu0 }
 0x44c   : > { %v5551_v17 = vmax.f32 %v5549_v47, 0.0  ;;  %5482 = vst.msk [vmem:[#allocation4 + $0x38] sm:$0xff] %vm3743_vm11, %v5443_v30  ;;  %5219 = vst.msk [vmem:[#allocation3 + $0x80] sm:$0xff] %vm3743_vm11, %v4957_v35  ;;  %v4960_v41 = vadd.f32 %v10111_v42, %v4614_v57  ;;  %v4616_v37 = vpop.f32.mrb[207].mxu0 }
 0x44d   : > { %v10168_v3 = vpop.f32.mrb[124].mxu1 }
 0x44e   : > { %v6287_v28 = vpack.c.bf16 %v5551_v17, %v5551_v17  ;;  %5220 = vst.msk [vmem:[#allocation3 + $0x88] sm:$0xff] %vm3743_vm11, %v4960_v41  ;;  %v6625_v50 = vpop.f32.mrb[125].mxu1 }
 0x44f   : > { %v10175_v24 = vpop.f32.mrb[126].mxu1 }
 0x450   : > { %v5563_v11 = vrot.slane %v6287_v28, 6  ;;  %v6626_v49 = vpop.f32.mrb[127].mxu1 }
 0x452   : > { %v5564_v10 = vsel %vm10171_vm2, %v5562_v5, %v5563_v11 }
 0x453   : > { %5569 = vst.msk [vmem:[%s10092_s29 + $0x8] sm:$0xf] %vm5538_vm13, %v5564_v10  ;;  %v5570_v34 = vld [vmem:[#allocation4 + $0x34] sm:$0xff]  ;;  %v5571_v4 = vld [vmem:[#allocation4 + $0x3c] sm:$0xf] }
 0x455   : > { %v5297_v42 = vld [vmem:[#allocation3 + $0x80] ss:$2 sm:$0xff]  ;;  %v5375_v45 = vld [vmem:[#allocation3 + $0x81] ss:$2 sm:$0xff]  ;;  %v4619_v6 = vpop.f32.mrb[208].mxu0  ;;  %v10181_v53 = vpop.f32.mrb[128].mxu1 }
 0x456   : > { %v5444_v36 = vmax.f32 %v5297_v42, %v5375_v45  ;;  %v4965_v0 = vadd.f32 %v10123_v60, %v4619_v6  ;;  %v4621_v31 = vpop.f32.mrb[209].mxu0  ;;  %v6629_v61 = vpop.f32.mrb[129].mxu1 }
 0x457   : > { %v4622_v55 = vpop.f32.mrb[210].mxu0  ;;  %v10184_v46 = vpop.f32.mrb[130].mxu1 }
 0x458   : > { %5483 = vst.msk [vmem:[#allocation4 + $0x40] sm:$0xff] %vm3743_vm11, %v5444_v36  ;;  %5221 = vst.msk [vmem:[#allocation3 + $0x90] sm:$0xff] %vm3743_vm11, %v4965_v0  ;;  %v4968_v44 = vadd.f32 %v10126_v18, %v4622_v55  ;;  %v4624_v12 = vpop.f32.mrb[211].mxu0  ;;  %v6630_v14 = vpop.f32.mrb[131].mxu1 }
 0x45a   : > { %5222 = vst.msk [vmem:[#allocation3 + $0x98] sm:$0xff] %vm3743_vm11, %v4968_v44 }
 0x45d   : > { %v10190_v20 = vpop.f32.mrb[132].mxu1 }
 0x45e   : > { %v6633_v51 = vpop.f32.mrb[133].mxu1 }
 0x45f   : > { %v10192_v23 = vpop.f32.mrb[134].mxu1 }
 0x460   : > { %v6634_v60 = vpop.f32.mrb[135].mxu1 }
 0x461   : > { %v5299_v29 = vld [vmem:[#allocation3 + $0x90] ss:$2 sm:$0xff]  ;;  %v5377_v48 = vld [vmem:[#allocation3 + $0x91] ss:$2 sm:$0xff]  ;;  %v4627_v19 = vpop.f32.mrb[212].mxu0 }
 0x462   : > { %v5445_v59 = vmax.f32 %v5299_v29, %v5377_v48  ;;  %v4973_v33 = vadd.f32 %v10136_v21, %v4627_v19  ;;  %v4629_v8 = vpop.f32.mrb[213].mxu0 }
 0x463   : > { %v4630_v43 = vpop.f32.mrb[214].mxu0 }
 0x464   : > { %5484 = vst.msk [vmem:[#allocation4 + $0x48] sm:$0xff] %vm3743_vm11, %v5445_v59  ;;  %5223 = vst.msk [vmem:[#allocation3 + $0xa0] sm:$0xff] %vm3743_vm11, %v4973_v33  ;;  %v4976_v18 = vadd.f32 %v10139_v7, %v4630_v43  ;;  %v4632_v2 = vpop.f32.mrb[215].mxu0 }
 0x465   : > { %v10198_v22 = vpop.f32.mrb[136].mxu1 }
 0x466   : > { %5224 = vst.msk [vmem:[#allocation3 + $0xa8] sm:$0xff] %vm3743_vm11, %v4976_v18  ;;  %v6637_v58 = vpop.f32.mrb[137].mxu1 }
 0x467   : > { %v10201_v54 = vpop.f32.mrb[138].mxu1 }
 0x468   : > { %v6638_v27 = vpop.f32.mrb[139].mxu1 }
 0x46b   : > { %v5572_v21 = vld [vmem:[#allocation4 + $0x41] sm:$0xff]  ;;  %v5573_v39 = vld [vmem:[#allocation4 + $0x49] sm:$0xf] }
 0x46c   : > { %v5574_v40 = vmax.f32 %v5570_v34, %v5572_v21  ;;  %v5575_v38 = vmax.f32 %v5571_v4, %v5573_v39 }
 0x46d   : > { %v5301_v52 = vld [vmem:[#allocation3 + $0xa0] ss:$2 sm:$0xff]  ;;  %v5379_v25 = vld [vmem:[#allocation3 + $0xa1] ss:$2 sm:$0xff]  ;;  %v4635_v63 = vpop.f32.mrb[216].mxu0  ;;  %v10203_v56 = vpop.f32.mrb[140].mxu1 }
 0x46e   : > { %v5576_v7 = vadd.f32 %v10077_v32, %v5574_v40  ;;  %v5577_v9 = vadd.f32 %v10077_v32, %v5575_v38  ;;  %v5446_v47 = vmax.f32 %v5301_v52, %v5379_v25  ;;  %v4981_v30 = vadd.f32 %v10145_v15, %v4635_v63  ;;  %v4637_v35 = vpop.f32.mrb[217].mxu0  ;;  %v6641_v16 = vpop.f32.mrb[141].mxu1 }
 0x46f   : > { %v4638_v57 = vpop.f32.mrb[218].mxu0  ;;  %v10208_v17 = vpop.f32.mrb[142].mxu1 }
 0x470   : > { %v5578_v41 = vmax.f32 %v5576_v7, 0.0  ;;  %v5579_v37 = vmax.f32 %v5577_v9, 0.0  ;;  %5485 = vst.msk [vmem:[#allocation4 + $0x50] sm:$0xff] %vm3743_vm11, %v5446_v47  ;;  %5225 = vst.msk [vmem:[#allocation3 + $0xb0] sm:$0xff] %vm3743_vm11, %v4981_v30  ;;  %v4984_v28 = vadd.f32 %v10149_v1, %v4638_v57  ;;  %v4640_v50 = vpop.f32.mrb[219].mxu0  ;;  %v6642_v5 = vpop.f32.mrb[143].mxu1 }
 0x472   : > { %v6288_v11 = vpack.c.bf16 %v5578_v41, %v5578_v41  ;;  %v6289_v49 = vpack.c.bf16 %v5579_v37, %v5579_v37  ;;  %5226 = vst.msk [vmem:[#allocation3 + $0xb8] sm:$0xff] %vm3743_vm11, %v4984_v28 }
 0x474   : > { %5588 = vst.msk [vmem:[%s10092_s29 + $0xc] sm:$0xf] %vm5538_vm13, %v6288_v11 }
 0x475   : > { %5589 = vst.msk [vmem:[%s10092_s29 + $0x10] sm:$0x3] %vm5540_vm14, %v6289_v49  ;;  %v10218_v15 = vpop.f32.mrb[144].mxu1 }
 0x476   : > { %v6645_v10 = vpop.f32.mrb[145].mxu1 }
 0x477   : > { %v10220_v42 = vpop.f32.mrb[146].mxu1  ;;  %v5590_v21 = vld [vmem:[#allocation4 + $0x4e] sm:$0xff] }
 0x478   : > { %v6646_v45 = vpop.f32.mrb[147].mxu1 }
 0x479   : > { %v5303_v6 = vld [vmem:[#allocation3 + $0xb0] ss:$2 sm:$0xff]  ;;  %v5381_v36 = vld [vmem:[#allocation3 + $0xb1] ss:$2 sm:$0xff]  ;;  %v4643_v0 = vpop.f32.mrb[220].mxu0 }
 0x47a   : > { %v5447_v1 = vmax.f32 %v5303_v6, %v5381_v36  ;;  %v4989_v31 = vadd.f32 %v10157_v13, %v4643_v0  ;;  %v4645_v61 = vpop.f32.mrb[221].mxu0 }
 0x47b   : > { %v4646_v55 = vpop.f32.mrb[222].mxu0 }
 0x47c   : > { %5486 = vst.msk [vmem:[#allocation4 + $0x58] sm:$0xff] %vm3743_vm11, %v5447_v1  ;;  %5227 = vst.msk [vmem:[#allocation3 + $0xc0] sm:$0xff] %vm3743_vm11, %v4989_v31  ;;  %v4992_v44 = vadd.f32 %v10161_v26, %v4646_v55  ;;  %v4648_v12 = vpop.f32.mrb[223].mxu0 }
 0x47d   : > { %v10226_v14 = vpop.f32.mrb[148].mxu1 }
 0x47e   : > { %5228 = vst.msk [vmem:[#allocation3 + $0xc8] sm:$0xff] %vm3743_vm11, %v4992_v44  ;;  %v6649_v51 = vpop.f32.mrb[149].mxu1 }
 0x47f   : > { %v10229_v60 = vpop.f32.mrb[150].mxu1 }
 0x480   : > { %v6650_v29 = vpop.f32.mrb[151].mxu1 }
 0x483   : > { %v5591_v39 = vld [vmem:[#allocation4 + $0x56] sm:$0xf] }
 0x485   : > { %v5305_v48 = vld [vmem:[#allocation3 + $0xc0] ss:$2 sm:$0xff]  ;;  %v5383_v19 = vld [vmem:[#allocation3 + $0xc1] ss:$2 sm:$0xff]  ;;  %v4651_v13 = vpop.f32.mrb[224].mxu0  ;;  %v10231_v59 = vpop.f32.mrb[152].mxu1 }
 0x486   : > { %v5448_v33 = vmax.f32 %v5305_v48, %v5383_v19  ;;  %v4997_v8 = vadd.f32 %v10168_v3, %v4651_v13  ;;  %v4653_v43 = vpop.f32.mrb[225].mxu0  ;;  %v6653_v18 = vpop.f32.mrb[153].mxu1 }
 0x487   : > { %v4654_v26 = vpop.f32.mrb[226].mxu0  ;;  %v10234_v2 = vpop.f32.mrb[154].mxu1 }
 0x488   : > { %5487 = vst.msk [vmem:[#allocation4 + $0x60] sm:$0xff] %vm3743_vm11, %v5448_v33  ;;  %5229 = vst.msk [vmem:[#allocation3 + $0xd0] sm:$0xff] %vm3743_vm11, %v4997_v8  ;;  %v5000_v58 = vadd.f32 %v10175_v24, %v4654_v26  ;;  %v4656_v27 = vpop.f32.mrb[227].mxu0  ;;  %v6654_v34 = vpop.f32.mrb[155].mxu1 }
 0x48a   : > { %5230 = vst.msk [vmem:[#allocation3 + $0xd8] sm:$0xff] %vm3743_vm11, %v5000_v58 }
 0x48d   : > { %v5060_v4 = vpop.f32.mrb[0].mxu1 }
 0x48e   : > { %5245 = vst.msk [vmem:[#allocation3 + $0x150] sm:$0xff] %vm3743_vm11, %v5060_v4  ;;  %v6657_v3 = vpop.f32.mrb[1].mxu1 }
 0x48f   : > { %v5592_v40 = vld [vmem:[#allocation4 + $0x5b] sm:$0xff]  ;;  %v5593_v38 = vld [vmem:[#allocation4 + $0x63] sm:$0xf]  ;;  %v5063_v52 = vpop.f32.mrb[2].mxu1 }
 0x490   : > { %v5594_v25 = vmax.f32 %v5590_v21, %v5592_v40  ;;  %v5595_v63 = vmax.f32 %v5591_v39, %v5593_v38  ;;  %5246 = vst.msk [vmem:[#allocation3 + $0x158] sm:$0xff] %vm3743_vm11, %v5063_v52  ;;  %v6658_v7 = vpop.f32.mrb[3].mxu1 }
 0x491   : > { %v5307_v9 = vld [vmem:[#allocation3 + $0xd0] ss:$2 sm:$0xff]  ;;  %v5385_v24 = vld [vmem:[#allocation3 + $0xd1] ss:$2 sm:$0xff]  ;;  %v4659_v47 = vpop.f32.mrb[228].mxu0 }
 0x492   : > { %v5596_v30 = vadd.f32 %v10077_v32, %v5594_v25  ;;  %v5597_v35 = vadd.f32 %v10077_v32, %v5595_v63  ;;  %v5449_v16 = vmax.f32 %v5307_v9, %v5385_v24  ;;  %v5005_v57 = vadd.f32 %v10181_v53, %v4659_v47  ;;  %v4661_v41 = vpop.f32.mrb[229].mxu0 }
 0x493   : > { %v4662_v37 = vpop.f32.mrb[230].mxu0 }
 0x494   : > { %v5598_v28 = vmax.f32 %v5596_v30, 0.0  ;;  %v5599_v50 = vmax.f32 %v5597_v35, 0.0  ;;  %5488 = vst.msk [vmem:[#allocation4 + $0x68] sm:$0xff] %vm3743_vm11, %v5449_v16  ;;  %5231 = vst.msk [vmem:[#allocation3 + $0xe0] sm:$0xff] %vm3743_vm11, %v5005_v57  ;;  %v5008_v5 = vadd.f32 %v10184_v46, %v4662_v37  ;;  %v4664_v11 = vpop.f32.mrb[231].mxu0 }
 0x495   : > { %v5068_v49 = vpop.f32.mrb[4].mxu1 }
 0x496   : > { %v6290_v10 = vpack.c.bf16 %v5598_v28, %v5598_v28  ;;  %v6291_v45 = vpack.c.bf16 %v5599_v50, %v5599_v50  ;;  %5232 = vst.msk [vmem:[#allocation3 + $0xe8] sm:$0xff] %vm3743_vm11, %v5008_v5  ;;  %5247 = vst.msk [vmem:[#allocation3 + $0x160] sm:$0xff] %vm3743_vm11, %v5068_v49  ;;  %v6661_v53 = vpop.f32.mrb[5].mxu1 }
 0x497   : > { %v5323_v6 = vld [vmem:[#allocation3 + $0x150] ss:$2 sm:$0xff]  ;;  %v5401_v36 = vld [vmem:[#allocation3 + $0x151] ss:$2 sm:$0xff]  ;;  %v5071_v0 = vpop.f32.mrb[6].mxu1 }
 0x498   : > { %v5606_v1 = vrot.slane %v6290_v10, 6  ;;  %v5457_v31 = vmax.f32 %v5323_v6, %v5401_v36  ;;  %5248 = vst.msk [vmem:[#allocation3 + $0x168] sm:$0xff] %vm3743_vm11, %v5071_v0  ;;  %v6662_v61 = vpop.f32.mrb[7].mxu1  ;;  %v5608_v55 = vrot.slane %v6291_v45, 6 }
 0x49a   : > { %v5607_v46 = vrot.slane %v5606_v1, 4  ;;  %5612 = vst.msk [vmem:[%s10092_s29 + $0x10] sm:$0xc] %vm5567_vm15, %v5606_v1 }
 0x49b   : > { %5496 = vst.msk [vmem:[#allocation4 + $0xa8] sm:$0xff] %vm3743_vm11, %v5457_v31  ;;  %v5614_v11 = vld [vmem:[#allocation4 + $0x68] sm:$0xff] }
 0x49c   : > { %v5609_v44 = vsel %vm10171_vm2, %v5607_v46, %v5608_v55 }
 0x49d   : > { %5613 = vst.msk [vmem:[%s10092_s29 + $0x14] sm:$0xf] %vm5538_vm13, %v5609_v44  ;;  %v5309_v12 = vld [vmem:[#allocation3 + $0xe0] ss:$2 sm:$0xff]  ;;  %v5387_v51 = vld [vmem:[#allocation3 + $0xe1] ss:$2 sm:$0xff] }
 0x49e   : > { %v4667_v29 = vpop.f32.mrb[232].mxu0  ;;  %v5076_v48 = vpop.f32.mrb[8].mxu1  ;;  %v5450_v19 = vmax.f32 %v5309_v12, %v5387_v51 }
 0x49f   : > { %v5013_v13 = vadd.f32 %v10190_v20, %v4667_v29  ;;  %5249 = vst.msk [vmem:[#allocation3 + $0x170] sm:$0xff] %vm3743_vm11, %v5076_v48  ;;  %v4669_v33 = vpop.f32.mrb[233].mxu0  ;;  %v6665_v8 = vpop.f32.mrb[9].mxu1  ;;  %v5325_v43 = vld [vmem:[#allocation3 + $0x160] ss:$2 sm:$0xff] }
 0x4a0   : > { %v5403_v18 = vld [vmem:[#allocation3 + $0x161] ss:$2 sm:$0xff]  ;;  %v4670_v26 = vpop.f32.mrb[234].mxu0  ;;  %v5079_v58 = vpop.f32.mrb[10].mxu1  ;;  %5489 = vst.msk [vmem:[#allocation4 + $0x70] sm:$0xff] %vm3743_vm11, %v5450_v19 }
 0x4a1   : > { %v5458_v27 = vmax.f32 %v5325_v43, %v5403_v18  ;;  %5233 = vst.msk [vmem:[#allocation3 + $0xf0] sm:$0xff] %vm3743_vm11, %v5013_v13  ;;  %v5016_v34 = vadd.f32 %v10192_v23, %v4670_v26  ;;  %5250 = vst.msk [vmem:[#allocation3 + $0x178] sm:$0xff] %vm3743_vm11, %v5079_v58  ;;  %v4672_v4 = vpop.f32.mrb[235].mxu0  ;;  %v6666_v21 = vpop.f32.mrb[11].mxu1 }
 0x4a3   : > { %5497 = vst.msk [vmem:[#allocation4 + $0xb0] sm:$0xff] %vm3743_vm11, %v5458_v27  ;;  %5234 = vst.msk [vmem:[#allocation3 + $0xf8] sm:$0xff] %vm3743_vm11, %v5016_v34 }
 0x4a5   : > { %v5084_v20 = vpop.f32.mrb[12].mxu1 }
 0x4a6   : > { %5251 = vst.msk [vmem:[#allocation3 + $0x180] sm:$0xff] %vm3743_vm11, %v5084_v20  ;;  %v6669_v3 = vpop.f32.mrb[13].mxu1 }
 0x4a7   : > { %v5087_v52 = vpop.f32.mrb[14].mxu1  ;;  %v5615_v8 = vld [vmem:[#allocation4 + $0x70] sm:$0xf] }
 0x4a8   : > { %v5327_v39 = vld [vmem:[#allocation3 + $0x170] ss:$2 sm:$0xff]  ;;  %v5405_v40 = vld [vmem:[#allocation3 + $0x171] ss:$2 sm:$0xff]  ;;  %5252 = vst.msk [vmem:[#allocation3 + $0x188] sm:$0xff] %vm3743_vm11, %v5087_v52  ;;  %v6670_v23 = vpop.f32.mrb[15].mxu1 }
 0x4a9   : > { %v5459_v38 = vmax.f32 %v5327_v39, %v5405_v40  ;;  %v4675_v7 = vpop.f32.mrb[236].mxu0 }
 0x4aa   : > { %v5311_v25 = vld [vmem:[#allocation3 + $0xf0] ss:$2 sm:$0xff]  ;;  %v5389_v63 = vld [vmem:[#allocation3 + $0xf1] ss:$2 sm:$0xff]  ;;  %v5021_v24 = vadd.f32 %v10198_v22, %v4675_v7  ;;  %v4677_v47 = vpop.f32.mrb[237].mxu0 }
 0x4ab   : > { %5498 = vst.msk [vmem:[#allocation4 + $0xb8] sm:$0xff] %vm3743_vm11, %v5459_v38  ;;  %v5451_v9 = vmax.f32 %v5311_v25, %v5389_v63  ;;  %v4678_v30 = vpop.f32.mrb[238].mxu0 }
 0x4ac   : > { %5235 = vst.msk [vmem:[#allocation3 + $0x100] sm:$0xff] %vm3743_vm11, %v5021_v24  ;;  %v5024_v35 = vadd.f32 %v10201_v54, %v4678_v30  ;;  %v4680_v16 = vpop.f32.mrb[239].mxu0 }
 0x4ad   : > { %5490 = vst.msk [vmem:[#allocation4 + $0x78] sm:$0xff] %vm3743_vm11, %v5451_v9  ;;  %v5092_v57 = vpop.f32.mrb[16].mxu1 }
 0x4ae   : > { %5253 = vst.msk [vmem:[#allocation3 + $0x190] sm:$0xff] %vm3743_vm11, %v5092_v57  ;;  %v6673_v41 = vpop.f32.mrb[17].mxu1  ;;  %5236 = vst.msk [vmem:[#allocation3 + $0x108] sm:$0xff] %vm3743_vm11, %v5024_v35 }
 0x4af   : > { %v5095_v37 = vpop.f32.mrb[18].mxu1  ;;  %v5329_v28 = vld [vmem:[#allocation3 + $0x180] ss:$2 sm:$0xff]  ;;  %v5407_v50 = vld [vmem:[#allocation3 + $0x181] ss:$2 sm:$0xff] }
 0x4b0   : > { %5254 = vst.msk [vmem:[#allocation3 + $0x198] sm:$0xff] %vm3743_vm11, %v5095_v37  ;;  %v6674_v22 = vpop.f32.mrb[19].mxu1  ;;  %v5460_v5 = vmax.f32 %v5329_v28, %v5407_v50 }
 0x4b2   : > { %5499 = vst.msk [vmem:[#allocation4 + $0xc0] sm:$0xff] %vm3743_vm11, %v5460_v5  ;;  %v5678_v58 = vld [vmem:[#allocation4 + $0xb6] sm:$0xff] }
 0x4b4   : > { %v5616_v49 = vld [vmem:[#allocation4 + $0x75] sm:$0xff] }
 0x4b5   : > { %v5618_v10 = vmax.f32 %v5614_v11, %v5616_v49  ;;  %v4683_v54 = vpop.f32.mrb[240].mxu0  ;;  %v5100_v45 = vpop.f32.mrb[20].mxu1  ;;  %v5313_v53 = vld [vmem:[#allocation3 + $0x100] ss:$2 sm:$0xff]  ;;  %v5391_v6 = vld [vmem:[#allocation3 + $0x101] ss:$2 sm:$0xff] }
 0x4b6   : > { %v5029_v36 = vadd.f32 %v10203_v56, %v4683_v54  ;;  %5255 = vst.msk [vmem:[#allocation3 + $0x1a0] sm:$0xff] %vm3743_vm11, %v5100_v45  ;;  %v4685_v0 = vpop.f32.mrb[241].mxu0  ;;  %v6677_v1 = vpop.f32.mrb[21].mxu1  ;;  %v5452_v61 = vmax.f32 %v5313_v53, %v5391_v6 }
 0x4b7   : > { %v5620_v31 = vadd.f32 %v10077_v32, %v5618_v10  ;;  %v5331_v46 = vld [vmem:[#allocation3 + $0x190] ss:$2 sm:$0xff]  ;;  %v5409_v55 = vld [vmem:[#allocation3 + $0x191] ss:$2 sm:$0xff]  ;;  %v4686_v44 = vpop.f32.mrb[242].mxu0  ;;  %v5103_v12 = vpop.f32.mrb[22].mxu1 }
 0x4b8   : > { %v5461_v51 = vmax.f32 %v5331_v46, %v5409_v55  ;;  %5237 = vst.msk [vmem:[#allocation3 + $0x110] sm:$0xff] %vm3743_vm11, %v5029_v36  ;;  %v5032_v29 = vadd.f32 %v10208_v17, %v4686_v44  ;;  %5256 = vst.msk [vmem:[#allocation3 + $0x1a8] sm:$0xff] %vm3743_vm11, %v5103_v12  ;;  %v4688_v56 = vpop.f32.mrb[243].mxu0  ;;  %v6678_v48 = vpop.f32.mrb[23].mxu1 }
 0x4b9   : > { %v5622_v19 = vmax.f32 %v5620_v31, 0.0  ;;  %5491 = vst.msk [vmem:[#allocation4 + $0x80] sm:$0xff] %vm3743_vm11, %v5452_v61  ;;  %v5679_v27 = vld [vmem:[#allocation4 + $0xbe] sm:$0xf] }
 0x4ba   : > { %5500 = vst.msk [vmem:[#allocation4 + $0xc8] sm:$0xff] %vm3743_vm11, %v5461_v51  ;;  %5238 = vst.msk [vmem:[#allocation3 + $0x118] sm:$0xff] %vm3743_vm11, %v5032_v29 }
 0x4bb   : > { %v6292_v13 = vpack.c.bf16 %v5622_v19, %v5622_v19 }
 0x4bd   : > { %5632 = vst.msk [vmem:[%s10092_s29 + $0x18] sm:$0xf] %vm5538_vm13, %v6292_v13  ;;  %v5108_v33 = vpop.f32.mrb[24].mxu1 }
 0x4be   : > { %5257 = vst.msk [vmem:[#allocation3 + $0x1b0] sm:$0xff] %vm3743_vm11, %v5108_v33  ;;  %v6681_v43 = vpop.f32.mrb[25].mxu1 }
 0x4bf   : > { %v5333_v17 = vld [vmem:[#allocation3 + $0x1a0] ss:$2 sm:$0xff]  ;;  %v5411_v18 = vld [vmem:[#allocation3 + $0x1a1] ss:$2 sm:$0xff]  ;;  %v5111_v26 = vpop.f32.mrb[26].mxu1 }
 0x4c0   : > { %v5617_v34 = vld [vmem:[#allocation4 + $0x7d] sm:$0xf]  ;;  %v5462_v4 = vmax.f32 %v5333_v17, %v5411_v18  ;;  %5258 = vst.msk [vmem:[#allocation3 + $0x1b8] sm:$0xff] %vm3743_vm11, %v5111_v26  ;;  %v6682_v21 = vpop.f32.mrb[27].mxu1 }
 0x4c1   : > { %v5619_v20 = vmax.f32 %v5615_v8, %v5617_v34  ;;  %v5680_v3 = vld [vmem:[#allocation4 + $0xc3] sm:$0xff]  ;;  %v5681_v39 = vld [vmem:[#allocation4 + $0xcb] sm:$0xf]  ;;  %v4691_v38 = vpop.f32.mrb[244].mxu0 }
 0x4c2   : > { %v5315_v40 = vld [vmem:[#allocation3 + $0x110] ss:$2 sm:$0xff]  ;;  %v5682_v52 = vmax.f32 %v5678_v58, %v5680_v3  ;;  %v5683_v25 = vmax.f32 %v5679_v27, %v5681_v39  ;;  %v5393_v23 = vld [vmem:[#allocation3 + $0x111] ss:$2 sm:$0xff]  ;;  %5501 = vst.msk [vmem:[#allocation4 + $0xd0] sm:$0xff] %vm3743_vm11, %v5462_v4  ;;  %v5037_v63 = vadd.f32 %v10218_v15, %v4691_v38  ;;  %v4693_v7 = vpop.f32.mrb[245].mxu0 }
 0x4c3   : > { %v5621_v9 = vadd.f32 %v10077_v32, %v5619_v20  ;;  %v5453_v24 = vmax.f32 %v5315_v40, %v5393_v23  ;;  %v4694_v47 = vpop.f32.mrb[246].mxu0 }
 0x4c4   : > { %v5684_v30 = vadd.f32 %v10077_v32, %v5682_v52  ;;  %v5685_v35 = vadd.f32 %v10077_v32, %v5683_v25  ;;  %5239 = vst.msk [vmem:[#allocation3 + $0x120] sm:$0xff] %vm3743_vm11, %v5037_v63  ;;  %v5040_v16 = vadd.f32 %v10220_v42, %v4694_v47  ;;  %v4696_v57 = vpop.f32.mrb[247].mxu0 }
 0x4c5   : > { %v5623_v41 = vmax.f32 %v5621_v9, 0.0  ;;  %5492 = vst.msk [vmem:[#allocation4 + $0x88] sm:$0xff] %vm3743_vm11, %v5453_v24  ;;  %v5116_v37 = vpop.f32.mrb[28].mxu1 }
 0x4c6   : > { %v5686_v15 = vmax.f32 %v5684_v30, 0.0  ;;  %v5687_v28 = vmax.f32 %v5685_v35, 0.0  ;;  %5240 = vst.msk [vmem:[#allocation3 + $0x128] sm:$0xff] %vm3743_vm11, %v5040_v16  ;;  %5259 = vst.msk [vmem:[#allocation3 + $0x1c0] sm:$0xff] %vm3743_vm11, %v5116_v37  ;;  %v6685_v50 = vpop.f32.mrb[29].mxu1 }
 0x4c7   : > { %v6293_v22 = vpack.c.bf16 %v5623_v41, %v5623_v41  ;;  %v5335_v5 = vld [vmem:[#allocation3 + $0x1b0] ss:$2 sm:$0xff]  ;;  %v5413_v11 = vld [vmem:[#allocation3 + $0x1b1] ss:$2 sm:$0xff]  ;;  %v5119_v49 = vpop.f32.mrb[30].mxu1 }
 0x4c8   : > { %v6298_v10 = vpack.c.bf16 %v5686_v15, %v5686_v15  ;;  %v6299_v42 = vpack.c.bf16 %v5687_v28, %v5687_v28  ;;  %v5463_v54 = vmax.f32 %v5335_v5, %v5413_v11  ;;  %5260 = vst.msk [vmem:[#allocation3 + $0x1c8] sm:$0xff] %vm3743_vm11, %v5119_v49  ;;  %v6686_v45 = vpop.f32.mrb[31].mxu1 }
 0x4c9   : > { %5633 = vst.msk [vmem:[%s10092_s29 + $0x1c] sm:$0x3] %vm5540_vm14, %v6293_v22 }
 0x4ca   : > { %v5694_v53 = vrot.slane %v6298_v10, 6  ;;  %5502 = vst.msk [vmem:[#allocation4 + $0xd8] sm:$0xff] %vm3743_vm11, %v5463_v54  ;;  %v5696_v36 = vrot.slane %v6299_v42, 6  ;;  %v10338_v54 = vld [vmem:[%s10406_s4] ss:$0 sm:$0xff] }
 0x4cc   : > { %v5695_v6 = vrot.slane %v5694_v53, 4  ;;  %5700 = vst.msk [vmem:[%s10092_s29 + $0x28] sm:$0xc] %vm5567_vm15, %v5694_v53  ;;  %v5635_v10 = vld [vmem:[#allocation4 + $0x8a] sm:$0xf] }
 0x4cd   : > { %v5317_v0 = vld [vmem:[#allocation3 + $0x120] ss:$2 sm:$0xff]  ;;  %v5395_v1 = vld [vmem:[#allocation3 + $0x121] ss:$2 sm:$0xff]  ;;  %v5124_v31 = vpop.f32.mrb[32].mxu1  ;;  %v4699_v55 = vpop.f32.mrb[248].mxu0 }
 0x4ce   : > { %v5697_v61 = vsel %vm10171_vm2, %v5695_v6, %v5696_v36  ;;  %v5454_v46 = vmax.f32 %v5317_v0, %v5395_v1  ;;  %5261 = vst.msk [vmem:[#allocation3 + $0x1d0] sm:$0xff] %vm3743_vm11, %v5124_v31  ;;  %v6689_v44 = vpop.f32.mrb[33].mxu1  ;;  %v5045_v29 = vadd.f32 %v10226_v14, %v4699_v55  ;;  %v4701_v56 = vpop.f32.mrb[249].mxu0  ;;  %v5634_v14 = vld [vmem:[#allocation4 + $0x82] sm:$0xff] }
 0x4cf   : > { %5701 = vst.msk [vmem:[%s10092_s29 + $0x2c] sm:$0xf] %vm5538_vm13, %v5697_v61  ;;  %v5337_v12 = vld [vmem:[#allocation3 + $0x1c0] ss:$2 sm:$0xff]  ;;  %v5415_v51 = vld [vmem:[#allocation3 + $0x1c1] ss:$2 sm:$0xff] }
 0x4d0   : > { %v5127_v48 = vpop.f32.mrb[34].mxu1  ;;  %5493 = vst.msk [vmem:[#allocation4 + $0x90] sm:$0xff] %vm3743_vm11, %v5454_v46  ;;  %v5464_v19 = vmax.f32 %v5337_v12, %v5415_v51  ;;  %v4702_v13 = vpop.f32.mrb[250].mxu0  ;;  %5241 = vst.msk [vmem:[#allocation3 + $0x130] sm:$0xff] %vm3743_vm11, %v5045_v29 }
 0x4d1   : > { %5262 = vst.msk [vmem:[#allocation3 + $0x1d8] sm:$0xff] %vm3743_vm11, %v5127_v48  ;;  %v6690_v33 = vpop.f32.mrb[35].mxu1  ;;  %v5048_v8 = vadd.f32 %v10229_v60, %v4702_v13  ;;  %v4704_v43 = vpop.f32.mrb[251].mxu0  ;;  %v5702_v60 = vld [vmem:[#allocation4 + $0xd0] sm:$0xff]  ;;  %v5703_v5 = vld [vmem:[#allocation4 + $0xd8] sm:$0xf] }
 0x4d2   : > { %5503 = vst.msk [vmem:[#allocation4 + $0xe0] sm:$0xff] %vm3743_vm11, %v5464_v19 }
 0x4d3   : > { %5242 = vst.msk [vmem:[#allocation3 + $0x138] sm:$0xff] %vm3743_vm11, %v5048_v8 }
 0x4d5   : > { %v5132_v17 = vpop.f32.mrb[36].mxu1 }
 0x4d6   : > { %5263 = vst.msk [vmem:[#allocation3 + $0x1e0] sm:$0xff] %vm3743_vm11, %v5132_v17  ;;  %v6693_v18 = vpop.f32.mrb[37].mxu1  ;;  %v5660_v17 = vld [vmem:[#allocation4 + $0xa9] sm:$0xff] }
 0x4d7   : > { %v5636_v26 = vld [vmem:[#allocation4 + $0x8f] sm:$0xff]  ;;  %v5135_v34 = vpop.f32.mrb[38].mxu1 }
 0x4d8   : > { %v5339_v58 = vld [vmem:[#allocation3 + $0x1d0] ss:$2 sm:$0xff]  ;;  %v5417_v27 = vld [vmem:[#allocation3 + $0x1d1] ss:$2 sm:$0xff]  ;;  %v5638_v4 = vmax.f32 %v5634_v14, %v5636_v26  ;;  %5264 = vst.msk [vmem:[#allocation3 + $0x1e8] sm:$0xff] %vm3743_vm11, %v5135_v34  ;;  %v6694_v20 = vpop.f32.mrb[39].mxu1 }
 0x4d9   : > { %v5465_v21 = vmax.f32 %v5339_v58, %v5417_v27  ;;  %v5704_v3 = vld [vmem:[#allocation4 + $0xdd] sm:$0xff]  ;;  %v4707_v25 = vpop.f32.mrb[252].mxu0  ;;  %v5661_v27 = vld [vmem:[#allocation4 + $0xb1] sm:$0xf] }
 0x4da   : > { %v5640_v39 = vadd.f32 %v10077_v32, %v5638_v4  ;;  %v5706_v40 = vmax.f32 %v5702_v60, %v5704_v3  ;;  %v5319_v38 = vld [vmem:[#allocation3 + $0x130] ss:$2 sm:$0xff]  ;;  %v5397_v52 = vld [vmem:[#allocation3 + $0x131] ss:$2 sm:$0xff]  ;;  %v5053_v63 = vadd.f32 %v10231_v59, %v4707_v25  ;;  %v4709_v7 = vpop.f32.mrb[253].mxu0 }
 0x4db   : > { %5504 = vst.msk [vmem:[#allocation4 + $0xe8] sm:$0xff] %vm3743_vm11, %v5465_v21  ;;  %v5455_v23 = vmax.f32 %v5319_v38, %v5397_v52  ;;  %v4710_v47 = vpop.f32.mrb[254].mxu0 }
 0x4dc   : > { %v5642_v9 = vmax.f32 %v5640_v39, 0.0  ;;  %v5708_v24 = vadd.f32 %v10077_v32, %v5706_v40  ;;  %5243 = vst.msk [vmem:[#allocation3 + $0x140] sm:$0xff] %vm3743_vm11, %v5053_v63  ;;  %v5056_v30 = vadd.f32 %v10234_v2, %v4710_v47  ;;  %v4712_v35 = vpop.f32.mrb[255].mxu0 }
 0x4dd   : > { %5494 = vst.msk [vmem:[#allocation4 + $0x98] sm:$0xff] %vm3743_vm11, %v5455_v23  ;;  %v5140_v16 = vpop.f32.mrb[40].mxu1 }
 0x4de   : > { %v6294_v57 = vpack.c.bf16 %v5642_v9, %v5642_v9  ;;  %v5710_v41 = vmax.f32 %v5708_v24, 0.0  ;;  %5265 = vst.msk [vmem:[#allocation3 + $0x1f0] sm:$0xff] %vm3743_vm11, %v5140_v16  ;;  %v6697_v59 = vpop.f32.mrb[41].mxu1  ;;  %5244 = vst.msk [vmem:[#allocation3 + $0x148] sm:$0xff] %vm3743_vm11, %v5056_v30 }
 0x4df   : > { %v5341_v37 = vld [vmem:[#allocation3 + $0x1e0] ss:$2 sm:$0xff]  ;;  %v5419_v15 = vld [vmem:[#allocation3 + $0x1e1] ss:$2 sm:$0xff]  ;;  %v5143_v32 = vpop.f32.mrb[42].mxu1 }
 0x4e0   : > { %v5650_v28 = vrot.slane %v6294_v57, 6  ;;  %v6300_v50 = vpack.c.bf16 %v5710_v41, %v5710_v41  ;;  %v5466_v22 = vmax.f32 %v5341_v37, %v5419_v15  ;;  %5266 = vst.msk [vmem:[#allocation3 + $0x1f8] sm:$0xff] %vm3743_vm11, %v5143_v32  ;;  %v6698_v2 = vpop.f32.mrb[43].mxu1 }
 0x4e2   : > { %v5705_v11 = vld [vmem:[#allocation4 + $0xe5] sm:$0xf]  ;;  %5656 = vst.msk [vmem:[%s10092_s29 + $0x1c] sm:$0xc] %vm5567_vm15, %v5650_v28  ;;  %v5651_v13 = vrot.slane %v5650_v28, 4 }
 0x4e3   : > { %5720 = vst.msk [vmem:[%s10092_s29 + $0x30] sm:$0xf] %vm5538_vm13, %v6300_v50  ;;  %v5707_v49 = vmax.f32 %v5703_v5, %v5705_v11 }
 0x4e4   : > { %5505 = vst.msk [vmem:[#allocation4 + $0xf0] sm:$0xff] %vm3743_vm11, %v5466_v22  ;;  %v5637_v42 = vld [vmem:[#allocation4 + $0x97] sm:$0xf] }
 0x4e5   : > { %v5709_v45 = vadd.f32 %v10338_v54, %v5707_v49  ;;  %v5639_v53 = vmax.f32 %v5635_v10, %v5637_v42  ;;  %v5148_v6 = vpop.f32.mrb[44].mxu1  ;;  %v5321_v0 = vld [vmem:[#allocation3 + $0x140] ss:$2 sm:$0xff]  ;;  %v5399_v1 = vld [vmem:[#allocation3 + $0x141] ss:$2 sm:$0xff] }
 0x4e6   : > { %5267 = vst.msk [vmem:[#allocation3 + $0x200] sm:$0xff] %vm3743_vm11, %v5148_v6  ;;  %v6701_v31 = vpop.f32.mrb[45].mxu1  ;;  %v5456_v46 = vmax.f32 %v5321_v0, %v5399_v1 }
 0x4e7   : > { %v5711_v36 = vmax.f32 %v5709_v45, 0.0  ;;  %v5641_v61 = vadd.f32 %v10338_v54, %v5639_v53  ;;  %v5343_v55 = vld [vmem:[#allocation3 + $0x1f0] ss:$2 sm:$0xff]  ;;  %v5421_v44 = vld [vmem:[#allocation3 + $0x1f1] ss:$2 sm:$0xff]  ;;  %v5151_v12 = vpop.f32.mrb[46].mxu1 }
 0x4e8   : > { %v5467_v29 = vmax.f32 %v5343_v55, %v5421_v44  ;;  %5268 = vst.msk [vmem:[#allocation3 + $0x208] sm:$0xff] %vm3743_vm11, %v5151_v12  ;;  %v6702_v56 = vpop.f32.mrb[47].mxu1  ;;  %5495 = vst.msk [vmem:[#allocation4 + $0xa0] sm:$0xff] %vm3743_vm11, %v5456_v46 }
 0x4e9   : > { %v6301_v51 = vpack.c.bf16 %v5711_v36, %v5711_v36  ;;  %v5643_v48 = vmax.f32 %v5641_v61, 0.0 }
 0x4ea   : > { %5506 = vst.msk [vmem:[#allocation4 + $0xf8] sm:$0xff] %vm3743_vm11, %v5467_v29 }
 0x4eb   : > { %5721 = vst.msk [vmem:[%s10092_s29 + $0x34] sm:$0x3] %vm5540_vm14, %v6301_v51  ;;  %v6295_v19 = vpack.c.bf16 %v5643_v48, %v5643_v48  ;;  %v5722_v60 = vld [vmem:[#allocation4 + $0xea] sm:$0xff]  ;;  %v5723_v32 = vld [vmem:[#allocation4 + $0xf2] sm:$0xf] }
 0x4ed   : > { %v5652_v33 = vrot.slane %v6295_v19, 6  ;;  %v5156_v8 = vpop.f32.mrb[48].mxu1 }
 0x4ee   : > { %5269 = vst.msk [vmem:[#allocation3 + $0x210] sm:$0xff] %vm3743_vm11, %v5156_v8  ;;  %v6705_v43 = vpop.f32.mrb[49].mxu1 }
 0x4ef   : > { %v5653_v14 = vsel %vm10171_vm2, %v5651_v13, %v5652_v33  ;;  %v5345_v18 = vld [vmem:[#allocation3 + $0x200] ss:$2 sm:$0xff]  ;;  %v5423_v26 = vld [vmem:[#allocation3 + $0x201] ss:$2 sm:$0xff]  ;;  %v5159_v58 = vpop.f32.mrb[50].mxu1 }
 0x4f0   : > { %5657 = vst.msk [vmem:[%s10092_s29 + $0x20] sm:$0xf] %vm5538_vm13, %v5653_v14  ;;  %v5658_v34 = vld [vmem:[#allocation4 + $0x9c] sm:$0xff]  ;;  %v5659_v4 = vld [vmem:[#allocation4 + $0xa4] sm:$0xf]  ;;  %v5468_v21 = vmax.f32 %v5345_v18, %v5423_v26  ;;  %v6706_v20 = vpop.f32.mrb[51].mxu1 }
 0x4f1   : > { %5270 = vst.msk [vmem:[#allocation3 + $0x218] sm:$0xff] %vm3743_vm11, %v5159_v58  ;;  %v5662_v3 = vmax.f32 %v5658_v34, %v5660_v17  ;;  %v5663_v39 = vmax.f32 %v5659_v4, %v5661_v27  ;;  %v5724_v40 = vld [vmem:[#allocation4 + $0xf7] sm:$0xff] }
 0x4f2   : > { %v5726_v38 = vmax.f32 %v5722_v60, %v5724_v40  ;;  %5507 = vst.msk [vmem:[#allocation4 + $0x100] sm:$0xff] %vm3743_vm11, %v5468_v21 }
 0x4f3   : > { %v5664_v52 = vadd.f32 %v10338_v54, %v5662_v3  ;;  %v5665_v25 = vadd.f32 %v10338_v54, %v5663_v39 }
 0x4f4   : > { %v5728_v23 = vadd.f32 %v10338_v54, %v5726_v38 }
 0x4f5   : > { %v5666_v63 = vmax.f32 %v5664_v52, 0.0  ;;  %v5667_v7 = vmax.f32 %v5665_v25, 0.0  ;;  %v5164_v9 = vpop.f32.mrb[52].mxu1 }
 0x4f6   : > { %v5730_v24 = vmax.f32 %v5728_v23, 0.0  ;;  %5271 = vst.msk [vmem:[#allocation3 + $0x220] sm:$0xff] %vm3743_vm11, %v5164_v9  ;;  %v6709_v47 = vpop.f32.mrb[53].mxu1 }
 0x4f7   : > { %v6296_v30 = vpack.c.bf16 %v5666_v63, %v5666_v63  ;;  %v6297_v35 = vpack.c.bf16 %v5667_v7, %v5667_v7  ;;  %v5167_v41 = vpop.f32.mrb[54].mxu1 }
 0x4f8   : > { %v5347_v16 = vld [vmem:[#allocation3 + $0x210] ss:$2 sm:$0xff]  ;;  %v5425_v57 = vld [vmem:[#allocation3 + $0x211] ss:$2 sm:$0xff]  ;;  %v6302_v59 = vpack.c.bf16 %v5730_v24, %v5730_v24  ;;  %5272 = vst.msk [vmem:[#allocation3 + $0x228] sm:$0xff] %vm3743_vm11, %v5167_v41  ;;  %v6710_v15 = vpop.f32.mrb[55].mxu1 }
 0x4f9   : > { %v5469_v37 = vmax.f32 %v5347_v16, %v5425_v57  ;;  %5676 = vst.msk [vmem:[%s10092_s29 + $0x24] sm:$0xf] %vm5538_vm13, %v6296_v30  ;;  %v5725_v28 = vld [vmem:[#allocation4 + $0xff] sm:$0xf] }
 0x4fa   : > { %5677 = vst.msk [vmem:[%s10092_s29 + $0x28] sm:$0x3] %vm5540_vm14, %v6297_v35  ;;  %v5738_v50 = vrot.slane %v6302_v59, 6  ;;  %v5727_v22 = vmax.f32 %v5723_v32, %v5725_v28 }
 0x4fb   : > { %5508 = vst.msk [vmem:[#allocation4 + $0x108] sm:$0xff] %vm3743_vm11, %v5469_v37 }
 0x4fc   : > { %5744 = vst.msk [vmem:[%s10092_s29 + $0x34] sm:$0xc] %vm5567_vm15, %v5738_v50  ;;  %v5729_v2 = vadd.f32 %v10338_v54, %v5727_v22  ;;  %v5739_v0 = vrot.slane %v5738_v50, 4 }
 0x4fd   : > { %v5172_v5 = vpop.f32.mrb[56].mxu1 }
 0x4fe   : > { %v5731_v11 = vmax.f32 %v5729_v2, 0.0  ;;  %5273 = vst.msk [vmem:[#allocation3 + $0x230] sm:$0xff] %vm3743_vm11, %v5172_v5  ;;  %v6713_v49 = vpop.f32.mrb[57].mxu1 }
 0x4ff   : > { %v5349_v10 = vld [vmem:[#allocation3 + $0x220] ss:$2 sm:$0xff]  ;;  %v5427_v42 = vld [vmem:[#allocation3 + $0x221] ss:$2 sm:$0xff]  ;;  %v5175_v45 = vpop.f32.mrb[58].mxu1 }
 0x500   : > { %v6303_v53 = vpack.c.bf16 %v5731_v11, %v5731_v11  ;;  %v5470_v6 = vmax.f32 %v5349_v10, %v5427_v42  ;;  %5274 = vst.msk [vmem:[#allocation3 + $0x238] sm:$0xff] %vm3743_vm11, %v5175_v45  ;;  %v6714_v36 = vpop.f32.mrb[59].mxu1 }
 0x502   : > { %v5740_v1 = vrot.slane %v6303_v53, 6  ;;  %5509 = vst.msk [vmem:[#allocation4 + $0x110] sm:$0xff] %vm3743_vm11, %v5470_v6  ;;  %v5746_v8 = vld [vmem:[#allocation4 + $0x104] sm:$0xff]  ;;  %v5747_v14 = vld [vmem:[#allocation4 + $0x10c] sm:$0xf] }
 0x504   : > { %v5741_v31 = vsel %vm10171_vm2, %v5739_v0, %v5740_v1 }
 0x505   : > { %5745 = vst.msk [vmem:[%s10092_s29 + $0x38] sm:$0xf] %vm5538_vm13, %v5741_v31  ;;  %v5180_v61 = vpop.f32.mrb[60].mxu1 }
 0x506   : > { %5275 = vst.msk [vmem:[#allocation3 + $0x240] sm:$0xff] %vm3743_vm11, %v5180_v61  ;;  %v6717_v46 = vpop.f32.mrb[61].mxu1 }
 0x507   : > { %v5351_v55 = vld [vmem:[#allocation3 + $0x230] ss:$2 sm:$0xff]  ;;  %v5429_v44 = vld [vmem:[#allocation3 + $0x231] ss:$2 sm:$0xff]  ;;  %v5183_v12 = vpop.f32.mrb[62].mxu1 }
 0x508   : > { %v5471_v51 = vmax.f32 %v5351_v55, %v5429_v44  ;;  %5276 = vst.msk [vmem:[#allocation3 + $0x248] sm:$0xff] %vm3743_vm11, %v5183_v12  ;;  %v6718_v29 = vpop.f32.mrb[63].mxu1 }
 0x50a   : > { %5510 = vst.msk [vmem:[#allocation4 + $0x118] sm:$0xff] %vm3743_vm11, %v5471_v51 }
 0x50d   : > { %v5188_v56 = vpop.f32.mrb[64].mxu1 }
 0x50e   : > { %5277 = vst.msk [vmem:[#allocation3 + $0x250] sm:$0xff] %vm3743_vm11, %v5188_v56  ;;  %v6721_v48 = vpop.f32.mrb[65].mxu1 }
 0x50f   : > { %v5353_v19 = vld [vmem:[#allocation3 + $0x240] ss:$2 sm:$0xff]  ;;  %v5431_v13 = vld [vmem:[#allocation3 + $0x241] ss:$2 sm:$0xff]  ;;  %v5191_v33 = vpop.f32.mrb[66].mxu1 }
 0x510   : > { %v5472_v43 = vmax.f32 %v5353_v19, %v5431_v13  ;;  %5278 = vst.msk [vmem:[#allocation3 + $0x258] sm:$0xff] %vm3743_vm11, %v5191_v33  ;;  %v6722_v17 = vpop.f32.mrb[67].mxu1 }
 0x511   : > { %v5748_v18 = vld [vmem:[#allocation4 + $0x111] sm:$0xff]  ;;  %v5749_v26 = vld [vmem:[#allocation4 + $0x119] sm:$0xf] }
 0x512   : > { %v5750_v58 = vmax.f32 %v5746_v8, %v5748_v18  ;;  %v5751_v27 = vmax.f32 %v5747_v14, %v5749_v26  ;;  %5511 = vst.msk [vmem:[#allocation4 + $0x120] sm:$0xff] %vm3743_vm11, %v5472_v43 }
 0x514   : > { %v5752_v34 = vadd.f32 %v10338_v54, %v5750_v58  ;;  %v5753_v4 = vadd.f32 %v10338_v54, %v5751_v27 }
 0x515   : > { %v5196_v21 = vpop.f32.mrb[68].mxu1 }
 0x516   : > { %v5754_v20 = vmax.f32 %v5752_v34, 0.0  ;;  %v5755_v60 = vmax.f32 %v5753_v4, 0.0  ;;  %5279 = vst.msk [vmem:[#allocation3 + $0x260] sm:$0xff] %vm3743_vm11, %v5196_v21  ;;  %v6725_v3 = vpop.f32.mrb[69].mxu1 }
 0x517   : > { %v5355_v39 = vld [vmem:[#allocation3 + $0x250] ss:$2 sm:$0xff]  ;;  %v5433_v40 = vld [vmem:[#allocation3 + $0x251] ss:$2 sm:$0xff]  ;;  %v5199_v38 = vpop.f32.mrb[70].mxu1 }
 0x518   : > { %v6304_v52 = vpack.c.bf16 %v5754_v20, %v5754_v20  ;;  %v6305_v25 = vpack.c.bf16 %v5755_v60, %v5755_v60  ;;  %v5473_v23 = vmax.f32 %v5355_v39, %v5433_v40  ;;  %5280 = vst.msk [vmem:[#allocation3 + $0x268] sm:$0xff] %vm3743_vm11, %v5199_v38  ;;  %v6726_v63 = vpop.f32.mrb[71].mxu1 }
 0x519   : > { %v5766_v47 = vld [vmem:[#allocation4 + $0x11e] sm:$0xff] }
 0x51a   : > { %5764 = vst.msk [vmem:[%s10092_s29 + $0x3c] sm:$0xf] %vm5538_vm13, %v6304_v52 }
 0x51b   : > { %5765 = vst.msk [vmem:[%s10092_s29 + $0x40] sm:$0x3] %vm5540_vm14, %v6305_v25 }
 0x51c   : > { %5512 = vst.msk [vmem:[#allocation4 + $0x128] sm:$0xff] %vm3743_vm11, %v5473_v23 }
 0x51f   : > { %v5357_v7 = vld [vmem:[#allocation3 + $0x260] ss:$2 sm:$0xff]  ;;  %v5435_v9 = vld [vmem:[#allocation3 + $0x261] ss:$2 sm:$0xff] }
 0x520   : > { %v5474_v24 = vmax.f32 %v5357_v7, %v5435_v9 }
 0x522   : > { %5513 = vst.msk [vmem:[#allocation4 + $0x130] sm:$0xff] %vm3743_vm11, %v5474_v24 }
 0x523   : > { %v5767_v30 = vld [vmem:[#allocation4 + $0x126] sm:$0xf] }
 0x529   : > { %v5768_v35 = vld [vmem:[#allocation4 + $0x12b] sm:$0xff]  ;;  %v5769_v16 = vld [vmem:[#allocation4 + $0x133] sm:$0xf] }
 0x52a   : > { %v5770_v57 = vmax.f32 %v5766_v47, %v5768_v35  ;;  %v5771_v41 = vmax.f32 %v5767_v30, %v5769_v16 }
 0x52c   : > { %v5772_v59 = vadd.f32 %v10338_v54, %v5770_v57  ;;  %v5773_v37 = vadd.f32 %v10338_v54, %v5771_v41 }
 0x52e   : > { %v5774_v15 = vmax.f32 %v5772_v59, 0.0  ;;  %v5775_v32 = vmax.f32 %v5773_v37, 0.0 }
 0x530   : > { %v6306_v28 = vpack.c.bf16 %v5774_v15, %v5774_v15  ;;  %v6307_v50 = vpack.c.bf16 %v5775_v32, %v5775_v32 }
 0x532   : > { %v5782_v22 = vrot.slane %v6306_v28, 6  ;;  %v5784_v5 = vrot.slane %v6307_v50, 6 }
 0x534   : > { %v5783_v2 = vrot.slane %v5782_v22, 4  ;;  %5788 = vst.msk [vmem:[%s10092_s29 + $0x40] sm:$0xc] %vm5567_vm15, %v5782_v22 }
 0x536   : > { %v5785_v11 = vsel %vm10171_vm2, %v5783_v2, %v5784_v5 }
 0x537   : > { %5789 = vst.msk [vmem:[%s10092_s29 + $0x44] sm:$0xf] %vm5538_vm13, %v5785_v11 }
 0x538 PF: > { %s15_s18 = sadd.s32 1, %s7068_s18  }
 0x539   : > { %p12_p4 = scmp.ge.s32.totalorder %s15_s18, 4  }
 0x53b   :  { %14 = sbr.rel (!%p12_p4) target bundleno = 1 (0x1), region = 147 }

</bundles_post_ra>
